<compile_context>
chip_gen: v7x
topology: tpu7x:2x2x1
jax: 0.10.0
libtpu: 0.0.40
codegen_flags: <defaults>
</compile_context>

<pallas_src>
import functools

import jax
import jax.numpy as jnp
from jax.experimental import pallas as pl
from jax.experimental.pallas import tpu as pltpu

BN_EPS = 1e-5
_ROW_BLOCK = 256            # row-block size for the streamed BN stats/normalize passes


def _vmem():
    # whole array resident in VMEM (shapes here are small / fit comfortably)
    return pl.BlockSpec(memory_space=pltpu.MemorySpace.VMEM)


# --------------------------------------------------------------------------
# Fused 3-layer Conv1d(k=5, pad=2) + BatchNorm1d(train stats) + ReLU stack.
# Activations are ((T+4)*B, C) / (T*B, C) time-major-flat slabs, row = t*B+b.
# --------------------------------------------------------------------------
def conv_stack_kernel(x_ref, w1_ref, w2_ref, w3_ref,
                      g1_ref, be1_ref, g2_ref, be2_ref, g3_ref, be3_ref,
                      out_ref, a_scr, b_scr, acc_scr, *, n_batch, n_time):
    B, T = n_batch, n_time
    P = 2                        # conv padding (kernel 5, dilation 1)
    M = T * B                    # rows of one activation slab
    C = out_ref.shape[-1]        # 512
    inv_m = 1.0 / M

    def conv_bn_relu(src_ref, w_ref, gamma_ref, beta_ref, dst_ref, dst_off):
        # ---- 5 conv taps as a straight dot-accumulate chain (MRB-friendly) ----
        # Each tap reads a shifted row window straight off the Ref; flat
        # (T*B, Cin) @ (Cin, Cout) MXU matmuls (M = T*B).
        acc = jnp.dot(src_ref[0:M, :], w_ref[0],
                      preferred_element_type=jnp.float32)
        for k in range(1, 5):    # static taps
            acc = acc + jnp.dot(src_ref[k * B:(k + T) * B, :], w_ref[k],
                                preferred_element_type=jnp.float32)
        # NOTE: conv bias omitted — a per-channel constant cancels exactly in
        # the train-mode BatchNorm mean subtraction (PyTorch default mode).

        # ---- spill the pre-BN slab; only (1, C) statistics stay live ----
        acc_scr[...] = acc
        s1 = jnp.zeros((1, C), jnp.float32)
        s2 = jnp.zeros((1, C), jnp.float32)
        for r0 in range(0, M, _ROW_BLOCK):          # static row blocks
            r1 = min(r0 + _ROW_BLOCK, M)
            blk = acc_scr[r0:r1, :]
            ones = jnp.ones((1, r1 - r0), jnp.float32)
            # per-channel row sums on the MXU (negligible vs the 5 conv taps),
            # instead of cross-sublane VPU adds.
            s1 = s1 + jnp.dot(ones, blk, preferred_element_type=jnp.float32)
            s2 = s2 + jnp.dot(ones, blk * blk, preferred_element_type=jnp.float32)
        mean = s1 * inv_m
        var = s2 * inv_m - mean * mean               # Var = E[x^2] - E[x]^2
        scale = jax.lax.rsqrt(var + BN_EPS) * gamma_ref[...]
        shift = beta_ref[...] - mean * scale

        # ---- normalize + ReLU, re-streamed from the f32 scratch ----
        for r0 in range(0, M, _ROW_BLOCK):
            r1 = min(r0 + _ROW_BLOCK, M)
            y = jnp.maximum(acc_scr[r0:r1, :] * scale + shift, 0.0)   # BN + F.relu
            dst_ref[dst_off + r0:dst_off + r1, :] = y.astype(dst_ref.dtype)

    # zero the time-padding border rows of the inter-layer scratch buffers
    zb = jnp.zeros((P * B, C), a_scr.dtype)
    a_scr[0:P * B, :] = zb
    a_scr[(P + T) * B:(2 * P + T) * B, :] = zb
    b_scr[0:P * B, :] = zb
    b_scr[(P + T) * B:(2 * P + T) * B, :] = zb

    conv_bn_relu(x_ref, w1_ref, g1_ref, be1_ref, a_scr, P * B)   # stays in VMEM
    conv_bn_relu(a_scr, w2_ref, g2_ref, be2_ref, b_scr, P * B)   # stays in VMEM
    conv_bn_relu(b_scr, w3_ref, g3_ref, be3_ref, out_ref, 0)     # lane-dense (512)


def conv_stack(x2d_pad, ws, gs, bs, *, n_batch, n_time):
    B, T = n_batch, n_time
    C = ws[-1].shape[-1]
    kernel = functools.partial(conv_stack_kernel, n_batch=B, n_time=T)
    return pl.pallas_call(
        kernel,
        out_shape=jax.ShapeDtypeStruct((T * B, C), jnp.bfloat16),
        in_specs=[_vmem()] * 10,
        out_specs=_vmem(),
        scratch_shapes=[pltpu.VMEM(((T + 4) * B, C), jnp.bfloat16),
                        pltpu.VMEM(((T + 4) * B, C), jnp.bfloat16),
                        pltpu.VMEM((T * B, C), jnp.float32)],
        compiler_params=pltpu.CompilerParams(vmem_limit_bytes=32 * 1024 * 1024),
    )(x2d_pad, ws[0], ws[1], ws[2], gs[0], bs[0], gs[1], bs[1], gs[2], bs[2])


# --------------------------------------------------------------------------
# One bidirectional LSTM layer, fully fused:
#   projection  : (T*B, Cin) @ (Cin, 8H)  + bias  -> VMEM gate scratch
#   recurrence  : chunked time loop, one (2B, H) @ (H, 8H) recurrent matmul per
#                 step for BOTH directions, gate nonlinearities applied once on
#                 the row-stacked (2B, 4H) block, coalesced (chunk*B, H) output
#                 stores per direction per chunk.
# Output is a flat (T*B, 2H) slab: columns [0:H] forward, [H:2H] backward.
# --------------------------------------------------------------------------
def bilstm_layer_kernel(x_ref, wih_ref, bias_ref, whh_ref, out_ref, g_scr,
                        *, hidden, n_time, n_batch, chunk):
    T, B, H = n_time, n_batch, hidden
    CH = chunk
    CB = CH * B

    # ---- input projection (lane-dense N = 8H = 128), written to VMEM scratch ----
    # TODO(synk): row-tile this matmul with a grid at realistic T*B.
    g_scr[...] = (jnp.dot(x_ref[...], wih_ref[...],
                          preferred_element_type=jnp.float32) + bias_ref[...])

    whh = whh_ref[...]            # (H, 8H) = [whh_f | whh_b], f32

    def step(g_cat, c_cat):
        # g_cat (2B, 4H), c_cat (2B, H); rows [0:B] fwd, [B:2B] bwd.
        # torch.nn.LSTM gate order: i, f, g, o
        i = jax.nn.sigmoid(g_cat[:, 0:H])
        f = jax.nn.sigmoid(g_cat[:, H:2 * H])
        g = jnp.tanh(g_cat[:, 2 * H:3 * H])
        o = jax.nn.sigmoid(g_cat[:, 3 * H:4 * H])
        c_new = f * c_cat + i * g
        return o * jnp.tanh(c_new), c_new

    def chunk_body(c, carry):
        h_cat, c_cat = carry                                   # (2B, H) each
        f0 = pl.multiple_of(c * CB, CB)                        # fwd chunk row start
        b0 = pl.multiple_of((T - (c + 1) * CH) * B, CB)        # bwd chunk row start
        gf_chunk = g_scr[pl.ds(f0, CB), :]                     # (CB, 8H)
        gb_chunk = g_scr[pl.ds(b0, CB), :]
        hfs = []
        hbs = []
        for k in range(CH):                                    # static unroll (8)
            # one recurrent MXU matmul serves both directions
            rec = jnp.dot(h_cat, whh, preferred_element_type=jnp.float32)  # (2B, 8H)
            gf = gf_chunk[k * B:(k + 1) * B, 0:4 * H] + rec[0:B, 0:4 * H]
            gb = gb_chunk[(CH - 1 - k) * B:(CH - k) * B, 4 * H:8 * H] \
                + rec[B:2 * B, 4 * H:8 * H]
            h_cat, c_cat = step(jnp.concatenate([gf, gb], axis=0), c_cat)
            hfs.append(h_cat[0:B])
            hbs.append(h_cat[B:2 * B])
        # coalesced stores: one (CH*B, H) slab per direction per chunk
        out_ref[pl.ds(f0, CB), 0:H] = \
            jnp.concatenate(hfs, axis=0).astype(out_ref.dtype)
        out_ref[pl.ds(b0, CB), H:2 * H] = \
            jnp.concatenate(hbs[::-1], axis=0).astype(out_ref.dtype)
        return h_cat, c_cat

    z = jnp.zeros((2 * B, H), jnp.float32)
    jax.lax.fori_loop(0, T // CH, chunk_body, (z, z))


def bilstm_layer(x_flat, wih, bias, whh, *, hidden, n_time, n_batch, out_dtype):
    T, B, H = n_time, n_batch, hidden
    CH = max(c for c in (8, 4, 2, 1) if T % c == 0)
    kernel = functools.partial(bilstm_layer_kernel, hidden=H, n_time=T,
                               n_batch=B, chunk=CH)
    return pl.pallas_call(
        kernel,
        out_shape=jax.ShapeDtypeStruct((T * B, 2 * H), out_dtype),
        in_specs=[_vmem()] * 4,
        out_specs=_vmem(),
        scratch_shapes=[pltpu.VMEM((T * B, 8 * H), jnp.float32)],
        compiler_params=pltpu.CompilerParams(vmem_limit_bytes=16 * 1024 * 1024),
    )(x_flat, wih, bias, whh)


# ------------------------------- Encoder forward -------------------------------
def encoder_forward(x, params, dim_neck, freq):
    # x: (B, T, 80 + dim_emb), matching the PyTorch module input before its
    # internal transpose(2, 1).
    B, T, C0 = x.shape
    assert T % freq == 0, "T must be divisible by freq (matches torch indexing)"
    H = dim_neck

    # ---- fused conv stack (time-major flat slab, Cin padded to a 128 tile) ----
    cin_pad = ((C0 + 127) // 128) * 128
    xt = jnp.swapaxes(x, 0, 1)                                    # (T, B, C0)
    xt = jnp.pad(xt, ((2, 2), (0, 0), (0, cin_pad - C0)))         # time + channel pad
    x2d = xt.reshape((T + 4) * B, cin_pad).astype(jnp.bfloat16)

    ws, gs, bs = [], [], []
    for li, (w, g, b) in enumerate(params["convs"]):
        if li == 0 and w.shape[1] != cin_pad:
            w = jnp.pad(w, ((0, 0), (0, cin_pad - w.shape[1]), (0, 0)))
        ws.append(w.astype(jnp.bfloat16))
        gs.append(g)
        bs.append(b)
    act = conv_stack(x2d, ws, gs, bs, n_batch=B, n_time=T)        # (T*B, 512) bf16

    # ---- 2-layer bidirectional LSTM, hidden = dim_neck ----
    # TODO(synk): self.lstm.flatten_parameters() is a CUDA memory-layout no-op.
    h = act
    for layer in range(2):
        lp = params["lstm"][layer]
        wih_f, whh_f, bias_f = lp["fwd"]
        wih_b, whh_b, bias_b = lp["bwd"]
        wih = jnp.concatenate([wih_f, wih_b], axis=1).astype(jnp.bfloat16)  # (Cin, 8H)
        bias = jnp.concatenate([bias_f, bias_b], axis=1)                    # (1, 8H)
        whh = jnp.concatenate([whh_f, whh_b], axis=1)                       # (H, 8H)
        out_dtype = jnp.bfloat16 if layer == 0 else jnp.float32
        h = bilstm_layer(h, wih, bias, whh, hidden=H, n_time=T, n_batch=B,
                         out_dtype=out_dtype)                               # (T*B, 2H)

    # ---- downsampled codes: strided reshape instead of T/freq tiny slice+concat ----
    out = h.reshape(T, B, 2 * H).astype(jnp.float32)
    of = out[:, :, :H].reshape(T // freq, freq, B, H)
    ob = out[:, :, H:].reshape(T // freq, freq, B, H)
    codes = jnp.concatenate([of[:, -1], ob[:, 0]], axis=-1)       # (T//freq, B, 2H)
    return [codes[i] for i in range(T // freq)]


# ------------------------------- parameter init -------------------------------
def init_params(key, dim_neck, dim_emb):
    keys = list(jax.random.split(key, 8))
    ki = 0

    convs = []
    cin = 80 + dim_emb
    for _ in range(3):
        cout = 512
        gain = 2.0 ** 0.5                                    # calculate_gain('relu')
        limit = gain * (6.0 / (5 * cin + 5 * cout)) ** 0.5   # xavier_uniform
        w = jax.random.uniform(keys[ki], (5, cin, cout), jnp.float32, -limit, limit)
        ki += 1
        gamma = jnp.ones((1, cout), jnp.float32)    # BatchNorm weight
        beta = jnp.zeros((1, cout), jnp.float32)    # BatchNorm bias
        # Conv bias not materialized: exactly cancelled by train-mode BatchNorm.
        convs.append((w, gamma, beta))
        cin = 512

    lstm = []
    in_size = 512
    s = 1.0 / (dim_neck ** 0.5)
    for _ in range(2):
        layer_p = {}
        for d in ("fwd", "bwd"):
            k1, k2, k3 = jax.random.split(keys[ki], 3)
            ki += 1
            wih = jax.random.uniform(k1, (in_size, 4 * dim_neck), jnp.float32, -s, s)
            whh = jax.random.uniform(k2, (dim_neck, 4 * dim_neck), jnp.float32, -s, s)
            bias = jax.random.uniform(k3, (1, 4 * dim_neck), jnp.float32, -2 * s, 2 * s)
            layer_p[d] = (wih, whh, bias)   # combined bias = b_ih + b_hh
        lstm.append(layer_p)
        in_size = 2 * dim_neck

    return {"convs": convs, "lstm": lstm}


if __name__ == "__main__":
    dim_neck, dim_emb, freq = 16, 16, 4
    B, T = 2, 16

    key = jax.random.PRNGKey(0)
    kx, kp = jax.random.split(key)
    x = jax.random.normal(kx, (B, T, 80 + dim_emb), jnp.float32)
    params = init_params(kp, dim_neck, dim_emb)

    fwd = jax.jit(functools.partial(encoder_forward, dim_neck=dim_neck, freq=freq))
    codes = fwd(x, params)
    stacked = jax.block_until_ready(jnp.stack(codes, axis=0))

    assert stacked.shape == (T // freq, B, 2 * dim_neck), stacked.shape
    assert bool(jnp.all(jnp.isfinite(stacked)))
    print("KERNEL_OK")
</pallas_src>

<mosaic_0001>
module attributes {stable_mosaic.version = 11 : i64} {
  func.func @conv_stack_kernel(%arg0: memref<40x128xbf16, #tpu.memory_space<vmem>>, %arg1: memref<5x128x512xbf16, #tpu.memory_space<vmem>>, %arg2: memref<5x512x512xbf16, #tpu.memory_space<vmem>>, %arg3: memref<5x512x512xbf16, #tpu.memory_space<vmem>>, %arg4: memref<1x512xf32, #tpu.memory_space<vmem>>, %arg5: memref<1x512xf32, #tpu.memory_space<vmem>>, %arg6: memref<1x512xf32, #tpu.memory_space<vmem>>, %arg7: memref<1x512xf32, #tpu.memory_space<vmem>>, %arg8: memref<1x512xf32, #tpu.memory_space<vmem>>, %arg9: memref<1x512xf32, #tpu.memory_space<vmem>>, %arg10: memref<32x512xbf16, #tpu.memory_space<vmem>>, %arg11: memref<40x512xbf16, #tpu.memory_space<vmem>>, %arg12: memref<40x512xbf16, #tpu.memory_space<vmem>>, %arg13: memref<32x512xf32, #tpu.memory_space<vmem>>) attributes {dimension_semantics = [], scalar_prefetch = 0 : i64, scratch_operands = 3 : i64, tpu.core_type = #tpu.core_type<tc>} {
    %cst = arith.constant 0.000000e+00 : bf16
    %0 = vector.broadcast %cst : bf16 to vector<4x512xbf16>
    %c0 = arith.constant 0 : index
    %c0_0 = arith.constant 0 : index
    %1 = vector.load %arg11[%c0, %c0_0] : memref<40x512xbf16, #tpu.memory_space<vmem>>, vector<4x512xbf16>
    tpu.vector_store %arg11[%c0, %c0_0], %0 {strides = array<i32>} : memref<40x512xbf16, #tpu.memory_space<vmem>>, vector<4x512xbf16>,
    %c36 = arith.constant 36 : index
    %c0_1 = arith.constant 0 : index
    %2 = vector.load %arg11[%c36, %c0_1] : memref<40x512xbf16, #tpu.memory_space<vmem>>, vector<4x512xbf16>
    tpu.vector_store %arg11[%c36, %c0_1], %0 {strides = array<i32>} : memref<40x512xbf16, #tpu.memory_space<vmem>>, vector<4x512xbf16>,
    %c0_2 = arith.constant 0 : index
    %c0_3 = arith.constant 0 : index
    %3 = vector.load %arg12[%c0_2, %c0_3] : memref<40x512xbf16, #tpu.memory_space<vmem>>, vector<4x512xbf16>
    tpu.vector_store %arg12[%c0_2, %c0_3], %0 {strides = array<i32>} : memref<40x512xbf16, #tpu.memory_space<vmem>>, vector<4x512xbf16>,
    %c36_4 = arith.constant 36 : index
    %c0_5 = arith.constant 0 : index
    %4 = vector.load %arg12[%c36_4, %c0_5] : memref<40x512xbf16, #tpu.memory_space<vmem>>, vector<4x512xbf16>
    tpu.vector_store %arg12[%c36_4, %c0_5], %0 {strides = array<i32>} : memref<40x512xbf16, #tpu.memory_space<vmem>>, vector<4x512xbf16>,
    %c0_6 = arith.constant 0 : index
    %c0_7 = arith.constant 0 : index
    %5 = vector.load %arg0[%c0_6, %c0_7] : memref<40x128xbf16, #tpu.memory_space<vmem>>, vector<32x128xbf16>
    %c0_8 = arith.constant 0 : index
    %c0_9 = arith.constant 0 : index
    %c0_10 = arith.constant 0 : index
    %6 = vector.load %arg1[%c0_8, %c0_9, %c0_10] : memref<5x128x512xbf16, #tpu.memory_space<vmem>>, vector<1x128x512xbf16>
    %7 = vector.shape_cast %6 : vector<1x128x512xbf16> to vector<128x512xbf16>
    %cst_11 = arith.constant dense<0.000000e+00> : vector<32x512xf32>
    %8 = tpu.matmul %5, %7, %cst_11 {dimension_numbers = #tpu.dot_dimension_numbers<[1], [0], [0], [1], [0, 0, 1, 1], [], []>} : vector<32x128xbf16>, vector<128x512xbf16>, vector<32x512xf32> -> vector<32x512xf32>
    %c2 = arith.constant 2 : index
    %c0_12 = arith.constant 0 : index
    %9 = vector.load %arg0[%c2, %c0_12] : memref<40x128xbf16, #tpu.memory_space<vmem>>, vector<32x128xbf16>
    %c1 = arith.constant 1 : index
    %c0_13 = arith.constant 0 : index
    %c0_14 = arith.constant 0 : index
    %10 = vector.load %arg1[%c1, %c0_13, %c0_14] : memref<5x128x512xbf16, #tpu.memory_space<vmem>>, vector<1x128x512xbf16>
    %11 = vector.shape_cast %10 : vector<1x128x512xbf16> to vector<128x512xbf16>
    %cst_15 = arith.constant dense<0.000000e+00> : vector<32x512xf32>
    %12 = tpu.matmul %9, %11, %cst_15 {dimension_numbers = #tpu.dot_dimension_numbers<[1], [0], [0], [1], [0, 0, 1, 1], [], []>} : vector<32x128xbf16>, vector<128x512xbf16>, vector<32x512xf32> -> vector<32x512xf32>
    %13 = arith.addf %8, %12 : vector<32x512xf32>
    %c4 = arith.constant 4 : index
    %c0_16 = arith.constant 0 : index
    %14 = vector.load %arg0[%c4, %c0_16] : memref<40x128xbf16, #tpu.memory_space<vmem>>, vector<32x128xbf16>
    %c2_17 = arith.constant 2 : index
    %c0_18 = arith.constant 0 : index
    %c0_19 = arith.constant 0 : index
    %15 = vector.load %arg1[%c2_17, %c0_18, %c0_19] : memref<5x128x512xbf16, #tpu.memory_space<vmem>>, vector<1x128x512xbf16>
    %16 = vector.shape_cast %15 : vector<1x128x512xbf16> to vector<128x512xbf16>
    %cst_20 = arith.constant dense<0.000000e+00> : vector<32x512xf32>
    %17 = tpu.matmul %14, %16, %cst_20 {dimension_numbers = #tpu.dot_dimension_numbers<[1], [0], [0], [1], [0, 0, 1, 1], [], []>} : vector<32x128xbf16>, vector<128x512xbf16>, vector<32x512xf32> -> vector<32x512xf32>
    %18 = arith.addf %13, %17 : vector<32x512xf32>
    %c6 = arith.constant 6 : index
    %c0_21 = arith.constant 0 : index
    %19 = vector.load %arg0[%c6, %c0_21] : memref<40x128xbf16, #tpu.memory_space<vmem>>, vector<32x128xbf16>
    %c3 = arith.constant 3 : index
    %c0_22 = arith.constant 0 : index
    %c0_23 = arith.constant 0 : index
    %20 = vector.load %arg1[%c3, %c0_22, %c0_23] : memref<5x128x512xbf16, #tpu.memory_space<vmem>>, vector<1x128x512xbf16>
    %21 = vector.shape_cast %20 : vector<1x128x512xbf16> to vector<128x512xbf16>
    %cst_24 = arith.constant dense<0.000000e+00> : vector<32x512xf32>
    %22 = tpu.matmul %19, %21, %cst_24 {dimension_numbers = #tpu.dot_dimension_numbers<[1], [0], [0], [1], [0, 0, 1, 1], [], []>} : vector<32x128xbf16>, vector<128x512xbf16>, vector<32x512xf32> -> vector<32x512xf32>
    %23 = arith.addf %18, %22 : vector<32x512xf32>
    %c8 = arith.constant 8 : index
    %c0_25 = arith.constant 0 : index
    %24 = vector.load %arg0[%c8, %c0_25] : memref<40x128xbf16, #tpu.memory_space<vmem>>, vector<32x128xbf16>
    %c4_26 = arith.constant 4 : index
    %c0_27 = arith.constant 0 : index
    %c0_28 = arith.constant 0 : index
    %25 = vector.load %arg1[%c4_26, %c0_27, %c0_28] : memref<5x128x512xbf16, #tpu.memory_space<vmem>>, vector<1x128x512xbf16>
    %26 = vector.shape_cast %25 : vector<1x128x512xbf16> to vector<128x512xbf16>
    %cst_29 = arith.constant dense<0.000000e+00> : vector<32x512xf32>
    %27 = tpu.matmul %24, %26, %cst_29 {dimension_numbers = #tpu.dot_dimension_numbers<[1], [0], [0], [1], [0, 0, 1, 1], [], []>} : vector<32x128xbf16>, vector<128x512xbf16>, vector<32x512xf32> -> vector<32x512xf32>
    %28 = arith.addf %23, %27 : vector<32x512xf32>
    %c0_30 = arith.constant 0 : index
    %c0_31 = arith.constant 0 : index
    %29 = vector.load %arg13[%c0_30, %c0_31] : memref<32x512xf32, #tpu.memory_space<vmem>>, vector<32x512xf32>
    tpu.vector_store %arg13[%c0_30, %c0_31], %28 {strides = array<i32>} : memref<32x512xf32, #tpu.memory_space<vmem>>, vector<32x512xf32>,
    %cst_32 = arith.constant 0.000000e+00 : f32
    %30 = vector.broadcast %cst_32 : f32 to vector<1x512xf32>
    %cst_33 = arith.constant 0.000000e+00 : f32
    %31 = vector.broadcast %cst_33 : f32 to vector<1x512xf32>
    %c0_34 = arith.constant 0 : index
    %c0_35 = arith.constant 0 : index
    %32 = vector.load %arg13[%c0_34, %c0_35] : memref<32x512xf32, #tpu.memory_space<vmem>>, vector<32x512xf32>
    %cst_36 = arith.constant 1.000000e+00 : f32
    %33 = vector.broadcast %cst_36 : f32 to vector<1x32xf32>
    %cst_37 = arith.constant dense<0.000000e+00> : vector<1x512xf32>
    %34 = tpu.matmul %33, %32, %cst_37 {dimension_numbers = #tpu.dot_dimension_numbers<[1], [0], [0], [1], [0, 0, 1, 1], [], []>} : vector<1x32xf32>, vector<32x512xf32>, vector<1x512xf32> -> vector<1x512xf32>
    %35 = arith.addf %30, %34 : vector<1x512xf32>
    %36 = arith.mulf %32, %32 : vector<32x512xf32>
    %cst_38 = arith.constant dense<0.000000e+00> : vector<1x512xf32>
    %37 = tpu.matmul %33, %36, %cst_38 {dimension_numbers = #tpu.dot_dimension_numbers<[1], [0], [0], [1], [0, 0, 1, 1], [], []>} : vector<1x32xf32>, vector<32x512xf32>, vector<1x512xf32> -> vector<1x512xf32>
    %38 = arith.addf %31, %37 : vector<1x512xf32>
    %cst_39 = arith.constant 3.125000e-02 : f32
    %39 = vector.broadcast %cst_39 : f32 to vector<1x512xf32>
    %40 = arith.mulf %35, %39 : vector<1x512xf32>
    %cst_40 = arith.constant 3.125000e-02 : f32
    %41 = vector.broadcast %cst_40 : f32 to vector<1x512xf32>
    %42 = arith.mulf %38, %41 : vector<1x512xf32>
    %43 = arith.mulf %40, %40 : vector<1x512xf32>
    %44 = arith.subf %42, %43 : vector<1x512xf32>
    %cst_41 = arith.constant 9.99999974E-6 : f32
    %45 = vector.broadcast %cst_41 : f32 to vector<1x512xf32>
    %46 = arith.addf %44, %45 : vector<1x512xf32>
    %47 = math.rsqrt %46 : vector<1x512xf32>
    %c0_42 = arith.constant 0 : index
    %c0_43 = arith.constant 0 : index
    %48 = vector.load %arg4[%c0_42, %c0_43] : memref<1x512xf32, #tpu.memory_space<vmem>>, vector<1x512xf32>
    %49 = arith.mulf %47, %48 : vector<1x512xf32>
    %c0_44 = arith.constant 0 : index
    %c0_45 = arith.constant 0 : index
    %50 = vector.load %arg5[%c0_44, %c0_45] : memref<1x512xf32, #tpu.memory_space<vmem>>, vector<1x512xf32>
    %51 = arith.mulf %40, %49 : vector<1x512xf32>
    %52 = arith.subf %50, %51 : vector<1x512xf32>
    %c0_46 = arith.constant 0 : index
    %c0_47 = arith.constant 0 : index
    %53 = vector.load %arg13[%c0_46, %c0_47] : memref<32x512xf32, #tpu.memory_space<vmem>>, vector<32x512xf32>
    %54 = vector.broadcast %49 : vector<1x512xf32> to vector<32x512xf32>
    %55 = arith.mulf %53, %54 : vector<32x512xf32>
    %56 = vector.broadcast %52 : vector<1x512xf32> to vector<32x512xf32>
    %57 = arith.addf %55, %56 : vector<32x512xf32>
    %cst_48 = arith.constant 0.000000e+00 : f32
    %58 = vector.broadcast %cst_48 : f32 to vector<32x512xf32>
    %59 = arith.maximumf %57, %58 : vector<32x512xf32>
    %60 = arith.truncf %59 : vector<32x512xf32> to vector<32x512xbf16>
    %c4_49 = arith.constant 4 : index
    %c0_50 = arith.constant 0 : index
    %61 = vector.load %arg11[%c4_49, %c0_50] : memref<40x512xbf16, #tpu.memory_space<vmem>>, vector<32x512xbf16>
    tpu.vector_store %arg11[%c4_49, %c0_50], %60 {strides = array<i32>} : memref<40x512xbf16, #tpu.memory_space<vmem>>, vector<32x512xbf16>,
    %c0_51 = arith.constant 0 : index
    %c0_52 = arith.constant 0 : index
    %62 = vector.load %arg11[%c0_51, %c0_52] : memref<40x512xbf16, #tpu.memory_space<vmem>>, vector<32x512xbf16>
    %c0_53 = arith.constant 0 : index
    %c0_54 = arith.constant 0 : index
    %c0_55 = arith.constant 0 : index
    %63 = vector.load %arg2[%c0_53, %c0_54, %c0_55] : memref<5x512x512xbf16, #tpu.memory_space<vmem>>, vector<1x512x512xbf16>
    %64 = vector.shape_cast %63 : vector<1x512x512xbf16> to vector<512x512xbf16>
    %cst_56 = arith.constant dense<0.000000e+00> : vector<32x512xf32>
    %65 = tpu.matmul %62, %64, %cst_56 {dimension_numbers = #tpu.dot_dimension_numbers<[1], [0], [0], [1], [0, 0, 1, 1], [], []>} : vector<32x512xbf16>, vector<512x512xbf16>, vector<32x512xf32> -> vector<32x512xf32>
    %c2_57 = arith.constant 2 : index
    %c0_58 = arith.constant 0 : index
    %66 = vector.load %arg11[%c2_57, %c0_58] : memref<40x512xbf16, #tpu.memory_space<vmem>>, vector<32x512xbf16>
    %c1_59 = arith.constant 1 : index
    %c0_60 = arith.constant 0 : index
    %c0_61 = arith.constant 0 : index
    %67 = vector.load %arg2[%c1_59, %c0_60, %c0_61] : memref<5x512x512xbf16, #tpu.memory_space<vmem>>, vector<1x512x512xbf16>
    %68 = vector.shape_cast %67 : vector<1x512x512xbf16> to vector<512x512xbf16>
    %cst_62 = arith.constant dense<0.000000e+00> : vector<32x512xf32>
    %69 = tpu.matmul %66, %68, %cst_62 {dimension_numbers = #tpu.dot_dimension_numbers<[1], [0], [0], [1], [0, 0, 1, 1], [], []>} : vector<32x512xbf16>, vector<512x512xbf16>, vector<32x512xf32> -> vector<32x512xf32>
    %70 = arith.addf %65, %69 : vector<32x512xf32>
    %c4_63 = arith.constant 4 : index
    %c0_64 = arith.constant 0 : index
    %71 = vector.load %arg11[%c4_63, %c0_64] : memref<40x512xbf16, #tpu.memory_space<vmem>>, vector<32x512xbf16>
    %c2_65 = arith.constant 2 : index
    %c0_66 = arith.constant 0 : index
    %c0_67 = arith.constant 0 : index
    %72 = vector.load %arg2[%c2_65, %c0_66, %c0_67] : memref<5x512x512xbf16, #tpu.memory_space<vmem>>, vector<1x512x512xbf16>
    %73 = vector.shape_cast %72 : vector<1x512x512xbf16> to vector<512x512xbf16>
    %cst_68 = arith.constant dense<0.000000e+00> : vector<32x512xf32>
    %74 = tpu.matmul %71, %73, %cst_68 {dimension_numbers = #tpu.dot_dimension_numbers<[1], [0], [0], [1], [0, 0, 1, 1], [], []>} : vector<32x512xbf16>, vector<512x512xbf16>, vector<32x512xf32> -> vector<32x512xf32>
    %75 = arith.addf %70, %74 : vector<32x512xf32>
    %c6_69 = arith.constant 6 : index
    %c0_70 = arith.constant 0 : index
    %76 = vector.load %arg11[%c6_69, %c0_70] : memref<40x512xbf16, #tpu.memory_space<vmem>>, vector<32x512xbf16>
    %c3_71 = arith.constant 3 : index
    %c0_72 = arith.constant 0 : index
    %c0_73 = arith.constant 0 : index
    %77 = vector.load %arg2[%c3_71, %c0_72, %c0_73] : memref<5x512x512xbf16, #tpu.memory_space<vmem>>, vector<1x512x512xbf16>
    %78 = vector.shape_cast %77 : vector<1x512x512xbf16> to vector<512x512xbf16>
    %cst_74 = arith.constant dense<0.000000e+00> : vector<32x512xf32>
    %79 = tpu.matmul %76, %78, %cst_74 {dimension_numbers = #tpu.dot_dimension_numbers<[1], [0], [0], [1], [0, 0, 1, 1], [], []>} : vector<32x512xbf16>, vector<512x512xbf16>, vector<32x512xf32> -> vector<32x512xf32>
    %80 = arith.addf %75, %79 : vector<32x512xf32>
    %c8_75 = arith.constant 8 : index
    %c0_76 = arith.constant 0 : index
    %81 = vector.load %arg11[%c8_75, %c0_76] : memref<40x512xbf16, #tpu.memory_space<vmem>>, vector<32x512xbf16>
    %c4_77 = arith.constant 4 : index
    %c0_78 = arith.constant 0 : index
    %c0_79 = arith.constant 0 : index
    %82 = vector.load %arg2[%c4_77, %c0_78, %c0_79] : memref<5x512x512xbf16, #tpu.memory_space<vmem>>, vector<1x512x512xbf16>
    %83 = vector.shape_cast %82 : vector<1x512x512xbf16> to vector<512x512xbf16>
    %cst_80 = arith.constant dense<0.000000e+00> : vector<32x512xf32>
    %84 = tpu.matmul %81, %83, %cst_80 {dimension_numbers = #tpu.dot_dimension_numbers<[1], [0], [0], [1], [0, 0, 1, 1], [], []>} : vector<32x512xbf16>, vector<512x512xbf16>, vector<32x512xf32> -> vector<32x512xf32>
    %85 = arith.addf %80, %84 : vector<32x512xf32>
    %c0_81 = arith.constant 0 : index
    %c0_82 = arith.constant 0 : index
    %86 = vector.load %arg13[%c0_81, %c0_82] : memref<32x512xf32, #tpu.memory_space<vmem>>, vector<32x512xf32>
    tpu.vector_store %arg13[%c0_81, %c0_82], %85 {strides = array<i32>} : memref<32x512xf32, #tpu.memory_space<vmem>>, vector<32x512xf32>,
    %cst_83 = arith.constant 0.000000e+00 : f32
    %87 = vector.broadcast %cst_83 : f32 to vector<1x512xf32>
    %cst_84 = arith.constant 0.000000e+00 : f32
    %88 = vector.broadcast %cst_84 : f32 to vector<1x512xf32>
    %c0_85 = arith.constant 0 : index
    %c0_86 = arith.constant 0 : index
    %89 = vector.load %arg13[%c0_85, %c0_86] : memref<32x512xf32, #tpu.memory_space<vmem>>, vector<32x512xf32>
    %cst_87 = arith.constant 1.000000e+00 : f32
    %90 = vector.broadcast %cst_87 : f32 to vector<1x32xf32>
    %cst_88 = arith.constant dense<0.000000e+00> : vector<1x512xf32>
    %91 = tpu.matmul %90, %89, %cst_88 {dimension_numbers = #tpu.dot_dimension_numbers<[1], [0], [0], [1], [0, 0, 1, 1], [], []>} : vector<1x32xf32>, vector<32x512xf32>, vector<1x512xf32> -> vector<1x512xf32>
    %92 = arith.addf %87, %91 : vector<1x512xf32>
    %93 = arith.mulf %89, %89 : vector<32x512xf32>
    %cst_89 = arith.constant dense<0.000000e+00> : vector<1x512xf32>
    %94 = tpu.matmul %90, %93, %cst_89 {dimension_numbers = #tpu.dot_dimension_numbers<[1], [0], [0], [1], [0, 0, 1, 1], [], []>} : vector<1x32xf32>, vector<32x512xf32>, vector<1x512xf32> -> vector<1x512xf32>
    %95 = arith.addf %88, %94 : vector<1x512xf32>
    %cst_90 = arith.constant 3.125000e-02 : f32
    %96 = vector.broadcast %cst_90 : f32 to vector<1x512xf32>
    %97 = arith.mulf %92, %96 : vector<1x512xf32>
    %cst_91 = arith.constant 3.125000e-02 : f32
    %98 = vector.broadcast %cst_91 : f32 to vector<1x512xf32>
    %99 = arith.mulf %95, %98 : vector<1x512xf32>
    %100 = arith.mulf %97, %97 : vector<1x512xf32>
    %101 = arith.subf %99, %100 : vector<1x512xf32>
    %cst_92 = arith.constant 9.99999974E-6 : f32
    %102 = vector.broadcast %cst_92 : f32 to vector<1x512xf32>
    %103 = arith.addf %101, %102 : vector<1x512xf32>
    %104 = math.rsqrt %103 : vector<1x512xf32>
    %c0_93 = arith.constant 0 : index
    %c0_94 = arith.constant 0 : index
    %105 = vector.load %arg6[%c0_93, %c0_94] : memref<1x512xf32, #tpu.memory_space<vmem>>, vector<1x512xf32>
    %106 = arith.mulf %104, %105 : vector<1x512xf32>
    %c0_95 = arith.constant 0 : index
    %c0_96 = arith.constant 0 : index
    %107 = vector.load %arg7[%c0_95, %c0_96] : memref<1x512xf32, #tpu.memory_space<vmem>>, vector<1x512xf32>
    %108 = arith.mulf %97, %106 : vector<1x512xf32>
    %109 = arith.subf %107, %108 : vector<1x512xf32>
    %c0_97 = arith.constant 0 : index
    %c0_98 = arith.constant 0 : index
    %110 = vector.load %arg13[%c0_97, %c0_98] : memref<32x512xf32, #tpu.memory_space<vmem>>, vector<32x512xf32>
    %111 = vector.broadcast %106 : vector<1x512xf32> to vector<32x512xf32>
    %112 = arith.mulf %110, %111 : vector<32x512xf32>
    %113 = vector.broadcast %109 : vector<1x512xf32> to vector<32x512xf32>
    %114 = arith.addf %112, %113 : vector<32x512xf32>
    %cst_99 = arith.constant 0.000000e+00 : f32
    %115 = vector.broadcast %cst_99 : f32 to vector<32x512xf32>
    %116 = arith.maximumf %114, %115 : vector<32x512xf32>
    %117 = arith.truncf %116 : vector<32x512xf32> to vector<32x512xbf16>
    %c4_100 = arith.constant 4 : index
    %c0_101 = arith.constant 0 : index
    %118 = vector.load %arg12[%c4_100, %c0_101] : memref<40x512xbf16, #tpu.memory_space<vmem>>, vector<32x512xbf16>
    tpu.vector_store %arg12[%c4_100, %c0_101], %117 {strides = array<i32>} : memref<40x512xbf16, #tpu.memory_space<vmem>>, vector<32x512xbf16>,
    %c0_102 = arith.constant 0 : index
    %c0_103 = arith.constant 0 : index
    %119 = vector.load %arg12[%c0_102, %c0_103] : memref<40x512xbf16, #tpu.memory_space<vmem>>, vector<32x512xbf16>
    %c0_104 = arith.constant 0 : index
    %c0_105 = arith.constant 0 : index
    %c0_106 = arith.constant 0 : index
    %120 = vector.load %arg3[%c0_104, %c0_105, %c0_106] : memref<5x512x512xbf16, #tpu.memory_space<vmem>>, vector<1x512x512xbf16>
    %121 = vector.shape_cast %120 : vector<1x512x512xbf16> to vector<512x512xbf16>
    %cst_107 = arith.constant dense<0.000000e+00> : vector<32x512xf32>
    %122 = tpu.matmul %119, %121, %cst_107 {dimension_numbers = #tpu.dot_dimension_numbers<[1], [0], [0], [1], [0, 0, 1, 1], [], []>} : vector<32x512xbf16>, vector<512x512xbf16>, vector<32x512xf32> -> vector<32x512xf32>
    %c2_108 = arith.constant 2 : index
    %c0_109 = arith.constant 0 : index
    %123 = vector.load %arg12[%c2_108, %c0_109] : memref<40x512xbf16, #tpu.memory_space<vmem>>, vector<32x512xbf16>
    %c1_110 = arith.constant 1 : index
    %c0_111 = arith.constant 0 : index
    %c0_112 = arith.constant 0 : index
    %124 = vector.load %arg3[%c1_110, %c0_111, %c0_112] : memref<5x512x512xbf16, #tpu.memory_space<vmem>>, vector<1x512x512xbf16>
    %125 = vector.shape_cast %124 : vector<1x512x512xbf16> to vector<512x512xbf16>
    %cst_113 = arith.constant dense<0.000000e+00> : vector<32x512xf32>
    %126 = tpu.matmul %123, %125, %cst_113 {dimension_numbers = #tpu.dot_dimension_numbers<[1], [0], [0], [1], [0, 0, 1, 1], [], []>} : vector<32x512xbf16>, vector<512x512xbf16>, vector<32x512xf32> -> vector<32x512xf32>
    %127 = arith.addf %122, %126 : vector<32x512xf32>
    %c4_114 = arith.constant 4 : index
    %c0_115 = arith.constant 0 : index
    %128 = vector.load %arg12[%c4_114, %c0_115] : memref<40x512xbf16, #tpu.memory_space<vmem>>, vector<32x512xbf16>
    %c2_116 = arith.constant 2 : index
    %c0_117 = arith.constant 0 : index
    %c0_118 = arith.constant 0 : index
    %129 = vector.load %arg3[%c2_116, %c0_117, %c0_118] : memref<5x512x512xbf16, #tpu.memory_space<vmem>>, vector<1x512x512xbf16>
    %130 = vector.shape_cast %129 : vector<1x512x512xbf16> to vector<512x512xbf16>
    %cst_119 = arith.constant dense<0.000000e+00> : vector<32x512xf32>
    %131 = tpu.matmul %128, %130, %cst_119 {dimension_numbers = #tpu.dot_dimension_numbers<[1], [0], [0], [1], [0, 0, 1, 1], [], []>} : vector<32x512xbf16>, vector<512x512xbf16>, vector<32x512xf32> -> vector<32x512xf32>
    %132 = arith.addf %127, %131 : vector<32x512xf32>
    %c6_120 = arith.constant 6 : index
    %c0_121 = arith.constant 0 : index
    %133 = vector.load %arg12[%c6_120, %c0_121] : memref<40x512xbf16, #tpu.memory_space<vmem>>, vector<32x512xbf16>
    %c3_122 = arith.constant 3 : index
    %c0_123 = arith.constant 0 : index
    %c0_124 = arith.constant 0 : index
    %134 = vector.load %arg3[%c3_122, %c0_123, %c0_124] : memref<5x512x512xbf16, #tpu.memory_space<vmem>>, vector<1x512x512xbf16>
    %135 = vector.shape_cast %134 : vector<1x512x512xbf16> to vector<512x512xbf16>
    %cst_125 = arith.constant dense<0.000000e+00> : vector<32x512xf32>
    %136 = tpu.matmul %133, %135, %cst_125 {dimension_numbers = #tpu.dot_dimension_numbers<[1], [0], [0], [1], [0, 0, 1, 1], [], []>} : vector<32x512xbf16>, vector<512x512xbf16>, vector<32x512xf32> -> vector<32x512xf32>
    %137 = arith.addf %132, %136 : vector<32x512xf32>
    %c8_126 = arith.constant 8 : index
    %c0_127 = arith.constant 0 : index
    %138 = vector.load %arg12[%c8_126, %c0_127] : memref<40x512xbf16, #tpu.memory_space<vmem>>, vector<32x512xbf16>
    %c4_128 = arith.constant 4 : index
    %c0_129 = arith.constant 0 : index
    %c0_130 = arith.constant 0 : index
    %139 = vector.load %arg3[%c4_128, %c0_129, %c0_130] : memref<5x512x512xbf16, #tpu.memory_space<vmem>>, vector<1x512x512xbf16>
    %140 = vector.shape_cast %139 : vector<1x512x512xbf16> to vector<512x512xbf16>
    %cst_131 = arith.constant dense<0.000000e+00> : vector<32x512xf32>
    %141 = tpu.matmul %138, %140, %cst_131 {dimension_numbers = #tpu.dot_dimension_numbers<[1], [0], [0], [1], [0, 0, 1, 1], [], []>} : vector<32x512xbf16>, vector<512x512xbf16>, vector<32x512xf32> -> vector<32x512xf32>
    %142 = arith.addf %137, %141 : vector<32x512xf32>
    %c0_132 = arith.constant 0 : index
    %c0_133 = arith.constant 0 : index
    %143 = vector.load %arg13[%c0_132, %c0_133] : memref<32x512xf32, #tpu.memory_space<vmem>>, vector<32x512xf32>
    tpu.vector_store %arg13[%c0_132, %c0_133], %142 {strides = array<i32>} : memref<32x512xf32, #tpu.memory_space<vmem>>, vector<32x512xf32>,
    %cst_134 = arith.constant 0.000000e+00 : f32
    %144 = vector.broadcast %cst_134 : f32 to vector<1x512xf32>
    %cst_135 = arith.constant 0.000000e+00 : f32
    %145 = vector.broadcast %cst_135 : f32 to vector<1x512xf32>
    %c0_136 = arith.constant 0 : index
    %c0_137 = arith.constant 0 : index
    %146 = vector.load %arg13[%c0_136, %c0_137] : memref<32x512xf32, #tpu.memory_space<vmem>>, vector<32x512xf32>
    %cst_138 = arith.constant 1.000000e+00 : f32
    %147 = vector.broadcast %cst_138 : f32 to vector<1x32xf32>
    %cst_139 = arith.constant dense<0.000000e+00> : vector<1x512xf32>
    %148 = tpu.matmul %147, %146, %cst_139 {dimension_numbers = #tpu.dot_dimension_numbers<[1], [0], [0], [1], [0, 0, 1, 1], [], []>} : vector<1x32xf32>, vector<32x512xf32>, vector<1x512xf32> -> vector<1x512xf32>
    %149 = arith.addf %144, %148 : vector<1x512xf32>
    %150 = arith.mulf %146, %146 : vector<32x512xf32>
    %cst_140 = arith.constant dense<0.000000e+00> : vector<1x512xf32>
    %151 = tpu.matmul %147, %150, %cst_140 {dimension_numbers = #tpu.dot_dimension_numbers<[1], [0], [0], [1], [0, 0, 1, 1], [], []>} : vector<1x32xf32>, vector<32x512xf32>, vector<1x512xf32> -> vector<1x512xf32>
    %152 = arith.addf %145, %151 : vector<1x512xf32>
    %cst_141 = arith.constant 3.125000e-02 : f32
    %153 = vector.broadcast %cst_141 : f32 to vector<1x512xf32>
    %154 = arith.mulf %149, %153 : vector<1x512xf32>
    %cst_142 = arith.constant 3.125000e-02 : f32
    %155 = vector.broadcast %cst_142 : f32 to vector<1x512xf32>
    %156 = arith.mulf %152, %155 : vector<1x512xf32>
    %157 = arith.mulf %154, %154 : vector<1x512xf32>
    %158 = arith.subf %156, %157 : vector<1x512xf32>
    %cst_143 = arith.constant 9.99999974E-6 : f32
    %159 = vector.broadcast %cst_143 : f32 to vector<1x512xf32>
    %160 = arith.addf %158, %159 : vector<1x512xf32>
    %161 = math.rsqrt %160 : vector<1x512xf32>
    %c0_144 = arith.constant 0 : index
    %c0_145 = arith.constant 0 : index
    %162 = vector.load %arg8[%c0_144, %c0_145] : memref<1x512xf32, #tpu.memory_space<vmem>>, vector<1x512xf32>
    %163 = arith.mulf %161, %162 : vector<1x512xf32>
    %c0_146 = arith.constant 0 : index
    %c0_147 = arith.constant 0 : index
    %164 = vector.load %arg9[%c0_146, %c0_147] : memref<1x512xf32, #tpu.memory_space<vmem>>, vector<1x512xf32>
    %165 = arith.mulf %154, %163 : vector<1x512xf32>
    %166 = arith.subf %164, %165 : vector<1x512xf32>
    %c0_148 = arith.constant 0 : index
    %c0_149 = arith.constant 0 : index
    %167 = vector.load %arg13[%c0_148, %c0_149] : memref<32x512xf32, #tpu.memory_space<vmem>>, vector<32x512xf32>
    %168 = vector.broadcast %163 : vector<1x512xf32> to vector<32x512xf32>
    %169 = arith.mulf %167, %168 : vector<32x512xf32>
    %170 = vector.broadcast %166 : vector<1x512xf32> to vector<32x512xf32>
    %171 = arith.addf %169, %170 : vector<32x512xf32>
    %cst_150 = arith.constant 0.000000e+00 : f32
    %172 = vector.broadcast %cst_150 : f32 to vector<32x512xf32>
    %173 = arith.maximumf %171, %172 : vector<32x512xf32>
    %174 = arith.truncf %173 : vector<32x512xf32> to vector<32x512xbf16>
    %c0_151 = arith.constant 0 : index
    %c0_152 = arith.constant 0 : index
    %175 = vector.load %arg10[%c0_151, %c0_152] : memref<32x512xbf16, #tpu.memory_space<vmem>>, vector<32x512xbf16>
    tpu.vector_store %arg10[%c0_151, %c0_152], %174 {strides = array<i32>} : memref<32x512xbf16, #tpu.memory_space<vmem>>, vector<32x512xbf16>,
    return
  }
}

module attributes {stable_mosaic.version = 11 : i64} {
  func.func @bilstm_layer_kernel(%arg0: memref<32x512xbf16, #tpu.memory_space<vmem>>, %arg1: memref<512x128xbf16, #tpu.memory_space<vmem>>, %arg2: memref<1x128xf32, #tpu.memory_space<vmem>>, %arg3: memref<16x128xf32, #tpu.memory_space<vmem>>, %arg4: memref<32x32xbf16, #tpu.memory_space<vmem>>, %arg5: memref<32x128xf32, #tpu.memory_space<vmem>>) attributes {dimension_semantics = [], scalar_prefetch = 0 : i64, scratch_operands = 1 : i64, tpu.core_type = #tpu.core_type<tc>} {
    %c0 = arith.constant 0 : index
    %c0_0 = arith.constant 0 : index
    %0 = vector.load %arg0[%c0, %c0_0] : memref<32x512xbf16, #tpu.memory_space<vmem>>, vector<32x512xbf16>
    %c0_1 = arith.constant 0 : index
    %c0_2 = arith.constant 0 : index
    %1 = vector.load %arg1[%c0_1, %c0_2] : memref<512x128xbf16, #tpu.memory_space<vmem>>, vector<512x128xbf16>
    %cst = arith.constant dense<0.000000e+00> : vector<32x128xf32>
    %2 = tpu.matmul %0, %1, %cst {dimension_numbers = #tpu.dot_dimension_numbers<[1], [0], [0], [1], [0, 0, 1, 1], [], []>} : vector<32x512xbf16>, vector<512x128xbf16>, vector<32x128xf32> -> vector<32x128xf32>
    %c0_3 = arith.constant 0 : index
    %c0_4 = arith.constant 0 : index
    %3 = vector.load %arg2[%c0_3, %c0_4] : memref<1x128xf32, #tpu.memory_space<vmem>>, vector<1x128xf32>
    %4 = vector.broadcast %3 : vector<1x128xf32> to vector<32x128xf32>
    %5 = arith.addf %2, %4 : vector<32x128xf32>
    %c0_5 = arith.constant 0 : index
    %c0_6 = arith.constant 0 : index
    %6 = vector.load %arg5[%c0_5, %c0_6] : memref<32x128xf32, #tpu.memory_space<vmem>>, vector<32x128xf32>
    tpu.vector_store %arg5[%c0_5, %c0_6], %5 {strides = array<i32>} : memref<32x128xf32, #tpu.memory_space<vmem>>, vector<32x128xf32>,
    %c0_7 = arith.constant 0 : index
    %c0_8 = arith.constant 0 : index
    %7 = vector.load %arg3[%c0_7, %c0_8] : memref<16x128xf32, #tpu.memory_space<vmem>>, vector<16x128xf32>
    %cst_9 = arith.constant 0.000000e+00 : f32
    %8 = vector.broadcast %cst_9 : f32 to vector<4x16xf32>
    %c0_i32 = arith.constant 0 : i32
    %c2_i32 = arith.constant 2 : i32
    %9 = arith.addi %c0_i32, %c2_i32 : i32
    %c1_i32 = arith.constant 1 : i32
    %10:2 = scf.for %arg6 = %c0_i32 to %9 step %c1_i32 iter_args(%arg7 = %8, %arg8 = %8) -> (vector<4x16xf32>, vector<4x16xf32>)  : i32 {
      %c16_i32 = arith.constant 16 : i32
      %11 = arith.muli %arg6, %c16_i32 : i32
      %12 = tpu.assume_multiple %11, 16 : i32
      %c1_i32_11 = arith.constant 1 : i32
      %13 = arith.addi %arg6, %c1_i32_11 : i32
      %c8_i32 = arith.constant 8 : i32
      %14 = arith.muli %13, %c8_i32 : i32
      %c16_i32_12 = arith.constant 16 : i32
      %15 = arith.subi %c16_i32_12, %14 : i32
      %c2_i32_13 = arith.constant 2 : i32
      %16 = arith.muli %15, %c2_i32_13 : i32
      %17 = tpu.assume_multiple %16, 16 : i32
      %18 = arith.index_cast %12 : i32 to index
      %c0_14 = arith.constant 0 : index
      %19 = vector.load %arg5[%18, %c0_14] : memref<32x128xf32, #tpu.memory_space<vmem>>, vector<16x128xf32>
      %20 = arith.index_cast %17 : i32 to index
      %c0_15 = arith.constant 0 : index
      %21 = vector.load %arg5[%20, %c0_15] : memref<32x128xf32, #tpu.memory_space<vmem>>, vector<16x128xf32>
      %cst_16 = arith.constant dense<0.000000e+00> : vector<4x128xf32>
      %22 = tpu.matmul %arg7, %7, %cst_16 {dimension_numbers = #tpu.dot_dimension_numbers<[1], [0], [0], [1], [0, 0, 1, 1], [], []>} : vector<4x16xf32>, vector<16x128xf32>, vector<4x128xf32> -> vector<4x128xf32>
      %23 = vector.extract_strided_slice %19 {offsets = [0, 0], sizes = [2, 64], strides = [1, 1]} : vector<16x128xf32> to vector<2x64xf32>
      %24 = vector.extract_strided_slice %22 {offsets = [0, 0], sizes = [2, 64], strides = [1, 1]} : vector<4x128xf32> to vector<2x64xf32>
      %25 = arith.addf %23, %24 : vector<2x64xf32>
      %26 = vector.extract_strided_slice %21 {offsets = [14, 64], sizes = [2, 64], strides = [1, 1]} : vector<16x128xf32> to vector<2x64xf32>
      %27 = vector.extract_strided_slice %22 {offsets = [2, 64], sizes = [2, 64], strides = [1, 1]} : vector<4x128xf32> to vector<2x64xf32>
      %28 = arith.addf %26, %27 : vector<2x64xf32>
      %29 = tpu.concatenate %25, %28 in 0 : vector<2x64xf32>, vector<2x64xf32> -> vector<4x64xf32>
      %30 = vector.extract_strided_slice %29 {offsets = [0, 0], sizes = [4, 16], strides = [1, 1]} : vector<4x64xf32> to vector<4x16xf32>
      %31 = arith.negf %30 : vector<4x16xf32>
      %32 = math.exp %31 : vector<4x16xf32>
      %cst_17 = arith.constant 1.000000e+00 : f32
      %33 = vector.broadcast %cst_17 : f32 to vector<4x16xf32>
      %34 = arith.addf %33, %32 : vector<4x16xf32>
      %35 = arith.divf %33, %34 : vector<4x16xf32>
      %36 = vector.extract_strided_slice %29 {offsets = [0, 16], sizes = [4, 16], strides = [1, 1]} : vector<4x64xf32> to vector<4x16xf32>
      %37 = arith.negf %36 : vector<4x16xf32>
      %38 = math.exp %37 : vector<4x16xf32>
      %cst_18 = arith.constant 1.000000e+00 : f32
      %39 = vector.broadcast %cst_18 : f32 to vector<4x16xf32>
      %40 = arith.addf %39, %38 : vector<4x16xf32>
      %41 = arith.divf %39, %40 : vector<4x16xf32>
      %42 = vector.extract_strided_slice %29 {offsets = [0, 32], sizes = [4, 16], strides = [1, 1]} : vector<4x64xf32> to vector<4x16xf32>
      %43 = math.tanh %42 : vector<4x16xf32>
      %44 = vector.extract_strided_slice %29 {offsets = [0, 48], sizes = [4, 16], strides = [1, 1]} : vector<4x64xf32> to vector<4x16xf32>
      %45 = arith.negf %44 : vector<4x16xf32>
      %46 = math.exp %45 : vector<4x16xf32>
      %cst_19 = arith.constant 1.000000e+00 : f32
      %47 = vector.broadcast %cst_19 : f32 to vector<4x16xf32>
      %48 = arith.addf %47, %46 : vector<4x16xf32>
      %49 = arith.divf %47, %48 : vector<4x16xf32>
      %50 = arith.mulf %41, %arg8 : vector<4x16xf32>
      %51 = arith.mulf %35, %43 : vector<4x16xf32>
      %52 = arith.addf %50, %51 : vector<4x16xf32>
      %53 = math.tanh %52 : vector<4x16xf32>
      %54 = arith.mulf %49, %53 : vector<4x16xf32>
      %55 = vector.extract_strided_slice %54 {offsets = [0, 0], sizes = [2, 16], strides = [1, 1]} : vector<4x16xf32> to vector<2x16xf32>
      %56 = vector.extract_strided_slice %54 {offsets = [2, 0], sizes = [2, 16], strides = [1, 1]} : vector<4x16xf32> to vector<2x16xf32>
      %cst_20 = arith.constant dense<0.000000e+00> : vector<4x128xf32>
      %57 = tpu.matmul %54, %7, %cst_20 {dimension_numbers = #tpu.dot_dimension_numbers<[1], [0], [0], [1], [0, 0, 1, 1], [], []>} : vector<4x16xf32>, vector<16x128xf32>, vector<4x128xf32> -> vector<4x128xf32>
      %58 = vector.extract_strided_slice %19 {offsets = [2, 0], sizes = [2, 64], strides = [1, 1]} : vector<16x128xf32> to vector<2x64xf32>
      %59 = vector.extract_strided_slice %57 {offsets = [0, 0], sizes = [2, 64], strides = [1, 1]} : vector<4x128xf32> to vector<2x64xf32>
      %60 = arith.addf %58, %59 : vector<2x64xf32>
      %61 = vector.extract_strided_slice %21 {offsets = [12, 64], sizes = [2, 64], strides = [1, 1]} : vector<16x128xf32> to vector<2x64xf32>
      %62 = vector.extract_strided_slice %57 {offsets = [2, 64], sizes = [2, 64], strides = [1, 1]} : vector<4x128xf32> to vector<2x64xf32>
      %63 = arith.addf %61, %62 : vector<2x64xf32>
      %64 = tpu.concatenate %60, %63 in 0 : vector<2x64xf32>, vector<2x64xf32> -> vector<4x64xf32>
      %65 = vector.extract_strided_slice %64 {offsets = [0, 0], sizes = [4, 16], strides = [1, 1]} : vector<4x64xf32> to vector<4x16xf32>
      %66 = arith.negf %65 : vector<4x16xf32>
      %67 = math.exp %66 : vector<4x16xf32>
      %cst_21 = arith.constant 1.000000e+00 : f32
      %68 = vector.broadcast %cst_21 : f32 to vector<4x16xf32>
      %69 = arith.addf %68, %67 : vector<4x16xf32>
      %70 = arith.divf %68, %69 : vector<4x16xf32>
      %71 = vector.extract_strided_slice %64 {offsets = [0, 16], sizes = [4, 16], strides = [1, 1]} : vector<4x64xf32> to vector<4x16xf32>
      %72 = arith.negf %71 : vector<4x16xf32>
      %73 = math.exp %72 : vector<4x16xf32>
      %cst_22 = arith.constant 1.000000e+00 : f32
      %74 = vector.broadcast %cst_22 : f32 to vector<4x16xf32>
      %75 = arith.addf %74, %73 : vector<4x16xf32>
      %76 = arith.divf %74, %75 : vector<4x16xf32>
      %77 = vector.extract_strided_slice %64 {offsets = [0, 32], sizes = [4, 16], strides = [1, 1]} : vector<4x64xf32> to vector<4x16xf32>
      %78 = math.tanh %77 : vector<4x16xf32>
      %79 = vector.extract_strided_slice %64 {offsets = [0, 48], sizes = [4, 16], strides = [1, 1]} : vector<4x64xf32> to vector<4x16xf32>
      %80 = arith.negf %79 : vector<4x16xf32>
      %81 = math.exp %80 : vector<4x16xf32>
      %cst_23 = arith.constant 1.000000e+00 : f32
      %82 = vector.broadcast %cst_23 : f32 to vector<4x16xf32>
      %83 = arith.addf %82, %81 : vector<4x16xf32>
      %84 = arith.divf %82, %83 : vector<4x16xf32>
      %85 = arith.mulf %76, %52 : vector<4x16xf32>
      %86 = arith.mulf %70, %78 : vector<4x16xf32>
      %87 = arith.addf %85, %86 : vector<4x16xf32>
      %88 = math.tanh %87 : vector<4x16xf32>
      %89 = arith.mulf %84, %88 : vector<4x16xf32>
      %90 = vector.extract_strided_slice %89 {offsets = [0, 0], sizes = [2, 16], strides = [1, 1]} : vector<4x16xf32> to vector<2x16xf32>
      %91 = vector.extract_strided_slice %89 {offsets = [2, 0], sizes = [2, 16], strides = [1, 1]} : vector<4x16xf32> to vector<2x16xf32>
      %cst_24 = arith.constant dense<0.000000e+00> : vector<4x128xf32>
      %92 = tpu.matmul %89, %7, %cst_24 {dimension_numbers = #tpu.dot_dimension_numbers<[1], [0], [0], [1], [0, 0, 1, 1], [], []>} : vector<4x16xf32>, vector<16x128xf32>, vector<4x128xf32> -> vector<4x128xf32>
      %93 = vector.extract_strided_slice %19 {offsets = [4, 0], sizes = [2, 64], strides = [1, 1]} : vector<16x128xf32> to vector<2x64xf32>
      %94 = vector.extract_strided_slice %92 {offsets = [0, 0], sizes = [2, 64], strides = [1, 1]} : vector<4x128xf32> to vector<2x64xf32>
      %95 = arith.addf %93, %94 : vector<2x64xf32>
      %96 = vector.extract_strided_slice %21 {offsets = [10, 64], sizes = [2, 64], strides = [1, 1]} : vector<16x128xf32> to vector<2x64xf32>
      %97 = vector.extract_strided_slice %92 {offsets = [2, 64], sizes = [2, 64], strides = [1, 1]} : vector<4x128xf32> to vector<2x64xf32>
      %98 = arith.addf %96, %97 : vector<2x64xf32>
      %99 = tpu.concatenate %95, %98 in 0 : vector<2x64xf32>, vector<2x64xf32> -> vector<4x64xf32>
      %100 = vector.extract_strided_slice %99 {offsets = [0, 0], sizes = [4, 16], strides = [1, 1]} : vector<4x64xf32> to vector<4x16xf32>
      %101 = arith.negf %100 : vector<4x16xf32>
      %102 = math.exp %101 : vector<4x16xf32>
      %cst_25 = arith.constant 1.000000e+00 : f32
      %103 = vector.broadcast %cst_25 : f32 to vector<4x16xf32>
      %104 = arith.addf %103, %102 : vector<4x16xf32>
      %105 = arith.divf %103, %104 : vector<4x16xf32>
      %106 = vector.extract_strided_slice %99 {offsets = [0, 16], sizes = [4, 16], strides = [1, 1]} : vector<4x64xf32> to vector<4x16xf32>
      %107 = arith.negf %106 : vector<4x16xf32>
      %108 = math.exp %107 : vector<4x16xf32>
      %cst_26 = arith.constant 1.000000e+00 : f32
      %109 = vector.broadcast %cst_26 : f32 to vector<4x16xf32>
      %110 = arith.addf %109, %108 : vector<4x16xf32>
      %111 = arith.divf %109, %110 : vector<4x16xf32>
      %112 = vector.extract_strided_slice %99 {offsets = [0, 32], sizes = [4, 16], strides = [1, 1]} : vector<4x64xf32> to vector<4x16xf32>
      %113 = math.tanh %112 : vector<4x16xf32>
      %114 = vector.extract_strided_slice %99 {offsets = [0, 48], sizes = [4, 16], strides = [1, 1]} : vector<4x64xf32> to vector<4x16xf32>
      %115 = arith.negf %114 : vector<4x16xf32>
      %116 = math.exp %115 : vector<4x16xf32>
      %cst_27 = arith.constant 1.000000e+00 : f32
      %117 = vector.broadcast %cst_27 : f32 to vector<4x16xf32>
      %118 = arith.addf %117, %116 : vector<4x16xf32>
      %119 = arith.divf %117, %118 : vector<4x16xf32>
      %120 = arith.mulf %111, %87 : vector<4x16xf32>
      %121 = arith.mulf %105, %113 : vector<4x16xf32>
      %122 = arith.addf %120, %121 : vector<4x16xf32>
      %123 = math.tanh %122 : vector<4x16xf32>
      %124 = arith.mulf %119, %123 : vector<4x16xf32>
      %125 = vector.extract_strided_slice %124 {offsets = [0, 0], sizes = [2, 16], strides = [1, 1]} : vector<4x16xf32> to vector<2x16xf32>
      %126 = vector.extract_strided_slice %124 {offsets = [2, 0], sizes = [2, 16], strides = [1, 1]} : vector<4x16xf32> to vector<2x16xf32>
      %cst_28 = arith.constant dense<0.000000e+00> : vector<4x128xf32>
      %127 = tpu.matmul %124, %7, %cst_28 {dimension_numbers = #tpu.dot_dimension_numbers<[1], [0], [0], [1], [0, 0, 1, 1], [], []>} : vector<4x16xf32>, vector<16x128xf32>, vector<4x128xf32> -> vector<4x128xf32>
      %128 = vector.extract_strided_slice %19 {offsets = [6, 0], sizes = [2, 64], strides = [1, 1]} : vector<16x128xf32> to vector<2x64xf32>
      %129 = vector.extract_strided_slice %127 {offsets = [0, 0], sizes = [2, 64], strides = [1, 1]} : vector<4x128xf32> to vector<2x64xf32>
      %130 = arith.addf %128, %129 : vector<2x64xf32>
      %131 = vector.extract_strided_slice %21 {offsets = [8, 64], sizes = [2, 64], strides = [1, 1]} : vector<16x128xf32> to vector<2x64xf32>
      %132 = vector.extract_strided_slice %127 {offsets = [2, 64], sizes = [2, 64], strides = [1, 1]} : vector<4x128xf32> to vector<2x64xf32>
      %133 = arith.addf %131, %132 : vector<2x64xf32>
      %134 = tpu.concatenate %130, %133 in 0 : vector<2x64xf32>, vector<2x64xf32> -> vector<4x64xf32>
      %135 = vector.extract_strided_slice %134 {offsets = [0, 0], sizes = [4, 16], strides = [1, 1]} : vector<4x64xf32> to vector<4x16xf32>
      %136 = arith.negf %135 : vector<4x16xf32>
      %137 = math.exp %136 : vector<4x16xf32>
      %cst_29 = arith.constant 1.000000e+00 : f32
      %138 = vector.broadcast %cst_29 : f32 to vector<4x16xf32>
      %139 = arith.addf %138, %137 : vector<4x16xf32>
      %140 = arith.divf %138, %139 : vector<4x16xf32>
      %141 = vector.extract_strided_slice %134 {offsets = [0, 16], sizes = [4, 16], strides = [1, 1]} : vector<4x64xf32> to vector<4x16xf32>
      %142 = arith.negf %141 : vector<4x16xf32>
      %143 = math.exp %142 : vector<4x16xf32>
      %cst_30 = arith.constant 1.000000e+00 : f32
      %144 = vector.broadcast %cst_30 : f32 to vector<4x16xf32>
      %145 = arith.addf %144, %143 : vector<4x16xf32>
      %146 = arith.divf %144, %145 : vector<4x16xf32>
      %147 = vector.extract_strided_slice %134 {offsets = [0, 32], sizes = [4, 16], strides = [1, 1]} : vector<4x64xf32> to vector<4x16xf32>
      %148 = math.tanh %147 : vector<4x16xf32>
      %149 = vector.extract_strided_slice %134 {offsets = [0, 48], sizes = [4, 16], strides = [1, 1]} : vector<4x64xf32> to vector<4x16xf32>
      %150 = arith.negf %149 : vector<4x16xf32>
      %151 = math.exp %150 : vector<4x16xf32>
      %cst_31 = arith.constant 1.000000e+00 : f32
      %152 = vector.broadcast %cst_31 : f32 to vector<4x16xf32>
      %153 = arith.addf %152, %151 : vector<4x16xf32>
      %154 = arith.divf %152, %153 : vector<4x16xf32>
      %155 = arith.mulf %146, %122 : vector<4x16xf32>
      %156 = arith.mulf %140, %148 : vector<4x16xf32>
      %157 = arith.addf %155, %156 : vector<4x16xf32>
      %158 = math.tanh %157 : vector<4x16xf32>
      %159 = arith.mulf %154, %158 : vector<4x16xf32>
      %160 = vector.extract_strided_slice %159 {offsets = [0, 0], sizes = [2, 16], strides = [1, 1]} : vector<4x16xf32> to vector<2x16xf32>
      %161 = vector.extract_strided_slice %159 {offsets = [2, 0], sizes = [2, 16], strides = [1, 1]} : vector<4x16xf32> to vector<2x16xf32>
      %cst_32 = arith.constant dense<0.000000e+00> : vector<4x128xf32>
      %162 = tpu.matmul %159, %7, %cst_32 {dimension_numbers = #tpu.dot_dimension_numbers<[1], [0], [0], [1], [0, 0, 1, 1], [], []>} : vector<4x16xf32>, vector<16x128xf32>, vector<4x128xf32> -> vector<4x128xf32>
      %163 = vector.extract_strided_slice %19 {offsets = [8, 0], sizes = [2, 64], strides = [1, 1]} : vector<16x128xf32> to vector<2x64xf32>
      %164 = vector.extract_strided_slice %162 {offsets = [0, 0], sizes = [2, 64], strides = [1, 1]} : vector<4x128xf32> to vector<2x64xf32>
      %165 = arith.addf %163, %164 : vector<2x64xf32>
      %166 = vector.extract_strided_slice %21 {offsets = [6, 64], sizes = [2, 64], strides = [1, 1]} : vector<16x128xf32> to vector<2x64xf32>
      %167 = vector.extract_strided_slice %162 {offsets = [2, 64], sizes = [2, 64], strides = [1, 1]} : vector<4x128xf32> to vector<2x64xf32>
      %168 = arith.addf %166, %167 : vector<2x64xf32>
      %169 = tpu.concatenate %165, %168 in 0 : vector<2x64xf32>, vector<2x64xf32> -> vector<4x64xf32>
      %170 = vector.extract_strided_slice %169 {offsets = [0, 0], sizes = [4, 16], strides = [1, 1]} : vector<4x64xf32> to vector<4x16xf32>
      %171 = arith.negf %170 : vector<4x16xf32>
      %172 = math.exp %171 : vector<4x16xf32>
      %cst_33 = arith.constant 1.000000e+00 : f32
      %173 = vector.broadcast %cst_33 : f32 to vector<4x16xf32>
      %174 = arith.addf %173, %172 : vector<4x16xf32>
      %175 = arith.divf %173, %174 : vector<4x16xf32>
      %176 = vector.extract_strided_slice %169 {offsets = [0, 16], sizes = [4, 16], strides = [1, 1]} : vector<4x64xf32> to vector<4x16xf32>
      %177 = arith.negf %176 : vector<4x16xf32>
      %178 = math.exp %177 : vector<4x16xf32>
      %cst_34 = arith.constant 1.000000e+00 : f32
      %179 = vector.broadcast %cst_34 : f32 to vector<4x16xf32>
      %180 = arith.addf %179, %178 : vector<4x16xf32>
      %181 = arith.divf %179, %180 : vector<4x16xf32>
      %182 = vector.extract_strided_slice %169 {offsets = [0, 32], sizes = [4, 16], strides = [1, 1]} : vector<4x64xf32> to vector<4x16xf32>
      %183 = math.tanh %182 : vector<4x16xf32>
      %184 = vector.extract_strided_slice %169 {offsets = [0, 48], sizes = [4, 16], strides = [1, 1]} : vector<4x64xf32> to vector<4x16xf32>
      %185 = arith.negf %184 : vector<4x16xf32>
      %186 = math.exp %185 : vector<4x16xf32>
      %cst_35 = arith.constant 1.000000e+00 : f32
      %187 = vector.broadcast %cst_35 : f32 to vector<4x16xf32>
      %188 = arith.addf %187, %186 : vector<4x16xf32>
      %189 = arith.divf %187, %188 : vector<4x16xf32>
      %190 = arith.mulf %181, %157 : vector<4x16xf32>
      %191 = arith.mulf %175, %183 : vector<4x16xf32>
      %192 = arith.addf %190, %191 : vector<4x16xf32>
      %193 = math.tanh %192 : vector<4x16xf32>
      %194 = arith.mulf %189, %193 : vector<4x16xf32>
      %195 = vector.extract_strided_slice %194 {offsets = [0, 0], sizes = [2, 16], strides = [1, 1]} : vector<4x16xf32> to vector<2x16xf32>
      %196 = vector.extract_strided_slice %194 {offsets = [2, 0], sizes = [2, 16], strides = [1, 1]} : vector<4x16xf32> to vector<2x16xf32>
      %cst_36 = arith.constant dense<0.000000e+00> : vector<4x128xf32>
      %197 = tpu.matmul %194, %7, %cst_36 {dimension_numbers = #tpu.dot_dimension_numbers<[1], [0], [0], [1], [0, 0, 1, 1], [], []>} : vector<4x16xf32>, vector<16x128xf32>, vector<4x128xf32> -> vector<4x128xf32>
      %198 = vector.extract_strided_slice %19 {offsets = [10, 0], sizes = [2, 64], strides = [1, 1]} : vector<16x128xf32> to vector<2x64xf32>
      %199 = vector.extract_strided_slice %197 {offsets = [0, 0], sizes = [2, 64], strides = [1, 1]} : vector<4x128xf32> to vector<2x64xf32>
      %200 = arith.addf %198, %199 : vector<2x64xf32>
      %201 = vector.extract_strided_slice %21 {offsets = [4, 64], sizes = [2, 64], strides = [1, 1]} : vector<16x128xf32> to vector<2x64xf32>
      %202 = vector.extract_strided_slice %197 {offsets = [2, 64], sizes = [2, 64], strides = [1, 1]} : vector<4x128xf32> to vector<2x64xf32>
      %203 = arith.addf %201, %202 : vector<2x64xf32>
      %204 = tpu.concatenate %200, %203 in 0 : vector<2x64xf32>, vector<2x64xf32> -> vector<4x64xf32>
      %205 = vector.extract_strided_slice %204 {offsets = [0, 0], sizes = [4, 16], strides = [1, 1]} : vector<4x64xf32> to vector<4x16xf32>
      %206 = arith.negf %205 : vector<4x16xf32>
      %207 = math.exp %206 : vector<4x16xf32>
      %cst_37 = arith.constant 1.000000e+00 : f32
      %208 = vector.broadcast %cst_37 : f32 to vector<4x16xf32>
      %209 = arith.addf %208, %207 : vector<4x16xf32>
      %210 = arith.divf %208, %209 : vector<4x16xf32>
      %211 = vector.extract_strided_slice %204 {offsets = [0, 16], sizes = [4, 16], strides = [1, 1]} : vector<4x64xf32> to vector<4x16xf32>
      %212 = arith.negf %211 : vector<4x16xf32>
      %213 = math.exp %212 : vector<4x16xf32>
      %cst_38 = arith.constant 1.000000e+00 : f32
      %214 = vector.broadcast %cst_38 : f32 to vector<4x16xf32>
      %215 = arith.addf %214, %213 : vector<4x16xf32>
      %216 = arith.divf %214, %215 : vector<4x16xf32>
      %217 = vector.extract_strided_slice %204 {offsets = [0, 32], sizes = [4, 16], strides = [1, 1]} : vector<4x64xf32> to vector<4x16xf32>
      %218 = math.tanh %217 : vector<4x16xf32>
      %219 = vector.extract_strided_slice %204 {offsets = [0, 48], sizes = [4, 16], strides = [1, 1]} : vector<4x64xf32> to vector<4x16xf32>
      %220 = arith.negf %219 : vector<4x16xf32>
      %221 = math.exp %220 : vector<4x16xf32>
      %cst_39 = arith.constant 1.000000e+00 : f32
      %222 = vector.broadcast %cst_39 : f32 to vector<4x16xf32>
      %223 = arith.addf %222, %221 : vector<4x16xf32>
      %224 = arith.divf %222, %223 : vector<4x16xf32>
      %225 = arith.mulf %216, %192 : vector<4x16xf32>
      %226 = arith.mulf %210, %218 : vector<4x16xf32>
      %227 = arith.addf %225, %226 : vector<4x16xf32>
      %228 = math.tanh %227 : vector<4x16xf32>
      %229 = arith.mulf %224, %228 : vector<4x16xf32>
      %230 = vector.extract_strided_slice %229 {offsets = [0, 0], sizes = [2, 16], strides = [1, 1]} : vector<4x16xf32> to vector<2x16xf32>
      %231 = vector.extract_strided_slice %229 {offsets = [2, 0], sizes = [2, 16], strides = [1, 1]} : vector<4x16xf32> to vector<2x16xf32>
      %cst_40 = arith.constant dense<0.000000e+00> : vector<4x128xf32>
      %232 = tpu.matmul %229, %7, %cst_40 {dimension_numbers = #tpu.dot_dimension_numbers<[1], [0], [0], [1], [0, 0, 1, 1], [], []>} : vector<4x16xf32>, vector<16x128xf32>, vector<4x128xf32> -> vector<4x128xf32>
      %233 = vector.extract_strided_slice %19 {offsets = [12, 0], sizes = [2, 64], strides = [1, 1]} : vector<16x128xf32> to vector<2x64xf32>
      %234 = vector.extract_strided_slice %232 {offsets = [0, 0], sizes = [2, 64], strides = [1, 1]} : vector<4x128xf32> to vector<2x64xf32>
      %235 = arith.addf %233, %234 : vector<2x64xf32>
      %236 = vector.extract_strided_slice %21 {offsets = [2, 64], sizes = [2, 64], strides = [1, 1]} : vector<16x128xf32> to vector<2x64xf32>
      %237 = vector.extract_strided_slice %232 {offsets = [2, 64], sizes = [2, 64], strides = [1, 1]} : vector<4x128xf32> to vector<2x64xf32>
      %238 = arith.addf %236, %237 : vector<2x64xf32>
      %239 = tpu.concatenate %235, %238 in 0 : vector<2x64xf32>, vector<2x64xf32> -> vector<4x64xf32>
      %240 = vector.extract_strided_slice %239 {offsets = [0, 0], sizes = [4, 16], strides = [1, 1]} : vector<4x64xf32> to vector<4x16xf32>
      %241 = arith.negf %240 : vector<4x16xf32>
      %242 = math.exp %241 : vector<4x16xf32>
      %cst_41 = arith.constant 1.000000e+00 : f32
      %243 = vector.broadcast %cst_41 : f32 to vector<4x16xf32>
      %244 = arith.addf %243, %242 : vector<4x16xf32>
      %245 = arith.divf %243, %244 : vector<4x16xf32>
      %246 = vector.extract_strided_slice %239 {offsets = [0, 16], sizes = [4, 16], strides = [1, 1]} : vector<4x64xf32> to vector<4x16xf32>
      %247 = arith.negf %246 : vector<4x16xf32>
      %248 = math.exp %247 : vector<4x16xf32>
      %cst_42 = arith.constant 1.000000e+00 : f32
      %249 = vector.broadcast %cst_42 : f32 to vector<4x16xf32>
      %250 = arith.addf %249, %248 : vector<4x16xf32>
      %251 = arith.divf %249, %250 : vector<4x16xf32>
      %252 = vector.extract_strided_slice %239 {offsets = [0, 32], sizes = [4, 16], strides = [1, 1]} : vector<4x64xf32> to vector<4x16xf32>
      %253 = math.tanh %252 : vector<4x16xf32>
      %254 = vector.extract_strided_slice %239 {offsets = [0, 48], sizes = [4, 16], strides = [1, 1]} : vector<4x64xf32> to vector<4x16xf32>
      %255 = arith.negf %254 : vector<4x16xf32>
      %256 = math.exp %255 : vector<4x16xf32>
      %cst_43 = arith.constant 1.000000e+00 : f32
      %257 = vector.broadcast %cst_43 : f32 to vector<4x16xf32>
      %258 = arith.addf %257, %256 : vector<4x16xf32>
      %259 = arith.divf %257, %258 : vector<4x16xf32>
      %260 = arith.mulf %251, %227 : vector<4x16xf32>
      %261 = arith.mulf %245, %253 : vector<4x16xf32>
      %262 = arith.addf %260, %261 : vector<4x16xf32>
      %263 = math.tanh %262 : vector<4x16xf32>
      %264 = arith.mulf %259, %263 : vector<4x16xf32>
      %265 = vector.extract_strided_slice %264 {offsets = [0, 0], sizes = [2, 16], strides = [1, 1]} : vector<4x16xf32> to vector<2x16xf32>
      %266 = vector.extract_strided_slice %264 {offsets = [2, 0], sizes = [2, 16], strides = [1, 1]} : vector<4x16xf32> to vector<2x16xf32>
      %cst_44 = arith.constant dense<0.000000e+00> : vector<4x128xf32>
      %267 = tpu.matmul %264, %7, %cst_44 {dimension_numbers = #tpu.dot_dimension_numbers<[1], [0], [0], [1], [0, 0, 1, 1], [], []>} : vector<4x16xf32>, vector<16x128xf32>, vector<4x128xf32> -> vector<4x128xf32>
      %268 = vector.extract_strided_slice %19 {offsets = [14, 0], sizes = [2, 64], strides = [1, 1]} : vector<16x128xf32> to vector<2x64xf32>
      %269 = vector.extract_strided_slice %267 {offsets = [0, 0], sizes = [2, 64], strides = [1, 1]} : vector<4x128xf32> to vector<2x64xf32>
      %270 = arith.addf %268, %269 : vector<2x64xf32>
      %271 = vector.extract_strided_slice %21 {offsets = [0, 64], sizes = [2, 64], strides = [1, 1]} : vector<16x128xf32> to vector<2x64xf32>
      %272 = vector.extract_strided_slice %267 {offsets = [2, 64], sizes = [2, 64], strides = [1, 1]} : vector<4x128xf32> to vector<2x64xf32>
      %273 = arith.addf %271, %272 : vector<2x64xf32>
      %274 = tpu.concatenate %270, %273 in 0 : vector<2x64xf32>, vector<2x64xf32> -> vector<4x64xf32>
      %275 = vector.extract_strided_slice %274 {offsets = [0, 0], sizes = [4, 16], strides = [1, 1]} : vector<4x64xf32> to vector<4x16xf32>
      %276 = arith.negf %275 : vector<4x16xf32>
      %277 = math.exp %276 : vector<4x16xf32>
      %cst_45 = arith.constant 1.000000e+00 : f32
      %278 = vector.broadcast %cst_45 : f32 to vector<4x16xf32>
      %279 = arith.addf %278, %277 : vector<4x16xf32>
      %280 = arith.divf %278, %279 : vector<4x16xf32>
      %281 = vector.extract_strided_slice %274 {offsets = [0, 16], sizes = [4, 16], strides = [1, 1]} : vector<4x64xf32> to vector<4x16xf32>
      %282 = arith.negf %281 : vector<4x16xf32>
      %283 = math.exp %282 : vector<4x16xf32>
      %cst_46 = arith.constant 1.000000e+00 : f32
      %284 = vector.broadcast %cst_46 : f32 to vector<4x16xf32>
      %285 = arith.addf %284, %283 : vector<4x16xf32>
      %286 = arith.divf %284, %285 : vector<4x16xf32>
      %287 = vector.extract_strided_slice %274 {offsets = [0, 32], sizes = [4, 16], strides = [1, 1]} : vector<4x64xf32> to vector<4x16xf32>
      %288 = math.tanh %287 : vector<4x16xf32>
      %289 = vector.extract_strided_slice %274 {offsets = [0, 48], sizes = [4, 16], strides = [1, 1]} : vector<4x64xf32> to vector<4x16xf32>
      %290 = arith.negf %289 : vector<4x16xf32>
      %291 = math.exp %290 : vector<4x16xf32>
      %cst_47 = arith.constant 1.000000e+00 : f32
      %292 = vector.broadcast %cst_47 : f32 to vector<4x16xf32>
      %293 = arith.addf %292, %291 : vector<4x16xf32>
      %294 = arith.divf %292, %293 : vector<4x16xf32>
      %295 = arith.mulf %286, %262 : vector<4x16xf32>
      %296 = arith.mulf %280, %288 : vector<4x16xf32>
      %297 = arith.addf %295, %296 : vector<4x16xf32>
      %298 = math.tanh %297 : vector<4x16xf32>
      %299 = arith.mulf %294, %298 : vector<4x16xf32>
      %300 = vector.extract_strided_slice %299 {offsets = [0, 0], sizes = [2, 16], strides = [1, 1]} : vector<4x16xf32> to vector<2x16xf32>
      %301 = vector.extract_strided_slice %299 {offsets = [2, 0], sizes = [2, 16], strides = [1, 1]} : vector<4x16xf32> to vector<2x16xf32>
      %302 = tpu.concatenate %55, %90, %125, %160, %195, %230, %265, %300 in 0 : vector<2x16xf32>, vector<2x16xf32>, vector<2x16xf32>, vector<2x16xf32>, vector<2x16xf32>, vector<2x16xf32>, vector<2x16xf32>, vector<2x16xf32> -> vector<16x16xf32>
      %303 = arith.truncf %302 : vector<16x16xf32> to vector<16x16xbf16>
      %304 = arith.index_cast %12 : i32 to index
      %c0_48 = arith.constant 0 : index
      %305 = vector.load %arg4[%304, %c0_48] : memref<32x32xbf16, #tpu.memory_space<vmem>>, vector<16x16xbf16>
      tpu.vector_store %arg4[%304, %c0_48], %303 {strides = array<i32>} : memref<32x32xbf16, #tpu.memory_space<vmem>>, vector<16x16xbf16>,
      %306 = tpu.concatenate %301, %266, %231, %196, %161, %126, %91, %56 in 0 : vector<2x16xf32>, vector<2x16xf32>, vector<2x16xf32>, vector<2x16xf32>, vector<2x16xf32>, vector<2x16xf32>, vector<2x16xf32>, vector<2x16xf32> -> vector<16x16xf32>
      %307 = arith.truncf %306 : vector<16x16xf32> to vector<16x16xbf16>
      %308 = arith.index_cast %17 : i32 to index
      %c16 = arith.constant 16 : index
      %309 = vector.load %arg4[%308, %c16] : memref<32x32xbf16, #tpu.memory_space<vmem>>, vector<16x16xbf16>
      tpu.vector_store %arg4[%308, %c16], %307 {strides = array<i32>} : memref<32x32xbf16, #tpu.memory_space<vmem>>, vector<16x16xbf16>,
      scf.yield %299, %297 : vector<4x16xf32>, vector<4x16xf32>
    }
    %c2_i32_10 = arith.constant 2 : i32
    return
  }
}

module attributes {stable_mosaic.version = 11 : i64} {
  func.func @bilstm_layer_kernel(%arg0: memref<32x32xbf16, #tpu.memory_space<vmem>>, %arg1: memref<32x128xbf16, #tpu.memory_space<vmem>>, %arg2: memref<1x128xf32, #tpu.memory_space<vmem>>, %arg3: memref<16x128xf32, #tpu.memory_space<vmem>>, %arg4: memref<32x32xf32, #tpu.memory_space<vmem>>, %arg5: memref<32x128xf32, #tpu.memory_space<vmem>>) attributes {dimension_semantics = [], scalar_prefetch = 0 : i64, scratch_operands = 1 : i64, tpu.core_type = #tpu.core_type<tc>} {
    %c0 = arith.constant 0 : index
    %c0_0 = arith.constant 0 : index
    %0 = vector.load %arg0[%c0, %c0_0] : memref<32x32xbf16, #tpu.memory_space<vmem>>, vector<32x32xbf16>
    %c0_1 = arith.constant 0 : index
    %c0_2 = arith.constant 0 : index
    %1 = vector.load %arg1[%c0_1, %c0_2] : memref<32x128xbf16, #tpu.memory_space<vmem>>, vector<32x128xbf16>
    %cst = arith.constant dense<0.000000e+00> : vector<32x128xf32>
    %2 = tpu.matmul %0, %1, %cst {dimension_numbers = #tpu.dot_dimension_numbers<[1], [0], [0], [1], [0, 0, 1, 1], [], []>} : vector<32x32xbf16>, vector<32x128xbf16>, vector<32x128xf32> -> vector<32x128xf32>
    %c0_3 = arith.constant 0 : index
    %c0_4 = arith.constant 0 : index
    %3 = vector.load %arg2[%c0_3, %c0_4] : memref<1x128xf32, #tpu.memory_space<vmem>>, vector<1x128xf32>
    %4 = vector.broadcast %3 : vector<1x128xf32> to vector<32x128xf32>
    %5 = arith.addf %2, %4 : vector<32x128xf32>
    %c0_5 = arith.constant 0 : index
    %c0_6 = arith.constant 0 : index
    %6 = vector.load %arg5[%c0_5, %c0_6] : memref<32x128xf32, #tpu.memory_space<vmem>>, vector<32x128xf32>
    tpu.vector_store %arg5[%c0_5, %c0_6], %5 {strides = array<i32>} : memref<32x128xf32, #tpu.memory_space<vmem>>, vector<32x128xf32>,
    %c0_7 = arith.constant 0 : index
    %c0_8 = arith.constant 0 : index
    %7 = vector.load %arg3[%c0_7, %c0_8] : memref<16x128xf32, #tpu.memory_space<vmem>>, vector<16x128xf32>
    %cst_9 = arith.constant 0.000000e+00 : f32
    %8 = vector.broadcast %cst_9 : f32 to vector<4x16xf32>
    %c0_i32 = arith.constant 0 : i32
    %c2_i32 = arith.constant 2 : i32
    %9 = arith.addi %c0_i32, %c2_i32 : i32
    %c1_i32 = arith.constant 1 : i32
    %10:2 = scf.for %arg6 = %c0_i32 to %9 step %c1_i32 iter_args(%arg7 = %8, %arg8 = %8) -> (vector<4x16xf32>, vector<4x16xf32>)  : i32 {
      %c16_i32 = arith.constant 16 : i32
      %11 = arith.muli %arg6, %c16_i32 : i32
      %12 = tpu.assume_multiple %11, 16 : i32
      %c1_i32_11 = arith.constant 1 : i32
      %13 = arith.addi %arg6, %c1_i32_11 : i32
      %c8_i32 = arith.constant 8 : i32
      %14 = arith.muli %13, %c8_i32 : i32
      %c16_i32_12 = arith.constant 16 : i32
      %15 = arith.subi %c16_i32_12, %14 : i32
      %c2_i32_13 = arith.constant 2 : i32
      %16 = arith.muli %15, %c2_i32_13 : i32
      %17 = tpu.assume_multiple %16, 16 : i32
      %18 = arith.index_cast %12 : i32 to index
      %c0_14 = arith.constant 0 : index
      %19 = vector.load %arg5[%18, %c0_14] : memref<32x128xf32, #tpu.memory_space<vmem>>, vector<16x128xf32>
      %20 = arith.index_cast %17 : i32 to index
      %c0_15 = arith.constant 0 : index
      %21 = vector.load %arg5[%20, %c0_15] : memref<32x128xf32, #tpu.memory_space<vmem>>, vector<16x128xf32>
      %cst_16 = arith.constant dense<0.000000e+00> : vector<4x128xf32>
      %22 = tpu.matmul %arg7, %7, %cst_16 {dimension_numbers = #tpu.dot_dimension_numbers<[1], [0], [0], [1], [0, 0, 1, 1], [], []>} : vector<4x16xf32>, vector<16x128xf32>, vector<4x128xf32> -> vector<4x128xf32>
      %23 = vector.extract_strided_slice %19 {offsets = [0, 0], sizes = [2, 64], strides = [1, 1]} : vector<16x128xf32> to vector<2x64xf32>
      %24 = vector.extract_strided_slice %22 {offsets = [0, 0], sizes = [2, 64], strides = [1, 1]} : vector<4x128xf32> to vector<2x64xf32>
      %25 = arith.addf %23, %24 : vector<2x64xf32>
      %26 = vector.extract_strided_slice %21 {offsets = [14, 64], sizes = [2, 64], strides = [1, 1]} : vector<16x128xf32> to vector<2x64xf32>
      %27 = vector.extract_strided_slice %22 {offsets = [2, 64], sizes = [2, 64], strides = [1, 1]} : vector<4x128xf32> to vector<2x64xf32>
      %28 = arith.addf %26, %27 : vector<2x64xf32>
      %29 = tpu.concatenate %25, %28 in 0 : vector<2x64xf32>, vector<2x64xf32> -> vector<4x64xf32>
      %30 = vector.extract_strided_slice %29 {offsets = [0, 0], sizes = [4, 16], strides = [1, 1]} : vector<4x64xf32> to vector<4x16xf32>
      %31 = arith.negf %30 : vector<4x16xf32>
      %32 = math.exp %31 : vector<4x16xf32>
      %cst_17 = arith.constant 1.000000e+00 : f32
      %33 = vector.broadcast %cst_17 : f32 to vector<4x16xf32>
      %34 = arith.addf %33, %32 : vector<4x16xf32>
      %35 = arith.divf %33, %34 : vector<4x16xf32>
      %36 = vector.extract_strided_slice %29 {offsets = [0, 16], sizes = [4, 16], strides = [1, 1]} : vector<4x64xf32> to vector<4x16xf32>
      %37 = arith.negf %36 : vector<4x16xf32>
      %38 = math.exp %37 : vector<4x16xf32>
      %cst_18 = arith.constant 1.000000e+00 : f32
      %39 = vector.broadcast %cst_18 : f32 to vector<4x16xf32>
      %40 = arith.addf %39, %38 : vector<4x16xf32>
      %41 = arith.divf %39, %40 : vector<4x16xf32>
      %42 = vector.extract_strided_slice %29 {offsets = [0, 32], sizes = [4, 16], strides = [1, 1]} : vector<4x64xf32> to vector<4x16xf32>
      %43 = math.tanh %42 : vector<4x16xf32>
      %44 = vector.extract_strided_slice %29 {offsets = [0, 48], sizes = [4, 16], strides = [1, 1]} : vector<4x64xf32> to vector<4x16xf32>
      %45 = arith.negf %44 : vector<4x16xf32>
      %46 = math.exp %45 : vector<4x16xf32>
      %cst_19 = arith.constant 1.000000e+00 : f32
      %47 = vector.broadcast %cst_19 : f32 to vector<4x16xf32>
      %48 = arith.addf %47, %46 : vector<4x16xf32>
      %49 = arith.divf %47, %48 : vector<4x16xf32>
      %50 = arith.mulf %41, %arg8 : vector<4x16xf32>
      %51 = arith.mulf %35, %43 : vector<4x16xf32>
      %52 = arith.addf %50, %51 : vector<4x16xf32>
      %53 = math.tanh %52 : vector<4x16xf32>
      %54 = arith.mulf %49, %53 : vector<4x16xf32>
      %55 = vector.extract_strided_slice %54 {offsets = [0, 0], sizes = [2, 16], strides = [1, 1]} : vector<4x16xf32> to vector<2x16xf32>
      %56 = vector.extract_strided_slice %54 {offsets = [2, 0], sizes = [2, 16], strides = [1, 1]} : vector<4x16xf32> to vector<2x16xf32>
      %cst_20 = arith.constant dense<0.000000e+00> : vector<4x128xf32>
      %57 = tpu.matmul %54, %7, %cst_20 {dimension_numbers = #tpu.dot_dimension_numbers<[1], [0], [0], [1], [0, 0, 1, 1], [], []>} : vector<4x16xf32>, vector<16x128xf32>, vector<4x128xf32> -> vector<4x128xf32>
      %58 = vector.extract_strided_slice %19 {offsets = [2, 0], sizes = [2, 64], strides = [1, 1]} : vector<16x128xf32> to vector<2x64xf32>
      %59 = vector.extract_strided_slice %57 {offsets = [0, 0], sizes = [2, 64], strides = [1, 1]} : vector<4x128xf32> to vector<2x64xf32>
      %60 = arith.addf %58, %59 : vector<2x64xf32>
      %61 = vector.extract_strided_slice %21 {offsets = [12, 64], sizes = [2, 64], strides = [1, 1]} : vector<16x128xf32> to vector<2x64xf32>
      %62 = vector.extract_strided_slice %57 {offsets = [2, 64], sizes = [2, 64], strides = [1, 1]} : vector<4x128xf32> to vector<2x64xf32>
      %63 = arith.addf %61, %62 : vector<2x64xf32>
      %64 = tpu.concatenate %60, %63 in 0 : vector<2x64xf32>, vector<2x64xf32> -> vector<4x64xf32>
      %65 = vector.extract_strided_slice %64 {offsets = [0, 0], sizes = [4, 16], strides = [1, 1]} : vector<4x64xf32> to vector<4x16xf32>
      %66 = arith.negf %65 : vector<4x16xf32>
      %67 = math.exp %66 : vector<4x16xf32>
      %cst_21 = arith.constant 1.000000e+00 : f32
      %68 = vector.broadcast %cst_21 : f32 to vector<4x16xf32>
      %69 = arith.addf %68, %67 : vector<4x16xf32>
      %70 = arith.divf %68, %69 : vector<4x16xf32>
      %71 = vector.extract_strided_slice %64 {offsets = [0, 16], sizes = [4, 16], strides = [1, 1]} : vector<4x64xf32> to vector<4x16xf32>
      %72 = arith.negf %71 : vector<4x16xf32>
      %73 = math.exp %72 : vector<4x16xf32>
      %cst_22 = arith.constant 1.000000e+00 : f32
      %74 = vector.broadcast %cst_22 : f32 to vector<4x16xf32>
      %75 = arith.addf %74, %73 : vector<4x16xf32>
      %76 = arith.divf %74, %75 : vector<4x16xf32>
      %77 = vector.extract_strided_slice %64 {offsets = [0, 32], sizes = [4, 16], strides = [1, 1]} : vector<4x64xf32> to vector<4x16xf32>
      %78 = math.tanh %77 : vector<4x16xf32>
      %79 = vector.extract_strided_slice %64 {offsets = [0, 48], sizes = [4, 16], strides = [1, 1]} : vector<4x64xf32> to vector<4x16xf32>
      %80 = arith.negf %79 : vector<4x16xf32>
      %81 = math.exp %80 : vector<4x16xf32>
      %cst_23 = arith.constant 1.000000e+00 : f32
      %82 = vector.broadcast %cst_23 : f32 to vector<4x16xf32>
      %83 = arith.addf %82, %81 : vector<4x16xf32>
      %84 = arith.divf %82, %83 : vector<4x16xf32>
      %85 = arith.mulf %76, %52 : vector<4x16xf32>
      %86 = arith.mulf %70, %78 : vector<4x16xf32>
      %87 = arith.addf %85, %86 : vector<4x16xf32>
      %88 = math.tanh %87 : vector<4x16xf32>
      %89 = arith.mulf %84, %88 : vector<4x16xf32>
      %90 = vector.extract_strided_slice %89 {offsets = [0, 0], sizes = [2, 16], strides = [1, 1]} : vector<4x16xf32> to vector<2x16xf32>
      %91 = vector.extract_strided_slice %89 {offsets = [2, 0], sizes = [2, 16], strides = [1, 1]} : vector<4x16xf32> to vector<2x16xf32>
      %cst_24 = arith.constant dense<0.000000e+00> : vector<4x128xf32>
      %92 = tpu.matmul %89, %7, %cst_24 {dimension_numbers = #tpu.dot_dimension_numbers<[1], [0], [0], [1], [0, 0, 1, 1], [], []>} : vector<4x16xf32>, vector<16x128xf32>, vector<4x128xf32> -> vector<4x128xf32>
      %93 = vector.extract_strided_slice %19 {offsets = [4, 0], sizes = [2, 64], strides = [1, 1]} : vector<16x128xf32> to vector<2x64xf32>
      %94 = vector.extract_strided_slice %92 {offsets = [0, 0], sizes = [2, 64], strides = [1, 1]} : vector<4x128xf32> to vector<2x64xf32>
      %95 = arith.addf %93, %94 : vector<2x64xf32>
      %96 = vector.extract_strided_slice %21 {offsets = [10, 64], sizes = [2, 64], strides = [1, 1]} : vector<16x128xf32> to vector<2x64xf32>
      %97 = vector.extract_strided_slice %92 {offsets = [2, 64], sizes = [2, 64], strides = [1, 1]} : vector<4x128xf32> to vector<2x64xf32>
      %98 = arith.addf %96, %97 : vector<2x64xf32>
      %99 = tpu.concatenate %95, %98 in 0 : vector<2x64xf32>, vector<2x64xf32> -> vector<4x64xf32>
      %100 = vector.extract_strided_slice %99 {offsets = [0, 0], sizes = [4, 16], strides = [1, 1]} : vector<4x64xf32> to vector<4x16xf32>
      %101 = arith.negf %100 : vector<4x16xf32>
      %102 = math.exp %101 : vector<4x16xf32>
      %cst_25 = arith.constant 1.000000e+00 : f32
      %103 = vector.broadcast %cst_25 : f32 to vector<4x16xf32>
      %104 = arith.addf %103, %102 : vector<4x16xf32>
      %105 = arith.divf %103, %104 : vector<4x16xf32>
      %106 = vector.extract_strided_slice %99 {offsets = [0, 16], sizes = [4, 16], strides = [1, 1]} : vector<4x64xf32> to vector<4x16xf32>
      %107 = arith.negf %106 : vector<4x16xf32>
      %108 = math.exp %107 : vector<4x16xf32>
      %cst_26 = arith.constant 1.000000e+00 : f32
      %109 = vector.broadcast %cst_26 : f32 to vector<4x16xf32>
      %110 = arith.addf %109, %108 : vector<4x16xf32>
      %111 = arith.divf %109, %110 : vector<4x16xf32>
      %112 = vector.extract_strided_slice %99 {offsets = [0, 32], sizes = [4, 16], strides = [1, 1]} : vector<4x64xf32> to vector<4x16xf32>
      %113 = math.tanh %112 : vector<4x16xf32>
      %114 = vector.extract_strided_slice %99 {offsets = [0, 48], sizes = [4, 16], strides = [1, 1]} : vector<4x64xf32> to vector<4x16xf32>
      %115 = arith.negf %114 : vector<4x16xf32>
      %116 = math.exp %115 : vector<4x16xf32>
      %cst_27 = arith.constant 1.000000e+00 : f32
      %117 = vector.broadcast %cst_27 : f32 to vector<4x16xf32>
      %118 = arith.addf %117, %116 : vector<4x16xf32>
      %119 = arith.divf %117, %118 : vector<4x16xf32>
      %120 = arith.mulf %111, %87 : vector<4x16xf32>
      %121 = arith.mulf %105, %113 : vector<4x16xf32>
      %122 = arith.addf %120, %121 : vector<4x16xf32>
      %123 = math.tanh %122 : vector<4x16xf32>
      %124 = arith.mulf %119, %123 : vector<4x16xf32>
      %125 = vector.extract_strided_slice %124 {offsets = [0, 0], sizes = [2, 16], strides = [1, 1]} : vector<4x16xf32> to vector<2x16xf32>
      %126 = vector.extract_strided_slice %124 {offsets = [2, 0], sizes = [2, 16], strides = [1, 1]} : vector<4x16xf32> to vector<2x16xf32>
      %cst_28 = arith.constant dense<0.000000e+00> : vector<4x128xf32>
      %127 = tpu.matmul %124, %7, %cst_28 {dimension_numbers = #tpu.dot_dimension_numbers<[1], [0], [0], [1], [0, 0, 1, 1], [], []>} : vector<4x16xf32>, vector<16x128xf32>, vector<4x128xf32> -> vector<4x128xf32>
      %128 = vector.extract_strided_slice %19 {offsets = [6, 0], sizes = [2, 64], strides = [1, 1]} : vector<16x128xf32> to vector<2x64xf32>
      %129 = vector.extract_strided_slice %127 {offsets = [0, 0], sizes = [2, 64], strides = [1, 1]} : vector<4x128xf32> to vector<2x64xf32>
      %130 = arith.addf %128, %129 : vector<2x64xf32>
      %131 = vector.extract_strided_slice %21 {offsets = [8, 64], sizes = [2, 64], strides = [1, 1]} : vector<16x128xf32> to vector<2x64xf32>
      %132 = vector.extract_strided_slice %127 {offsets = [2, 64], sizes = [2, 64], strides = [1, 1]} : vector<4x128xf32> to vector<2x64xf32>
      %133 = arith.addf %131, %132 : vector<2x64xf32>
      %134 = tpu.concatenate %130, %133 in 0 : vector<2x64xf32>, vector<2x64xf32> -> vector<4x64xf32>
      %135 = vector.extract_strided_slice %134 {offsets = [0, 0], sizes = [4, 16], strides = [1, 1]} : vector<4x64xf32> to vector<4x16xf32>
      %136 = arith.negf %135 : vector<4x16xf32>
      %137 = math.exp %136 : vector<4x16xf32>
      %cst_29 = arith.constant 1.000000e+00 : f32
      %138 = vector.broadcast %cst_29 : f32 to vector<4x16xf32>
      %139 = arith.addf %138, %137 : vector<4x16xf32>
      %140 = arith.divf %138, %139 : vector<4x16xf32>
      %141 = vector.extract_strided_slice %134 {offsets = [0, 16], sizes = [4, 16], strides = [1, 1]} : vector<4x64xf32> to vector<4x16xf32>
      %142 = arith.negf %141 : vector<4x16xf32>
      %143 = math.exp %142 : vector<4x16xf32>
      %cst_30 = arith.constant 1.000000e+00 : f32
      %144 = vector.broadcast %cst_30 : f32 to vector<4x16xf32>
      %145 = arith.addf %144, %143 : vector<4x16xf32>
      %146 = arith.divf %144, %145 : vector<4x16xf32>
      %147 = vector.extract_strided_slice %134 {offsets = [0, 32], sizes = [4, 16], strides = [1, 1]} : vector<4x64xf32> to vector<4x16xf32>
      %148 = math.tanh %147 : vector<4x16xf32>
      %149 = vector.extract_strided_slice %134 {offsets = [0, 48], sizes = [4, 16], strides = [1, 1]} : vector<4x64xf32> to vector<4x16xf32>
      %150 = arith.negf %149 : vector<4x16xf32>
      %151 = math.exp %150 : vector<4x16xf32>
      %cst_31 = arith.constant 1.000000e+00 : f32
      %152 = vector.broadcast %cst_31 : f32 to vector<4x16xf32>
      %153 = arith.addf %152, %151 : vector<4x16xf32>
      %154 = arith.divf %152, %153 : vector<4x16xf32>
      %155 = arith.mulf %146, %122 : vector<4x16xf32>
      %156 = arith.mulf %140, %148 : vector<4x16xf32>
      %157 = arith.addf %155, %156 : vector<4x16xf32>
      %158 = math.tanh %157 : vector<4x16xf32>
      %159 = arith.mulf %154, %158 : vector<4x16xf32>
      %160 = vector.extract_strided_slice %159 {offsets = [0, 0], sizes = [2, 16], strides = [1, 1]} : vector<4x16xf32> to vector<2x16xf32>
      %161 = vector.extract_strided_slice %159 {offsets = [2, 0], sizes = [2, 16], strides = [1, 1]} : vector<4x16xf32> to vector<2x16xf32>
      %cst_32 = arith.constant dense<0.000000e+00> : vector<4x128xf32>
      %162 = tpu.matmul %159, %7, %cst_32 {dimension_numbers = #tpu.dot_dimension_numbers<[1], [0], [0], [1], [0, 0, 1, 1], [], []>} : vector<4x16xf32>, vector<16x128xf32>, vector<4x128xf32> -> vector<4x128xf32>
      %163 = vector.extract_strided_slice %19 {offsets = [8, 0], sizes = [2, 64], strides = [1, 1]} : vector<16x128xf32> to vector<2x64xf32>
      %164 = vector.extract_strided_slice %162 {offsets = [0, 0], sizes = [2, 64], strides = [1, 1]} : vector<4x128xf32> to vector<2x64xf32>
      %165 = arith.addf %163, %164 : vector<2x64xf32>
      %166 = vector.extract_strided_slice %21 {offsets = [6, 64], sizes = [2, 64], strides = [1, 1]} : vector<16x128xf32> to vector<2x64xf32>
      %167 = vector.extract_strided_slice %162 {offsets = [2, 64], sizes = [2, 64], strides = [1, 1]} : vector<4x128xf32> to vector<2x64xf32>
      %168 = arith.addf %166, %167 : vector<2x64xf32>
      %169 = tpu.concatenate %165, %168 in 0 : vector<2x64xf32>, vector<2x64xf32> -> vector<4x64xf32>
      %170 = vector.extract_strided_slice %169 {offsets = [0, 0], sizes = [4, 16], strides = [1, 1]} : vector<4x64xf32> to vector<4x16xf32>
      %171 = arith.negf %170 : vector<4x16xf32>
      %172 = math.exp %171 : vector<4x16xf32>
      %cst_33 = arith.constant 1.000000e+00 : f32
      %173 = vector.broadcast %cst_33 : f32 to vector<4x16xf32>
      %174 = arith.addf %173, %172 : vector<4x16xf32>
      %175 = arith.divf %173, %174 : vector<4x16xf32>
      %176 = vector.extract_strided_slice %169 {offsets = [0, 16], sizes = [4, 16], strides = [1, 1]} : vector<4x64xf32> to vector<4x16xf32>
      %177 = arith.negf %176 : vector<4x16xf32>
      %178 = math.exp %177 : vector<4x16xf32>
      %cst_34 = arith.constant 1.000000e+00 : f32
      %179 = vector.broadcast %cst_34 : f32 to vector<4x16xf32>
      %180 = arith.addf %179, %178 : vector<4x16xf32>
      %181 = arith.divf %179, %180 : vector<4x16xf32>
      %182 = vector.extract_strided_slice %169 {offsets = [0, 32], sizes = [4, 16], strides = [1, 1]} : vector<4x64xf32> to vector<4x16xf32>
      %183 = math.tanh %182 : vector<4x16xf32>
      %184 = vector.extract_strided_slice %169 {offsets = [0, 48], sizes = [4, 16], strides = [1, 1]} : vector<4x64xf32> to vector<4x16xf32>
      %185 = arith.negf %184 : vector<4x16xf32>
      %186 = math.exp %185 : vector<4x16xf32>
      %cst_35 = arith.constant 1.000000e+00 : f32
      %187 = vector.broadcast %cst_35 : f32 to vector<4x16xf32>
      %188 = arith.addf %187, %186 : vector<4x16xf32>
      %189 = arith.divf %187, %188 : vector<4x16xf32>
      %190 = arith.mulf %181, %157 : vector<4x16xf32>
      %191 = arith.mulf %175, %183 : vector<4x16xf32>
      %192 = arith.addf %190, %191 : vector<4x16xf32>
      %193 = math.tanh %192 : vector<4x16xf32>
      %194 = arith.mulf %189, %193 : vector<4x16xf32>
      %195 = vector.extract_strided_slice %194 {offsets = [0, 0], sizes = [2, 16], strides = [1, 1]} : vector<4x16xf32> to vector<2x16xf32>
      %196 = vector.extract_strided_slice %194 {offsets = [2, 0], sizes = [2, 16], strides = [1, 1]} : vector<4x16xf32> to vector<2x16xf32>
      %cst_36 = arith.constant dense<0.000000e+00> : vector<4x128xf32>
      %197 = tpu.matmul %194, %7, %cst_36 {dimension_numbers = #tpu.dot_dimension_numbers<[1], [0], [0], [1], [0, 0, 1, 1], [], []>} : vector<4x16xf32>, vector<16x128xf32>, vector<4x128xf32> -> vector<4x128xf32>
      %198 = vector.extract_strided_slice %19 {offsets = [10, 0], sizes = [2, 64], strides = [1, 1]} : vector<16x128xf32> to vector<2x64xf32>
      %199 = vector.extract_strided_slice %197 {offsets = [0, 0], sizes = [2, 64], strides = [1, 1]} : vector<4x128xf32> to vector<2x64xf32>
      %200 = arith.addf %198, %199 : vector<2x64xf32>
      %201 = vector.extract_strided_slice %21 {offsets = [4, 64], sizes = [2, 64], strides = [1, 1]} : vector<16x128xf32> to vector<2x64xf32>
      %202 = vector.extract_strided_slice %197 {offsets = [2, 64], sizes = [2, 64], strides = [1, 1]} : vector<4x128xf32> to vector<2x64xf32>
      %203 = arith.addf %201, %202 : vector<2x64xf32>
      %204 = tpu.concatenate %200, %203 in 0 : vector<2x64xf32>, vector<2x64xf32> -> vector<4x64xf32>
      %205 = vector.extract_strided_slice %204 {offsets = [0, 0], sizes = [4, 16], strides = [1, 1]} : vector<4x64xf32> to vector<4x16xf32>
      %206 = arith.negf %205 : vector<4x16xf32>
      %207 = math.exp %206 : vector<4x16xf32>
      %cst_37 = arith.constant 1.000000e+00 : f32
      %208 = vector.broadcast %cst_37 : f32 to vector<4x16xf32>
      %209 = arith.addf %208, %207 : vector<4x16xf32>
      %210 = arith.divf %208, %209 : vector<4x16xf32>
      %211 = vector.extract_strided_slice %204 {offsets = [0, 16], sizes = [4, 16], strides = [1, 1]} : vector<4x64xf32> to vector<4x16xf32>
      %212 = arith.negf %211 : vector<4x16xf32>
      %213 = math.exp %212 : vector<4x16xf32>
      %cst_38 = arith.constant 1.000000e+00 : f32
      %214 = vector.broadcast %cst_38 : f32 to vector<4x16xf32>
      %215 = arith.addf %214, %213 : vector<4x16xf32>
      %216 = arith.divf %214, %215 : vector<4x16xf32>
      %217 = vector.extract_strided_slice %204 {offsets = [0, 32], sizes = [4, 16], strides = [1, 1]} : vector<4x64xf32> to vector<4x16xf32>
      %218 = math.tanh %217 : vector<4x16xf32>
      %219 = vector.extract_strided_slice %204 {offsets = [0, 48], sizes = [4, 16], strides = [1, 1]} : vector<4x64xf32> to vector<4x16xf32>
      %220 = arith.negf %219 : vector<4x16xf32>
      %221 = math.exp %220 : vector<4x16xf32>
      %cst_39 = arith.constant 1.000000e+00 : f32
      %222 = vector.broadcast %cst_39 : f32 to vector<4x16xf32>
      %223 = arith.addf %222, %221 : vector<4x16xf32>
      %224 = arith.divf %222, %223 : vector<4x16xf32>
      %225 = arith.mulf %216, %192 : vector<4x16xf32>
      %226 = arith.mulf %210, %218 : vector<4x16xf32>
      %227 = arith.addf %225, %226 : vector<4x16xf32>
      %228 = math.tanh %227 : vector<4x16xf32>
      %229 = arith.mulf %224, %228 : vector<4x16xf32>
      %230 = vector.extract_strided_slice %229 {offsets = [0, 0], sizes = [2, 16], strides = [1, 1]} : vector<4x16xf32> to vector<2x16xf32>
      %231 = vector.extract_strided_slice %229 {offsets = [2, 0], sizes = [2, 16], strides = [1, 1]} : vector<4x16xf32> to vector<2x16xf32>
      %cst_40 = arith.constant dense<0.000000e+00> : vector<4x128xf32>
      %232 = tpu.matmul %229, %7, %cst_40 {dimension_numbers = #tpu.dot_dimension_numbers<[1], [0], [0], [1], [0, 0, 1, 1], [], []>} : vector<4x16xf32>, vector<16x128xf32>, vector<4x128xf32> -> vector<4x128xf32>
      %233 = vector.extract_strided_slice %19 {offsets = [12, 0], sizes = [2, 64], strides = [1, 1]} : vector<16x128xf32> to vector<2x64xf32>
      %234 = vector.extract_strided_slice %232 {offsets = [0, 0], sizes = [2, 64], strides = [1, 1]} : vector<4x128xf32> to vector<2x64xf32>
      %235 = arith.addf %233, %234 : vector<2x64xf32>
      %236 = vector.extract_strided_slice %21 {offsets = [2, 64], sizes = [2, 64], strides = [1, 1]} : vector<16x128xf32> to vector<2x64xf32>
      %237 = vector.extract_strided_slice %232 {offsets = [2, 64], sizes = [2, 64], strides = [1, 1]} : vector<4x128xf32> to vector<2x64xf32>
      %238 = arith.addf %236, %237 : vector<2x64xf32>
      %239 = tpu.concatenate %235, %238 in 0 : vector<2x64xf32>, vector<2x64xf32> -> vector<4x64xf32>
      %240 = vector.extract_strided_slice %239 {offsets = [0, 0], sizes = [4, 16], strides = [1, 1]} : vector<4x64xf32> to vector<4x16xf32>
      %241 = arith.negf %240 : vector<4x16xf32>
      %242 = math.exp %241 : vector<4x16xf32>
      %cst_41 = arith.constant 1.000000e+00 : f32
      %243 = vector.broadcast %cst_41 : f32 to vector<4x16xf32>
      %244 = arith.addf %243, %242 : vector<4x16xf32>
      %245 = arith.divf %243, %244 : vector<4x16xf32>
      %246 = vector.extract_strided_slice %239 {offsets = [0, 16], sizes = [4, 16], strides = [1, 1]} : vector<4x64xf32> to vector<4x16xf32>
      %247 = arith.negf %246 : vector<4x16xf32>
      %248 = math.exp %247 : vector<4x16xf32>
      %cst_42 = arith.constant 1.000000e+00 : f32
      %249 = vector.broadcast %cst_42 : f32 to vector<4x16xf32>
      %250 = arith.addf %249, %248 : vector<4x16xf32>
      %251 = arith.divf %249, %250 : vector<4x16xf32>
      %252 = vector.extract_strided_slice %239 {offsets = [0, 32], sizes = [4, 16], strides = [1, 1]} : vector<4x64xf32> to vector<4x16xf32>
      %253 = math.tanh %252 : vector<4x16xf32>
      %254 = vector.extract_strided_slice %239 {offsets = [0, 48], sizes = [4, 16], strides = [1, 1]} : vector<4x64xf32> to vector<4x16xf32>
      %255 = arith.negf %254 : vector<4x16xf32>
      %256 = math.exp %255 : vector<4x16xf32>
      %cst_43 = arith.constant 1.000000e+00 : f32
      %257 = vector.broadcast %cst_43 : f32 to vector<4x16xf32>
      %258 = arith.addf %257, %256 : vector<4x16xf32>
      %259 = arith.divf %257, %258 : vector<4x16xf32>
      %260 = arith.mulf %251, %227 : vector<4x16xf32>
      %261 = arith.mulf %245, %253 : vector<4x16xf32>
      %262 = arith.addf %260, %261 : vector<4x16xf32>
      %263 = math.tanh %262 : vector<4x16xf32>
      %264 = arith.mulf %259, %263 : vector<4x16xf32>
      %265 = vector.extract_strided_slice %264 {offsets = [0, 0], sizes = [2, 16], strides = [1, 1]} : vector<4x16xf32> to vector<2x16xf32>
      %266 = vector.extract_strided_slice %264 {offsets = [2, 0], sizes = [2, 16], strides = [1, 1]} : vector<4x16xf32> to vector<2x16xf32>
      %cst_44 = arith.constant dense<0.000000e+00> : vector<4x128xf32>
      %267 = tpu.matmul %264, %7, %cst_44 {dimension_numbers = #tpu.dot_dimension_numbers<[1], [0], [0], [1], [0, 0, 1, 1], [], []>} : vector<4x16xf32>, vector<16x128xf32>, vector<4x128xf32> -> vector<4x128xf32>
      %268 = vector.extract_strided_slice %19 {offsets = [14, 0], sizes = [2, 64], strides = [1, 1]} : vector<16x128xf32> to vector<2x64xf32>
      %269 = vector.extract_strided_slice %267 {offsets = [0, 0], sizes = [2, 64], strides = [1, 1]} : vector<4x128xf32> to vector<2x64xf32>
      %270 = arith.addf %268, %269 : vector<2x64xf32>
      %271 = vector.extract_strided_slice %21 {offsets = [0, 64], sizes = [2, 64], strides = [1, 1]} : vector<16x128xf32> to vector<2x64xf32>
      %272 = vector.extract_strided_slice %267 {offsets = [2, 64], sizes = [2, 64], strides = [1, 1]} : vector<4x128xf32> to vector<2x64xf32>
      %273 = arith.addf %271, %272 : vector<2x64xf32>
      %274 = tpu.concatenate %270, %273 in 0 : vector<2x64xf32>, vector<2x64xf32> -> vector<4x64xf32>
      %275 = vector.extract_strided_slice %274 {offsets = [0, 0], sizes = [4, 16], strides = [1, 1]} : vector<4x64xf32> to vector<4x16xf32>
      %276 = arith.negf %275 : vector<4x16xf32>
      %277 = math.exp %276 : vector<4x16xf32>
      %cst_45 = arith.constant 1.000000e+00 : f32
      %278 = vector.broadcast %cst_45 : f32 to vector<4x16xf32>
      %279 = arith.addf %278, %277 : vector<4x16xf32>
      %280 = arith.divf %278, %279 : vector<4x16xf32>
      %281 = vector.extract_strided_slice %274 {offsets = [0, 16], sizes = [4, 16], strides = [1, 1]} : vector<4x64xf32> to vector<4x16xf32>
      %282 = arith.negf %281 : vector<4x16xf32>
      %283 = math.exp %282 : vector<4x16xf32>
      %cst_46 = arith.constant 1.000000e+00 : f32
      %284 = vector.broadcast %cst_46 : f32 to vector<4x16xf32>
      %285 = arith.addf %284, %283 : vector<4x16xf32>
      %286 = arith.divf %284, %285 : vector<4x16xf32>
      %287 = vector.extract_strided_slice %274 {offsets = [0, 32], sizes = [4, 16], strides = [1, 1]} : vector<4x64xf32> to vector<4x16xf32>
      %288 = math.tanh %287 : vector<4x16xf32>
      %289 = vector.extract_strided_slice %274 {offsets = [0, 48], sizes = [4, 16], strides = [1, 1]} : vector<4x64xf32> to vector<4x16xf32>
      %290 = arith.negf %289 : vector<4x16xf32>
      %291 = math.exp %290 : vector<4x16xf32>
      %cst_47 = arith.constant 1.000000e+00 : f32
      %292 = vector.broadcast %cst_47 : f32 to vector<4x16xf32>
      %293 = arith.addf %292, %291 : vector<4x16xf32>
      %294 = arith.divf %292, %293 : vector<4x16xf32>
      %295 = arith.mulf %286, %262 : vector<4x16xf32>
      %296 = arith.mulf %280, %288 : vector<4x16xf32>
      %297 = arith.addf %295, %296 : vector<4x16xf32>
      %298 = math.tanh %297 : vector<4x16xf32>
      %299 = arith.mulf %294, %298 : vector<4x16xf32>
      %300 = vector.extract_strided_slice %299 {offsets = [0, 0], sizes = [2, 16], strides = [1, 1]} : vector<4x16xf32> to vector<2x16xf32>
      %301 = vector.extract_strided_slice %299 {offsets = [2, 0], sizes = [2, 16], strides = [1, 1]} : vector<4x16xf32> to vector<2x16xf32>
      %302 = tpu.concatenate %55, %90, %125, %160, %195, %230, %265, %300 in 0 : vector<2x16xf32>, vector<2x16xf32>, vector<2x16xf32>, vector<2x16xf32>, vector<2x16xf32>, vector<2x16xf32>, vector<2x16xf32>, vector<2x16xf32> -> vector<16x16xf32>
      %303 = arith.index_cast %12 : i32 to index
      %c0_48 = arith.constant 0 : index
      %304 = vector.load %arg4[%303, %c0_48] : memref<32x32xf32, #tpu.memory_space<vmem>>, vector<16x16xf32>
      tpu.vector_store %arg4[%303, %c0_48], %302 {strides = array<i32>} : memref<32x32xf32, #tpu.memory_space<vmem>>, vector<16x16xf32>,
      %305 = tpu.concatenate %301, %266, %231, %196, %161, %126, %91, %56 in 0 : vector<2x16xf32>, vector<2x16xf32>, vector<2x16xf32>, vector<2x16xf32>, vector<2x16xf32>, vector<2x16xf32>, vector<2x16xf32>, vector<2x16xf32> -> vector<16x16xf32>
      %306 = arith.index_cast %17 : i32 to index
      %c16 = arith.constant 16 : index
      %307 = vector.load %arg4[%306, %c16] : memref<32x32xf32, #tpu.memory_space<vmem>>, vector<16x16xf32>
      tpu.vector_store %arg4[%306, %c16], %305 {strides = array<i32>} : memref<32x32xf32, #tpu.memory_space<vmem>>, vector<16x16xf32>,
      scf.yield %299, %297 : vector<4x16xf32>, vector<4x16xf32>
    }
    %c2_i32_10 = arith.constant 2 : i32
    return
  }
}

</mosaic_0001>

<bundles_post_ra>
// kernel: encoder_forward.4
= control target key start
LH: loop header
LB: loop body
LE: loop exit
PB: predicated region body
PF: predicated region fallthrough
CT: control target
= control target key end

     0   :  { %s2211_s1 = inlined_call_operand.vmem [shape: bf16[512,128], index: 1, kind: input, shape index: {}]   ;;  %s2212_s4 = inlined_call_operand.vmem [shape: bf16[32,32], index: 4, kind: output, shape index: {}]   ;;  %s2213_s0 = inlined_call_operand.vmem [shape: bf16[32,512], index: 0, kind: input, shape index: {}]   ;;  %s2214_s3 = inlined_call_operand.vmem [shape: f32[16,128], index: 3, kind: input, shape index: {}]   ;;  %s2215_s2 = inlined_call_operand.vmem [shape: f32[1,128], index: 2, kind: input, shape index: {}]  }
   0x1   :  { %v1706_v0 = vld [vmem:[%s2211_s1 + $0x40] sm:$0xff]   ;;  %v1710_v4 = vld [vmem:[%s2211_s1 + $0x48] sm:$0xff]   ;;  %v1714_v8 = vld [vmem:[%s2211_s1 + $0x50] sm:$0xff]  }
   0x2   :  { %v1707_v1 = vld [vmem:[%s2211_s1 + $0xc0] sm:$0xff]   ;;  %1514 = vmatprep.subr.bf16.mxu0 %v1706_v0  ;;  %v1711_v5 = vld [vmem:[%s2211_s1 + $0xc8] sm:$0xff]   ;;  %v1715_v9 = vld [vmem:[%s2211_s1 + $0xd0] sm:$0xff]  }
   0x3   :  { %v1708_v2 = vld [vmem:[%s2211_s1] sm:$0xff]   ;;  %1542 = vmatprep.subr.bf16.mxu1 %v1707_v1  ;;  %v1712_v6 = vld [vmem:[%s2211_s1 + $0x8] sm:$0xff]   ;;  %v1716_v10 = vld [vmem:[%s2211_s1 + $0x10] sm:$0xff]  }
   0x4   :  { %v1709_v3 = vld [vmem:[%s2211_s1 + $0x80] sm:$0xff]   ;;  %1515 = vmatpush3.bf16.msra.mxu0 %v1708_v2  ;;  %v1713_v7 = vld [vmem:[%s2211_s1 + $0x88] sm:$0xff]   ;;  %v1717_v11 = vld [vmem:[%s2211_s1 + $0x90] sm:$0xff]  }
   0x5   :  { %1543 = vmatpush3.bf16.msra.mxu1 %v1709_v3  ;;  %1516 = vmatprep.subr.bf16.mxu0 %v1710_v4  ;;  %v1718_v12 = vld [vmem:[%s2211_s1 + $0x58] sm:$0xff]   ;;  %v1722_v16 = vld [vmem:[%s2211_s1 + $0x60] sm:$0xff]   ;;  %v1726_v20 = vld [vmem:[%s2211_s1 + $0x68] sm:$0xff]  }
   0x6   :  { %1544 = vmatprep.subr.bf16.mxu1 %v1711_v5  ;;  %v1719_v13 = vld [vmem:[%s2211_s1 + $0xd8] sm:$0xff]   ;;  %v1723_v17 = vld [vmem:[%s2211_s1 + $0xe0] sm:$0xff]   ;;  %v1727_v21 = vld [vmem:[%s2211_s1 + $0xe8] sm:$0xff]  }
   0x7   :  { %v1720_v14 = vld [vmem:[%s2211_s1 + $0x18] sm:$0xff]   ;;  %v1724_v18 = vld [vmem:[%s2211_s1 + $0x20] sm:$0xff]   ;;  %v1728_v22 = vld [vmem:[%s2211_s1 + $0x28] sm:$0xff]  }
   0x8   :  { %1517 = vmatpush3.bf16.msra.mxu0 %v1712_v6  ;;  %v1721_v15 = vld [vmem:[%s2211_s1 + $0x98] sm:$0xff]   ;;  %v1725_v19 = vld [vmem:[%s2211_s1 + $0xa0] sm:$0xff]   ;;  %v1729_v23 = vld [vmem:[%s2211_s1 + $0xa8] sm:$0xff]  }
   0x9   :  { %1545 = vmatpush3.bf16.msra.mxu1 %v1713_v7  ;;  %1518 = vmatprep.subr.bf16.mxu0 %v1714_v8  ;;  %v1730_v24 = vld [vmem:[%s2211_s1 + $0x70] sm:$0xff]   ;;  %v1734_v28 = vld [vmem:[%s2211_s1 + $0x78] sm:$0xff]   ;;  %v1994_v40 = vld [vmem:[%s2214_s3] sm:$0xff] }
   0xa   :  { %1546 = vmatprep.subr.bf16.mxu1 %v1715_v9  ;;  %v1731_v25 = vld [vmem:[%s2211_s1 + $0xf0] sm:$0xff]   ;;  %v1735_v29 = vld [vmem:[%s2211_s1 + $0xf8] sm:$0xff]   ;;  %v1999_v41 = vld [vmem:[%s2214_s3 + $0x8] sm:$0xff] }
   0xb   :  { %v1732_v26 = vld [vmem:[%s2211_s1 + $0x30] sm:$0xff]   ;;  %v1736_v30 = vld [vmem:[%s2211_s1 + $0x38] sm:$0xff]   ;;  %v1442_v44 = vld [vmem:[%s2215_s2] ss:$0 sm:$0xff] }
   0xc   :  { %1519 = vmatpush3.bf16.msra.mxu0 %v1716_v10  ;;  %v1733_v27 = vld [vmem:[%s2211_s1 + $0xb0] sm:$0xff]   ;;  %v1737_v31 = vld [vmem:[%s2211_s1 + $0xb8] sm:$0xff]  }
   0xd   :  { %1547 = vmatpush3.bf16.msra.mxu1 %v1717_v11  ;;  %1520 = vmatprep.subr.bf16.mxu0 %v1718_v12  ;;  %v1738_v32 = vld [vmem:[%s2213_s0] ss:$16 sps:$4 sm:$0xff]   ;;  %v1740_v33 = vld [vmem:[%s2213_s0 + $0x4] ss:$16 sps:$4 sm:$0xff]   ;;  %v1741_v34 = vld [vmem:[%s2213_s0 + $0x8] ss:$16 sps:$4 sm:$0xff]  }
   0xe   :  { %1548 = vmatprep.subr.bf16.mxu1 %v1719_v13  ;;  %v1743_v35 = vld [vmem:[%s2213_s0 + $0xc] ss:$16 sps:$4 sm:$0xff]   ;;  %361 = vmatprep.mubr.bf16.mxu0 %v1740_v33  ;;  %v1744_v36 = vld [vmem:[%s2213_s0 + $0x24] ss:$16 sps:$4 sm:$0xff]   ;;  %v1748_v38 = vld [vmem:[%s2213_s0 + $0x20] ss:$16 sps:$4 sm:$0xff]  }
   0xf   :  { %410 = vmatprep.mubr.bf16.mxu1 %v1743_v35  ;;  %v1746_v37 = vld [vmem:[%s2213_s0 + $0x2c] ss:$16 sps:$4 sm:$0xff]   ;;  %v1749_v39 = vld [vmem:[%s2213_s0 + $0x28] ss:$16 sps:$4 sm:$0xff]   ;;  %v2004_v11 = vmov 0.0   ;;  %v2006_v12 = vmov 0.0  }
  0x10   :  { %1521 = vmatpush3.bf16.msra.mxu0 %v1720_v14  ;;  %s2008_s0 = smov 0  }
  0x11   :  { %1549 = vmatpush3.bf16.msra.mxu1 %v1721_v15  ;;  %1522 = vmatprep.subr.bf16.mxu0 %v1722_v16 }
  0x12   :  { %1550 = vmatprep.subr.bf16.mxu1 %v1723_v17 }
  0x14   :  { %1523 = vmatpush3.bf16.msra.mxu0 %v1724_v18 }
  0x15   :  { %1551 = vmatpush3.bf16.msra.mxu1 %v1725_v19  ;;  %1524 = vmatprep.subr.bf16.mxu0 %v1726_v20 }
  0x16   :  { %1552 = vmatprep.subr.bf16.mxu1 %v1727_v21 }
  0x18   :  { %1525 = vmatpush3.bf16.msra.mxu0 %v1728_v22 }
  0x19   :  { %1553 = vmatpush3.bf16.msra.mxu1 %v1729_v23  ;;  %1526 = vmatprep.subr.bf16.mxu0 %v1730_v24 }
  0x1a   :  { %1554 = vmatprep.subr.bf16.mxu1 %v1731_v25 }
  0x1c   :  { %1527 = vmatpush3.bf16.msra.mxu0 %v1732_v26 }
  0x1d   :  { %1555 = vmatpush3.bf16.msra.mxu1 %v1733_v27  ;;  %1528 = vmatprep.subr.bf16.mxu0 %v1734_v28 }
  0x1e   :  { %1556 = vmatprep.subr.bf16.mxu1 %v1735_v29 }
  0x20   :  { %1529 = vmatpush3.bf16.msra.mxu0 %v1736_v30 }
  0x21   :  { %1557 = vmatpush3.bf16.msra.mxu1 %v1737_v31 }
  0x23   :  { %362 = vmatmul.mubr.bf16.vlgmr.msra.gmra.mrb[0].mxu0 %v1738_v32 }
  0x24   :  { %411 = vmatmul.mubr.bf16.vlgmr.msra.gmra.mrb[0].mxu1 %v1741_v34  ;;  %369 = vmatprep.mubr.bf16.mxu0 %v1744_v36 }
  0x25   :  { %418 = vmatprep.mubr.bf16.mxu1 %v1746_v37 }
  0x2b   :  { %370 = vmatmul.mubr.bf16.gmra.mrb[4].mxu0 %v1748_v38 }
  0x2c   :  { %419 = vmatmul.mubr.bf16.gmra.mrb[4].mxu1 %v1749_v39 }
  0xf6   :  { %v1530_v42 = vpop.f32.mrb[0].mxu0 }
  0xf7   :  { %v1558_v43 = vpop.f32.mrb[0].mxu1  ;;  %v1531_v45 = vpop.f32.mrb[1].mxu0 }
  0xf8   :  { %v1532_v46 = vadd.f32 %v1531_v45, %v1530_v42  ;;  %v1559_v47 = vpop.f32.mrb[1].mxu1  ;;  %v1533_v48 = vpop.f32.mrb[2].mxu0 }
  0xf9   :  { %v1560_v49 = vadd.f32 %v1559_v47, %v1558_v43  ;;  %v1561_v50 = vpop.f32.mrb[2].mxu1  ;;  %v1534_v51 = vpop.f32.mrb[3].mxu0 }
  0xfa   :  { %v364_v52 = vadd.f32 %v1532_v46, %v1442_v44  ;;  %v1535_v53 = vadd.f32 %v1534_v51, %v1533_v48  ;;  %v1562_v54 = vpop.f32.mrb[3].mxu1 }
  0xfb   :  { %v1563_v55 = vadd.f32 %v1562_v54, %v1561_v50 }
  0xfc   :  { %v413_v56 = vadd.f32 %v1560_v49, %v364_v52  ;;  %v367_v57 = vadd.f32 %v1535_v53, %v1442_v44 }
  0xfe   :  { %427 = vst [vmem:[#allocation2] sm:$0xff] %v413_v56  ;;  %v416_v58 = vadd.f32 %v1563_v55, %v367_v57  ;;  %v1536_v59 = vpop.f32.mrb[4].mxu0 }
  0xff   :  { %v1564_v60 = vpop.f32.mrb[4].mxu1  ;;  %v1537_v61 = vpop.f32.mrb[5].mxu0 }
 0x100   :  { %428 = vst [vmem:[#allocation2 + $0x8] sm:$0xff] %v416_v58  ;;  %v1538_v62 = vadd.f32 %v1537_v61, %v1536_v59  ;;  %v1565_v63 = vpop.f32.mrb[5].mxu1  ;;  %v1539_v0 = vpop.f32.mrb[6].mxu0 }
 0x101   :  { %v1566_v1 = vadd.f32 %v1565_v63, %v1564_v60  ;;  %v1567_v2 = vpop.f32.mrb[6].mxu1  ;;  %v1540_v3 = vpop.f32.mrb[7].mxu0 }
 0x102   :  { %v372_v4 = vadd.f32 %v1538_v62, %v1442_v44  ;;  %v1541_v5 = vadd.f32 %v1540_v3, %v1539_v0  ;;  %v1568_v6 = vpop.f32.mrb[7].mxu1 }
 0x103   :  { %v1569_v7 = vadd.f32 %v1568_v6, %v1567_v2 }
 0x104   :  { %v421_v8 = vadd.f32 %v1566_v1, %v372_v4  ;;  %v375_v9 = vadd.f32 %v1541_v5, %v1442_v44 }
 0x106   :  { %429 = vst [vmem:[#allocation2 + $0x10] sm:$0xff] %v421_v8  ;;  %v424_v10 = vadd.f32 %v1569_v7, %v375_v9 }
 0x108   :  { %430 = vst [vmem:[#allocation2 + $0x18] sm:$0xff] %v424_v10 }
 0x109 LB: > { %v2017_v13 = vpack.c.bf16 %v1999_v41, %v1994_v40  ;;  %v1838_v14 = vmov 0.0|0.0   ;;  %s1839_s2 = smov 80   ;;  %vm1840_vm0 = vmmov 0   ;;  %v1841_v15 = vmov 0.0   ;;  %s1508_s3 = sshll.u32 %s1836_s0, 3  ;;  %s1836_s0 = sphi %s2008_s0, %s438_s0   ;;  %v1832_v12 = vphi %v2006_v12, %v1349_v12   ;;  %v1828_v11 = vphi %v2004_v11, %v2216_v11  }
 0x10a   : > { %1650 = vmatprep.subr.bf16.mxu0 %v1838_v14  ;;  %1653 = vmatprep.subr.bf16.mxu1 %v1838_v14  ;;  %vm455_vm1 = vcmask 130048   ;;  %s1509_s22 = sadd.s32 8, %s1508_s3  ;;  %s1842_s26 = smov 64   ;;  %vm538_vm2 = vcmask 1041408   ;;  %vm1364_vm3 = vcmask 1043456   ;;  %vm1366_vm4 = vcmask 1045504  }
 0x10b   : > { %453 = vrot.lane.b32.xlu0 %v1832_v12, %s1839_s2  ;;  %1652 = vmatpush3.bf16.msra.mxu0 %v2017_v13  ;;  %s444_s23 = ssub.s32 16, %s1509_s22  ;;  %s1483_s27 = sshll.u32 %s1836_s0, 4  ;;  %vm1387_vm5 = vcmask 125952   ;;  %vm1416_vm6 = vcmask 257152  }
 0x10c   : > { %1598 = vmatprep.mubr.msk.f32.mxu0 %vm1840_vm0, %v1841_v15  ;;  %1655 = vmatpush3.bf16.msra.mxu1 %v2017_v13  ;;  %s2036_s24 = sshll.u32 %s444_s23, 1  ;;  %s2048_s28 = scalar_lea.vmem [#allocation2], %s1483_s27 }
 0x10d   : > { %1605 = vmatprep.mubr.msk.f32.mxu1 %vm1840_vm0, %v1841_v15  ;;  %1656 = vmatprep.subr.bf16.mxu0 %v1838_v14  ;;  %s449_s25 = scalar_lea.vmem [#allocation2], %s2036_s24  ;;  %s1843_s29 = smov 96  }
 0x10e   : > { %1659 = vmatprep.subr.bf16.mxu1 %v1838_v14  ;;  %s1844_s30 = smov 16   ;;  %s1845_s5 = smov 32  }
 0x10f   : > { %v2041_v17 = vld [vmem:[%s449_s25 + $0x8] sm:$0xff]  ;;  %v2051_v23 = vld [vmem:[%s2048_s28] sm:$0xff]  ;;  %s1383_s6 = sshra.s32 %s1483_s27, 3  ;;  %s1412_s10 = sshra.s32 %s2036_s24, 3 }
 0x110   : > { %s1504_s7 = sshll.u32 %s1383_s6, 2  ;;  %s1507_s11 = sshll.u32 %s1412_s10, 2 }
 0x111   : > { %s2176_s9 = scalar_lea.vmem %s2212_s4, %s1504_s7  ;;  %s1415_s14 = scalar_lea.vmem %s2212_s4, %s1507_s11 }
 0x112   : > { %s438_s0 = sadd.s32 1, %s1836_s0  }
 0x113   : > { %p435_p0 = scmp.ge.s32.totalorder %s438_s0, 2  }
 0x17d   : > { %v454_v16 = vpop.permute.xlu0 %453 }
 0x17e   : > { %1599 = vmatmul.mubr.msk.f32.vlgmr.msra.gmra.mrb[0].mxu0 %vm455_vm1, %v454_v16 }
 0x17f   : > { %1658 = vmatpush3.bf16.msra.mxu0 %v2017_v13  ;;  %1612 = vmatprep.mubr.msk.f32.mxu0 %vm1840_vm0, %v1841_v15 }
 0x180   : > { %1662 = vmatprep.subr.bf16.mxu0 %v1838_v14 }
 0x251   : > { %v524_v18 = vpop.f32.mrb[0].mxu0 }
 0x252   : > { %v530_v19 = vrot.slane %v524_v18, 4  ;;  %v1600_v20 = vpop.f32.mrb[1].mxu0  ;;  %v528_v24 = vadd.f32 %v524_v18, %v2051_v23 }
 0x254   : > { %v532_v21 = vadd.f32 %v530_v19, %v2041_v17 }
 0x256   : > { %v534_v22 = vrot.slane %v532_v21, 4 }
 0x258   : > { %535 = vrot.lane.b32.xlu0 %v534_v22, %s1842_s26 }
 0x2ca   : > { %v536_v25 = vpop.permute.xlu0 %535 }
 0x2cb   : > { %v539_v26 = vsel %vm538_vm2, %v528_v24, %v536_v25 }
 0x2cc   : > { %1750 = vtanh.f32 %v539_v26  ;;  %v1487_v28 = vmul.f32 -1.442695, %v539_v26 }
 0x2ce   : > { %1752 = vpow2.f32 %v1487_v28 }
 0x2d6   : > { %v1751_v27 = vpop.eup %1750 }
 0x2d7   : > { %549 = vrot.lane.b32.xlu1 %v1751_v27, %s1843_s29 }
 0x2d8   : > { %v1753_v29 = vpop.eup %1752 }
 0x2d9   : > { %v543_v30 = vadd.f32 1.0, %v1753_v29 }
 0x2db   : > { %1754 = vrcp.f32 %v543_v30 }
 0x2e5   : > { %v1755_v31 = vpop.eup %1754 }
 0x2e6   : > { %v547_v34 = vmul.f32 %v1828_v11, %v1755_v31 }
 0x349   : > { %v550_v32 = vpop.permute.xlu1 %549 }
 0x34a   : > { %v552_v33 = vmul.f32 %v1755_v31, %v550_v32 }
 0x34c   : > { %554 = vrot.lane.b32.xlu1 %v552_v33, %s1844_s30 }
 0x3be   : > { %v555_v35 = vpop.permute.xlu1 %554 }
 0x3bf   : > { %v557_v36 = vadd.f32 %v555_v35, %v547_v34 }
 0x3c1   : > { %1756 = vtanh.f32 %v557_v36 }
 0x3cb   : > { %v1757_v37 = vpop.eup %1756 }
 0x3cc   : > { %560 = vrot.lane.b32.xlu0 %v1757_v37, %s1845_s5 }
 0x43e   : > { %v561_v38 = vpop.permute.xlu0 %560 }
 0x43f   : > { %v2058_v39 = vmul.f32 %v1755_v31, %v561_v38 }
 0x441   : > { %565 = vrot.lane.b32.xlu1 %v2058_v39, %s1839_s2 }
 0x4b3   : > { %v566_v42 = vpop.permute.xlu1 %565 }
 0x4b4   : > { %1606 = vmatmul.mubr.msk.f32.vlgmr.msra.gmra.mrb[0].mxu1 %vm455_vm1, %v566_v42 }
 0x4b5   : > { %1661 = vmatpush3.bf16.msra.mxu1 %v2017_v13  ;;  %1619 = vmatprep.mubr.msk.f32.mxu1 %vm1840_vm0, %v1841_v15 }
 0x4b6   : > { %1665 = vmatprep.subr.bf16.mxu1 %v1838_v14 }
 0x587   : > { %v635_v43 = vpop.f32.mrb[0].mxu1 }
 0x588   : > { %v640_v44 = vrot.slane %v635_v43, 6  ;;  %v1607_v45 = vpop.f32.mrb[1].mxu1 }
 0x58a   : > { %v643_v46 = vadd.f32 %v640_v44, %v2041_v17  ;;  %v642_v48 = vadd.f32 %v640_v44, %v2051_v23 }
 0x58c   : > { %v648_v47 = vrot.slane %v643_v46, 2  ;;  %v645_v49 = vrot.slane %v642_v48, 2 }
 0x58e   : > { %649 = vrot.lane.b32.xlu0 %v648_v47, %s1842_s26 }
 0x600   : > { %v650_v50 = vpop.permute.xlu0 %649 }
 0x601   : > { %v652_v51 = vsel %vm538_vm2, %v645_v49, %v650_v50 }
 0x602   : > { %1758 = vtanh.f32 %v652_v51  ;;  %v1489_v53 = vmul.f32 -1.442695, %v652_v51 }
 0x604   : > { %1760 = vpow2.f32 %v1489_v53 }
 0x60c   : > { %v1759_v52 = vpop.eup %1758 }
 0x60d   : > { %662 = vrot.lane.b32.xlu1 %v1759_v52, %s1843_s29  ;;  %v2116_v52 = vld [vmem:[%s449_s25] sm:$0xff] }
 0x60e   : > { %v1761_v54 = vpop.eup %1760 }
 0x60f   : > { %v656_v55 = vadd.f32 1.0, %v1761_v54 }
 0x611   : > { %1762 = vrcp.f32 %v656_v55 }
 0x61b   : > { %v1763_v56 = vpop.eup %1762 }
 0x61c   : > { %v660_v59 = vmul.f32 %v1763_v56, %v557_v36 }
 0x67f   : > { %v663_v57 = vpop.permute.xlu1 %662 }
 0x680   : > { %v665_v58 = vmul.f32 %v1763_v56, %v663_v57 }
 0x682   : > { %667 = vrot.lane.b32.xlu0 %v665_v58, %s1844_s30  ;;  %v2121_v58 = vld [vmem:[%s2048_s28 + $0x8] sm:$0xff] }
 0x6f4   : > { %v668_v60 = vpop.permute.xlu0 %667 }
 0x6f5   : > { %v670_v61 = vadd.f32 %v668_v60, %v660_v59 }
 0x6f7   : > { %1764 = vtanh.f32 %v670_v61 }
 0x701   : > { %v1765_v62 = vpop.eup %1764 }
 0x702   : > { %673 = vrot.lane.b32.xlu1 %v1765_v62, %s1845_s5 }
 0x774   : > { %v674_v63 = vpop.permute.xlu1 %673 }
 0x775   : > { %v2074_v0 = vmul.f32 %v1763_v56, %v674_v63 }
 0x777   : > { %678 = vrot.lane.b32.xlu0 %v2074_v0, %s1839_s2 }
 0x7e9   : > { %v679_v1 = vpop.permute.xlu0 %678 }
 0x7ea   : > { %1613 = vmatmul.mubr.msk.f32.vlgmr.msra.gmra.mrb[2].mxu0 %vm455_vm1, %v679_v1 }
 0x7eb   : > { %1664 = vmatpush3.bf16.msra.mxu0 %v2017_v13  ;;  %1626 = vmatprep.mubr.msk.f32.mxu0 %vm1840_vm0, %v1841_v15 }
 0x7ec   : > { %1668 = vmatprep.subr.bf16.mxu0 %v1838_v14 }
 0x8bd   : > { %v748_v2 = vpop.f32.mrb[2].mxu0 }
 0x8be   : > { %v756_v3 = vadd.f32 %v748_v2, %v2041_v17  ;;  %v1614_v4 = vpop.f32.mrb[3].mxu0  ;;  %v753_v5 = vrot.slane %v748_v2, 4 }
 0x8c0   : > { %761 = vrot.lane.b32.xlu1 %v756_v3, %s1842_s26  ;;  %v755_v6 = vadd.f32 %v753_v5, %v2051_v23 }
 0x8c2   : > { %v758_v7 = vrot.slane %v755_v6, 4 }
 0x932   : > { %v762_v8 = vpop.permute.xlu1 %761 }
 0x933   : > { %v764_v9 = vsel %vm538_vm2, %v758_v7, %v762_v8 }
 0x934   : > { %1766 = vtanh.f32 %v764_v9  ;;  %v1491_v11 = vmul.f32 -1.442695, %v764_v9 }
 0x936   : > { %1768 = vpow2.f32 %v1491_v11 }
 0x93e   : > { %v1767_v10 = vpop.eup %1766 }
 0x93f   : > { %774 = vrot.lane.b32.xlu0 %v1767_v10, %s1843_s29 }
 0x940   : > { %v1769_v12 = vpop.eup %1768 }
 0x941   : > { %v768_v16 = vadd.f32 1.0, %v1769_v12 }
 0x943   : > { %1770 = vrcp.f32 %v768_v16 }
 0x94d   : > { %v1771_v18 = vpop.eup %1770 }
 0x94e   : > { %v772_v21 = vmul.f32 %v1771_v18, %v670_v61 }
 0x9b1   : > { %v775_v19 = vpop.permute.xlu0 %774 }
 0x9b2   : > { %v777_v20 = vmul.f32 %v1771_v18, %v775_v19 }
 0x9b4   : > { %779 = vrot.lane.b32.xlu1 %v777_v20, %s1844_s30 }
 0xa26   : > { %v780_v22 = vpop.permute.xlu1 %779 }
 0xa27   : > { %v782_v24 = vadd.f32 %v780_v22, %v772_v21 }
 0xa29   : > { %1772 = vtanh.f32 %v782_v24 }
 0xa33   : > { %v1773_v25 = vpop.eup %1772 }
 0xa34   : > { %785 = vrot.lane.b32.xlu0 %v1773_v25, %s1845_s5 }
 0xaa6   : > { %v786_v26 = vpop.permute.xlu0 %785 }
 0xaa7   : > { %v2090_v27 = vmul.f32 %v1771_v18, %v786_v26 }
 0xaa9   : > { %790 = vrot.lane.b32.xlu1 %v2090_v27, %s1839_s2 }
 0xb1b   : > { %v791_v28 = vpop.permute.xlu1 %790 }
 0xb1c   : > { %1620 = vmatmul.mubr.msk.f32.vlgmr.msra.gmra.mrb[2].mxu1 %vm455_vm1, %v791_v28 }
 0xb1d   : > { %1667 = vmatpush3.bf16.msra.mxu1 %v2017_v13  ;;  %1633 = vmatprep.mubr.msk.f32.mxu1 %vm1840_vm0, %v1841_v15 }
 0xb1e   : > { %1671 = vmatprep.subr.bf16.mxu1 %v1838_v14 }
 0xbef   : > { %v860_v29 = vpop.f32.mrb[2].mxu1 }
 0xbf0   : > { %v865_v30 = vrot.slane %v860_v29, 2  ;;  %v1621_v31 = vpop.f32.mrb[3].mxu1 }
 0xbf2   : > { %v868_v32 = vadd.f32 %v865_v30, %v2041_v17  ;;  %v867_v34 = vadd.f32 %v865_v30, %v2051_v23 }
 0xbf4   : > { %v873_v33 = vrot.slane %v868_v32, 6  ;;  %v870_v35 = vrot.slane %v867_v34, 6 }
 0xbf6   : > { %874 = vrot.lane.b32.xlu0 %v873_v33, %s1842_s26 }
 0xc68   : > { %v875_v36 = vpop.permute.xlu0 %874 }
 0xc69   : > { %v877_v37 = vsel %vm538_vm2, %v870_v35, %v875_v36 }
 0xc6a   : > { %1774 = vtanh.f32 %v877_v37  ;;  %v1493_v42 = vmul.f32 -1.442695, %v877_v37 }
 0xc6c   : > { %1776 = vpow2.f32 %v1493_v42 }
 0xc74   : > { %v1775_v38 = vpop.eup %1774 }
 0xc75   : > { %887 = vrot.lane.b32.xlu1 %v1775_v38, %s1843_s29 }
 0xc76   : > { %v1777_v14 = vpop.eup %1776 }
 0xc77   : > { %v881_v43 = vadd.f32 1.0, %v1777_v14 }
 0xc79   : > { %1778 = vrcp.f32 %v881_v43 }
 0xc83   : > { %v1779_v44 = vpop.eup %1778 }
 0xc84   : > { %v885_v23 = vmul.f32 %v1779_v44, %v782_v24 }
 0xce7   : > { %v888_v17 = vpop.permute.xlu1 %887 }
 0xce8   : > { %v890_v45 = vmul.f32 %v1779_v44, %v888_v17 }
 0xcea   : > { %892 = vrot.lane.b32.xlu0 %v890_v45, %s1844_s30 }
 0xd5c   : > { %v893_v46 = vpop.permute.xlu0 %892 }
 0xd5d   : > { %v895_v47 = vadd.f32 %v893_v46, %v885_v23 }
 0xd5f   : > { %1780 = vtanh.f32 %v895_v47 }
 0xd69   : > { %v1781_v48 = vpop.eup %1780 }
 0xd6a   : > { %898 = vrot.lane.b32.xlu1 %v1781_v48, %s1845_s5 }
 0xddc   : > { %v899_v49 = vpop.permute.xlu1 %898 }
 0xddd   : > { %v2106_v50 = vmul.f32 %v1779_v44, %v899_v49 }
 0xddf   : > { %903 = vrot.lane.b32.xlu0 %v2106_v50, %s1839_s2 }
 0xe51   : > { %v904_v51 = vpop.permute.xlu0 %903 }
 0xe52   : > { %1627 = vmatmul.mubr.msk.f32.vlgmr.msra.gmra.mrb[4].mxu0 %vm455_vm1, %v904_v51 }
 0xe53   : > { %1670 = vmatpush3.bf16.msra.mxu0 %v2017_v13  ;;  %1640 = vmatprep.mubr.msk.f32.mxu0 %vm1840_vm0, %v1841_v15 }
 0xf25   : > { %v973_v53 = vpop.f32.mrb[4].mxu0 }
 0xf26   : > { %v979_v54 = vrot.slane %v973_v53, 4  ;;  %v1628_v55 = vpop.f32.mrb[5].mxu0  ;;  %v977_v59 = vadd.f32 %v973_v53, %v2121_v58 }
 0xf28   : > { %v981_v56 = vadd.f32 %v979_v54, %v2116_v52 }
 0xf2a   : > { %v983_v57 = vrot.slane %v981_v56, 4 }
 0xf2c   : > { %984 = vrot.lane.b32.xlu1 %v983_v57, %s1842_s26 }
 0xf9e   : > { %v985_v60 = vpop.permute.xlu1 %984 }
 0xf9f   : > { %v987_v61 = vsel %vm538_vm2, %v977_v59, %v985_v60 }
 0xfa0   : > { %1782 = vtanh.f32 %v987_v61  ;;  %v1495_v63 = vmul.f32 -1.442695, %v987_v61 }
 0xfa2   : > { %1784 = vpow2.f32 %v1495_v63 }
 0xfaa   : > { %v1783_v62 = vpop.eup %1782 }
 0xfab   : > { %997 = vrot.lane.b32.xlu0 %v1783_v62, %s1843_s29 }
 0xfac   : > { %v1785_v1 = vpop.eup %1784 }
 0xfad   : > { %v991_v2 = vadd.f32 1.0, %v1785_v1 }
 0xfaf   : > { %1786 = vrcp.f32 %v991_v2 }
 0xfb9   : > { %v1787_v3 = vpop.eup %1786 }
 0xfba   : > { %v995_v6 = vmul.f32 %v1787_v3, %v895_v47 }
0x101d   : > { %v998_v4 = vpop.permute.xlu0 %997 }
0x101e   : > { %v1000_v5 = vmul.f32 %v1787_v3, %v998_v4 }
0x1020   : > { %1002 = vrot.lane.b32.xlu1 %v1000_v5, %s1844_s30 }
0x1092   : > { %v1003_v7 = vpop.permute.xlu1 %1002 }
0x1093   : > { %v1005_v8 = vadd.f32 %v1003_v7, %v995_v6 }
0x1095   : > { %1788 = vtanh.f32 %v1005_v8 }
0x109f   : > { %v1789_v9 = vpop.eup %1788 }
0x10a0   : > { %1008 = vrot.lane.b32.xlu0 %v1789_v9, %s1845_s5 }
0x1112   : > { %v1009_v10 = vpop.permute.xlu0 %1008 }
0x1113   : > { %v2128_v11 = vmul.f32 %v1787_v3, %v1009_v10 }
0x1115   : > { %1013 = vrot.lane.b32.xlu1 %v2128_v11, %s1839_s2 }
0x1187   : > { %v1014_v12 = vpop.permute.xlu1 %1013 }
0x1188   : > { %1634 = vmatmul.mubr.msk.f32.vlgmr.msra.gmra.mrb[4].mxu1 %vm455_vm1, %v1014_v12 }
0x1189   : > { %1673 = vmatpush3.bf16.msra.mxu1 %v2017_v13  ;;  %1647 = vmatprep.mubr.msk.f32.mxu1 %vm1840_vm0, %v1841_v15 }
0x125b   : > { %v1083_v16 = vpop.f32.mrb[4].mxu1 }
0x125c   : > { %v1088_v18 = vrot.slane %v1083_v16, 6  ;;  %v1635_v19 = vpop.f32.mrb[5].mxu1 }
0x125e   : > { %v1091_v20 = vadd.f32 %v1088_v18, %v2116_v52  ;;  %v1090_v22 = vadd.f32 %v1088_v18, %v2121_v58 }
0x1260   : > { %v1096_v21 = vrot.slane %v1091_v20, 2  ;;  %v1093_v24 = vrot.slane %v1090_v22, 2  ;;  %v1352_v20 = vrot.slane %v2090_v27, 4 }
0x1262   : > { %1097 = vrot.lane.b32.xlu0 %v1096_v21, %s1842_s26 }
0x12d4   : > { %v1098_v25 = vpop.permute.xlu0 %1097 }
0x12d5   : > { %v1100_v26 = vsel %vm538_vm2, %v1093_v24, %v1098_v25 }
0x12d6   : > { %1790 = vtanh.f32 %v1100_v26  ;;  %v1497_v13 = vmul.f32 -1.442695, %v1100_v26 }
0x12d8   : > { %1792 = vpow2.f32 %v1497_v13 }
0x12e0   : > { %v1791_v28 = vpop.eup %1790 }
0x12e1   : > { %1110 = vrot.lane.b32.xlu1 %v1791_v28, %s1843_s29 }
0x12e2   : > { %v1793_v15 = vpop.eup %1792 }
0x12e3   : > { %v1104_v29 = vadd.f32 1.0, %v1793_v15 }
0x12e5   : > { %1794 = vrcp.f32 %v1104_v29 }
0x12ef   : > { %v1795_v30 = vpop.eup %1794 }
0x12f0   : > { %v1108_v33 = vmul.f32 %v1795_v30, %v1005_v8 }
0x1353   : > { %v1111_v31 = vpop.permute.xlu1 %1110 }
0x1354   : > { %v1113_v32 = vmul.f32 %v1795_v30, %v1111_v31 }
0x1356   : > { %1115 = vrot.lane.b32.xlu0 %v1113_v32, %s1844_s30 }
0x13c8   : > { %v1116_v34 = vpop.permute.xlu0 %1115 }
0x13c9   : > { %v1118_v35 = vadd.f32 %v1116_v34, %v1108_v33 }
0x13cb   : > { %1796 = vtanh.f32 %v1118_v35 }
0x13d5   : > { %v1797_v36 = vpop.eup %1796 }
0x13d6   : > { %1121 = vrot.lane.b32.xlu1 %v1797_v36, %s1845_s5 }
0x1448   : > { %v1122_v37 = vpop.permute.xlu1 %1121 }
0x1449   : > { %v2143_v38 = vmul.f32 %v1795_v30, %v1122_v37 }
0x144b   : > { %1126 = vrot.lane.b32.xlu0 %v2143_v38, %s1839_s2  ;;  %v1356_v31 = vrot.slane %v2143_v38, 6 }
0x14bd   : > { %v1127_v42 = vpop.permute.xlu0 %1126 }
0x14be   : > { %1641 = vmatmul.mubr.msk.f32.vlgmr.msra.gmra.mrb[6].mxu0 %vm455_vm1, %v1127_v42 }
0x1591   : > { %v1196_v14 = vpop.f32.mrb[6].mxu0 }
0x1592   : > { %v1204_v43 = vadd.f32 %v1196_v14, %v2116_v52  ;;  %v1642_v44 = vpop.f32.mrb[7].mxu0  ;;  %v1201_v17 = vrot.slane %v1196_v14, 4  ;;  %v1392_v14 = vrot.slane %v2058_v39, 4 }
0x1594   : > { %1209 = vrot.lane.b32.xlu1 %v1204_v43, %s1842_s26  ;;  %v1203_v45 = vadd.f32 %v1201_v17, %v2121_v58  ;;  %v1390_v43 = vrot.slane %v2128_v11, 4 }
0x1596   : > { %v1206_v23 = vrot.slane %v1203_v45, 4 }
0x1606   : > { %v1210_v46 = vpop.permute.xlu1 %1209 }
0x1607   : > { %v1212_v47 = vsel %vm538_vm2, %v1206_v23, %v1210_v46 }
0x1608   : > { %1798 = vtanh.f32 %v1212_v47  ;;  %v1499_v49 = vmul.f32 -1.442695, %v1212_v47 }
0x160a   : > { %1800 = vpow2.f32 %v1499_v49 }
0x1612   : > { %v1799_v48 = vpop.eup %1798 }
0x1613   : > { %1222 = vrot.lane.b32.xlu0 %v1799_v48, %s1843_s29 }
0x1614   : > { %v1801_v51 = vpop.eup %1800 }
0x1615   : > { %v1216_v53 = vadd.f32 1.0, %v1801_v51 }
0x1617   : > { %1802 = vrcp.f32 %v1216_v53 }
0x1621   : > { %v1803_v54 = vpop.eup %1802 }
0x1622   : > { %v1220_v57 = vmul.f32 %v1803_v54, %v1118_v35  ;;  %v1368_v35 = vsel %vm538_vm2, %v2128_v11, %v1356_v31 }
0x1685   : > { %v1223_v55 = vpop.permute.xlu0 %1222 }
0x1686   : > { %v1225_v56 = vmul.f32 %v1803_v54, %v1223_v55 }
0x1688   : > { %1227 = vrot.lane.b32.xlu1 %v1225_v56, %s1844_s30 }
0x16fa   : > { %v1228_v59 = vpop.permute.xlu1 %1227 }
0x16fb   : > { %v1230_v60 = vadd.f32 %v1228_v59, %v1220_v57 }
0x16fd   : > { %1804 = vtanh.f32 %v1230_v60 }
0x1707   : > { %v1805_v61 = vpop.eup %1804 }
0x1708   : > { %1233 = vrot.lane.b32.xlu0 %v1805_v61, %s1845_s5 }
0x177a   : > { %v1234_v62 = vpop.permute.xlu0 %1233 }
0x177b   : > { %v1236_v63 = vmul.f32 %v1803_v54, %v1234_v62 }
0x177d   : > { %1238 = vrot.lane.b32.xlu1 %v1236_v63, %s1839_s2  ;;  %v1358_v32 = vrot.slane %v1236_v63, 4 }
0x177f   : > { %v1369_v37 = vsel %vm1364_vm3, %v1368_v35, %v1358_v32 }
0x17ef   : > { %v1239_v1 = vpop.permute.xlu1 %1238 }
0x17f0   : > { %1648 = vmatmul.mubr.msk.f32.vlgmr.msra.gmra.mrb[6].mxu1 %vm455_vm1, %v1239_v1 }
0x18c3   : > { %v1308_v2 = vpop.f32.mrb[6].mxu1 }
0x18c4   : > { %v1313_v3 = vrot.slane %v1308_v2, 2  ;;  %v1649_v4 = vpop.f32.mrb[7].mxu1 }
0x18c6   : > { %v1316_v5 = vadd.f32 %v1313_v3, %v2116_v52  ;;  %v1315_v7 = vadd.f32 %v1313_v3, %v2121_v58  ;;  %v1350_v52 = vrot.slane %v2074_v0, 6  ;;  %v1354_v58 = vrot.slane %v2106_v50, 2 }
0x18c8   : > { %v1321_v6 = vrot.slane %v1316_v5, 6  ;;  %v1318_v8 = vrot.slane %v1315_v7, 6  ;;  %v1363_v22 = vsel %vm538_vm2, %v2058_v39, %v1350_v52  ;;  %v1397_v34 = vsel %vm538_vm2, %v1354_v58, %v2090_v27 }
0x18c9   : > { %v1365_v26 = vsel %vm1364_vm3, %v1363_v22, %v1352_v20  ;;  %v1398_v42 = vsel %vm1364_vm3, %v1397_v34, %v1350_v52 }
0x18ca   : > { %1322 = vrot.lane.b32.xlu0 %v1321_v6, %s1842_s26  ;;  %v1367_v28 = vsel %vm1366_vm4, %v1365_v26, %v1354_v58  ;;  %v1399_v23 = vsel %vm1366_vm4, %v1398_v42, %v1392_v14 }
0x18cb   : > { %v1510_v13 = vpack.c.bf16 %v1367_v28, %v1367_v28  ;;  %v1513_v39 = vpack.c.bf16 %v1399_v23, %v1399_v23 }
0x193c   : > { %v1323_v9 = vpop.permute.xlu0 %1322 }
0x193d   : > { %v1325_v10 = vsel %vm538_vm2, %v1318_v8, %v1323_v9 }
0x193e   : > { %1806 = vtanh.f32 %v1325_v10  ;;  %v1501_v16 = vmul.f32 -1.442695, %v1325_v10 }
0x1940   : > { %1808 = vpow2.f32 %v1501_v16 }
0x1948   : > { %v1807_v12 = vpop.eup %1806 }
0x1949   : > { %1335 = vrot.lane.b32.xlu1 %v1807_v12, %s1843_s29 }
0x194a   : > { %v1809_v18 = vpop.eup %1808 }
0x194b   : > { %v1329_v19 = vadd.f32 1.0, %v1809_v18 }
0x194d   : > { %1810 = vrcp.f32 %v1329_v19 }
0x1957   : > { %v1811_v21 = vpop.eup %1810 }
0x1958   : > { %v1333_v0 = vmul.f32 %v1811_v21, %v1230_v60 }
0x19bb   : > { %v1336_v24 = vpop.permute.xlu1 %1335 }
0x19bc   : > { %v1338_v25 = vmul.f32 %v1811_v21, %v1336_v24 }
0x19be   : > { %1340 = vrot.lane.b32.xlu0 %v1338_v25, %s1844_s30 }
0x19c2   : > { %1377 = vrot.lane.b32.xlu0 %v1510_v13, %s1839_s2 }
0x1a30   : > { %v1341_v50 = vpop.permute.xlu0 %1340 }
0x1a31   : > { %v1343_v15 = vadd.f32 %v1341_v50, %v1333_v0  }
0x1a33   : > { %1812 = vtanh.f32 %v1343_v15 }
0x1a34   : > { %v1378_v29 = vpop.permute.xlu0 %1377 }
0x1a35   : > { %1388 = vst.msk [vmem:[%s2176_s9] sm:$0xf] %vm1387_vm5, %v1378_v29 }
0x1a3d   : > { %v1813_v30 = vpop.eup %1812 }
0x1a3e   : > { %1346 = vrot.lane.b32.xlu1 %v1813_v30, %s1845_s5 }
0x1ab0   : > { %v1347_v33 = vpop.permute.xlu1 %1346 }
0x1ab1   : > { %v1349_v12 = vmul.f32 %v1811_v21, %v1347_v33  }
0x1ab3   : > { %v1361_v36 = vrot.slane %v1349_v12, 2 }
0x1ab5   : > { %v1394_v38 = vsel %vm538_vm2, %v1361_v36, %v1236_v63  ;;  %v1370_v44 = vsel %vm1366_vm4, %v1369_v37, %v1361_v36 }
0x1ab6   : > { %v1511_v27 = vpack.c.bf16 %v1370_v44, %v1370_v44  ;;  %v1395_v17 = vsel %vm1364_vm3, %v1394_v38, %v1356_v31 }
0x1ab7   : > { %v1396_v45 = vsel %vm1366_vm4, %v1395_v17, %v1390_v43 }
0x1ab8   : > { %1379 = vrot.lane.b32.xlu1 %v1511_v27, %s1839_s2  ;;  %v1512_v46 = vpack.c.bf16 %v1396_v45, %v1396_v45 }
0x1aba   : > { %1406 = vrot.lane.b32.xlu0 %v1512_v46, %s1843_s29 }
0x1abc   : > { %1408 = vrot.lane.b32.xlu1 %v1513_v39, %s1843_s29 }
0x1b29   :  { %437 = sbr.rel (!%p435_p0) target bundleno = 265 (0x109), region = 47 }
0x1b2a   : > { %v1380_v11 = vpop.permute.xlu1 %1379 }
0x1b2b   : > { %1389 = vst.msk [vmem:[%s2176_s9 + $0x4] sm:$0xf] %vm1387_vm5, %v1380_v11  ;;  %v2216_v11 = vmov %v1343_v15 }
0x1b2c   : > { %v1407_v47 = vpop.permute.xlu0 %1406 }
0x1b2d   : > { %1417 = vst.msk [vmem:[%s1415_s14] sm:$0xf] %vm1416_vm6, %v1407_v47 }
0x1b2e   : > { %v1409_v48 = vpop.permute.xlu1 %1408 }
0x1b2f   : > { %1418 = vst.msk [vmem:[%s1415_s14 + $0x4] sm:$0xf] %vm1416_vm6, %v1409_v48 }

// kernel: encoder_forward.5
= control target key start
LH: loop header
LB: loop body
LE: loop exit
PB: predicated region body
PF: predicated region fallthrough
CT: control target
= control target key end

     0   :  { %vm55_vm0 = vcmask 261120   ;;  %v1437_v15 = vmov 0.0   ;;  %v1439_v16 = vmov 0.0   ;;  %s1640_s1 = inlined_call_operand.vmem [shape: bf16[32,128], index: 1, kind: input, shape index: {}]   ;;  %s1641_s4 = inlined_call_operand.vmem [shape: f32[32,32], index: 4, kind: output, shape index: {}]   ;;  %s1642_s0 = inlined_call_operand.vmem [shape: bf16[32,32], index: 0, kind: input, shape index: {}]   ;;  %s1643_s3 = inlined_call_operand.vmem [shape: f32[16,128], index: 3, kind: input, shape index: {}]   ;;  %s1644_s2 = inlined_call_operand.vmem [shape: f32[1,128], index: 2, kind: input, shape index: {}]  }
   0x1   :  { %v1287_v0 = vld [vmem:[%s1640_s1] sm:$0xff]   ;;  %v1288_v1 = vld [vmem:[%s1640_s1 + $0x8] sm:$0xff]  }
   0x2   :  { %1167 = vmatprep.subr.bf16.mxu0 %v1287_v0  ;;  %v1289_v2 = vld [vmem:[%s1642_s0] sm:$0xff]   ;;  %v1290_v3 = vld [vmem:[%s1642_s0 + $0x8] sm:$0xff]   ;;  %s1441_s0 = smov 0  }
   0x3   :  { %1168 = vmatpush3.bf16.msra.mxu0 %v1287_v0  ;;  %1171 = vmatprep.mubr.msk.bf16.mxu0 %vm55_vm0, %v1289_v2  ;;  %v1427_v4 = vld [vmem:[%s1643_s3] sm:$0xff]  ;;  %v1432_v5 = vld [vmem:[%s1643_s3 + $0x8] sm:$0xff] }
   0x4   :  { %1169 = vmatprep.subr.bf16.mxu0 %v1288_v1  ;;  %v1111_v6 = vld [vmem:[%s1644_s2] ss:$0 sm:$0xff] }
   0x7   :  { %1170 = vmatpush3.bf16.msra.mxu0 %v1288_v1 }
   0xa   :  { %1172 = vmatmul.mubr.msk.bf16.vlgmr.msra.gmra.mrb[0].mxu0 %vm55_vm0, %v1290_v3 }
  0xdd   :  { %v1173_v7 = vpop.f32.mrb[0].mxu0 }
  0xde   :  { %v105_v8 = vadd.f32 %v1173_v7, %v1111_v6  ;;  %v96_v9 = vpop.f32.mrb[1].mxu0 }
  0xdf   :  { %v97_v10 = vadd.f32 %v1111_v6, %v96_v9  ;;  %v1174_v11 = vpop.f32.mrb[2].mxu0 }
  0xe0   :  { %113 = vst [vmem:[#allocation2 + $0x10] sm:$0xff] %v105_v8  ;;  %v108_v12 = vadd.f32 %v1174_v11, %v1111_v6  ;;  %v99_v13 = vpop.f32.mrb[3].mxu0 }
  0xe1   :  { %111 = vst [vmem:[#allocation2] sm:$0xff] %v97_v10  ;;  %v100_v14 = vadd.f32 %v1111_v6, %v99_v13 }
  0xe2   :  { %114 = vst [vmem:[#allocation2 + $0x18] sm:$0xff] %v108_v12 }
  0xe3   :  { %112 = vst [vmem:[#allocation2 + $0x8] sm:$0xff] %v100_v14 }
  0xe4 LB: > { %v1450_v17 = vpack.c.bf16 %v1432_v5, %v1427_v4  ;;  %v1379_v18 = vmov 0.0|0.0   ;;  %s1380_s2 = smov 80   ;;  %vm1381_vm1 = vmmov 0   ;;  %v1382_v19 = vmov 0.0   ;;  %s1137_s3 = sshll.u32 %s1377_s0, 3  ;;  %s1377_s0 = sphi %s1441_s0, %s122_s0   ;;  %v1373_v16 = vphi %v1439_v16, %v1033_v16   ;;  %v1369_v15 = vphi %v1437_v15, %v1645_v15  }
  0xe5   : > { %1231 = vmatprep.subr.bf16.mxu0 %v1379_v18  ;;  %1234 = vmatprep.subr.bf16.mxu1 %v1379_v18  ;;  %vm139_vm2 = vcmask 130048   ;;  %s1138_s28 = sadd.s32 8, %s1137_s3  ;;  %s1383_s6 = smov 64   ;;  %vm222_vm3 = vcmask 1041408   ;;  %vm1048_vm4 = vcmask 1043456   ;;  %vm1050_vm5 = vcmask 1045504  }
  0xe6   : > { %137 = vrot.lane.b32.xlu0 %v1373_v16, %s1380_s2  ;;  %1233 = vmatpush3.bf16.msra.mxu0 %v1450_v17  ;;  %s128_s29 = ssub.s32 16, %s1138_s28  ;;  %s1118_s7 = sshll.u32 %s1377_s0, 4  ;;  %vm1085_vm6 = vcmask 261248  }
  0xe7   : > { %1179 = vmatprep.mubr.msk.f32.mxu0 %vm1381_vm1, %v1382_v19  ;;  %1236 = vmatpush3.bf16.msra.mxu1 %v1450_v17  ;;  %s1469_s30 = sshll.u32 %s128_s29, 1  ;;  %s1481_s8 = scalar_lea.vmem [#allocation2], %s1118_s7 }
  0xe8   : > { %1186 = vmatprep.mubr.msk.f32.mxu1 %vm1381_vm1, %v1382_v19  ;;  %1237 = vmatprep.subr.bf16.mxu0 %v1379_v18  ;;  %s133_s5 = scalar_lea.vmem [#allocation2], %s1469_s30  ;;  %s1384_s9 = smov 96  }
  0xe9   : > { %1240 = vmatprep.subr.bf16.mxu1 %v1379_v18  ;;  %s1385_s10 = smov 16   ;;  %s1386_s11 = smov 32  }
  0xea   : > { %v1474_v21 = vld [vmem:[%s133_s5 + $0x8] sm:$0xff]  ;;  %v1484_v27 = vld [vmem:[%s1481_s8] sm:$0xff]  ;;  %s1063_s14 = scalar_lea.vmem %s1641_s4, %s1118_s7  ;;  %s1084_s17 = scalar_lea.vmem %s1641_s4, %s1469_s30 }
  0xeb   : > { %s122_s0 = sadd.s32 1, %s1377_s0  }
  0xec   : > { %p119_p0 = scmp.ge.s32.totalorder %s122_s0, 2  }
 0x158   : > { %v138_v20 = vpop.permute.xlu0 %137 }
 0x159   : > { %1180 = vmatmul.mubr.msk.f32.vlgmr.msra.gmra.mrb[0].mxu0 %vm139_vm2, %v138_v20 }
 0x15a   : > { %1239 = vmatpush3.bf16.msra.mxu0 %v1450_v17  ;;  %1193 = vmatprep.mubr.msk.f32.mxu0 %vm1381_vm1, %v1382_v19 }
 0x15b   : > { %1243 = vmatprep.subr.bf16.mxu0 %v1379_v18 }
 0x22c   : > { %v208_v22 = vpop.f32.mrb[0].mxu0 }
 0x22d   : > { %v214_v23 = vrot.slane %v208_v22, 4  ;;  %v1181_v24 = vpop.f32.mrb[1].mxu0  ;;  %v212_v28 = vadd.f32 %v208_v22, %v1484_v27 }
 0x22f   : > { %v216_v25 = vadd.f32 %v214_v23, %v1474_v21 }
 0x231   : > { %v218_v26 = vrot.slane %v216_v25, 4 }
 0x233   : > { %219 = vrot.lane.b32.xlu0 %v218_v26, %s1383_s6 }
 0x2a5   : > { %v220_v29 = vpop.permute.xlu0 %219 }
 0x2a6   : > { %v223_v30 = vsel %vm222_vm3, %v212_v28, %v220_v29 }
 0x2a7   : > { %1291 = vtanh.f32 %v223_v30  ;;  %v1122_v32 = vmul.f32 -1.442695, %v223_v30 }
 0x2a9   : > { %1293 = vpow2.f32 %v1122_v32 }
 0x2b1   : > { %v1292_v31 = vpop.eup %1291 }
 0x2b2   : > { %233 = vrot.lane.b32.xlu1 %v1292_v31, %s1384_s9 }
 0x2b3   : > { %v1294_v33 = vpop.eup %1293 }
 0x2b4   : > { %v227_v34 = vadd.f32 1.0, %v1294_v33 }
 0x2b6   : > { %1295 = vrcp.f32 %v227_v34 }
 0x2c0   : > { %v1296_v35 = vpop.eup %1295 }
 0x2c1   : > { %v231_v38 = vmul.f32 %v1369_v15, %v1296_v35 }
 0x324   : > { %v234_v36 = vpop.permute.xlu1 %233 }
 0x325   : > { %v236_v37 = vmul.f32 %v1296_v35, %v234_v36 }
 0x327   : > { %238 = vrot.lane.b32.xlu1 %v236_v37, %s1385_s10 }
 0x399   : > { %v239_v39 = vpop.permute.xlu1 %238 }
 0x39a   : > { %v241_v40 = vadd.f32 %v239_v39, %v231_v38 }
 0x39c   : > { %1297 = vtanh.f32 %v241_v40 }
 0x3a6   : > { %v1298_v41 = vpop.eup %1297 }
 0x3a7   : > { %244 = vrot.lane.b32.xlu0 %v1298_v41, %s1386_s11 }
 0x419   : > { %v245_v42 = vpop.permute.xlu0 %244 }
 0x41a   : > { %v1491_v43 = vmul.f32 %v1296_v35, %v245_v42 }
 0x41c   : > { %249 = vrot.lane.b32.xlu1 %v1491_v43, %s1380_s2 }
 0x48e   : > { %v250_v44 = vpop.permute.xlu1 %249 }
 0x48f   : > { %1187 = vmatmul.mubr.msk.f32.vlgmr.msra.gmra.mrb[0].mxu1 %vm139_vm2, %v250_v44 }
 0x490   : > { %1242 = vmatpush3.bf16.msra.mxu1 %v1450_v17  ;;  %1200 = vmatprep.mubr.msk.f32.mxu1 %vm1381_vm1, %v1382_v19 }
 0x491   : > { %1246 = vmatprep.subr.bf16.mxu1 %v1379_v18 }
 0x562   : > { %v319_v45 = vpop.f32.mrb[0].mxu1 }
 0x563   : > { %v324_v46 = vrot.slane %v319_v45, 6  ;;  %v1188_v47 = vpop.f32.mrb[1].mxu1 }
 0x565   : > { %v327_v48 = vadd.f32 %v324_v46, %v1474_v21  ;;  %v326_v50 = vadd.f32 %v324_v46, %v1484_v27 }
 0x567   : > { %v332_v49 = vrot.slane %v327_v48, 2  ;;  %v329_v51 = vrot.slane %v326_v50, 2 }
 0x569   : > { %333 = vrot.lane.b32.xlu0 %v332_v49, %s1383_s6 }
 0x5db   : > { %v334_v52 = vpop.permute.xlu0 %333 }
 0x5dc   : > { %v336_v53 = vsel %vm222_vm3, %v329_v51, %v334_v52 }
 0x5dd   : > { %1299 = vtanh.f32 %v336_v53  ;;  %v1124_v55 = vmul.f32 -1.442695, %v336_v53 }
 0x5df   : > { %1301 = vpow2.f32 %v1124_v55 }
 0x5e7   : > { %v1300_v54 = vpop.eup %1299 }
 0x5e8   : > { %346 = vrot.lane.b32.xlu1 %v1300_v54, %s1384_s9  ;;  %v1549_v54 = vld [vmem:[%s133_s5] sm:$0xff] }
 0x5e9   : > { %v1302_v56 = vpop.eup %1301 }
 0x5ea   : > { %v340_v57 = vadd.f32 1.0, %v1302_v56 }
 0x5ec   : > { %1303 = vrcp.f32 %v340_v57 }
 0x5f6   : > { %v1304_v58 = vpop.eup %1303 }
 0x5f7   : > { %v344_v61 = vmul.f32 %v1304_v58, %v241_v40 }
 0x65a   : > { %v347_v59 = vpop.permute.xlu1 %346 }
 0x65b   : > { %v349_v60 = vmul.f32 %v1304_v58, %v347_v59 }
 0x65d   : > { %351 = vrot.lane.b32.xlu0 %v349_v60, %s1385_s10  ;;  %v1554_v60 = vld [vmem:[%s1481_s8 + $0x8] sm:$0xff] }
 0x6cf   : > { %v352_v62 = vpop.permute.xlu0 %351 }
 0x6d0   : > { %v354_v63 = vadd.f32 %v352_v62, %v344_v61 }
 0x6d2   : > { %1305 = vtanh.f32 %v354_v63 }
 0x6dc   : > { %v1306_v0 = vpop.eup %1305 }
 0x6dd   : > { %357 = vrot.lane.b32.xlu1 %v1306_v0, %s1386_s11 }
 0x74f   : > { %v358_v1 = vpop.permute.xlu1 %357 }
 0x750   : > { %v1507_v2 = vmul.f32 %v1304_v58, %v358_v1 }
 0x752   : > { %362 = vrot.lane.b32.xlu0 %v1507_v2, %s1380_s2 }
 0x7c4   : > { %v363_v3 = vpop.permute.xlu0 %362 }
 0x7c5   : > { %1194 = vmatmul.mubr.msk.f32.vlgmr.msra.gmra.mrb[2].mxu0 %vm139_vm2, %v363_v3 }
 0x7c6   : > { %1245 = vmatpush3.bf16.msra.mxu0 %v1450_v17  ;;  %1207 = vmatprep.mubr.msk.f32.mxu0 %vm1381_vm1, %v1382_v19 }
 0x7c7   : > { %1249 = vmatprep.subr.bf16.mxu0 %v1379_v18 }
 0x898   : > { %v432_v6 = vpop.f32.mrb[2].mxu0 }
 0x899   : > { %v440_v7 = vadd.f32 %v432_v6, %v1474_v21  ;;  %v1195_v8 = vpop.f32.mrb[3].mxu0  ;;  %v437_v9 = vrot.slane %v432_v6, 4 }
 0x89b   : > { %445 = vrot.lane.b32.xlu1 %v440_v7, %s1383_s6  ;;  %v439_v10 = vadd.f32 %v437_v9, %v1484_v27 }
 0x89d   : > { %v442_v11 = vrot.slane %v439_v10, 4 }
 0x90d   : > { %v446_v12 = vpop.permute.xlu1 %445 }
 0x90e   : > { %v448_v13 = vsel %vm222_vm3, %v442_v11, %v446_v12 }
 0x90f   : > { %1307 = vtanh.f32 %v448_v13  ;;  %v1126_v15 = vmul.f32 -1.442695, %v448_v13 }
 0x911   : > { %1309 = vpow2.f32 %v1126_v15 }
 0x919   : > { %v1308_v14 = vpop.eup %1307 }
 0x91a   : > { %458 = vrot.lane.b32.xlu0 %v1308_v14, %s1384_s9 }
 0x91b   : > { %v1310_v16 = vpop.eup %1309 }
 0x91c   : > { %v452_v20 = vadd.f32 1.0, %v1310_v16 }
 0x91e   : > { %1311 = vrcp.f32 %v452_v20 }
 0x928   : > { %v1312_v22 = vpop.eup %1311 }
 0x929   : > { %v456_v25 = vmul.f32 %v1312_v22, %v354_v63 }
 0x98c   : > { %v459_v23 = vpop.permute.xlu0 %458 }
 0x98d   : > { %v461_v24 = vmul.f32 %v1312_v22, %v459_v23 }
 0x98f   : > { %463 = vrot.lane.b32.xlu1 %v461_v24, %s1385_s10 }
 0xa01   : > { %v464_v26 = vpop.permute.xlu1 %463 }
 0xa02   : > { %v466_v28 = vadd.f32 %v464_v26, %v456_v25 }
 0xa04   : > { %1313 = vtanh.f32 %v466_v28 }
 0xa0e   : > { %v1314_v29 = vpop.eup %1313 }
 0xa0f   : > { %469 = vrot.lane.b32.xlu0 %v1314_v29, %s1386_s11 }
 0xa81   : > { %v470_v30 = vpop.permute.xlu0 %469 }
 0xa82   : > { %v1523_v31 = vmul.f32 %v1312_v22, %v470_v30 }
 0xa84   : > { %474 = vrot.lane.b32.xlu1 %v1523_v31, %s1380_s2 }
 0xaf6   : > { %v475_v32 = vpop.permute.xlu1 %474 }
 0xaf7   : > { %1201 = vmatmul.mubr.msk.f32.vlgmr.msra.gmra.mrb[2].mxu1 %vm139_vm2, %v475_v32 }
 0xaf8   : > { %1248 = vmatpush3.bf16.msra.mxu1 %v1450_v17  ;;  %1214 = vmatprep.mubr.msk.f32.mxu1 %vm1381_vm1, %v1382_v19 }
 0xaf9   : > { %1252 = vmatprep.subr.bf16.mxu1 %v1379_v18 }
 0xbca   : > { %v544_v33 = vpop.f32.mrb[2].mxu1 }
 0xbcb   : > { %v549_v34 = vrot.slane %v544_v33, 2  ;;  %v1202_v35 = vpop.f32.mrb[3].mxu1 }
 0xbcd   : > { %v552_v36 = vadd.f32 %v549_v34, %v1474_v21  ;;  %v551_v38 = vadd.f32 %v549_v34, %v1484_v27 }
 0xbcf   : > { %v557_v37 = vrot.slane %v552_v36, 6  ;;  %v554_v39 = vrot.slane %v551_v38, 6 }
 0xbd1   : > { %558 = vrot.lane.b32.xlu0 %v557_v37, %s1383_s6 }
 0xc43   : > { %v559_v40 = vpop.permute.xlu0 %558 }
 0xc44   : > { %v561_v41 = vsel %vm222_vm3, %v554_v39, %v559_v40 }
 0xc45   : > { %1315 = vtanh.f32 %v561_v41  ;;  %v1128_v44 = vmul.f32 -1.442695, %v561_v41 }
 0xc47   : > { %1317 = vpow2.f32 %v1128_v44 }
 0xc4f   : > { %v1316_v42 = vpop.eup %1315 }
 0xc50   : > { %571 = vrot.lane.b32.xlu1 %v1316_v42, %s1384_s9 }
 0xc51   : > { %v1318_v18 = vpop.eup %1317 }
 0xc52   : > { %v565_v45 = vadd.f32 1.0, %v1318_v18 }
 0xc54   : > { %1319 = vrcp.f32 %v565_v45 }
 0xc5e   : > { %v1320_v46 = vpop.eup %1319 }
 0xc5f   : > { %v569_v27 = vmul.f32 %v1320_v46, %v466_v28 }
 0xcc2   : > { %v572_v21 = vpop.permute.xlu1 %571 }
 0xcc3   : > { %v574_v47 = vmul.f32 %v1320_v46, %v572_v21 }
 0xcc5   : > { %576 = vrot.lane.b32.xlu0 %v574_v47, %s1385_s10 }
 0xd37   : > { %v577_v48 = vpop.permute.xlu0 %576 }
 0xd38   : > { %v579_v49 = vadd.f32 %v577_v48, %v569_v27 }
 0xd3a   : > { %1321 = vtanh.f32 %v579_v49 }
 0xd44   : > { %v1322_v50 = vpop.eup %1321 }
 0xd45   : > { %582 = vrot.lane.b32.xlu1 %v1322_v50, %s1386_s11 }
 0xdb7   : > { %v583_v51 = vpop.permute.xlu1 %582 }
 0xdb8   : > { %v1539_v52 = vmul.f32 %v1320_v46, %v583_v51 }
 0xdba   : > { %587 = vrot.lane.b32.xlu0 %v1539_v52, %s1380_s2 }
 0xe2c   : > { %v588_v53 = vpop.permute.xlu0 %587 }
 0xe2d   : > { %1208 = vmatmul.mubr.msk.f32.vlgmr.msra.gmra.mrb[4].mxu0 %vm139_vm2, %v588_v53 }
 0xe2e   : > { %1251 = vmatpush3.bf16.msra.mxu0 %v1450_v17  ;;  %1221 = vmatprep.mubr.msk.f32.mxu0 %vm1381_vm1, %v1382_v19 }
 0xf00   : > { %v657_v55 = vpop.f32.mrb[4].mxu0 }
 0xf01   : > { %v663_v56 = vrot.slane %v657_v55, 4  ;;  %v1209_v57 = vpop.f32.mrb[5].mxu0  ;;  %v661_v61 = vadd.f32 %v657_v55, %v1554_v60 }
 0xf03   : > { %v665_v58 = vadd.f32 %v663_v56, %v1549_v54 }
 0xf05   : > { %v667_v59 = vrot.slane %v665_v58, 4 }
 0xf07   : > { %668 = vrot.lane.b32.xlu1 %v667_v59, %s1383_s6 }
 0xf79   : > { %v669_v62 = vpop.permute.xlu1 %668 }
 0xf7a   : > { %v671_v63 = vsel %vm222_vm3, %v661_v61, %v669_v62 }
 0xf7b   : > { %1323 = vtanh.f32 %v671_v63  ;;  %v1130_v1 = vmul.f32 -1.442695, %v671_v63 }
 0xf7d   : > { %1325 = vpow2.f32 %v1130_v1 }
 0xf85   : > { %v1324_v0 = vpop.eup %1323 }
 0xf86   : > { %681 = vrot.lane.b32.xlu0 %v1324_v0, %s1384_s9 }
 0xf87   : > { %v1326_v3 = vpop.eup %1325 }
 0xf88   : > { %v675_v6 = vadd.f32 1.0, %v1326_v3 }
 0xf8a   : > { %1327 = vrcp.f32 %v675_v6 }
 0xf94   : > { %v1328_v7 = vpop.eup %1327 }
 0xf95   : > { %v679_v10 = vmul.f32 %v1328_v7, %v579_v49 }
 0xff8   : > { %v682_v8 = vpop.permute.xlu0 %681 }
 0xff9   : > { %v684_v9 = vmul.f32 %v1328_v7, %v682_v8 }
 0xffb   : > { %686 = vrot.lane.b32.xlu1 %v684_v9, %s1385_s10 }
0x106d   : > { %v687_v11 = vpop.permute.xlu1 %686 }
0x106e   : > { %v689_v12 = vadd.f32 %v687_v11, %v679_v10 }
0x1070   : > { %1329 = vtanh.f32 %v689_v12 }
0x107a   : > { %v1330_v13 = vpop.eup %1329 }
0x107b   : > { %692 = vrot.lane.b32.xlu0 %v1330_v13, %s1386_s11 }
0x10ed   : > { %v693_v14 = vpop.permute.xlu0 %692 }
0x10ee   : > { %v1561_v15 = vmul.f32 %v1328_v7, %v693_v14 }
0x10f0   : > { %697 = vrot.lane.b32.xlu1 %v1561_v15, %s1380_s2 }
0x1162   : > { %v698_v16 = vpop.permute.xlu1 %697 }
0x1163   : > { %1215 = vmatmul.mubr.msk.f32.vlgmr.msra.gmra.mrb[4].mxu1 %vm139_vm2, %v698_v16 }
0x1164   : > { %1254 = vmatpush3.bf16.msra.mxu1 %v1450_v17  ;;  %1228 = vmatprep.mubr.msk.f32.mxu1 %vm1381_vm1, %v1382_v19 }
0x1236   : > { %v767_v20 = vpop.f32.mrb[4].mxu1 }
0x1237   : > { %v772_v22 = vrot.slane %v767_v20, 6  ;;  %v1216_v23 = vpop.f32.mrb[5].mxu1 }
0x1239   : > { %v775_v24 = vadd.f32 %v772_v22, %v1549_v54  ;;  %v774_v26 = vadd.f32 %v772_v22, %v1554_v60 }
0x123b   : > { %v780_v25 = vrot.slane %v775_v24, 2  ;;  %v777_v28 = vrot.slane %v774_v26, 2 }
0x123d   : > { %781 = vrot.lane.b32.xlu0 %v780_v25, %s1383_s6 }
0x12af   : > { %v782_v29 = vpop.permute.xlu0 %781 }
0x12b0   : > { %v784_v30 = vsel %vm222_vm3, %v777_v28, %v782_v29  ;;  %v1038_v28 = vrot.slane %v1539_v52, 2 }
0x12b1   : > { %1331 = vtanh.f32 %v784_v30  ;;  %v1132_v17 = vmul.f32 -1.442695, %v784_v30 }
0x12b3   : > { %1333 = vpow2.f32 %v1132_v17 }
0x12bb   : > { %v1332_v32 = vpop.eup %1331 }
0x12bc   : > { %794 = vrot.lane.b32.xlu1 %v1332_v32, %s1384_s9 }
0x12bd   : > { %v1334_v19 = vpop.eup %1333 }
0x12be   : > { %v788_v33 = vadd.f32 1.0, %v1334_v19 }
0x12c0   : > { %1335 = vrcp.f32 %v788_v33 }
0x12ca   : > { %v1336_v34 = vpop.eup %1335 }
0x12cb   : > { %v792_v37 = vmul.f32 %v1336_v34, %v689_v12 }
0x132e   : > { %v795_v35 = vpop.permute.xlu1 %794 }
0x132f   : > { %v797_v36 = vmul.f32 %v1336_v34, %v795_v35 }
0x1331   : > { %799 = vrot.lane.b32.xlu0 %v797_v36, %s1385_s10 }
0x13a3   : > { %v800_v38 = vpop.permute.xlu0 %799 }
0x13a4   : > { %v802_v39 = vadd.f32 %v800_v38, %v792_v37 }
0x13a6   : > { %1337 = vtanh.f32 %v802_v39 }
0x13b0   : > { %v1338_v40 = vpop.eup %1337 }
0x13b1   : > { %805 = vrot.lane.b32.xlu1 %v1338_v40, %s1386_s11 }
0x1423   : > { %v806_v41 = vpop.permute.xlu1 %805 }
0x1424   : > { %v1576_v42 = vmul.f32 %v1336_v34, %v806_v41  ;;  %v1066_v41 = vrot.slane %v1561_v15, 4 }
0x1426   : > { %810 = vrot.lane.b32.xlu0 %v1576_v42, %s1380_s2  ;;  %v1040_v34 = vrot.slane %v1576_v42, 6 }
0x1428   : > { %v1052_v38 = vsel %vm222_vm3, %v1561_v15, %v1040_v34 }
0x1498   : > { %v811_v44 = vpop.permute.xlu0 %810 }
0x1499   : > { %1222 = vmatmul.mubr.msk.f32.vlgmr.msra.gmra.mrb[6].mxu0 %vm139_vm2, %v811_v44 }
0x156c   : > { %v880_v18 = vpop.f32.mrb[6].mxu0 }
0x156d   : > { %v888_v45 = vadd.f32 %v880_v18, %v1549_v54  ;;  %v1223_v46 = vpop.f32.mrb[7].mxu0  ;;  %v885_v21 = vrot.slane %v880_v18, 4 }
0x156e   : > { %v1068_v46 = vrot.slane %v1491_v43, 4 }
0x156f   : > { %893 = vrot.lane.b32.xlu1 %v888_v45, %s1383_s6  ;;  %v887_v47 = vadd.f32 %v885_v21, %v1554_v60 }
0x1571   : > { %v890_v27 = vrot.slane %v887_v47, 4 }
0x15e1   : > { %v894_v48 = vpop.permute.xlu1 %893 }
0x15e2   : > { %v896_v49 = vsel %vm222_vm3, %v890_v27, %v894_v48 }
0x15e3   : > { %1339 = vtanh.f32 %v896_v49  ;;  %v1134_v51 = vmul.f32 -1.442695, %v896_v49 }
0x15e5   : > { %1341 = vpow2.f32 %v1134_v51 }
0x15ed   : > { %v1340_v50 = vpop.eup %1339 }
0x15ee   : > { %906 = vrot.lane.b32.xlu0 %v1340_v50, %s1384_s9 }
0x15ef   : > { %v1342_v53 = vpop.eup %1341 }
0x15f0   : > { %v900_v55 = vadd.f32 1.0, %v1342_v53 }
0x15f2   : > { %1343 = vrcp.f32 %v900_v55 }
0x15fc   : > { %v1344_v56 = vpop.eup %1343 }
0x15fd   : > { %v904_v59 = vmul.f32 %v1344_v56, %v802_v39  ;;  %v1073_v39 = vsel %vm222_vm3, %v1038_v28, %v1523_v31 }
0x1660   : > { %v907_v57 = vpop.permute.xlu0 %906 }
0x1661   : > { %v909_v58 = vmul.f32 %v1344_v56, %v907_v57 }
0x1663   : > { %911 = vrot.lane.b32.xlu1 %v909_v58, %s1385_s10 }
0x16d5   : > { %v912_v61 = vpop.permute.xlu1 %911 }
0x16d6   : > { %v914_v62 = vadd.f32 %v912_v61, %v904_v59 }
0x16d8   : > { %1345 = vtanh.f32 %v914_v62 }
0x16e2   : > { %v1346_v63 = vpop.eup %1345 }
0x16e3   : > { %917 = vrot.lane.b32.xlu0 %v1346_v63, %s1386_s11 }
0x1755   : > { %v918_v0 = vpop.permute.xlu0 %917 }
0x1756   : > { %v920_v1 = vmul.f32 %v1344_v56, %v918_v0 }
0x1758   : > { %922 = vrot.lane.b32.xlu1 %v920_v1, %s1380_s2  ;;  %v1042_v35 = vrot.slane %v920_v1, 4 }
0x175a   : > { %v1053_v40 = vsel %vm1048_vm4, %v1052_v38, %v1042_v35 }
0x17ca   : > { %v923_v3 = vpop.permute.xlu1 %922 }
0x17cb   : > { %1229 = vmatmul.mubr.msk.f32.vlgmr.msra.gmra.mrb[6].mxu1 %vm139_vm2, %v923_v3 }
0x189e   : > { %v992_v6 = vpop.f32.mrb[6].mxu1 }
0x189f   : > { %v997_v7 = vrot.slane %v992_v6, 2  ;;  %v1230_v8 = vpop.f32.mrb[7].mxu1 }
0x18a1   : > { %v1000_v9 = vadd.f32 %v997_v7, %v1549_v54  ;;  %v999_v11 = vadd.f32 %v997_v7, %v1554_v60  ;;  %v1034_v54 = vrot.slane %v1507_v2, 6  ;;  %v1036_v60 = vrot.slane %v1523_v31, 4 }
0x18a3   : > { %v1005_v10 = vrot.slane %v1000_v9, 6  ;;  %v1002_v12 = vrot.slane %v999_v11, 6  ;;  %v1047_v29 = vsel %vm222_vm3, %v1491_v43, %v1034_v54  ;;  %v1074_v45 = vsel %vm1048_vm4, %v1073_v39, %v1034_v54 }
0x18a4   : > { %v1049_v30 = vsel %vm1048_vm4, %v1047_v29, %v1036_v60  ;;  %v1075_v31 = vsel %vm1050_vm5, %v1074_v45, %v1068_v46 }
0x18a5   : > { %1006 = vrot.lane.b32.xlu0 %v1005_v10, %s1383_s6  ;;  %v1051_v32 = vsel %vm1050_vm5, %v1049_v30, %v1038_v28 }
0x1917   : > { %v1007_v13 = vpop.permute.xlu0 %1006 }
0x1918   : > { %v1009_v14 = vsel %vm222_vm3, %v1002_v12, %v1007_v13 }
0x1919   : > { %1347 = vtanh.f32 %v1009_v14  ;;  %v1136_v20 = vmul.f32 -1.442695, %v1009_v14 }
0x191b   : > { %1349 = vpow2.f32 %v1136_v20 }
0x1923   : > { %v1348_v16 = vpop.eup %1347 }
0x1924   : > { %1019 = vrot.lane.b32.xlu1 %v1348_v16, %s1384_s9 }
0x1925   : > { %v1350_v22 = vpop.eup %1349 }
0x1926   : > { %v1013_v23 = vadd.f32 1.0, %v1350_v22 }
0x1928   : > { %1351 = vrcp.f32 %v1013_v23 }
0x1932   : > { %v1352_v24 = vpop.eup %1351 }
0x1933   : > { %v1017_v2 = vmul.f32 %v1352_v24, %v914_v62 }
0x1996   : > { %v1020_v25 = vpop.permute.xlu1 %1019 }
0x1997   : > { %v1022_v26 = vmul.f32 %v1352_v24, %v1020_v25 }
0x1999   : > { %1024 = vrot.lane.b32.xlu0 %v1022_v26, %s1385_s10 }
0x199d   : > { %1057 = vrot.lane.b32.xlu0 %v1051_v32, %s1380_s2 }
0x1a0b   : > { %v1025_v17 = vpop.permute.xlu0 %1024 }
0x1a0c   : > { %v1027_v19 = vadd.f32 %v1025_v17, %v1017_v2  }
0x1a0e   : > { %1353 = vtanh.f32 %v1027_v19 }
0x1a0f   : > { %v1058_v52 = vpop.permute.xlu0 %1057 }
0x1a10   : > { %1064 = vst.msk [vmem:[%s1063_s14] sm:$0xff] %vm139_vm2, %v1058_v52 }
0x1a18   : > { %v1354_v33 = vpop.eup %1353 }
0x1a19   : > { %1030 = vrot.lane.b32.xlu1 %v1354_v33, %s1386_s11 }
0x1a8b   : > { %v1031_v36 = vpop.permute.xlu1 %1030 }
0x1a8c   : > { %v1033_v16 = vmul.f32 %v1352_v24, %v1031_v36  }
0x1a8e   : > { %v1045_v37 = vrot.slane %v1033_v16, 2 }
0x1a90   : > { %v1070_v44 = vsel %vm222_vm3, %v1045_v37, %v920_v1  ;;  %v1054_v18 = vsel %vm1050_vm5, %v1053_v40, %v1045_v37 }
0x1a91   : > { %1059 = vrot.lane.b32.xlu1 %v1054_v18, %s1380_s2  ;;  %v1071_v42 = vsel %vm1048_vm4, %v1070_v44, %v1040_v34 }
0x1a92   : > { %v1072_v21 = vsel %vm1050_vm5, %v1071_v42, %v1066_v41 }
0x1a93   : > { %1078 = vrot.lane.b32.xlu0 %v1072_v21, %s1384_s9 }
0x1a95   : > { %1080 = vrot.lane.b32.xlu1 %v1075_v31, %s1384_s9 }
0x1b02   :  { %121 = sbr.rel (!%p119_p0) target bundleno = 228 (0xe4), region = 47 }
0x1b03   : > { %v1060_v15 = vpop.permute.xlu1 %1059 }
0x1b04   : > { %1065 = vst.msk [vmem:[%s1063_s14 + $0x8] sm:$0xff] %vm139_vm2, %v1060_v15  ;;  %v1645_v15 = vmov %v1027_v19 }
0x1b05   : > { %v1079_v47 = vpop.permute.xlu0 %1078 }
0x1b06   : > { %1086 = vst.msk [vmem:[%s1084_s17] sm:$0xff] %vm1085_vm6, %v1079_v47 }
0x1b07   : > { %v1081_v27 = vpop.permute.xlu1 %1080 }
0x1b08   : > { %1087 = vst.msk [vmem:[%s1084_s17 + $0x8] sm:$0xff] %vm1085_vm6, %v1081_v27 }

// kernel: encoder_forward.3
= control target key start
LH: loop header
LB: loop body
LE: loop exit
PB: predicated region body
PF: predicated region fallthrough
CT: control target
= control target key end

     0   :  { %v19265_v1 = vmov 0   ;;  %vm131_vm0 = vcmask 1046528   ;;  %vm724_vm1 = vcmask 1045504   ;;  %vm1055_vm2 = vcmask 1044480   ;;  %s24485_s1 = inlined_call_operand.vmem [shape: bf16[5,128,512], index: 1, kind: input, shape index: {}]   ;;  %s24486_s0 = inlined_call_operand.vmem [shape: bf16[40,128], index: 0, kind: input, shape index: {}]   ;;  %s24487_s2 = inlined_call_operand.vmem [shape: bf16[5,512,512], index: 2, kind: input, shape index: {}]   ;;  %s24488_s4 = inlined_call_operand.vmem [shape: f32[1,512], index: 4, kind: input, shape index: {}]   ;;  %s24489_s5 = inlined_call_operand.vmem [shape: f32[1,512], index: 5, kind: input, shape index: {}]   ;;  %s24490_s3 = inlined_call_operand.vmem [shape: bf16[5,512,512], index: 3, kind: input, shape index: {}]   ;;  %s24491_s6 = inlined_call_operand.vmem [shape: f32[1,512], index: 6, kind: input, shape index: {}]   ;;  %s24492_s7 = inlined_call_operand.vmem [shape: f32[1,512], index: 7, kind: input, shape index: {}]   ;;  %s24493_s8 = inlined_call_operand.vmem [shape: f32[1,512], index: 8, kind: input, shape index: {}]   ;;  %s24494_s9 = inlined_call_operand.vmem [shape: f32[1,512], index: 9, kind: input, shape index: {}]   ;;  %s24495_s10 = inlined_call_operand.vmem [shape: bf16[32,512], index: 10, kind: output, shape index: {}]  }
   0x1   :  { %v17023_v0 = vld [vmem:[%s24485_s1 + $0x104] ss:$16 sps:$4 sm:$0xff]   ;;  %331 = vmatprep.mubr.bf16.mxu0 %v19265_v1  ;;  %36 = vst [vmem:[#allocation2] sm:$0x33] %v19265_v1  ;;  %37 = vst [vmem:[#allocation2 + $0x8] sm:$0x33] %v19265_v1  ;;  %384 = vmatprep.mubr.bf16.mxu1 %v19265_v1 }
   0x2   :  { %38 = vst [vmem:[#allocation2 + $0x40] sm:$0xcc] %v19265_v1  ;;  %39 = vst [vmem:[#allocation2 + $0x48] sm:$0xcc] %v19265_v1  ;;  %v17025_v2 = vld [vmem:[%s24485_s1 + $0x10c] ss:$16 sps:$4 sm:$0xff]   ;;  %299 = vmatprep.subr.bf16.mxu0 %v17023_v0 }
   0x3   :  { %40 = vst [vmem:[#allocation3] sm:$0x33] %v19265_v1  ;;  %41 = vst [vmem:[#allocation3 + $0x8] sm:$0x33] %v19265_v1  ;;  %v17027_v3 = vld [vmem:[%s24485_s1 + $0x100] ss:$16 sps:$4 sm:$0xff]   ;;  %352 = vmatprep.subr.bf16.mxu1 %v17025_v2 }
   0x4   :  { %42 = vst [vmem:[#allocation3 + $0x40] sm:$0xcc] %v19265_v1  ;;  %43 = vst [vmem:[#allocation3 + $0x48] sm:$0xcc] %v19265_v1  ;;  %v17028_v4 = vld [vmem:[%s24485_s1 + $0x108] ss:$16 sps:$4 sm:$0xff]   ;;  %300 = vmatpush1.bf16.msra.mxu0 %v17027_v3 }
   0x5   :  { %v17029_v5 = vld [vmem:[%s24485_s1 + $0x124] ss:$16 sps:$4 sm:$0xff]   ;;  %353 = vmatpush1.bf16.msra.mxu1 %v17028_v4  ;;  %v17031_v6 = vld [vmem:[%s24485_s1 + $0x12c] ss:$16 sps:$4 sm:$0xff]   ;;  %v17033_v7 = vld [vmem:[%s24485_s1 + $0x120] ss:$16 sps:$4 sm:$0xff]  }
   0x6   :  { %301 = vmatprep.subr.bf16.mxu0 %v17029_v5  ;;  %v17034_v8 = vld [vmem:[%s24485_s1 + $0x128] ss:$16 sps:$4 sm:$0xff]   ;;  %354 = vmatprep.subr.bf16.mxu1 %v17031_v6  ;;  %v17035_v9 = vld [vmem:[%s24485_s1 + $0x144] ss:$16 sps:$4 sm:$0xff]   ;;  %v17037_v10 = vld [vmem:[%s24485_s1 + $0x14c] ss:$16 sps:$4 sm:$0xff]  }
   0x7   :  { %v17039_v11 = vld [vmem:[%s24485_s1 + $0x140] ss:$16 sps:$4 sm:$0xff]   ;;  %v17040_v12 = vld [vmem:[%s24485_s1 + $0x148] ss:$16 sps:$4 sm:$0xff]   ;;  %v17041_v13 = vld [vmem:[%s24485_s1 + $0x164] ss:$16 sps:$4 sm:$0xff]  }
   0x8   :  { %302 = vmatpush1.bf16.msra.mxu0 %v17033_v7  ;;  %v17043_v14 = vld [vmem:[%s24485_s1 + $0x16c] ss:$16 sps:$4 sm:$0xff]   ;;  %v17045_v15 = vld [vmem:[%s24485_s1 + $0x160] ss:$16 sps:$4 sm:$0xff]   ;;  %v17046_v16 = vld [vmem:[%s24485_s1 + $0x168] ss:$16 sps:$4 sm:$0xff]  }
   0x9   :  { %355 = vmatpush1.bf16.msra.mxu1 %v17034_v8  ;;  %303 = vmatprep.subr.bf16.mxu0 %v17035_v9  ;;  %v17047_v17 = vld [vmem:[%s24485_s1 + $0x184] ss:$16 sps:$4 sm:$0xff]   ;;  %v17049_v18 = vld [vmem:[%s24485_s1 + $0x18c] ss:$16 sps:$4 sm:$0xff]   ;;  %v17051_v19 = vld [vmem:[%s24485_s1 + $0x180] ss:$16 sps:$4 sm:$0xff]  }
   0xa   :  { %356 = vmatprep.subr.bf16.mxu1 %v17037_v10  ;;  %v17052_v20 = vld [vmem:[%s24485_s1 + $0x188] ss:$16 sps:$4 sm:$0xff]   ;;  %v17053_v21 = vld [vmem:[%s24485_s1 + $0x1a4] ss:$16 sps:$4 sm:$0xff]   ;;  %v17055_v22 = vld [vmem:[%s24485_s1 + $0x1ac] ss:$16 sps:$4 sm:$0xff]  }
   0xb   :  { %v17057_v23 = vld [vmem:[%s24485_s1 + $0x1a0] ss:$16 sps:$4 sm:$0xff]   ;;  %v17058_v24 = vld [vmem:[%s24485_s1 + $0x1a8] ss:$16 sps:$4 sm:$0xff]   ;;  %v17059_v25 = vld [vmem:[%s24485_s1 + $0x1c4] ss:$16 sps:$4 sm:$0xff]  }
   0xc   :  { %304 = vmatpush1.bf16.msra.mxu0 %v17039_v11  ;;  %v17061_v26 = vld [vmem:[%s24485_s1 + $0x1cc] ss:$16 sps:$4 sm:$0xff]   ;;  %v17063_v27 = vld [vmem:[%s24485_s1 + $0x1c0] ss:$16 sps:$4 sm:$0xff]   ;;  %v17064_v28 = vld [vmem:[%s24485_s1 + $0x1c8] ss:$16 sps:$4 sm:$0xff]  }
   0xd   :  { %357 = vmatpush1.bf16.msra.mxu1 %v17040_v12  ;;  %305 = vmatprep.subr.bf16.mxu0 %v17041_v13  ;;  %v17065_v29 = vld [vmem:[%s24485_s1 + $0x1e4] ss:$16 sps:$4 sm:$0xff]   ;;  %v17067_v30 = vld [vmem:[%s24485_s1 + $0x1ec] ss:$16 sps:$4 sm:$0xff]   ;;  %v80_v31 = vld [vmem:[%s24486_s0] sm:$0xe] }
   0xe   :  { %358 = vmatprep.subr.bf16.mxu1 %v17043_v14  ;;  %v19430_v32 = vld [vmem:[%s24486_s0 + $0x4] sm:$0xf]  ;;  %v19435_v33 = vld [vmem:[%s24486_s0 + $0x8] sm:$0xf]  ;;  %v19440_v34 = vld [vmem:[%s24486_s0 + $0xc] sm:$0xf] }
   0xf   :  { %v13852_v35 = vcombine.low %v80_v31, %v19430_v32  ;;  %v19445_v36 = vcombine.low %v19435_v33, %v19440_v34  ;;  %v17069_v37 = vld [vmem:[%s24485_s1 + $0x1e0] ss:$16 sps:$4 sm:$0xff]   ;;  %v17070_v38 = vld [vmem:[%s24485_s1 + $0x1e8] ss:$16 sps:$4 sm:$0xff]   ;;  %v17073_v39 = vld [vmem:[%s24485_s1 + $0x4] ss:$16 sps:$4 sm:$0xff]  }
  0x10   :  { %306 = vmatpush1.bf16.msra.mxu0 %v17045_v15  ;;  %v17076_v42 = vld [vmem:[%s24485_s1 + $0xc] ss:$16 sps:$4 sm:$0xff]   ;;  %v17071_v43 = vld [vmem:[%s24485_s1] ss:$16 sps:$4 sm:$0xff]   ;;  %v17074_v44 = vld [vmem:[%s24485_s1 + $0x8] ss:$16 sps:$4 sm:$0xff]  }
  0x11   :  { %359 = vmatpush1.bf16.msra.mxu1 %v17046_v16  ;;  %307 = vmatprep.subr.bf16.mxu0 %v17047_v17  ;;  %v132_v40 = vrot.slane %v13852_v35, 1  ;;  %v133_v41 = vrot.slane %v19445_v36, 1  ;;  %v17081_v46 = vld [vmem:[%s24485_s1 + $0x24] ss:$16 sps:$4 sm:$0xff]   ;;  %v17084_v47 = vld [vmem:[%s24485_s1 + $0x2c] ss:$16 sps:$4 sm:$0xff]  }
  0x12   :  { %360 = vmatprep.subr.bf16.mxu1 %v17049_v18  ;;  %v17079_v48 = vld [vmem:[%s24485_s1 + $0x20] ss:$16 sps:$4 sm:$0xff]   ;;  %v17082_v49 = vld [vmem:[%s24485_s1 + $0x28] ss:$16 sps:$4 sm:$0xff]   ;;  %v17087_v50 = vld [vmem:[%s24485_s1 + $0x44] ss:$16 sps:$4 sm:$0xff]  }
  0x13   :  { %v134_v45 = vsel %vm131_vm0, %v132_v40, %v133_v41  ;;  %v17090_v51 = vld [vmem:[%s24485_s1 + $0x4c] ss:$16 sps:$4 sm:$0xff]   ;;  %v17085_v52 = vld [vmem:[%s24485_s1 + $0x40] ss:$16 sps:$4 sm:$0xff]   ;;  %v17088_v53 = vld [vmem:[%s24485_s1 + $0x48] ss:$16 sps:$4 sm:$0xff]  }
  0x14   :  { %308 = vmatpush1.bf16.msra.mxu0 %v17051_v19  ;;  %v17093_v54 = vld [vmem:[%s24485_s1 + $0x64] ss:$16 sps:$4 sm:$0xff]   ;;  %v17096_v55 = vld [vmem:[%s24485_s1 + $0x6c] ss:$16 sps:$4 sm:$0xff]   ;;  %v17091_v57 = vld [vmem:[%s24485_s1 + $0x60] ss:$16 sps:$4 sm:$0xff]  }
  0x15   :  { %361 = vmatpush1.bf16.msra.mxu1 %v17052_v20  ;;  %309 = vmatprep.subr.bf16.mxu0 %v17053_v21  ;;  %v17115_v56 = vld [vmem:[%s24486_s0 + $0x10] ss:$0 sps:$4 sm:$0x11]   ;;  %v17094_v58 = vld [vmem:[%s24485_s1 + $0x68] ss:$16 sps:$4 sm:$0xff]   ;;  %v17128_v18 = vld [vmem:[%s24486_s0] sm:$0xff]  }
  0x16   :  { %362 = vmatprep.subr.bf16.mxu1 %v17055_v22  ;;  %v135_v59 = vrot.slane %v17115_v56, 1  ;;  %v17099_v60 = vld [vmem:[%s24485_s1 + $0x84] ss:$16 sps:$4 sm:$0xff]   ;;  %v17102_v61 = vld [vmem:[%s24485_s1 + $0x8c] ss:$16 sps:$4 sm:$0xff]   ;;  %vm1699_vm3 = vcmask 261120  }
  0x17   :  { %v17097_v63 = vld [vmem:[%s24485_s1 + $0x80] ss:$16 sps:$4 sm:$0xff]   ;;  %v17100_v0 = vld [vmem:[%s24485_s1 + $0x88] ss:$16 sps:$4 sm:$0xff]   ;;  %v17105_v2 = vld [vmem:[%s24485_s1 + $0xa4] ss:$16 sps:$4 sm:$0xff]  }
  0x18   :  { %310 = vmatpush1.bf16.msra.mxu0 %v17057_v23  ;;  %v136_v62 = vsel %vm131_vm0, %v133_v41, %v135_v59  ;;  %v17108_v3 = vld [vmem:[%s24485_s1 + $0xac] ss:$16 sps:$4 sm:$0xff]   ;;  %v17103_v4 = vld [vmem:[%s24485_s1 + $0xa0] ss:$16 sps:$4 sm:$0xff]   ;;  %v17106_v5 = vld [vmem:[%s24485_s1 + $0xa8] ss:$16 sps:$4 sm:$0xff]  }
  0x19   :  { %363 = vmatpush1.bf16.msra.mxu1 %v17058_v24  ;;  %311 = vmatprep.subr.bf16.mxu0 %v17059_v25  ;;  %v17111_v6 = vld [vmem:[%s24485_s1 + $0xc4] ss:$16 sps:$4 sm:$0xff]   ;;  %v17114_v7 = vld [vmem:[%s24485_s1 + $0xcc] ss:$16 sps:$4 sm:$0xff]   ;;  %v17109_v8 = vld [vmem:[%s24485_s1 + $0xc0] ss:$16 sps:$4 sm:$0xff]  }
  0x1a   :  { %364 = vmatprep.subr.bf16.mxu1 %v17061_v26  ;;  %v17112_v9 = vld [vmem:[%s24485_s1 + $0xc8] ss:$16 sps:$4 sm:$0xff]   ;;  %v17118_v10 = vld [vmem:[%s24485_s1 + $0xe4] ss:$16 sps:$4 sm:$0xff]   ;;  %v17121_v11 = vld [vmem:[%s24485_s1 + $0xec] ss:$16 sps:$4 sm:$0xff]  }
  0x1b   :  { %v17116_v12 = vld [vmem:[%s24485_s1 + $0xe0] ss:$16 sps:$4 sm:$0xff]   ;;  %v17119_v13 = vld [vmem:[%s24485_s1 + $0xe8] ss:$16 sps:$4 sm:$0xff]   ;;  %v17124_v14 = vld [vmem:[%s24485_s1 + $0x204] ss:$16 sps:$4 sm:$0xff]  }
  0x1c   :  { %312 = vmatpush1.bf16.msra.mxu0 %v17063_v27  ;;  %v17127_v15 = vld [vmem:[%s24485_s1 + $0x20c] ss:$16 sps:$4 sm:$0xff]   ;;  %v17122_v16 = vld [vmem:[%s24485_s1 + $0x200] ss:$16 sps:$4 sm:$0xff]   ;;  %v17125_v17 = vld [vmem:[%s24485_s1 + $0x208] ss:$16 sps:$4 sm:$0xff]  }
  0x1d   :  { %365 = vmatpush1.bf16.msra.mxu1 %v17064_v28  ;;  %313 = vmatprep.subr.bf16.mxu0 %v17065_v29  ;;  %v17131_v19 = vld [vmem:[%s24485_s1 + $0x224] ss:$16 sps:$4 sm:$0xff]   ;;  %v17134_v20 = vld [vmem:[%s24485_s1 + $0x22c] ss:$16 sps:$4 sm:$0xff]   ;;  %v17129_v21 = vld [vmem:[%s24485_s1 + $0x220] ss:$16 sps:$4 sm:$0xff]  }
  0x1e   :  { %366 = vmatprep.subr.bf16.mxu1 %v17067_v30  ;;  %v17132_v22 = vld [vmem:[%s24485_s1 + $0x228] ss:$16 sps:$4 sm:$0xff]   ;;  %v17137_v23 = vld [vmem:[%s24485_s1 + $0x244] ss:$16 sps:$4 sm:$0xff]   ;;  %v17140_v24 = vld [vmem:[%s24485_s1 + $0x24c] ss:$16 sps:$4 sm:$0xff]  }
  0x1f   :  { %v17135_v25 = vld [vmem:[%s24485_s1 + $0x240] ss:$16 sps:$4 sm:$0xff]   ;;  %v17165_v26 = vld [vmem:[%s24486_s0 + $0x8] sm:$0xff]   ;;  %v17143_v28 = vld [vmem:[%s24485_s1 + $0x264] ss:$16 sps:$4 sm:$0xff]   ;;  %vm2213_vm4 = vcmask 1041408  }
  0x20   :  { %314 = vmatpush1.bf16.msra.mxu0 %v17069_v37  ;;  %v17138_v27 = vld [vmem:[%s24485_s1 + $0x248] ss:$16 sps:$4 sm:$0xff]   ;;  %v17146_v29 = vld [vmem:[%s24485_s1 + $0x26c] ss:$16 sps:$4 sm:$0xff]   ;;  %v17141_v30 = vld [vmem:[%s24485_s1 + $0x260] ss:$16 sps:$4 sm:$0xff]  }
  0x21   :  { %367 = vmatpush1.bf16.msra.mxu1 %v17070_v38  ;;  %577 = vmatprep.subr.bf16.mxu0 %v17073_v39  ;;  %v17144_v31 = vld [vmem:[%s24485_s1 + $0x268] ss:$16 sps:$4 sm:$0xff]   ;;  %v17149_v35 = vld [vmem:[%s24485_s1 + $0x284] ss:$16 sps:$4 sm:$0xff]   ;;  %v17152_v37 = vld [vmem:[%s24485_s1 + $0x28c] ss:$16 sps:$4 sm:$0xff]  }
  0x22   :  { %630 = vmatprep.subr.bf16.mxu1 %v17076_v42  ;;  %v17147_v38 = vld [vmem:[%s24485_s1 + $0x280] ss:$16 sps:$4 sm:$0xff]   ;;  %v17150_v39 = vld [vmem:[%s24485_s1 + $0x288] ss:$16 sps:$4 sm:$0xff]   ;;  %v17155_v40 = vld [vmem:[%s24485_s1 + $0x2a4] ss:$16 sps:$4 sm:$0xff]  }
  0x23   :  { %332 = vmatmul.mubr.bf16.vlgmr.msra.gmra.mrb[0].mxu0 %v134_v45  ;;  %v17158_v41 = vld [vmem:[%s24485_s1 + $0x2ac] ss:$16 sps:$4 sm:$0xff]   ;;  %v17153_v42 = vld [vmem:[%s24485_s1 + $0x2a0] ss:$16 sps:$4 sm:$0xff]   ;;  %v17175_v59 = vld [vmem:[%s24485_s1 + $0x308] ss:$16 sps:$4 sm:$0xff]  }
  0x24   :  { %385 = vmatmul.mubr.bf16.vlgmr.msra.gmra.mrb[0].mxu1 %v134_v45  ;;  %578 = vmatpush1.bf16.msra.mxu0 %v17071_v43  ;;  %v17156_v43 = vld [vmem:[%s24485_s1 + $0x2a8] ss:$16 sps:$4 sm:$0xff]   ;;  %v17164_v45 = vld [vmem:[%s24485_s1 + $0x2cc] ss:$16 sps:$4 sm:$0xff]   ;;  %vm2214_vm5 = vcmask 1045508  }
  0x25   :  { %631 = vmatpush1.bf16.msra.mxu1 %v17074_v44  ;;  %579 = vmatprep.subr.bf16.mxu0 %v17081_v46  ;;  %v17161_v44 = vld [vmem:[%s24485_s1 + $0x2c4] ss:$16 sps:$4 sm:$0xff]   ;;  %v683_v46 = vld [vmem:[%s24486_s0] sm:$0xc]  ;;  %vm20237_vm6 = vmor %vm2213_vm4, %vm2214_vm5 }
  0x26   :  { %632 = vmatprep.subr.bf16.mxu1 %v17084_v47  ;;  %341 = vmatprep.mubr.bf16.mxu0 %v19265_v1  ;;  %v17159_v47 = vld [vmem:[%s24485_s1 + $0x2c0] ss:$16 sps:$4 sm:$0xff]  }
  0x27   :  { %394 = vmatprep.mubr.bf16.mxu1 %v19265_v1 }
  0x28   :  { %580 = vmatpush1.bf16.msra.mxu0 %v17079_v48  ;;  %v17162_v48 = vld [vmem:[%s24485_s1 + $0x2c8] ss:$16 sps:$4 sm:$0xff]  }
  0x29   :  { %633 = vmatpush1.bf16.msra.mxu1 %v17082_v49  ;;  %581 = vmatprep.subr.bf16.mxu0 %v17087_v50  ;;  %v17168_v49 = vld [vmem:[%s24485_s1 + $0x2e4] ss:$16 sps:$4 sm:$0xff]   ;;  %v13953_v50 = vcombine.low %v683_v46, %v19430_v32 }
  0x2a   :  { %634 = vmatprep.subr.bf16.mxu1 %v17090_v51  ;;  %v17171_v51 = vld [vmem:[%s24485_s1 + $0x2ec] ss:$16 sps:$4 sm:$0xff]  }
  0x2b   :  { %342 = vmatmul.mubr.bf16.gmra.mrb[4].mxu0 %v136_v62  ;;  %v725_v56 = vrot.slane %v13953_v50, 2  ;;  %v17238_v50 = vld [vmem:[%s24485_s1 + $0x448] ss:$16 sps:$4 sm:$0xff]  }
  0x2c   :  { %582 = vmatpush1.bf16.msra.mxu0 %v17085_v52  ;;  %395 = vmatmul.mubr.bf16.gmra.mrb[4].mxu1 %v136_v62  ;;  %v17166_v52 = vld [vmem:[%s24485_s1 + $0x2e0] ss:$16 sps:$4 sm:$0xff]  }
  0x2d   :  { %635 = vmatpush1.bf16.msra.mxu1 %v17088_v53  ;;  %583 = vmatprep.subr.bf16.mxu0 %v17093_v54  ;;  %v726_v53 = vrot.slane %v19445_v36, 2  ;;  %v17169_v54 = vld [vmem:[%s24485_s1 + $0x2e8] ss:$16 sps:$4 sm:$0xff]   ;;  %v17215_v62 = vld [vmem:[%s24486_s0 + $0x10] ss:$0 sps:$4 sm:$0x33]  }
  0x2e   :  { %636 = vmatprep.subr.bf16.mxu1 %v17096_v55  ;;  %609 = vmatprep.mubr.bf16.mxu0 %v19265_v1  ;;  %v17174_v55 = vld [vmem:[%s24485_s1 + $0x304] ss:$16 sps:$4 sm:$0xff]  }
  0x2f   :  { %662 = vmatprep.mubr.bf16.mxu1 %v19265_v1 }
  0x30   :  { %584 = vmatpush1.bf16.msra.mxu0 %v17091_v57  ;;  %v17177_v57 = vld [vmem:[%s24485_s1 + $0x30c] ss:$16 sps:$4 sm:$0xff]  }
  0x31   :  { %637 = vmatpush1.bf16.msra.mxu1 %v17094_v58  ;;  %585 = vmatprep.subr.bf16.mxu0 %v17099_v60  ;;  %v17172_v58 = vld [vmem:[%s24485_s1 + $0x300] ss:$16 sps:$4 sm:$0xff]   ;;  %v17181_v60 = vld [vmem:[%s24485_s1 + $0x324] ss:$16 sps:$4 sm:$0xff]  }
  0x32   :  { %638 = vmatprep.subr.bf16.mxu1 %v17102_v61  ;;  %v727_v61 = vsel %vm724_vm1, %v725_v56, %v726_v53  ;;  %v17249_v56 = vld [vmem:[%s24485_s1 + $0x484] ss:$16 sps:$4 sm:$0xff]  }
  0x34   :  { %586 = vmatpush1.bf16.msra.mxu0 %v17097_v63  ;;  %v17184_v63 = vld [vmem:[%s24485_s1 + $0x32c] ss:$16 sps:$4 sm:$0xff]  }
  0x35   :  { %639 = vmatpush1.bf16.msra.mxu1 %v17100_v0  ;;  %587 = vmatprep.subr.bf16.mxu0 %v17105_v2  ;;  %v17179_v0 = vld [vmem:[%s24485_s1 + $0x320] ss:$16 sps:$4 sm:$0xff]   ;;  %v17182_v2 = vld [vmem:[%s24485_s1 + $0x328] ss:$16 sps:$4 sm:$0xff]  }
  0x36   :  { %640 = vmatprep.subr.bf16.mxu1 %v17108_v3  ;;  %v17187_v3 = vld [vmem:[%s24485_s1 + $0x344] ss:$16 sps:$4 sm:$0xff]  }
  0x38   :  { %588 = vmatpush1.bf16.msra.mxu0 %v17103_v4  ;;  %v728_v4 = vrot.slane %v17215_v62, 2  ;;  %v17253_v62 = vld [vmem:[%s24485_s1 + $0x4a0] ss:$16 sps:$4 sm:$0xff]  }
  0x39   :  { %641 = vmatpush1.bf16.msra.mxu1 %v17106_v5  ;;  %589 = vmatprep.subr.bf16.mxu0 %v17111_v6  ;;  %v17190_v5 = vld [vmem:[%s24485_s1 + $0x34c] ss:$16 sps:$4 sm:$0xff]   ;;  %v17185_v6 = vld [vmem:[%s24485_s1 + $0x340] ss:$16 sps:$4 sm:$0xff]  }
  0x3a   :  { %642 = vmatprep.subr.bf16.mxu1 %v17114_v7  ;;  %v17188_v7 = vld [vmem:[%s24485_s1 + $0x348] ss:$16 sps:$4 sm:$0xff]  }
  0x3c   :  { %590 = vmatpush1.bf16.msra.mxu0 %v17109_v8  ;;  %v17193_v8 = vld [vmem:[%s24485_s1 + $0x364] ss:$16 sps:$4 sm:$0xff]  }
  0x3d   :  { %643 = vmatpush1.bf16.msra.mxu1 %v17112_v9  ;;  %591 = vmatprep.subr.bf16.mxu0 %v17118_v10  ;;  %v729_v9 = vsel %vm724_vm1, %v726_v53, %v728_v4  ;;  %v17196_v10 = vld [vmem:[%s24485_s1 + $0x36c] ss:$16 sps:$4 sm:$0xff]   ;;  %v17263_v4 = vld [vmem:[%s24485_s1 + $0x4c8] ss:$16 sps:$4 sm:$0xff]  }
  0x3e   :  { %644 = vmatprep.subr.bf16.mxu1 %v17121_v11  ;;  %v17191_v11 = vld [vmem:[%s24485_s1 + $0x360] ss:$16 sps:$4 sm:$0xff]   ;;  %v17246_v53 = vld [vmem:[%s24485_s1 + $0x46c] ss:$16 sps:$4 sm:$0xff]  }
  0x40   :  { %592 = vmatpush1.bf16.msra.mxu0 %v17116_v12  ;;  %v17194_v12 = vld [vmem:[%s24485_s1 + $0x368] ss:$16 sps:$4 sm:$0xff]  }
  0x41   :  { %645 = vmatpush1.bf16.msra.mxu1 %v17119_v13  ;;  %892 = vmatprep.subr.bf16.mxu0 %v17124_v14  ;;  %v17199_v13 = vld [vmem:[%s24485_s1 + $0x384] ss:$16 sps:$4 sm:$0xff]   ;;  %v17202_v14 = vld [vmem:[%s24485_s1 + $0x38c] ss:$16 sps:$4 sm:$0xff]  }
  0x42   :  { %945 = vmatprep.subr.bf16.mxu1 %v17127_v15  ;;  %v17197_v15 = vld [vmem:[%s24485_s1 + $0x380] ss:$16 sps:$4 sm:$0xff]  }
  0x43   :  { %610 = vmatmul.mubr.bf16.vlgmr.msra.gmra.mrb[0].mxu0 %v17128_v18 }
  0x44   :  { %663 = vmatmul.mubr.bf16.vlgmr.msra.gmra.mrb[0].mxu1 %v17128_v18  ;;  %893 = vmatpush1.bf16.msra.mxu0 %v17122_v16  ;;  %v17200_v16 = vld [vmem:[%s24485_s1 + $0x388] ss:$16 sps:$4 sm:$0xff]   ;;  %v17208_v18 = vld [vmem:[%s24485_s1 + $0x3ac] ss:$16 sps:$4 sm:$0xff]  }
  0x45   :  { %946 = vmatpush1.bf16.msra.mxu1 %v17125_v17  ;;  %894 = vmatprep.subr.bf16.mxu0 %v17131_v19  ;;  %v17205_v17 = vld [vmem:[%s24485_s1 + $0x3a4] ss:$16 sps:$4 sm:$0xff]   ;;  %v17203_v19 = vld [vmem:[%s24485_s1 + $0x3a0] ss:$16 sps:$4 sm:$0xff]  }
  0x46   :  { %947 = vmatprep.subr.bf16.mxu1 %v17134_v20  ;;  %619 = vmatprep.mubr.bf16.mxu0 %v19265_v1  ;;  %v17206_v20 = vld [vmem:[%s24485_s1 + $0x3a8] ss:$16 sps:$4 sm:$0xff]  }
  0x47   :  { %672 = vmatprep.mubr.bf16.mxu1 %v19265_v1 }
  0x48   :  { %895 = vmatpush1.bf16.msra.mxu0 %v17129_v21  ;;  %v17211_v21 = vld [vmem:[%s24485_s1 + $0x3c4] ss:$16 sps:$4 sm:$0xff]  }
  0x49   :  { %948 = vmatpush1.bf16.msra.mxu1 %v17132_v22  ;;  %896 = vmatprep.subr.bf16.mxu0 %v17137_v23  ;;  %v17214_v22 = vld [vmem:[%s24485_s1 + $0x3cc] ss:$16 sps:$4 sm:$0xff]   ;;  %v1014_v23 = vld [vmem:[%s24486_s0] sm:$0x8] }
  0x4a   :  { %949 = vmatprep.subr.bf16.mxu1 %v17140_v24  ;;  %v17209_v24 = vld [vmem:[%s24485_s1 + $0x3c0] ss:$16 sps:$4 sm:$0xff]  }
  0x4b   :  { %620 = vmatmul.mubr.bf16.gmra.mrb[4].mxu0 %v17165_v26 }
  0x4c   :  { %673 = vmatmul.mubr.bf16.gmra.mrb[4].mxu1 %v17165_v26  ;;  %897 = vmatpush1.bf16.msra.mxu0 %v17135_v25  ;;  %v17212_v25 = vld [vmem:[%s24485_s1 + $0x3c8] ss:$16 sps:$4 sm:$0xff]   ;;  %v14019_v26 = vcombine.low %v1014_v23, %v19430_v32 }
  0x4d   :  { %950 = vmatpush1.bf16.msra.mxu1 %v17138_v27  ;;  %898 = vmatprep.subr.bf16.mxu0 %v17143_v28  ;;  %v17218_v27 = vld [vmem:[%s24485_s1 + $0x3e4] ss:$16 sps:$4 sm:$0xff]   ;;  %v17221_v28 = vld [vmem:[%s24485_s1 + $0x3ec] ss:$16 sps:$4 sm:$0xff]  }
  0x4e   :  { %951 = vmatprep.subr.bf16.mxu1 %v17146_v29  ;;  %924 = vmatprep.mubr.bf16.mxu0 %v19265_v1  ;;  %v17216_v29 = vld [vmem:[%s24485_s1 + $0x3e0] ss:$16 sps:$4 sm:$0xff]  }
  0x4f   :  { %977 = vmatprep.mubr.bf16.mxu1 %v19265_v1 }
  0x50   :  { %899 = vmatpush1.bf16.msra.mxu0 %v17141_v30  ;;  %v17219_v30 = vld [vmem:[%s24485_s1 + $0x3e8] ss:$16 sps:$4 sm:$0xff]  }
  0x51   :  { %952 = vmatpush1.bf16.msra.mxu1 %v17144_v31  ;;  %900 = vmatprep.subr.bf16.mxu0 %v17149_v35  ;;  %v1056_v31 = vrot.slane %v14019_v26, 3  ;;  %v1057_v35 = vrot.slane %v19445_v36, 3  ;;  %v17225_v36 = vld [vmem:[%s24485_s1 + $0x408] ss:$16 sps:$4 sm:$0xff]  }
  0x52   :  { %953 = vmatprep.subr.bf16.mxu1 %v17152_v37  ;;  %v17224_v37 = vld [vmem:[%s24485_s1 + $0x404] ss:$16 sps:$4 sm:$0xff]  }
  0x54   :  { %901 = vmatpush1.bf16.msra.mxu0 %v17147_v38  ;;  %v17227_v38 = vld [vmem:[%s24485_s1 + $0x40c] ss:$16 sps:$4 sm:$0xff]  }
  0x55   :  { %954 = vmatpush1.bf16.msra.mxu1 %v17150_v39  ;;  %902 = vmatprep.subr.bf16.mxu0 %v17155_v40  ;;  %v17222_v39 = vld [vmem:[%s24485_s1 + $0x400] ss:$16 sps:$4 sm:$0xff]   ;;  %v1058_v40 = vsel %vm1055_vm2, %v1056_v31, %v1057_v35 }
  0x56   :  { %955 = vmatprep.subr.bf16.mxu1 %v17158_v41  ;;  %v17259_v41 = vld [vmem:[%s24486_s0 + $0x10] ss:$0 sps:$4 sm:$0x77]  }
  0x57   :  { %v1059_v46 = vrot.slane %v17259_v41, 3 }
  0x58   :  { %903 = vmatpush1.bf16.msra.mxu0 %v17153_v42  ;;  %v17231_v42 = vld [vmem:[%s24485_s1 + $0x424] ss:$16 sps:$4 sm:$0xff]  }
  0x59   :  { %956 = vmatpush1.bf16.msra.mxu1 %v17156_v43  ;;  %904 = vmatprep.subr.bf16.mxu0 %v17161_v44  ;;  %v17234_v43 = vld [vmem:[%s24485_s1 + $0x42c] ss:$16 sps:$4 sm:$0xff]   ;;  %v17229_v44 = vld [vmem:[%s24485_s1 + $0x420] ss:$16 sps:$4 sm:$0xff]  }
  0x5a   :  { %957 = vmatprep.subr.bf16.mxu1 %v17164_v45  ;;  %v17232_v45 = vld [vmem:[%s24485_s1 + $0x428] ss:$16 sps:$4 sm:$0xff]  }
  0x5c   :  { %905 = vmatpush1.bf16.msra.mxu0 %v17159_v47  ;;  %v17237_v47 = vld [vmem:[%s24485_s1 + $0x444] ss:$16 sps:$4 sm:$0xff]  }
  0x5d   :  { %958 = vmatpush1.bf16.msra.mxu1 %v17162_v48  ;;  %906 = vmatprep.subr.bf16.mxu0 %v17168_v49  ;;  %v17240_v48 = vld [vmem:[%s24485_s1 + $0x44c] ss:$16 sps:$4 sm:$0xff]   ;;  %v17235_v49 = vld [vmem:[%s24485_s1 + $0x440] ss:$16 sps:$4 sm:$0xff]  }
  0x5e   :  { %959 = vmatprep.subr.bf16.mxu1 %v17171_v51  ;;  %v1060_v51 = vsel %vm1055_vm2, %v1057_v35, %v1059_v46 }
  0x60   :  { %907 = vmatpush1.bf16.msra.mxu0 %v17166_v52  ;;  %v17243_v52 = vld [vmem:[%s24485_s1 + $0x464] ss:$16 sps:$4 sm:$0xff]  }
  0x61   :  { %960 = vmatpush1.bf16.msra.mxu1 %v17169_v54  ;;  %1223 = vmatprep.subr.bf16.mxu0 %v17174_v55  ;;  %v17241_v54 = vld [vmem:[%s24485_s1 + $0x460] ss:$16 sps:$4 sm:$0xff]   ;;  %v17244_v55 = vld [vmem:[%s24485_s1 + $0x468] ss:$16 sps:$4 sm:$0xff]  }
  0x62   :  { %1276 = vmatprep.subr.bf16.mxu1 %v17177_v57  ;;  %v17252_v57 = vld [vmem:[%s24485_s1 + $0x48c] ss:$16 sps:$4 sm:$0xff]  }
  0x63   :  { %925 = vmatmul.mubr.bf16.vlgmr.msra.gmra.mrb[0].mxu0 %v727_v61 }
  0x64   :  { %978 = vmatmul.mubr.bf16.vlgmr.msra.gmra.mrb[0].mxu1 %v727_v61  ;;  %1224 = vmatpush1.bf16.msra.mxu0 %v17172_v58  ;;  %v17247_v58 = vld [vmem:[%s24485_s1 + $0x480] ss:$16 sps:$4 sm:$0xff]   ;;  %v17258_v61 = vld [vmem:[%s24485_s1 + $0x4ac] ss:$16 sps:$4 sm:$0xff]  }
  0x65   :  { %1277 = vmatpush1.bf16.msra.mxu1 %v17175_v59  ;;  %1225 = vmatprep.subr.bf16.mxu0 %v17181_v60  ;;  %v17250_v59 = vld [vmem:[%s24485_s1 + $0x488] ss:$16 sps:$4 sm:$0xff]   ;;  %v17255_v60 = vld [vmem:[%s24485_s1 + $0x4a4] ss:$16 sps:$4 sm:$0xff]  }
  0x66   :  { %1278 = vmatprep.subr.bf16.mxu1 %v17184_v63  ;;  %934 = vmatprep.mubr.bf16.mxu0 %v19265_v1  ;;  %v17256_v63 = vld [vmem:[%s24485_s1 + $0x4a8] ss:$16 sps:$4 sm:$0xff]  }
  0x67   :  { %987 = vmatprep.mubr.bf16.mxu1 %v19265_v1 }
  0x68   :  { %1226 = vmatpush1.bf16.msra.mxu0 %v17179_v0  ;;  %v17262_v0 = vld [vmem:[%s24485_s1 + $0x4c4] ss:$16 sps:$4 sm:$0xff]  }
  0x69   :  { %1279 = vmatpush1.bf16.msra.mxu1 %v17182_v2  ;;  %1227 = vmatprep.subr.bf16.mxu0 %v17187_v3  ;;  %v17265_v2 = vld [vmem:[%s24485_s1 + $0x4cc] ss:$16 sps:$4 sm:$0xff]   ;;  %v17260_v3 = vld [vmem:[%s24485_s1 + $0x4c0] ss:$16 sps:$4 sm:$0xff]  }
  0x6a   :  { %1280 = vmatprep.subr.bf16.mxu1 %v17190_v5  ;;  %v17268_v5 = vld [vmem:[%s24485_s1 + $0x4e4] ss:$16 sps:$4 sm:$0xff]  }
  0x6b   :  { %935 = vmatmul.mubr.bf16.gmra.mrb[4].mxu0 %v729_v9 }
  0x6c   :  { %988 = vmatmul.mubr.bf16.gmra.mrb[4].mxu1 %v729_v9  ;;  %1228 = vmatpush1.bf16.msra.mxu0 %v17185_v6  ;;  %v17271_v6 = vld [vmem:[%s24485_s1 + $0x4ec] ss:$16 sps:$4 sm:$0xff]   ;;  %v14085_v9 = vcombine.low %v19430_v32, %v19435_v33 }
  0x6d   :  { %1281 = vmatpush1.bf16.msra.mxu1 %v17188_v7  ;;  %1229 = vmatprep.subr.bf16.mxu0 %v17193_v8  ;;  %v17266_v7 = vld [vmem:[%s24485_s1 + $0x4e0] ss:$16 sps:$4 sm:$0xff]   ;;  %v17269_v8 = vld [vmem:[%s24485_s1 + $0x4e8] ss:$16 sps:$4 sm:$0xff]  }
  0x6e   :  { %1282 = vmatprep.subr.bf16.mxu1 %v17196_v10  ;;  %1255 = vmatprep.mubr.bf16.mxu0 %v19265_v1  ;;  %v1345_v10 = vld [vmem:[%s24486_s0 + $0x10] sm:$0xf] }
  0x6f   :  { %1308 = vmatprep.mubr.bf16.mxu1 %v19265_v1 }
  0x70   :  { %1230 = vmatpush1.bf16.msra.mxu0 %v17191_v11  ;;  %v14086_v11 = vcombine.low %v19440_v34, %v1345_v10  ;;  %v17294_v10 = vld [vmem:[%s24487_s2 + $0x464] ss:$16 sps:$4 sm:$0xff]  }
  0x71   :  { %1283 = vmatpush1.bf16.msra.mxu1 %v17194_v12  ;;  %1231 = vmatprep.subr.bf16.mxu0 %v17199_v13  ;;  %v19266_v12 = vmov 0.0  }
  0x72   :  { %1284 = vmatprep.subr.bf16.mxu1 %v17202_v14 }
  0x74   :  { %1232 = vmatpush1.bf16.msra.mxu0 %v17197_v15 }
  0x75   :  { %1285 = vmatpush1.bf16.msra.mxu1 %v17200_v16  ;;  %1233 = vmatprep.subr.bf16.mxu0 %v17205_v17 }
  0x76   :  { %1286 = vmatprep.subr.bf16.mxu1 %v17208_v18 }
  0x78   :  { %1234 = vmatpush1.bf16.msra.mxu0 %v17203_v19 }
  0x79   :  { %1287 = vmatpush1.bf16.msra.mxu1 %v17206_v20  ;;  %1235 = vmatprep.subr.bf16.mxu0 %v17211_v21 }
  0x7a   :  { %1288 = vmatprep.subr.bf16.mxu1 %v17214_v22 }
  0x7c   :  { %1236 = vmatpush1.bf16.msra.mxu0 %v17209_v24 }
  0x7d   :  { %1289 = vmatpush1.bf16.msra.mxu1 %v17212_v25  ;;  %1237 = vmatprep.subr.bf16.mxu0 %v17218_v27 }
  0x7e   :  { %1290 = vmatprep.subr.bf16.mxu1 %v17221_v28 }
  0x80   :  { %1238 = vmatpush1.bf16.msra.mxu0 %v17216_v29 }
  0x81   :  { %1291 = vmatpush1.bf16.msra.mxu1 %v17219_v30  ;;  %1545 = vmatprep.subr.bf16.mxu0 %v17224_v37 }
  0x82   :  { %1598 = vmatprep.subr.bf16.mxu1 %v17227_v38 }
  0x83   :  { %1256 = vmatmul.mubr.bf16.vlgmr.msra.gmra.mrb[0].mxu0 %v1058_v40 }
  0x84   :  { %1309 = vmatmul.mubr.bf16.vlgmr.msra.gmra.mrb[0].mxu1 %v1058_v40  ;;  %1546 = vmatpush1.bf16.msra.mxu0 %v17222_v39 }
  0x85   :  { %1599 = vmatpush1.bf16.msra.mxu1 %v17225_v36  ;;  %1547 = vmatprep.subr.bf16.mxu0 %v17231_v42 }
  0x86   :  { %1600 = vmatprep.subr.bf16.mxu1 %v17234_v43  ;;  %1265 = vmatprep.mubr.bf16.mxu0 %v19265_v1 }
  0x87   :  { %1318 = vmatprep.mubr.bf16.mxu1 %v19265_v1 }
  0x88   :  { %1548 = vmatpush1.bf16.msra.mxu0 %v17229_v44 }
  0x89   :  { %1601 = vmatpush1.bf16.msra.mxu1 %v17232_v45  ;;  %1549 = vmatprep.subr.bf16.mxu0 %v17237_v47 }
  0x8a   :  { %1602 = vmatprep.subr.bf16.mxu1 %v17240_v48 }
  0x8b   :  { %1266 = vmatmul.mubr.bf16.gmra.mrb[4].mxu0 %v1060_v51 }
  0x8c   :  { %1319 = vmatmul.mubr.bf16.gmra.mrb[4].mxu1 %v1060_v51  ;;  %1550 = vmatpush1.bf16.msra.mxu0 %v17235_v49 }
  0x8d   :  { %1603 = vmatpush1.bf16.msra.mxu1 %v17238_v50  ;;  %1551 = vmatprep.subr.bf16.mxu0 %v17243_v52 }
  0x8e   :  { %1604 = vmatprep.subr.bf16.mxu1 %v17246_v53  ;;  %1577 = vmatprep.mubr.bf16.mxu0 %v19265_v1 }
  0x8f   :  { %1630 = vmatprep.mubr.bf16.mxu1 %v19265_v1 }
  0x90   :  { %1552 = vmatpush1.bf16.msra.mxu0 %v17241_v54 }
  0x91   :  { %1605 = vmatpush1.bf16.msra.mxu1 %v17244_v55  ;;  %1553 = vmatprep.subr.bf16.mxu0 %v17249_v56 }
  0x92   :  { %1606 = vmatprep.subr.bf16.mxu1 %v17252_v57 }
  0x94   :  { %1554 = vmatpush1.bf16.msra.mxu0 %v17247_v58 }
  0x95   :  { %1607 = vmatpush1.bf16.msra.mxu1 %v17250_v59  ;;  %1555 = vmatprep.subr.bf16.mxu0 %v17255_v60  ;;  %v19267_v60 = vmov 1.0  }
  0x96   :  { %1608 = vmatprep.subr.bf16.mxu1 %v17258_v61  ;;  %v17276_v61 = vld [vmem:[%s24487_s2 + $0x404] ss:$16 sps:$4 sm:$0xff]  }
  0x98   :  { %1556 = vmatpush1.bf16.msra.mxu0 %v17253_v62  ;;  %v17274_v62 = vld [vmem:[%s24487_s2 + $0x400] ss:$16 sps:$4 sm:$0xff]  }
  0x99   :  { %1609 = vmatpush1.bf16.msra.mxu1 %v17256_v63  ;;  %1557 = vmatprep.subr.bf16.mxu0 %v17262_v0  ;;  %v17277_v63 = vld [vmem:[%s24487_s2 + $0x408] ss:$16 sps:$4 sm:$0xff]   ;;  %v17279_v0 = vld [vmem:[%s24487_s2 + $0x40c] ss:$16 sps:$4 sm:$0xff]  }
  0x9a   :  { %1610 = vmatprep.subr.bf16.mxu1 %v17265_v2  ;;  %v17282_v2 = vld [vmem:[%s24487_s2 + $0x424] ss:$16 sps:$4 sm:$0xff]  }
  0x9c   :  { %1558 = vmatpush1.bf16.msra.mxu0 %v17260_v3  ;;  %v17285_v3 = vld [vmem:[%s24487_s2 + $0x42c] ss:$16 sps:$4 sm:$0xff]  }
  0x9d   :  { %1611 = vmatpush1.bf16.msra.mxu1 %v17263_v4  ;;  %1559 = vmatprep.subr.bf16.mxu0 %v17268_v5  ;;  %v17280_v4 = vld [vmem:[%s24487_s2 + $0x420] ss:$16 sps:$4 sm:$0xff]   ;;  %v17283_v5 = vld [vmem:[%s24487_s2 + $0x428] ss:$16 sps:$4 sm:$0xff]  }
  0x9e   :  { %1612 = vmatprep.subr.bf16.mxu1 %v17271_v6  ;;  %v17288_v6 = vld [vmem:[%s24487_s2 + $0x444] ss:$16 sps:$4 sm:$0xff]  }
  0xa0   :  { %1560 = vmatpush1.bf16.msra.mxu0 %v17266_v7  ;;  %v17291_v7 = vld [vmem:[%s24487_s2 + $0x44c] ss:$16 sps:$4 sm:$0xff]  }
  0xa1   :  { %1613 = vmatpush1.bf16.msra.mxu1 %v17269_v8  ;;  %v17286_v8 = vld [vmem:[%s24487_s2 + $0x440] ss:$16 sps:$4 sm:$0xff]  }
  0xa3   :  { %1578 = vmatmul.mubr.bf16.vlgmr.msra.gmra.mrb[0].mxu0 %v14085_v9 }
  0xa4   :  { %1631 = vmatmul.mubr.bf16.vlgmr.msra.gmra.mrb[0].mxu1 %v14085_v9  ;;  %1587 = vmatprep.mubr.bf16.mxu0 %v19265_v1  ;;  %v17289_v9 = vld [vmem:[%s24487_s2 + $0x448] ss:$16 sps:$4 sm:$0xff]  }
  0xa5   :  { %1640 = vmatprep.mubr.bf16.mxu1 %v19265_v1 }
  0xab   :  { %1588 = vmatmul.mubr.bf16.gmra.mrb[4].mxu0 %v14086_v11 }
  0xac   :  { %1641 = vmatmul.mubr.bf16.gmra.mrb[4].mxu1 %v14086_v11  ;;  %1767 = vmatprep.mubr.f32.mxu0 %v19266_v12  ;;  %v17297_v11 = vld [vmem:[%s24487_s2 + $0x46c] ss:$16 sps:$4 sm:$0xff]  }
  0xad   :  { %1838 = vmatprep.mubr.f32.mxu1 %v19266_v12 }
 0x176   :  { %v19895_v32 = vpop.f32.mrb[0].mxu0 }
 0x177   :  { %v19897_v33 = vpop.f32.mrb[0].mxu1  ;;  %v19899_v13 = vpop.f32.mrb[1].mxu0  ;;  %v1845_v14 = vmul.f32 %v19895_v32, %v19895_v32 }
 0x178   :  { %v19901_v1 = vpop.f32.mrb[1].mxu1  ;;  %v1847_v34 = vmul.f32 %v19897_v33, %v19897_v33  ;;  %v1846_v15 = vmul.f32 %v19899_v13, %v19899_v13  ;;  %v19911_v17 = vpop.f32.mrb[2].mxu0 }
 0x179   :  { %v1848_v16 = vmul.f32 %v19901_v1, %v19901_v1  ;;  %v19913_v18 = vpop.f32.mrb[2].mxu1  ;;  %v16573_v19 = vpack.c.bf16 %v19911_v17, %v19895_v32  ;;  %v1849_v20 = vmul.f32 %v19911_v17, %v19911_v17  ;;  %v19923_v23 = vpop.f32.mrb[3].mxu0 }
 0x17a   :  { %v16581_v21 = vpack.c.bf16 %v19913_v18, %v19897_v33  ;;  %v1851_v22 = vmul.f32 %v19913_v18, %v19913_v18  ;;  %v19925_v24 = vpop.f32.mrb[3].mxu1  ;;  %v16571_v25 = vpack.c.bf16 %v19923_v23, %v19899_v13  ;;  %v1850_v26 = vmul.f32 %v19923_v23, %v19923_v23 }
 0x17b   :  { %v16579_v27 = vpack.c.bf16 %v19925_v24, %v19901_v1  ;;  %v1852_v28 = vmul.f32 %v19925_v24, %v19925_v24  ;;  %v16589_v29 = vpack.c.bf16 %v1849_v20, %v1845_v14  ;;  %v17292_v14 = vld [vmem:[%s24487_s2 + $0x460] ss:$16 sps:$4 sm:$0xff]   ;;  %v17301_v20 = vld [vmem:[%s24487_s2 + $0x488] ss:$16 sps:$4 sm:$0xff]  }
 0x17c   :  { %v16597_v30 = vpack.c.bf16 %v1851_v22, %v1847_v34  ;;  %16572 = vmatprep.subr.bf16.mxu0 %v16571_v25  ;;  %v16587_v31 = vpack.c.bf16 %v1850_v26, %v1846_v15  ;;  %v17295_v34 = vld [vmem:[%s24487_s2 + $0x468] ss:$16 sps:$4 sm:$0xff]   ;;  %v17300_v15 = vld [vmem:[%s24487_s2 + $0x484] ss:$16 sps:$4 sm:$0xff]   ;;  %v17309_v22 = vld [vmem:[%s24487_s2 + $0x4ac] ss:$16 sps:$4 sm:$0xff]  }
 0x17d   :  { %16580 = vmatprep.subr.bf16.mxu1 %v16579_v27  ;;  %v16595_v35 = vpack.c.bf16 %v1852_v28, %v1848_v16  ;;  %16574 = vmatpush1.bf16.msra.mxu0 %v16573_v19  ;;  %v17303_v16 = vld [vmem:[%s24487_s2 + $0x48c] ss:$16 sps:$4 sm:$0xff]   ;;  %v17298_v19 = vld [vmem:[%s24487_s2 + $0x480] ss:$16 sps:$4 sm:$0xff]   ;;  %v17307_v26 = vld [vmem:[%s24487_s2 + $0x4a8] ss:$16 sps:$4 sm:$0xff]  }
 0x17e   :  { %16582 = vmatpush1.bf16.msra.mxu1 %v16581_v21  ;;  %v19935_v37 = vpop.f32.mrb[4].mxu0  ;;  %v17306_v21 = vld [vmem:[%s24487_s2 + $0x4a4] ss:$16 sps:$4 sm:$0xff]   ;;  %v17304_v25 = vld [vmem:[%s24487_s2 + $0x4a0] ss:$16 sps:$4 sm:$0xff]  }
 0x17f   :  { %v19937_v38 = vpop.f32.mrb[4].mxu1  ;;  %v19939_v39 = vpop.f32.mrb[5].mxu0  ;;  %v1853_v40 = vmul.f32 %v19935_v37, %v19935_v37  ;;  %v17312_v27 = vld [vmem:[%s24487_s2 + $0x4c4] ss:$16 sps:$4 sm:$0xff]   ;;  %v17315_v28 = vld [vmem:[%s24487_s2 + $0x4cc] ss:$16 sps:$4 sm:$0xff]  }
 0x180   :  { %v19941_v36 = vpop.f32.mrb[5].mxu1  ;;  %v1855_v41 = vmul.f32 %v19937_v38, %v19937_v38  ;;  %v1854_v42 = vmul.f32 %v19939_v39, %v19939_v39  ;;  %v19951_v44 = vpop.f32.mrb[6].mxu0 }
 0x181   :  { %v1856_v43 = vmul.f32 %v19941_v36, %v19941_v36  ;;  %v19953_v45 = vpop.f32.mrb[6].mxu1  ;;  %v16577_v46 = vpack.c.bf16 %v19951_v44, %v19935_v37  ;;  %v1857_v47 = vmul.f32 %v19951_v44, %v19951_v44  ;;  %v19963_v50 = vpop.f32.mrb[7].mxu0 }
 0x182   :  { %v16585_v48 = vpack.c.bf16 %v19953_v45, %v19937_v38  ;;  %v1859_v49 = vmul.f32 %v19953_v45, %v19953_v45  ;;  %v19965_v51 = vpop.f32.mrb[7].mxu1  ;;  %v16575_v52 = vpack.c.bf16 %v19963_v50, %v19939_v39  ;;  %v1858_v53 = vmul.f32 %v19963_v50, %v19963_v50 }
 0x183   :  { %v16583_v54 = vpack.c.bf16 %v19965_v51, %v19941_v36  ;;  %v1860_v55 = vmul.f32 %v19965_v51, %v19965_v51  ;;  %v16593_v56 = vpack.c.bf16 %v1857_v47, %v1853_v40  ;;  %v17316_v40 = vld [vmem:[%s24487_s2 + $0x4e0] ss:$16 sps:$4 sm:$0xff]   ;;  %v17325_v47 = vld [vmem:[%s24487_s2 + $0x508] ss:$16 sps:$4 sm:$0xff]  }
 0x184   :  { %v16601_v57 = vpack.c.bf16 %v1859_v49, %v1855_v41  ;;  %16576 = vmatprep.subr.bf16.mxu0 %v16575_v52  ;;  %v16591_v58 = vpack.c.bf16 %v1858_v53, %v1854_v42  ;;  %v17319_v41 = vld [vmem:[%s24487_s2 + $0x4e8] ss:$16 sps:$4 sm:$0xff]   ;;  %v17324_v42 = vld [vmem:[%s24487_s2 + $0x504] ss:$16 sps:$4 sm:$0xff]   ;;  %v17333_v49 = vld [vmem:[%s24487_s2 + $0x52c] ss:$16 sps:$4 sm:$0xff]  }
 0x185   :  { %16584 = vmatprep.subr.bf16.mxu1 %v16583_v54  ;;  %v16599_v59 = vpack.c.bf16 %v1860_v55, %v1856_v43  ;;  %16578 = vmatpush1.bf16.msra.mxu0 %v16577_v46  ;;  %v17327_v43 = vld [vmem:[%s24487_s2 + $0x50c] ss:$16 sps:$4 sm:$0xff]   ;;  %v17322_v46 = vld [vmem:[%s24487_s2 + $0x500] ss:$16 sps:$4 sm:$0xff]   ;;  %v17331_v53 = vld [vmem:[%s24487_s2 + $0x528] ss:$16 sps:$4 sm:$0xff]  }
 0x186   :  { %16586 = vmatpush1.bf16.msra.mxu1 %v16585_v48  ;;  %16588 = vmatprep.subr.bf16.mxu0 %v16587_v31  ;;  %v17318_v31 = vld [vmem:[%s24487_s2 + $0x4e4] ss:$16 sps:$4 sm:$0xff]   ;;  %v17328_v52 = vld [vmem:[%s24487_s2 + $0x520] ss:$16 sps:$4 sm:$0xff]   ;;  %v17339_v55 = vld [vmem:[%s24487_s2 + $0x54c] ss:$16 sps:$4 sm:$0xff]  }
 0x187   :  { %16596 = vmatprep.subr.bf16.mxu1 %v16595_v35  ;;  %v17321_v35 = vld [vmem:[%s24487_s2 + $0x4ec] ss:$16 sps:$4 sm:$0xff]   ;;  %v17330_v48 = vld [vmem:[%s24487_s2 + $0x524] ss:$16 sps:$4 sm:$0xff]  }
 0x188   :  { %14119 = vmatmul.mubr.msk.f32.vlgmr.msra.gmra.mrb[8].mxu0 %vm1699_vm3, %v19267_v60  ;;  %v17336_v54 = vld [vmem:[%s24487_s2 + $0x544] ss:$16 sps:$4 sm:$0xff]  }
 0x189   :  { %14120 = vmatmul.mubr.msk.f32.vlgmr.msra.gmra.mrb[8].mxu1 %vm1699_vm3, %v19267_v60  ;;  %16590 = vmatpush1.bf16.msra.mxu0 %v16589_v29  ;;  %v17310_v29 = vld [vmem:[%s24487_s2 + $0x4c0] ss:$16 sps:$4 sm:$0xff]  }
 0x18a   :  { %16598 = vmatpush1.bf16.msra.mxu1 %v16597_v30  ;;  %16592 = vmatprep.subr.bf16.mxu0 %v16591_v58  ;;  %v17313_v30 = vld [vmem:[%s24487_s2 + $0x4c8] ss:$16 sps:$4 sm:$0xff]   ;;  %v17342_v58 = vld [vmem:[%s24487_s2 + $0x564] ss:$16 sps:$4 sm:$0xff]  }
 0x18b   :  { %16600 = vmatprep.subr.bf16.mxu1 %v16599_v59  ;;  %1925 = vmatprep.mubr.f32.mxu0 %v19266_v12  ;;  %v17345_v59 = vld [vmem:[%s24487_s2 + $0x56c] ss:$16 sps:$4 sm:$0xff]  }
 0x18c   :  { %1996 = vmatprep.mubr.f32.mxu1 %v19266_v12 }
 0x18d   :  { %16594 = vmatpush1.bf16.msra.mxu0 %v16593_v56  ;;  %v17334_v56 = vld [vmem:[%s24487_s2 + $0x540] ss:$16 sps:$4 sm:$0xff]  }
 0x18e   :  { %16602 = vmatpush1.bf16.msra.mxu1 %v16601_v57  ;;  %3243 = vmatprep.subr.bf16.mxu0 %v17276_v61  ;;  %v17337_v57 = vld [vmem:[%s24487_s2 + $0x548] ss:$16 sps:$4 sm:$0xff]   ;;  %v17340_v61 = vld [vmem:[%s24487_s2 + $0x560] ss:$16 sps:$4 sm:$0xff]  }
 0x18f   :  { %3349 = vmatprep.subr.bf16.mxu1 %v17279_v0  ;;  %v17351_v0 = vld [vmem:[%s24487_s2 + $0x58c] ss:$16 sps:$4 sm:$0xff]  }
 0x190   :  { %14121 = vmatmul.mubr.msk.f32.vlgmr.msra.gmra.mrb[10].mxu0 %vm1699_vm3, %v19267_v60 }
 0x191   :  { %14122 = vmatmul.mubr.msk.f32.vlgmr.msra.gmra.mrb[10].mxu1 %vm1699_vm3, %v19267_v60  ;;  %3244 = vmatpush1.bf16.msra.mxu0 %v17274_v62  ;;  %v17343_v62 = vld [vmem:[%s24487_s2 + $0x568] ss:$16 sps:$4 sm:$0xff]  }
 0x192   :  { %3350 = vmatpush1.bf16.msra.mxu1 %v17277_v63  ;;  %3245 = vmatprep.subr.bf16.mxu0 %v17282_v2  ;;  %v17348_v63 = vld [vmem:[%s24487_s2 + $0x584] ss:$16 sps:$4 sm:$0xff]   ;;  %v17346_v2 = vld [vmem:[%s24487_s2 + $0x580] ss:$16 sps:$4 sm:$0xff]  }
 0x193   :  { %3351 = vmatprep.subr.bf16.mxu1 %v17285_v3  ;;  %v17349_v3 = vld [vmem:[%s24487_s2 + $0x588] ss:$16 sps:$4 sm:$0xff]  }
 0x195   :  { %3246 = vmatpush1.bf16.msra.mxu0 %v17280_v4  ;;  %v17354_v4 = vld [vmem:[%s24487_s2 + $0x5a4] ss:$16 sps:$4 sm:$0xff]  }
 0x196   :  { %3352 = vmatpush1.bf16.msra.mxu1 %v17283_v5  ;;  %3247 = vmatprep.subr.bf16.mxu0 %v17288_v6  ;;  %v17357_v5 = vld [vmem:[%s24487_s2 + $0x5ac] ss:$16 sps:$4 sm:$0xff]   ;;  %v17352_v6 = vld [vmem:[%s24487_s2 + $0x5a0] ss:$16 sps:$4 sm:$0xff]  }
 0x197   :  { %3353 = vmatprep.subr.bf16.mxu1 %v17291_v7  ;;  %v17355_v7 = vld [vmem:[%s24487_s2 + $0x5a8] ss:$16 sps:$4 sm:$0xff]  }
 0x199   :  { %3248 = vmatpush1.bf16.msra.mxu0 %v17286_v8  ;;  %v17358_v8 = vld [vmem:[%s24487_s2 + $0x5c0] ss:$16 sps:$4 sm:$0xff]  }
 0x19a   :  { %3354 = vmatpush1.bf16.msra.mxu1 %v17289_v9  ;;  %3249 = vmatprep.subr.bf16.mxu0 %v17294_v10  ;;  %v17360_v9 = vld [vmem:[%s24487_s2 + $0x5c4] ss:$16 sps:$4 sm:$0xff]   ;;  %v17361_v10 = vld [vmem:[%s24487_s2 + $0x5c8] ss:$16 sps:$4 sm:$0xff]  }
 0x19b   :  { %3355 = vmatprep.subr.bf16.mxu1 %v17297_v11  ;;  %v17363_v11 = vld [vmem:[%s24487_s2 + $0x5cc] ss:$16 sps:$4 sm:$0xff]  }
 0x19d   :  { %3250 = vmatpush1.bf16.msra.mxu0 %v17292_v14  ;;  %v17364_v14 = vld [vmem:[%s24487_s2 + $0x5e0] ss:$16 sps:$4 sm:$0xff]  }
 0x19e   :  { %3356 = vmatpush1.bf16.msra.mxu1 %v17295_v34  ;;  %3251 = vmatprep.subr.bf16.mxu0 %v17300_v15  ;;  %v17366_v34 = vld [vmem:[%s24487_s2 + $0x5e4] ss:$16 sps:$4 sm:$0xff]   ;;  %v17367_v15 = vld [vmem:[%s24487_s2 + $0x5e8] ss:$16 sps:$4 sm:$0xff]  }
 0x19f   :  { %3357 = vmatprep.subr.bf16.mxu1 %v17303_v16  ;;  %v17369_v16 = vld [vmem:[%s24487_s2 + $0x5ec] ss:$16 sps:$4 sm:$0xff]  }
 0x1a1   :  { %3252 = vmatpush1.bf16.msra.mxu0 %v17298_v19  ;;  %v17372_v19 = vld [vmem:[%s24487_s2 + $0x604] ss:$16 sps:$4 sm:$0xff]  }
 0x1a2   :  { %3358 = vmatpush1.bf16.msra.mxu1 %v17301_v20  ;;  %3253 = vmatprep.subr.bf16.mxu0 %v17306_v21  ;;  %v17375_v20 = vld [vmem:[%s24487_s2 + $0x60c] ss:$16 sps:$4 sm:$0xff]  }
 0x1a3   :  { %3359 = vmatprep.subr.bf16.mxu1 %v17309_v22 }
 0x1a5   :  { %3254 = vmatpush1.bf16.msra.mxu0 %v17304_v25 }
 0x1a6   :  { %3360 = vmatpush1.bf16.msra.mxu1 %v17307_v26  ;;  %3255 = vmatprep.subr.bf16.mxu0 %v17312_v27 }
 0x1a7   :  { %3361 = vmatprep.subr.bf16.mxu1 %v17315_v28 }
 0x1a9   :  { %3256 = vmatpush1.bf16.msra.mxu0 %v17310_v29 }
 0x1aa   :  { %3362 = vmatpush1.bf16.msra.mxu1 %v17313_v30  ;;  %3257 = vmatprep.subr.bf16.mxu0 %v17318_v31 }
 0x1ab   :  { %3363 = vmatprep.subr.bf16.mxu1 %v17321_v35  ;;  %v2029_v35 = vlaneseq }
 0x1ad   :  { %3258 = vmatpush1.bf16.msra.mxu0 %v17316_v40 }
 0x1ae   :  { %3364 = vmatpush1.bf16.msra.mxu1 %v17319_v41  ;;  %3259 = vmatprep.subr.bf16.mxu0 %v17324_v42 }
 0x1af   :  { %3365 = vmatprep.subr.bf16.mxu1 %v17327_v43 }
 0x1b1   :  { %3260 = vmatpush1.bf16.msra.mxu0 %v17322_v46 }
 0x1b2   :  { %3366 = vmatpush1.bf16.msra.mxu1 %v17325_v47  ;;  %3261 = vmatprep.subr.bf16.mxu0 %v17330_v48 }
 0x1b3   :  { %3367 = vmatprep.subr.bf16.mxu1 %v17333_v49 }
 0x1b5   :  { %3262 = vmatpush1.bf16.msra.mxu0 %v17328_v52 }
 0x1b6   :  { %3368 = vmatpush1.bf16.msra.mxu1 %v17331_v53  ;;  %3263 = vmatprep.subr.bf16.mxu0 %v17336_v54 }
 0x1b7   :  { %3369 = vmatprep.subr.bf16.mxu1 %v17339_v55 }
 0x1b9   :  { %3264 = vmatpush1.bf16.msra.mxu0 %v17334_v56 }
 0x1ba   :  { %3370 = vmatpush1.bf16.msra.mxu1 %v17337_v57  ;;  %3265 = vmatprep.subr.bf16.mxu0 %v17342_v58 }
 0x1bb   :  { %3371 = vmatprep.subr.bf16.mxu1 %v17345_v59 }
 0x1bd   :  { %3266 = vmatpush1.bf16.msra.mxu0 %v17340_v61 }
 0x1be   :  { %3372 = vmatpush1.bf16.msra.mxu1 %v17343_v62  ;;  %3267 = vmatprep.subr.bf16.mxu0 %v17348_v63  ;;  %v2030_v62 = vshrl.u32 %v2029_v35, 7 }
 0x1bf   :  { %3373 = vmatprep.subr.bf16.mxu1 %v17351_v0 }
 0x1c1   :  { %3268 = vmatpush1.bf16.msra.mxu0 %v17346_v2  ;;  %v2027_v2 = vld [vmem:[%s24488_s4] sm:$0xf] }
 0x1c2   :  { %3374 = vmatpush1.bf16.msra.mxu1 %v17349_v3  ;;  %3269 = vmatprep.subr.bf16.mxu0 %v17354_v4  ;;  %v20190_v3 = vsub.s32 0, %v2030_v62  ;;  %v20192_v4 = vsub.s32 2, %v2030_v62 }
 0x1c3   :  { %3375 = vmatprep.subr.bf16.mxu1 %v17357_v5  ;;  %v20194_v5 = vsub.s32 1, %v2030_v62 }
 0x1c5   :  { %3270 = vmatpush1.bf16.msra.mxu0 %v17352_v6  ;;  %v19268_v6 = vmov 1966171168  }
 0x1c6   :  { %3376 = vmatpush1.bf16.msra.mxu1 %v17355_v7  ;;  %3271 = vmatprep.subr.bf16.mxu0 %v17360_v9  ;;  %v2065_v7 = vunpack.c.l.s4 %v19268_v6  ;;  %v2032_v9 = vrot.slane %v2027_v2, %v20190_v3 }
 0x1c7   :  { %3377 = vmatprep.subr.bf16.mxu1 %v17363_v11  ;;  %v2036_v11 = vrot.slane %v2027_v2, %v20194_v5 }
 0x1c9   :  { %3272 = vmatpush1.bf16.msra.mxu0 %v17358_v8  ;;  %v20196_v8 = vsub.s32 3, %v2030_v62 }
 0x1ca   :  { %3378 = vmatpush1.bf16.msra.mxu1 %v17361_v10  ;;  %3273 = vmatprep.subr.bf16.mxu0 %v17366_v34  ;;  %v2040_v10 = vrot.slane %v2027_v2, %v20192_v4  ;;  %v2066_v34 = vunpack.c.0.s8 %v2065_v7 }
 0x1cb   :  { %3379 = vmatprep.subr.bf16.mxu1 %v17369_v16 }
 0x1cd   :  { %3274 = vmatpush1.bf16.msra.mxu0 %v17364_v14 }
 0x1ce   :  { %3380 = vmatpush1.bf16.msra.mxu1 %v17367_v15  ;;  %3296 = vmatprep.subr.bf16.mxu0 %v17372_v19  ;;  %v2044_v15 = vrot.slane %v2027_v2, %v20196_v8 }
 0x1cf   :  { %3402 = vmatprep.subr.bf16.mxu1 %v17375_v20 }
 0x25b   :  { %v1769_v21 = vpop.f32.mrb[8].mxu0 }
 0x25c   :  { %v1840_v22 = vpop.f32.mrb[8].mxu1  ;;  %v1771_v25 = vpop.f32.mrb[9].mxu0  ;;  %v2003_v27 = vmul.f32 0.03125, %v1769_v21 }
 0x25d   :  { %v1842_v26 = vpop.f32.mrb[9].mxu1  ;;  %v2005_v28 = vmul.f32 0.03125, %v1840_v22  ;;  %v2004_v29 = vmul.f32 0.03125, %v1771_v25 }
 0x25e   :  { %v20183_v30 = vmul.f32 0.03125, %v1842_v26  ;;  %v2011_v41 = vmul.f32 %v2003_v27, %v2003_v27 }
 0x25f   :  { %v2013_v42 = vmul.f32 %v2005_v28, %v2005_v28  ;;  %v2012_v49 = vmul.f32 %v2004_v29, %v2004_v29 }
 0x260   :  { %v2014_v52 = vmul.f32 %v20183_v30, %v20183_v30 }
 0x263   :  { %v1927_v31 = vpop.f32.mrb[10].mxu0 }
 0x264   :  { %v1998_v40 = vpop.f32.mrb[10].mxu1  ;;  %v2007_v43 = vmul.f32 0.03125, %v1927_v31  ;;  %v1929_v47 = vpop.f32.mrb[11].mxu0 }
 0x265   :  { %v2009_v46 = vmul.f32 0.03125, %v1998_v40  ;;  %v2000_v48 = vpop.f32.mrb[11].mxu1  ;;  %v2008_v53 = vmul.f32 0.03125, %v1929_v47 }
 0x266   :  { %v2010_v54 = vmul.f32 0.03125, %v2000_v48  ;;  %v2015_v55 = vsub.f32 %v2007_v43, %v2011_v41  ;;  %v20204_v41 = vsub.s32 %v2066_v34, %v2030_v62 }
 0x267   :  { %v2017_v56 = vsub.f32 %v2009_v46, %v2013_v42  ;;  %v2016_v57 = vsub.f32 %v2008_v53, %v2012_v49 }
 0x268   :  { %v2018_v58 = vsub.f32 %v2010_v54, %v2014_v52  ;;  %v2019_v59 = vadd.f32 1e-05, %v2015_v55 }
 0x269   :  { %v2021_v61 = vadd.f32 1e-05, %v2017_v56  ;;  %v2020_v63 = vadd.f32 1e-05, %v2016_v57 }
 0x26a   :  { %v2022_v0 = vadd.f32 1e-05, %v2018_v58  ;;  %19230 = vrsqrt.f32 %v2019_v59 }
 0x26b   :  { %19232 = vrsqrt.f32 %v2021_v61 }
 0x26c   :  { %19234 = vrsqrt.f32 %v2020_v63 }
 0x26d   :  { %19236 = vrsqrt.f32 %v2022_v0 }
 0x274   :  { %v19231_v14 = vpop.eup %19230 }
 0x275   :  { %v19233_v16 = vpop.eup %19232  ;;  %v2049_v19 = vmul.f32 %v19231_v14, %v2032_v9 }
 0x276   :  { %v19235_v20 = vpop.eup %19234  ;;  %v2051_v21 = vmul.f32 %v19233_v16, %v2040_v10 }
 0x277   :  { %v19237_v22 = vpop.eup %19236  ;;  %v2054_v25 = vmul.f32 %v2049_v19, %v2003_v27  ;;  %v2091_v26 = vrot.slane %v2049_v19, %v20190_v3  ;;  %v2050_v31 = vmul.f32 %v19235_v20, %v2036_v11 }
 0x278   :  { %v2056_v35 = vmul.f32 %v2051_v21, %v2005_v28  ;;  %v2099_v40 = vrot.slane %v2051_v21, %v20190_v3  ;;  %v2052_v42 = vmul.f32 %v19237_v22, %v2044_v15 }
 0x279   :  { %v2104_v43 = vmul.f32 %v2091_v26, %v19895_v32  ;;  %v2108_v46 = vmul.f32 %v2091_v26, %v19911_v17  ;;  %v2112_v47 = vmul.f32 %v2091_v26, %v19935_v37  ;;  %v2116_v48 = vmul.f32 %v2091_v26, %v19951_v44 }
 0x27a   :  { %v2106_v49 = vmul.f32 %v2099_v40, %v19897_v33  ;;  %v2110_v27 = vmul.f32 %v2099_v40, %v19913_v18  ;;  %v2114_v52 = vmul.f32 %v2099_v40, %v19937_v38  ;;  %v2118_v28 = vmul.f32 %v2099_v40, %v19953_v45 }
 0x27b   :  { %v2055_v53 = vmul.f32 %v2050_v31, %v2004_v29  ;;  %v2095_v54 = vrot.slane %v2050_v31, %v20190_v3  ;;  %v2057_v55 = vmul.f32 %v2052_v42, %v20183_v30  ;;  %v2103_v32 = vrot.slane %v2052_v42, %v20190_v3 }
 0x27d   :  { %v2062_v17 = vcombine.low %v2054_v25, %v2055_v53  ;;  %v2105_v37 = vmul.f32 %v2095_v54, %v19899_v13  ;;  %v2109_v44 = vmul.f32 %v2095_v54, %v19923_v23  ;;  %v2113_v33 = vmul.f32 %v2095_v54, %v19939_v39  ;;  %v2053_v23 = vld [vmem:[%s24489_s5] sm:$0xf] }
 0x27e   :  { %v2117_v18 = vmul.f32 %v2095_v54, %v19963_v50  ;;  %v2063_v56 = vcombine.low %v2056_v35, %v2057_v55  ;;  %v2107_v38 = vmul.f32 %v2103_v32, %v19901_v1  ;;  %v2111_v45 = vmul.f32 %v2103_v32, %v19925_v24 }
 0x27f   :  { %v2070_v29 = vrot.slane %v2062_v17, %v20204_v41  ;;  %v2115_v30 = vmul.f32 %v2103_v32, %v19941_v36  ;;  %v2119_v57 = vmul.f32 %v2103_v32, %v19965_v51 }
 0x280   :  { %v2077_v58 = vrot.slane %v2063_v56, %v20204_v41 }
 0x282   :  { %v2078_v13 = vcombine.low %v2070_v29, %v2077_v58 }
 0x284   :  { %v2085_v39 = vrot.slane %v2078_v13, %v20204_v41 }
 0x286   :  { %v2087_v50 = vsub.f32 %v2053_v23, %v2085_v39 }
 0x288   :  { %v2124_v1 = vrot.slane %v2087_v50, %v20190_v3  ;;  %v2128_v24 = vrot.slane %v2087_v50, %v20194_v5  ;;  %v2132_v59 = vrot.slane %v2087_v50, %v20192_v4  ;;  %v2136_v36 = vrot.slane %v2087_v50, %v20196_v8 }
 0x28a   :  { %v2141_v61 = vadd.f32 %v2124_v1, %v2104_v43  ;;  %v2142_v51 = vadd.f32 %v2128_v24, %v2105_v37  ;;  %v2143_v62 = vadd.f32 %v2132_v59, %v2106_v49  ;;  %v2144_v63 = vadd.f32 %v2136_v36, %v2107_v38 }
 0x28b   :  { %v2145_v0 = vadd.f32 %v2124_v1, %v2108_v46  ;;  %v2146_v2 = vadd.f32 %v2128_v24, %v2109_v44  ;;  %v2147_v6 = vadd.f32 %v2132_v59, %v2110_v27  ;;  %v2148_v7 = vadd.f32 %v2136_v36, %v2111_v45 }
 0x28c   :  { %v2149_v9 = vadd.f32 %v2124_v1, %v2112_v47  ;;  %v2150_v10 = vadd.f32 %v2128_v24, %v2113_v33  ;;  %v2151_v11 = vadd.f32 %v2132_v59, %v2114_v52  ;;  %v2152_v14 = vadd.f32 %v2136_v36, %v2115_v30 }
 0x28d   :  { %v2153_v34 = vadd.f32 %v2124_v1, %v2116_v48  ;;  %v2154_v15 = vadd.f32 %v2128_v24, %v2117_v18  ;;  %v2155_v16 = vadd.f32 %v2132_v59, %v2118_v28  ;;  %v2156_v19 = vadd.f32 %v2136_v36, %v2119_v57 }
 0x28e   :  { %v2157_v20 = vmax.f32 %v2141_v61, 0.0  ;;  %v2158_v21 = vmax.f32 %v2142_v51, 0.0  ;;  %v2159_v22 = vmax.f32 %v2143_v62, 0.0  ;;  %v2160_v25 = vmax.f32 %v2144_v63, 0.0 }
 0x28f   :  { %v2161_v26 = vmax.f32 %v2145_v0, 0.0  ;;  %v2162_v31 = vmax.f32 %v2146_v2, 0.0  ;;  %v2163_v35 = vmax.f32 %v2147_v6, 0.0  ;;  %v2164_v40 = vmax.f32 %v2148_v7, 0.0 }
 0x290   :  { %v2165_v42 = vmax.f32 %v2149_v9, 0.0  ;;  %v2166_v43 = vmax.f32 %v2150_v10, 0.0  ;;  %v2167_v46 = vmax.f32 %v2151_v11, 0.0  ;;  %v2168_v49 = vmax.f32 %v2152_v14, 0.0 }
 0x291   :  { %v2169_v47 = vmax.f32 %v2153_v34, 0.0  ;;  %v2170_v27 = vmax.f32 %v2154_v15, 0.0  ;;  %v2171_v52 = vmax.f32 %v2155_v16, 0.0  ;;  %v2172_v53 = vmax.f32 %v2156_v19, 0.0 }
 0x292   :  { %v16548_v48 = vpack.c.bf16 %v2160_v25, %v2159_v22  ;;  %v16549_v54 = vpack.c.bf16 %v2162_v31, %v2161_v26  ;;  %v16550_v28 = vpack.c.bf16 %v2164_v40, %v2163_v35  ;;  %v16551_v55 = vpack.c.bf16 %v2166_v43, %v2165_v42 }
 0x293   :  { %v16552_v32 = vpack.c.bf16 %v2168_v49, %v2167_v46  ;;  %v16553_v17 = vpack.c.bf16 %v2170_v27, %v2169_v47  ;;  %v16554_v37 = vpack.c.bf16 %v2172_v53, %v2171_v52  ;;  %v16547_v44 = vpack.c.bf16 %v2158_v21, %v2157_v20  ;;  %v17370_v53 = vld [vmem:[%s24487_s2 + $0x600] ss:$16 sps:$4 sm:$0xff]  }
 0x294   :  { %v2217_v33 = vrot.slane %v16548_v48, 6  ;;  %v2219_v18 = vrot.slane %v16549_v54, 6  ;;  %v2222_v56 = vrot.slane %v16550_v28, 6  ;;  %v2225_v38 = vrot.slane %v16551_v55, 6  ;;  %v17373_v48 = vld [vmem:[%s24487_s2 + $0x608] ss:$16 sps:$4 sm:$0xff]  }
 0x295   :  { %v2228_v29 = vrot.slane %v16552_v32, 6  ;;  %v2231_v30 = vrot.slane %v16553_v17, 6  ;;  %v2234_v57 = vrot.slane %v16554_v37, 6  ;;  %v2216_v58 = vrot.slane %v16547_v44, 6  ;;  %v17379_v37 = vld [vmem:[%s24487_s2 + $0x624] ss:$16 sps:$4 sm:$0xff]  }
 0x296   :  { %v2221_v13 = vrot.slane %v2217_v33, 4  ;;  %v2224_v23 = vrot.slane %v2219_v18, 4  ;;  %v2227_v39 = vrot.slane %v2222_v56, 4  ;;  %v2230_v50 = vrot.slane %v2225_v38, 4  ;;  %2249 = vst [vmem:[#allocation2 + $0x8] sm:$0xcc] %v2217_v33 }
 0x297   :  { %v2233_v1 = vrot.slane %v2228_v29, 4  ;;  %v2237_v24 = vrot.slane %v2234_v57, 4  ;;  %v2218_v59 = vrot.slane %v2216_v58, 4  ;;  %2248 = vst [vmem:[#allocation2] sm:$0xcc] %v2216_v58  ;;  %v2236_v36 = vrot.slane %v2231_v30, 4 }
 0x298   :  { %v20243_v61 = vsel %vm20237_vm6, %v2221_v13, %v2222_v56  ;;  %v2229_v51 = vsel %vm20237_vm6, %v2227_v39, %v2228_v29  ;;  %v2226_v62 = vsel %vm20237_vm6, %v2224_v23, %v2225_v38  ;;  %v2232_v63 = vsel %vm20237_vm6, %v2230_v50, %v2231_v30  ;;  %v17382_v44 = vld [vmem:[%s24487_s2 + $0x62c] ss:$16 sps:$4 sm:$0xff]   ;;  %v17377_v29 = vld [vmem:[%s24487_s2 + $0x620] ss:$16 sps:$4 sm:$0xff]   ;;  %v17380_v30 = vld [vmem:[%s24487_s2 + $0x628] ss:$16 sps:$4 sm:$0xff]  }
 0x299   :  { %v2235_v0 = vsel %vm20237_vm6, %v2233_v1, %v2234_v57  ;;  %2251 = vst [vmem:[#allocation2 + $0x18] sm:$0xff] %v20243_v61  ;;  %2253 = vst [vmem:[#allocation2 + $0x28] sm:$0xff] %v2229_v51  ;;  %v20256_v2 = vsel %vm20237_vm6, %v2218_v59, %v2219_v18  ;;  %v20265_v9 = vcombine.high %v2226_v62, %v2232_v63  ;;  %v17385_v57 = vld [vmem:[%s24487_s2 + $0x644] ss:$16 sps:$4 sm:$0xff]   ;;  %v17388_v58 = vld [vmem:[%s24487_s2 + $0x64c] ss:$16 sps:$4 sm:$0xff]  }
 0x29a   :  { %2257 = vst [vmem:[#allocation2 + $0x48] sm:$0x33] %v2237_v24  ;;  %2254 = vst [vmem:[#allocation2 + $0x30] sm:$0xff] %v2232_v63  ;;  %v20260_v6 = vcombine.high %v20256_v2, %v2226_v62  ;;  %v20263_v7 = vcombine.low %v20256_v2, %v2226_v62  ;;  %v20268_v10 = vcombine.high %v20243_v61, %v2229_v51  ;;  %v17383_v24 = vld [vmem:[%s24487_s2 + $0x640] ss:$16 sps:$4 sm:$0xff]  }
 0x29b   :  { %2256 = vst [vmem:[#allocation2 + $0x40] sm:$0x33] %v2236_v36  ;;  %2255 = vst [vmem:[#allocation2 + $0x38] sm:$0xff] %v2235_v0  ;;  %v20271_v11 = vcombine.low %v20243_v61, %v2229_v51  ;;  %v20273_v14 = vcombine.high %v2229_v51, %v2235_v0  ;;  %v20275_v34 = vcombine.low %v2229_v51, %v2235_v0  ;;  %v2579_v25 = vrot.slane %v20265_v9, 1  ;;  %v17386_v59 = vld [vmem:[%s24487_s2 + $0x648] ss:$16 sps:$4 sm:$0xff]  }
 0x29c   :  { %2250 = vst [vmem:[#allocation2 + $0x10] sm:$0xff] %v20256_v2  ;;  %v20277_v15 = vcombine.low %v2226_v62, %v2232_v63  ;;  %v17392_v62 = vld [vmem:[%s24487_s2 + $0x664] ss:$16 sps:$4 sm:$0xff]   ;;  %v17395_v63 = vld [vmem:[%s24487_s2 + $0x66c] ss:$16 sps:$4 sm:$0xff]  }
 0x29d   :  { %v2395_v16 = vld [vmem:[#allocation2 + $0x8] sm:$0xee]  ;;  %v2585_v42 = vrot.slane %v20273_v14, 1  ;;  %v2582_v43 = vrot.slane %v20275_v34, 1  ;;  %v4510_v13 = vrot.slane %v20273_v14, 2  ;;  %v4507_v50 = vrot.slane %v20275_v34, 2 }
 0x29e   :  { %v2394_v19 = vld [vmem:[#allocation2] sm:$0xee]  ;;  %v14261_v20 = vcombine.low %v2395_v16, %v20243_v61  ;;  %v14262_v21 = vcombine.high %v2395_v16, %v20243_v61  ;;  %v2576_v47 = vrot.slane %v20277_v15, 1  ;;  %v4348_v52 = vld [vmem:[#allocation2 + $0x8] sm:$0xcc] }
 0x29f   :  { %v14260_v22 = vcombine.high %v2394_v19, %v20256_v2  ;;  %v14259_v26 = vcombine.low %v2394_v19, %v20256_v2  ;;  %v14665_v18 = vcombine.low %v4348_v52, %v20243_v61  ;;  %v14666_v56 = vcombine.high %v4348_v52, %v20243_v61  ;;  %v17390_v16 = vld [vmem:[%s24487_s2 + $0x660] ss:$16 sps:$4 sm:$0xff]   ;;  %v17393_v19 = vld [vmem:[%s24487_s2 + $0x668] ss:$16 sps:$4 sm:$0xff]   ;;  %v17416_v52 = vld [vmem:[%s24487_s2 + $0x6e4] ss:$16 sps:$4 sm:$0xff]  }
 0x2a0   :  { %v2581_v35 = vrot.slane %v14261_v20, 1  ;;  %v2584_v40 = vrot.slane %v14262_v21, 1  ;;  %v17398_v20 = vld [vmem:[%s24487_s2 + $0x684] ss:$16 sps:$4 sm:$0xff]   ;;  %v17401_v21 = vld [vmem:[%s24487_s2 + $0x68c] ss:$16 sps:$4 sm:$0xff]  }
 0x2a1   :  { %v2578_v46 = vrot.slane %v14260_v22, 1  ;;  %v2575_v49 = vrot.slane %v14259_v26, 1  ;;  %v4506_v23 = vrot.slane %v14665_v18, 2  ;;  %v4509_v39 = vrot.slane %v14666_v56, 2  ;;  %v17396_v22 = vld [vmem:[%s24487_s2 + $0x680] ss:$16 sps:$4 sm:$0xff]  }
 0x2a2   :  { %v2402_v31 = vld [vmem:[#allocation2 + $0x40] sm:$0x11]  ;;  %v2586_v54 = vsel %vm131_vm0, %v2584_v40, %v2585_v42  ;;  %v20299_v28 = vsel %vm131_vm0, %v2581_v35, %v2582_v43  ;;  %v17405_v40 = vld [vmem:[%s24487_s2 + $0x6a8] ss:$16 sps:$4 sm:$0xff]  }
 0x2a3   :  { %v14268_v27 = vcombine.high %v2402_v31, %v2402_v31  ;;  %v2580_v55 = vsel %vm131_vm0, %v2578_v46, %v2579_v25  ;;  %v2577_v32 = vsel %vm131_vm0, %v2575_v49, %v2576_v47  ;;  %v14267_v33 = vcombine.low %v2402_v31, %v2402_v31  ;;  %v17404_v26 = vld [vmem:[%s24487_s2 + $0x6a4] ss:$16 sps:$4 sm:$0xff]   ;;  %v17407_v31 = vld [vmem:[%s24487_s2 + $0x6ac] ss:$16 sps:$4 sm:$0xff]   ;;  %v17402_v35 = vld [vmem:[%s24487_s2 + $0x6a0] ss:$16 sps:$4 sm:$0xff]  }
 0x2a4   :  { %3275 = vmatprep.mubr.bf16.mxu0 %v2580_v55  ;;  %3381 = vmatprep.mubr.bf16.mxu1 %v2580_v55  ;;  %v20335_v36 = vsel %vm724_vm1, %v4509_v39, %v4510_v13  ;;  %v20340_v51 = vsel %vm724_vm1, %v4506_v23, %v4507_v50  ;;  %v17410_v46 = vld [vmem:[%s24487_s2 + $0x6c4] ss:$16 sps:$4 sm:$0xff]   ;;  %v17413_v49 = vld [vmem:[%s24487_s2 + $0x6cc] ss:$16 sps:$4 sm:$0xff]   ;;  %v17426_v18 = vld [vmem:[%s24487_s2 + $0x720] ss:$16 sps:$4 sm:$0xff]  }
 0x2a5   :  { %v2589_v17 = vrot.slane %v14268_v27, 1  ;;  %3276 = vmatmul.mubr.bf16.vlgmr.msra.gmra.mrb[12].mxu0 %v2577_v32  ;;  %3382 = vmatmul.mubr.bf16.vlgmr.msra.gmra.mrb[12].mxu1 %v2577_v32  ;;  %v2587_v1 = vrot.slane %v14267_v33, 1  ;;  %v17411_v27 = vld [vmem:[%s24487_s2 + $0x6c8] ss:$16 sps:$4 sm:$0xff]   ;;  %v17422_v55 = vld [vmem:[%s24487_s2 + $0x704] ss:$16 sps:$4 sm:$0xff]  }
 0x2a6   :  { %3297 = vmatpush1.bf16.msra.mxu0 %v17370_v53  ;;  %3403 = vmatpush1.bf16.msra.mxu1 %v17373_v48  ;;  %v17419_v53 = vld [vmem:[%s24487_s2 + $0x6ec] ss:$16 sps:$4 sm:$0xff]   ;;  %v17414_v48 = vld [vmem:[%s24487_s2 + $0x6e0] ss:$16 sps:$4 sm:$0xff]   ;;  %v17429_v56 = vld [vmem:[%s24487_s2 + $0x728] ss:$16 sps:$4 sm:$0xff]  }
 0x2a7   :  { %v2590_v38 = vsel %vm131_vm0, %v2579_v25, %v2589_v17  ;;  %3298 = vmatprep.subr.bf16.mxu0 %v17379_v37  ;;  %3404 = vmatprep.subr.bf16.mxu1 %v17382_v44  ;;  %v2588_v0 = vsel %vm131_vm0, %v2576_v47, %v2587_v1  ;;  %v17399_v25 = vld [vmem:[%s24487_s2 + $0x688] ss:$16 sps:$4 sm:$0xff]   ;;  %v17408_v47 = vld [vmem:[%s24487_s2 + $0x6c0] ss:$16 sps:$4 sm:$0xff]   ;;  %v17425_v32 = vld [vmem:[%s24487_s2 + $0x70c] ss:$16 sps:$4 sm:$0xff]  }
 0x2a8   :  { %3285 = vmatprep.mubr.bf16.mxu0 %v2590_v38  ;;  %3391 = vmatprep.mubr.bf16.mxu1 %v2590_v38  ;;  %v17420_v17 = vld [vmem:[%s24487_s2 + $0x700] ss:$16 sps:$4 sm:$0xff]   ;;  %v17423_v37 = vld [vmem:[%s24487_s2 + $0x708] ss:$16 sps:$4 sm:$0xff]   ;;  %v17428_v44 = vld [vmem:[%s24487_s2 + $0x724] ss:$16 sps:$4 sm:$0xff]  }
 0x2a9   :  { %v17431_v33 = vld [vmem:[%s24487_s2 + $0x72c] ss:$16 sps:$4 sm:$0xff]   ;;  %v17434_v38 = vld [vmem:[%s24487_s2 + $0x744] ss:$16 sps:$4 sm:$0xff]   ;;  %v17438_v39 = vld [vmem:[%s24487_s2 + $0x760] ss:$16 sps:$4 sm:$0xff]  }
 0x2aa   :  { %3299 = vmatpush1.bf16.msra.mxu0 %v17377_v29  ;;  %3405 = vmatpush1.bf16.msra.mxu1 %v17380_v30  ;;  %v17437_v29 = vld [vmem:[%s24487_s2 + $0x74c] ss:$16 sps:$4 sm:$0xff]   ;;  %v17432_v30 = vld [vmem:[%s24487_s2 + $0x740] ss:$16 sps:$4 sm:$0xff]   ;;  %v17441_v1 = vld [vmem:[%s24487_s2 + $0x768] ss:$16 sps:$4 sm:$0xff]  }
 0x2ab   :  { %3300 = vmatprep.subr.bf16.mxu0 %v17385_v57  ;;  %3406 = vmatprep.subr.bf16.mxu1 %v17388_v58  ;;  %v17435_v57 = vld [vmem:[%s24487_s2 + $0x748] ss:$16 sps:$4 sm:$0xff]   ;;  %v17440_v58 = vld [vmem:[%s24487_s2 + $0x764] ss:$16 sps:$4 sm:$0xff]   ;;  %v17443_v23 = vld [vmem:[%s24487_s2 + $0x76c] ss:$16 sps:$4 sm:$0xff]  }
 0x2ad   :  { %3286 = vmatmul.mubr.bf16.gmra.mrb[16].mxu0 %v2588_v0  ;;  %3392 = vmatmul.mubr.bf16.gmra.mrb[16].mxu1 %v2588_v0  ;;  %v17452_v0 = vld [vmem:[%s24487_s2 + $0x7a4] ss:$16 sps:$4 sm:$0xff]  }
 0x2ae   :  { %3301 = vmatpush1.bf16.msra.mxu0 %v17383_v24  ;;  %3407 = vmatpush1.bf16.msra.mxu1 %v17386_v59  ;;  %v17446_v24 = vld [vmem:[%s24487_s2 + $0x784] ss:$16 sps:$4 sm:$0xff]   ;;  %v17449_v59 = vld [vmem:[%s24487_s2 + $0x78c] ss:$16 sps:$4 sm:$0xff]  }
 0x2af   :  { %3328 = vmatprep.mubr.bf16.mxu0 %v2586_v54  ;;  %3434 = vmatprep.mubr.bf16.mxu1 %v2586_v54  ;;  %v17417_v54 = vld [vmem:[%s24487_s2 + $0x6e8] ss:$16 sps:$4 sm:$0xff]  }
 0x2b0   :  { %3302 = vmatprep.subr.bf16.mxu0 %v17392_v62  ;;  %3408 = vmatprep.subr.bf16.mxu1 %v17395_v63  ;;  %v17444_v62 = vld [vmem:[%s24487_s2 + $0x780] ss:$16 sps:$4 sm:$0xff]   ;;  %v17447_v63 = vld [vmem:[%s24487_s2 + $0x788] ss:$16 sps:$4 sm:$0xff]  }
 0x2b2   :  { %3303 = vmatpush1.bf16.msra.mxu0 %v17390_v16  ;;  %3409 = vmatpush1.bf16.msra.mxu1 %v17393_v19  ;;  %v17455_v16 = vld [vmem:[%s24487_s2 + $0x7ac] ss:$16 sps:$4 sm:$0xff]   ;;  %v17450_v19 = vld [vmem:[%s24487_s2 + $0x7a0] ss:$16 sps:$4 sm:$0xff]  }
 0x2b3   :  { %3304 = vmatprep.subr.bf16.mxu0 %v17398_v20  ;;  %3410 = vmatprep.subr.bf16.mxu1 %v17401_v21  ;;  %v17453_v20 = vld [vmem:[%s24487_s2 + $0x7a8] ss:$16 sps:$4 sm:$0xff]   ;;  %v17458_v21 = vld [vmem:[%s24487_s2 + $0x7c4] ss:$16 sps:$4 sm:$0xff]  }
 0x2b6   :  { %3305 = vmatpush1.bf16.msra.mxu0 %v17396_v22  ;;  %3411 = vmatpush1.bf16.msra.mxu1 %v17399_v25  ;;  %v17461_v22 = vld [vmem:[%s24487_s2 + $0x7cc] ss:$16 sps:$4 sm:$0xff]  }
 0x2b7   :  { %3306 = vmatprep.subr.bf16.mxu0 %v17404_v26  ;;  %3412 = vmatprep.subr.bf16.mxu1 %v17407_v31  ;;  %v5397_v25 = vld [vmem:[#allocation2 + $0x8] sm:$0x88] }
 0x2b8   :  { %v14929_v26 = vcombine.low %v5397_v25, %v20243_v61  ;;  %v14930_v31 = vcombine.high %v5397_v25, %v20243_v61  ;;  %v17502_v25 = vld [vmem:[%s24487_s2 + $0xa4] ss:$16 sps:$4 sm:$0xff]  }
 0x2ba   :  { %3307 = vmatpush1.bf16.msra.mxu0 %v17402_v35  ;;  %3413 = vmatpush1.bf16.msra.mxu1 %v17405_v40  ;;  %v17456_v35 = vld [vmem:[%s24487_s2 + $0x7c0] ss:$16 sps:$4 sm:$0xff]   ;;  %v17459_v40 = vld [vmem:[%s24487_s2 + $0x7c8] ss:$16 sps:$4 sm:$0xff]   ;;  %v5555_v61 = vrot.slane %v14929_v26, 3 }
 0x2bb   :  { %3308 = vmatprep.subr.bf16.mxu0 %v17410_v46  ;;  %3414 = vmatprep.subr.bf16.mxu1 %v17413_v49  ;;  %v2403_v46 = vld [vmem:[#allocation2 + $0x48] sm:$0x11]  ;;  %v17464_v49 = vld [vmem:[%s24487_s2 + $0x7e4] ss:$16 sps:$4 sm:$0xff]  }
 0x2bc   :  { %v17505_v26 = vld [vmem:[%s24487_s2 + $0xac] ss:$16 sps:$4 sm:$0xff]  }
 0x2be   :  { %3309 = vmatpush1.bf16.msra.mxu0 %v17408_v47  ;;  %3415 = vmatpush1.bf16.msra.mxu1 %v17411_v27  ;;  %v17467_v47 = vld [vmem:[%s24487_s2 + $0x7ec] ss:$16 sps:$4 sm:$0xff]   ;;  %v5558_v27 = vrot.slane %v14930_v31, 3  ;;  %v17500_v31 = vld [vmem:[%s24487_s2 + $0xa0] ss:$16 sps:$4 sm:$0xff]  }
 0x2bf   :  { %3310 = vmatprep.subr.bf16.mxu0 %v17416_v52  ;;  %3416 = vmatprep.subr.bf16.mxu1 %v17419_v53  ;;  %v5559_v52 = vrot.slane %v20273_v14, 3  ;;  %v5556_v53 = vrot.slane %v20275_v34, 3  ;;  %v18068_v14 = vld [vmem:[%s24487_s2 + $0x1028] ss:$16 sps:$4 sm:$0xff]   ;;  %v18078_v34 = vld [vmem:[%s24487_s2 + $0x1060] ss:$16 sps:$4 sm:$0xff]  }
 0x2c2   :  { %3311 = vmatpush1.bf16.msra.mxu0 %v17414_v48  ;;  %3417 = vmatpush1.bf16.msra.mxu1 %v17417_v54  ;;  %v20500_v48 = vsel %vm1055_vm2, %v5558_v27, %v5559_v52  ;;  %v20505_v54 = vsel %vm1055_vm2, %v5555_v61, %v5556_v53  ;;  %v17514_v61 = vld [vmem:[%s24487_s2 + $0xe4] ss:$16 sps:$4 sm:$0xff]   ;;  %v17517_v27 = vld [vmem:[%s24487_s2 + $0xec] ss:$16 sps:$4 sm:$0xff]  }
 0x2c3   :  { %3312 = vmatprep.subr.bf16.mxu0 %v17422_v55  ;;  %3418 = vmatprep.subr.bf16.mxu1 %v17425_v32  ;;  %v17462_v55 = vld [vmem:[%s24487_s2 + $0x7e0] ss:$16 sps:$4 sm:$0xff]   ;;  %v17465_v32 = vld [vmem:[%s24487_s2 + $0x7e8] ss:$16 sps:$4 sm:$0xff]  }
 0x2c6   :  { %3313 = vmatpush1.bf16.msra.mxu0 %v17420_v17  ;;  %3419 = vmatpush1.bf16.msra.mxu1 %v17423_v37  ;;  %v17470_v17 = vld [vmem:[%s24487_s2 + $0x4] ss:$16 sps:$4 sm:$0xff]   ;;  %v17473_v37 = vld [vmem:[%s24487_s2 + $0xc] ss:$16 sps:$4 sm:$0xff]  }
 0x2c7   :  { %3314 = vmatprep.subr.bf16.mxu0 %v17428_v44  ;;  %3420 = vmatprep.subr.bf16.mxu1 %v17431_v33  ;;  %v14270_v44 = vcombine.high %v2403_v46, %v2403_v46  ;;  %v17468_v33 = vld [vmem:[%s24487_s2] ss:$16 sps:$4 sm:$0xff]  }
 0x2ca   :  { %3315 = vmatpush1.bf16.msra.mxu0 %v17426_v18  ;;  %3421 = vmatpush1.bf16.msra.mxu1 %v17429_v56  ;;  %v17471_v18 = vld [vmem:[%s24487_s2 + $0x8] ss:$16 sps:$4 sm:$0xff]   ;;  %v2593_v56 = vrot.slane %v14270_v44, 1  ;;  %v17518_v44 = vld [vmem:[%s24487_s2 + $0x100] ss:$16 sps:$4 sm:$0xff]  }
 0x2cb   :  { %3316 = vmatprep.subr.bf16.mxu0 %v17434_v38  ;;  %3422 = vmatprep.subr.bf16.mxu1 %v17437_v29  ;;  %v17477_v38 = vld [vmem:[%s24487_s2 + $0x24] ss:$16 sps:$4 sm:$0xff]   ;;  %v17480_v29 = vld [vmem:[%s24487_s2 + $0x2c] ss:$16 sps:$4 sm:$0xff]  }
 0x2ce   :  { %3317 = vmatpush1.bf16.msra.mxu0 %v17432_v30  ;;  %3423 = vmatpush1.bf16.msra.mxu1 %v17435_v57  ;;  %v14269_v30 = vcombine.low %v2403_v46, %v2403_v46  ;;  %v2594_v57 = vsel %vm131_vm0, %v2585_v42, %v2593_v56  ;;  %v17511_v46 = vld [vmem:[%s24487_s2 + $0xcc] ss:$16 sps:$4 sm:$0xff]  }
 0x2cf   :  { %3318 = vmatprep.subr.bf16.mxu0 %v17440_v58  ;;  %3424 = vmatprep.subr.bf16.mxu1 %v17443_v23  ;;  %v17475_v58 = vld [vmem:[%s24487_s2 + $0x20] ss:$16 sps:$4 sm:$0xff]   ;;  %v17478_v23 = vld [vmem:[%s24487_s2 + $0x28] ss:$16 sps:$4 sm:$0xff]   ;;  %v17529_v56 = vld [vmem:[%s24487_s2 + $0x12c] ss:$16 sps:$4 sm:$0xff]  }
 0x2d0   :  { %v2591_v42 = vrot.slane %v14269_v30, 1  ;;  %v17532_v30 = vld [vmem:[%s24487_s2 + $0x144] ss:$16 sps:$4 sm:$0xff]  }
 0x2d2   :  { %3319 = vmatpush1.bf16.msra.mxu0 %v17438_v39  ;;  %3425 = vmatpush1.bf16.msra.mxu1 %v17441_v1  ;;  %v17484_v39 = vld [vmem:[%s24487_s2 + $0x44] ss:$16 sps:$4 sm:$0xff]   ;;  %v17482_v1 = vld [vmem:[%s24487_s2 + $0x40] ss:$16 sps:$4 sm:$0xff]  }
 0x2d3   :  { %3320 = vmatprep.subr.bf16.mxu0 %v17446_v24  ;;  %3426 = vmatprep.subr.bf16.mxu1 %v17449_v59  ;;  %v17485_v24 = vld [vmem:[%s24487_s2 + $0x48] ss:$16 sps:$4 sm:$0xff]   ;;  %v20554_v59 = vld [vmem:[#allocation2] sm:$0xff] }
 0x2d6   :  { %3321 = vmatpush1.bf16.msra.mxu0 %v17444_v62  ;;  %3427 = vmatpush1.bf16.msra.mxu1 %v17447_v63  ;;  %v17490_v62 = vld [vmem:[%s24487_s2 + $0x64] ss:$16 sps:$4 sm:$0xff]   ;;  %v17493_v63 = vld [vmem:[%s24487_s2 + $0x6c] ss:$16 sps:$4 sm:$0xff]  }
 0x2d7   :  { %3322 = vmatprep.subr.bf16.mxu0 %v17452_v0  ;;  %3428 = vmatprep.subr.bf16.mxu1 %v17455_v16  ;;  %v2592_v0 = vsel %vm131_vm0, %v2582_v43, %v2591_v42  ;;  %v14400_v16 = vcombine.high %v20554_v59, %v20256_v2  ;;  %v17496_v43 = vld [vmem:[%s24487_s2 + $0x84] ss:$16 sps:$4 sm:$0xff]   ;;  %v17499_v2 = vld [vmem:[%s24487_s2 + $0x8c] ss:$16 sps:$4 sm:$0xff]   ;;  %v17536_v42 = vld [vmem:[%s24487_s2 + $0x160] ss:$16 sps:$4 sm:$0xff]  }
 0x2da   :  { %3323 = vmatpush1.bf16.msra.mxu0 %v17450_v19  ;;  %3429 = vmatpush1.bf16.msra.mxu1 %v17453_v20  ;;  %v17488_v19 = vld [vmem:[%s24487_s2 + $0x60] ss:$16 sps:$4 sm:$0xff]   ;;  %v17491_v20 = vld [vmem:[%s24487_s2 + $0x68] ss:$16 sps:$4 sm:$0xff]  }
 0x2db   :  { %3324 = vmatprep.subr.bf16.mxu0 %v17458_v21  ;;  %3430 = vmatprep.subr.bf16.mxu1 %v17461_v22  ;;  %v17494_v21 = vld [vmem:[%s24487_s2 + $0x80] ss:$16 sps:$4 sm:$0xff]   ;;  %v17497_v22 = vld [vmem:[%s24487_s2 + $0x88] ss:$16 sps:$4 sm:$0xff]  }
 0x2de   :  { %3325 = vmatpush1.bf16.msra.mxu0 %v17456_v35  ;;  %3431 = vmatpush1.bf16.msra.mxu1 %v17459_v40  ;;  %v17503_v35 = vld [vmem:[%s24487_s2 + $0xa8] ss:$16 sps:$4 sm:$0xff]   ;;  %v17508_v40 = vld [vmem:[%s24487_s2 + $0xc4] ss:$16 sps:$4 sm:$0xff]  }
 0x2df   :  { %3326 = vmatprep.subr.bf16.mxu0 %v17464_v49  ;;  %3432 = vmatprep.subr.bf16.mxu1 %v17467_v47  ;;  %v17506_v49 = vld [vmem:[%s24487_s2 + $0xc0] ss:$16 sps:$4 sm:$0xff]   ;;  %v17509_v47 = vld [vmem:[%s24487_s2 + $0xc8] ss:$16 sps:$4 sm:$0xff]  }
 0x2e2   :  { %3327 = vmatpush1.bf16.msra.mxu0 %v17462_v55  ;;  %3433 = vmatpush1.bf16.msra.mxu1 %v17465_v32  ;;  %v17512_v55 = vld [vmem:[%s24487_s2 + $0xe0] ss:$16 sps:$4 sm:$0xff]   ;;  %v17515_v32 = vld [vmem:[%s24487_s2 + $0xe8] ss:$16 sps:$4 sm:$0xff]  }
 0x2e3   :  { %4135 = vmatprep.subr.bf16.mxu0 %v17470_v17  ;;  %4241 = vmatprep.subr.bf16.mxu1 %v17473_v37  ;;  %v17520_v17 = vld [vmem:[%s24487_s2 + $0x104] ss:$16 sps:$4 sm:$0xff]   ;;  %v17523_v37 = vld [vmem:[%s24487_s2 + $0x10c] ss:$16 sps:$4 sm:$0xff]  }
 0x2e5   :  { %3329 = vmatmul.mubr.bf16.vlgmr.msra.gmra.mrb[12].mxu0 %v20299_v28  ;;  %3435 = vmatmul.mubr.bf16.vlgmr.msra.gmra.mrb[12].mxu1 %v20299_v28  ;;  %v17487_v28 = vld [vmem:[%s24487_s2 + $0x4c] ss:$16 sps:$4 sm:$0xff]  }
 0x2e6   :  { %3338 = vmatprep.mubr.bf16.mxu0 %v2594_v57  ;;  %3444 = vmatprep.mubr.bf16.mxu1 %v2594_v57  ;;  %v17535_v57 = vld [vmem:[%s24487_s2 + $0x14c] ss:$16 sps:$4 sm:$0xff]  }
 0x2e7   :  { %4136 = vmatpush1.bf16.msra.mxu0 %v17468_v33  ;;  %4242 = vmatpush1.bf16.msra.mxu1 %v17471_v18  ;;  %v17521_v33 = vld [vmem:[%s24487_s2 + $0x108] ss:$16 sps:$4 sm:$0xff]   ;;  %v17526_v18 = vld [vmem:[%s24487_s2 + $0x124] ss:$16 sps:$4 sm:$0xff]  }
 0x2e8   :  { %4137 = vmatprep.subr.bf16.mxu0 %v17477_v38  ;;  %4243 = vmatprep.subr.bf16.mxu1 %v17480_v29  ;;  %v17524_v38 = vld [vmem:[%s24487_s2 + $0x120] ss:$16 sps:$4 sm:$0xff]   ;;  %v17527_v29 = vld [vmem:[%s24487_s2 + $0x128] ss:$16 sps:$4 sm:$0xff]  }
 0x2eb   :  { %4138 = vmatpush1.bf16.msra.mxu0 %v17475_v58  ;;  %4244 = vmatpush1.bf16.msra.mxu1 %v17478_v23  ;;  %v17530_v58 = vld [vmem:[%s24487_s2 + $0x140] ss:$16 sps:$4 sm:$0xff]   ;;  %v17533_v23 = vld [vmem:[%s24487_s2 + $0x148] ss:$16 sps:$4 sm:$0xff]  }
 0x2ec   :  { %4139 = vmatprep.subr.bf16.mxu0 %v17484_v39  ;;  %4245 = vmatprep.subr.bf16.mxu1 %v17487_v28  ;;  %v17538_v39 = vld [vmem:[%s24487_s2 + $0x164] ss:$16 sps:$4 sm:$0xff]   ;;  %v17541_v28 = vld [vmem:[%s24487_s2 + $0x16c] ss:$16 sps:$4 sm:$0xff]  }
 0x2ed   :  { %3339 = vmatmul.mubr.bf16.gmra.mrb[16].mxu0 %v2592_v0  ;;  %3445 = vmatmul.mubr.bf16.gmra.mrb[16].mxu1 %v2592_v0  ;;  %v17545_v0 = vld [vmem:[%s24487_s2 + $0x188] ss:$16 sps:$4 sm:$0xff]  }
 0x2ee   :  { %4167 = vmatprep.mubr.bf16.mxu0 %v14400_v16  ;;  %4273 = vmatprep.mubr.bf16.mxu1 %v14400_v16  ;;  %v17550_v16 = vld [vmem:[%s24487_s2 + $0x1a4] ss:$16 sps:$4 sm:$0xff]  }
 0x2ef   :  { %4140 = vmatpush1.bf16.msra.mxu0 %v17482_v1  ;;  %4246 = vmatpush1.bf16.msra.mxu1 %v17485_v24  ;;  %v17539_v1 = vld [vmem:[%s24487_s2 + $0x168] ss:$16 sps:$4 sm:$0xff]   ;;  %v17544_v24 = vld [vmem:[%s24487_s2 + $0x184] ss:$16 sps:$4 sm:$0xff]  }
 0x2f0   :  { %4141 = vmatprep.subr.bf16.mxu0 %v17490_v62  ;;  %4247 = vmatprep.subr.bf16.mxu1 %v17493_v63  ;;  %v17547_v62 = vld [vmem:[%s24487_s2 + $0x18c] ss:$16 sps:$4 sm:$0xff]   ;;  %v17542_v63 = vld [vmem:[%s24487_s2 + $0x180] ss:$16 sps:$4 sm:$0xff]  }
 0x2f3   :  { %4142 = vmatpush1.bf16.msra.mxu0 %v17488_v19  ;;  %4248 = vmatpush1.bf16.msra.mxu1 %v17491_v20  ;;  %v17553_v19 = vld [vmem:[%s24487_s2 + $0x1ac] ss:$16 sps:$4 sm:$0xff]   ;;  %v17548_v20 = vld [vmem:[%s24487_s2 + $0x1a0] ss:$16 sps:$4 sm:$0xff]  }
 0x2f4   :  { %4143 = vmatprep.subr.bf16.mxu0 %v17496_v43  ;;  %4249 = vmatprep.subr.bf16.mxu1 %v17499_v2  ;;  %v17551_v43 = vld [vmem:[%s24487_s2 + $0x1a8] ss:$16 sps:$4 sm:$0xff]   ;;  %v17556_v2 = vld [vmem:[%s24487_s2 + $0x1c4] ss:$16 sps:$4 sm:$0xff]  }
 0x2f7   :  { %4144 = vmatpush1.bf16.msra.mxu0 %v17494_v21  ;;  %4250 = vmatpush1.bf16.msra.mxu1 %v17497_v22  ;;  %v17559_v21 = vld [vmem:[%s24487_s2 + $0x1cc] ss:$16 sps:$4 sm:$0xff]   ;;  %v17554_v22 = vld [vmem:[%s24487_s2 + $0x1c0] ss:$16 sps:$4 sm:$0xff]  }
 0x2f8   :  { %4145 = vmatprep.subr.bf16.mxu0 %v17502_v25  ;;  %4251 = vmatprep.subr.bf16.mxu1 %v17505_v26  ;;  %v17557_v25 = vld [vmem:[%s24487_s2 + $0x1c8] ss:$16 sps:$4 sm:$0xff]   ;;  %v17562_v26 = vld [vmem:[%s24487_s2 + $0x1e4] ss:$16 sps:$4 sm:$0xff]  }
 0x2fb   :  { %4146 = vmatpush1.bf16.msra.mxu0 %v17500_v31  ;;  %4252 = vmatpush1.bf16.msra.mxu1 %v17503_v35  ;;  %v17565_v31 = vld [vmem:[%s24487_s2 + $0x1ec] ss:$16 sps:$4 sm:$0xff]   ;;  %v17560_v35 = vld [vmem:[%s24487_s2 + $0x1e0] ss:$16 sps:$4 sm:$0xff]  }
 0x2fc   :  { %4147 = vmatprep.subr.bf16.mxu0 %v17508_v40  ;;  %4253 = vmatprep.subr.bf16.mxu1 %v17511_v46  ;;  %v17563_v40 = vld [vmem:[%s24487_s2 + $0x1e8] ss:$16 sps:$4 sm:$0xff]   ;;  %v17568_v46 = vld [vmem:[%s24487_s2 + $0x204] ss:$16 sps:$4 sm:$0xff]  }
 0x2ff   :  { %4148 = vmatpush1.bf16.msra.mxu0 %v17506_v49  ;;  %4254 = vmatpush1.bf16.msra.mxu1 %v17509_v47  ;;  %v17571_v49 = vld [vmem:[%s24487_s2 + $0x20c] ss:$16 sps:$4 sm:$0xff]   ;;  %v17566_v47 = vld [vmem:[%s24487_s2 + $0x200] ss:$16 sps:$4 sm:$0xff]  }
 0x300   :  { %4149 = vmatprep.subr.bf16.mxu0 %v17514_v61  ;;  %4255 = vmatprep.subr.bf16.mxu1 %v17517_v27  ;;  %v17569_v61 = vld [vmem:[%s24487_s2 + $0x208] ss:$16 sps:$4 sm:$0xff]   ;;  %v17574_v27 = vld [vmem:[%s24487_s2 + $0x224] ss:$16 sps:$4 sm:$0xff]  }
 0x303   :  { %4150 = vmatpush1.bf16.msra.mxu0 %v17512_v55  ;;  %4256 = vmatpush1.bf16.msra.mxu1 %v17515_v32  ;;  %v17577_v55 = vld [vmem:[%s24487_s2 + $0x22c] ss:$16 sps:$4 sm:$0xff]   ;;  %v20735_v32 = vld [vmem:[#allocation2 + $0x10] sm:$0xff] }
 0x304   :  { %4151 = vmatprep.subr.bf16.mxu0 %v17520_v17  ;;  %4257 = vmatprep.subr.bf16.mxu1 %v17523_v37  ;;  %v14399_v17 = vcombine.low %v20554_v59, %v20735_v32  ;;  %v17572_v37 = vld [vmem:[%s24487_s2 + $0x220] ss:$16 sps:$4 sm:$0xff]   ;;  %v17583_v59 = vld [vmem:[%s24487_s2 + $0x24c] ss:$16 sps:$4 sm:$0xff]  }
 0x307   :  { %4152 = vmatpush1.bf16.msra.mxu0 %v17518_v44  ;;  %4258 = vmatpush1.bf16.msra.mxu1 %v17521_v33  ;;  %v17575_v44 = vld [vmem:[%s24487_s2 + $0x228] ss:$16 sps:$4 sm:$0xff]   ;;  %v17580_v33 = vld [vmem:[%s24487_s2 + $0x244] ss:$16 sps:$4 sm:$0xff]  }
 0x308   :  { %4153 = vmatprep.subr.bf16.mxu0 %v17526_v18  ;;  %4259 = vmatprep.subr.bf16.mxu1 %v17529_v56  ;;  %v17578_v18 = vld [vmem:[%s24487_s2 + $0x240] ss:$16 sps:$4 sm:$0xff]   ;;  %v17581_v56 = vld [vmem:[%s24487_s2 + $0x248] ss:$16 sps:$4 sm:$0xff]  }
 0x30b   :  { %4154 = vmatpush1.bf16.msra.mxu0 %v17524_v38  ;;  %4260 = vmatpush1.bf16.msra.mxu1 %v17527_v29  ;;  %v17586_v38 = vld [vmem:[#allocation2 + $0xc] ss:$16 sps:$4 sm:$0xff]   ;;  %v17589_v29 = vld [vmem:[%s24487_s2 + $0x264] ss:$16 sps:$4 sm:$0xff]  }
 0x30c   :  { %4155 = vmatprep.subr.bf16.mxu0 %v17532_v30  ;;  %4261 = vmatprep.subr.bf16.mxu1 %v17535_v57  ;;  %v17592_v30 = vld [vmem:[%s24487_s2 + $0x26c] ss:$16 sps:$4 sm:$0xff]   ;;  %v17587_v57 = vld [vmem:[%s24487_s2 + $0x260] ss:$16 sps:$4 sm:$0xff]  }
 0x30f   :  { %4156 = vmatpush1.bf16.msra.mxu0 %v17530_v58  ;;  %4262 = vmatpush1.bf16.msra.mxu1 %v17533_v23  ;;  %v17590_v58 = vld [vmem:[%s24487_s2 + $0x268] ss:$16 sps:$4 sm:$0xff]   ;;  %v17595_v23 = vld [vmem:[%s24487_s2 + $0x284] ss:$16 sps:$4 sm:$0xff]  }
 0x310   :  { %4157 = vmatprep.subr.bf16.mxu0 %v17538_v39  ;;  %4263 = vmatprep.subr.bf16.mxu1 %v17541_v28  ;;  %v17598_v39 = vld [vmem:[%s24487_s2 + $0x28c] ss:$16 sps:$4 sm:$0xff]   ;;  %v17593_v28 = vld [vmem:[%s24487_s2 + $0x280] ss:$16 sps:$4 sm:$0xff]  }
 0x313   :  { %4158 = vmatpush1.bf16.msra.mxu0 %v17536_v42  ;;  %4264 = vmatpush1.bf16.msra.mxu1 %v17539_v1  ;;  %v17596_v42 = vld [vmem:[%s24487_s2 + $0x288] ss:$16 sps:$4 sm:$0xff]   ;;  %v17601_v1 = vld [vmem:[%s24487_s2 + $0x2a4] ss:$16 sps:$4 sm:$0xff]  }
 0x314   :  { %4159 = vmatprep.subr.bf16.mxu0 %v17544_v24  ;;  %4265 = vmatprep.subr.bf16.mxu1 %v17547_v62  ;;  %v17604_v24 = vld [vmem:[%s24487_s2 + $0x2ac] ss:$16 sps:$4 sm:$0xff]   ;;  %v17599_v62 = vld [vmem:[%s24487_s2 + $0x2a0] ss:$16 sps:$4 sm:$0xff]  }
 0x317   :  { %4160 = vmatpush1.bf16.msra.mxu0 %v17542_v63  ;;  %4266 = vmatpush1.bf16.msra.mxu1 %v17545_v0  ;;  %v17602_v63 = vld [vmem:[%s24487_s2 + $0x2a8] ss:$16 sps:$4 sm:$0xff]   ;;  %v17607_v0 = vld [vmem:[%s24487_s2 + $0x2c4] ss:$16 sps:$4 sm:$0xff]  }
 0x318   :  { %4161 = vmatprep.subr.bf16.mxu0 %v17550_v16  ;;  %4267 = vmatprep.subr.bf16.mxu1 %v17553_v19  ;;  %v17610_v16 = vld [vmem:[%s24487_s2 + $0x2cc] ss:$16 sps:$4 sm:$0xff]   ;;  %v17605_v19 = vld [vmem:[%s24487_s2 + $0x2c0] ss:$16 sps:$4 sm:$0xff]  }
 0x31b   :  { %4162 = vmatpush1.bf16.msra.mxu0 %v17548_v20  ;;  %4268 = vmatpush1.bf16.msra.mxu1 %v17551_v43  ;;  %v17608_v20 = vld [vmem:[%s24487_s2 + $0x2c8] ss:$16 sps:$4 sm:$0xff]   ;;  %v17613_v43 = vld [vmem:[%s24487_s2 + $0x2e4] ss:$16 sps:$4 sm:$0xff]  }
 0x31c   :  { %4163 = vmatprep.subr.bf16.mxu0 %v17556_v2  ;;  %4269 = vmatprep.subr.bf16.mxu1 %v17559_v21  ;;  %v17616_v2 = vld [vmem:[%s24487_s2 + $0x2ec] ss:$16 sps:$4 sm:$0xff]   ;;  %v17611_v21 = vld [vmem:[%s24487_s2 + $0x2e0] ss:$16 sps:$4 sm:$0xff]  }
 0x31f   :  { %4164 = vmatpush1.bf16.msra.mxu0 %v17554_v22  ;;  %4270 = vmatpush1.bf16.msra.mxu1 %v17557_v25  ;;  %v17614_v22 = vld [vmem:[%s24487_s2 + $0x2e8] ss:$16 sps:$4 sm:$0xff]   ;;  %v17619_v25 = vld [vmem:[%s24487_s2 + $0x304] ss:$16 sps:$4 sm:$0xff]  }
 0x320   :  { %4165 = vmatprep.subr.bf16.mxu0 %v17562_v26  ;;  %4271 = vmatprep.subr.bf16.mxu1 %v17565_v31  ;;  %v17622_v26 = vld [vmem:[%s24487_s2 + $0x30c] ss:$16 sps:$4 sm:$0xff]   ;;  %v17617_v31 = vld [vmem:[%s24487_s2 + $0x300] ss:$16 sps:$4 sm:$0xff]  }
 0x323   :  { %4166 = vmatpush1.bf16.msra.mxu0 %v17560_v35  ;;  %4272 = vmatpush1.bf16.msra.mxu1 %v17563_v40  ;;  %v17620_v35 = vld [vmem:[%s24487_s2 + $0x308] ss:$16 sps:$4 sm:$0xff]   ;;  %v17625_v40 = vld [vmem:[%s24487_s2 + $0x324] ss:$16 sps:$4 sm:$0xff]  }
 0x324   :  { %4188 = vmatprep.subr.bf16.mxu0 %v17568_v46  ;;  %4294 = vmatprep.subr.bf16.mxu1 %v17571_v49  ;;  %v17628_v46 = vld [vmem:[%s24487_s2 + $0x32c] ss:$16 sps:$4 sm:$0xff]   ;;  %v17623_v49 = vld [vmem:[%s24487_s2 + $0x320] ss:$16 sps:$4 sm:$0xff]  }
 0x326   :  { %4168 = vmatmul.mubr.bf16.vlgmr.msra.gmra.mrb[12].mxu0 %v14399_v17  ;;  %4274 = vmatmul.mubr.bf16.vlgmr.msra.gmra.mrb[12].mxu1 %v14399_v17  ;;  %v17632_v17 = vld [vmem:[%s24487_s2 + $0x348] ss:$16 sps:$4 sm:$0xff]  }
 0x327   :  { %4177 = vmatprep.mubr.bf16.mxu0 %v20265_v9  ;;  %4189 = vmatpush1.bf16.msra.mxu0 %v17566_v47  ;;  %v17626_v47 = vld [vmem:[%s24487_s2 + $0x328] ss:$16 sps:$4 sm:$0xff]  }
 0x328   :  { %4283 = vmatprep.mubr.bf16.mxu1 %v20265_v9  ;;  %4295 = vmatpush1.bf16.msra.mxu1 %v17569_v61  ;;  %v17631_v61 = vld [vmem:[%s24487_s2 + $0x344] ss:$16 sps:$4 sm:$0xff]  }
 0x329   :  { %4190 = vmatprep.subr.bf16.mxu0 %v17574_v27  ;;  %4296 = vmatprep.subr.bf16.mxu1 %v17577_v55  ;;  %v17634_v27 = vld [vmem:[%s24487_s2 + $0x34c] ss:$16 sps:$4 sm:$0xff]   ;;  %v17629_v55 = vld [vmem:[%s24487_s2 + $0x340] ss:$16 sps:$4 sm:$0xff]  }
 0x32b   :  { %4191 = vmatpush1.bf16.msra.mxu0 %v17572_v37  ;;  %v17637_v37 = vld [vmem:[%s24487_s2 + $0x364] ss:$16 sps:$4 sm:$0xff]  }
 0x32c   :  { %4297 = vmatpush1.bf16.msra.mxu1 %v17575_v44  ;;  %4192 = vmatprep.subr.bf16.mxu0 %v17580_v33  ;;  %v17640_v44 = vld [vmem:[%s24487_s2 + $0x36c] ss:$16 sps:$4 sm:$0xff]   ;;  %v17635_v33 = vld [vmem:[%s24487_s2 + $0x360] ss:$16 sps:$4 sm:$0xff]  }
 0x32d   :  { %4298 = vmatprep.subr.bf16.mxu1 %v17583_v59  ;;  %v17638_v59 = vld [vmem:[%s24487_s2 + $0x368] ss:$16 sps:$4 sm:$0xff]  }
 0x32e   :  { %4178 = vmatmul.mubr.bf16.gmra.mrb[16].mxu0 %v20277_v15  ;;  %4284 = vmatmul.mubr.bf16.gmra.mrb[16].mxu1 %v20277_v15 }
 0x32f   :  { %4193 = vmatpush1.bf16.msra.mxu0 %v17578_v18  ;;  %4220 = vmatprep.mubr.bf16.mxu0 %v17586_v38  ;;  %v17643_v18 = vld [vmem:[%s24487_s2 + $0x384] ss:$16 sps:$4 sm:$0xff]  }
 0x330   :  { %4299 = vmatpush1.bf16.msra.mxu1 %v17581_v56  ;;  %4326 = vmatprep.mubr.bf16.mxu1 %v17586_v38  ;;  %v17646_v56 = vld [vmem:[%s24487_s2 + $0x38c] ss:$16 sps:$4 sm:$0xff]   ;;  %v17641_v38 = vld [vmem:[%s24487_s2 + $0x380] ss:$16 sps:$4 sm:$0xff]  }
 0x331   :  { %4194 = vmatprep.subr.bf16.mxu0 %v17589_v29  ;;  %4300 = vmatprep.subr.bf16.mxu1 %v17592_v30  ;;  %v17644_v29 = vld [vmem:[%s24487_s2 + $0x388] ss:$16 sps:$4 sm:$0xff]   ;;  %v17649_v30 = vld [vmem:[%s24487_s2 + $0x3a4] ss:$16 sps:$4 sm:$0xff]  }
 0x333   :  { %4195 = vmatpush1.bf16.msra.mxu0 %v17587_v57  ;;  %v17652_v57 = vld [vmem:[%s24487_s2 + $0x3ac] ss:$16 sps:$4 sm:$0xff]  }
 0x334   :  { %4301 = vmatpush1.bf16.msra.mxu1 %v17590_v58  ;;  %4196 = vmatprep.subr.bf16.mxu0 %v17595_v23  ;;  %v17647_v58 = vld [vmem:[%s24487_s2 + $0x3a0] ss:$16 sps:$4 sm:$0xff]   ;;  %v17650_v23 = vld [vmem:[%s24487_s2 + $0x3a8] ss:$16 sps:$4 sm:$0xff]  }
 0x335   :  { %4302 = vmatprep.subr.bf16.mxu1 %v17598_v39  ;;  %v17655_v39 = vld [vmem:[%s24487_s2 + $0x3c4] ss:$16 sps:$4 sm:$0xff]  }
 0x337   :  { %4197 = vmatpush1.bf16.msra.mxu0 %v17593_v28  ;;  %v17658_v28 = vld [vmem:[%s24487_s2 + $0x3cc] ss:$16 sps:$4 sm:$0xff]  }
 0x338   :  { %4303 = vmatpush1.bf16.msra.mxu1 %v17596_v42  ;;  %4198 = vmatprep.subr.bf16.mxu0 %v17601_v1  ;;  %v17653_v42 = vld [vmem:[%s24487_s2 + $0x3c0] ss:$16 sps:$4 sm:$0xff]   ;;  %v17656_v1 = vld [vmem:[%s24487_s2 + $0x3c8] ss:$16 sps:$4 sm:$0xff]  }
 0x339   :  { %4304 = vmatprep.subr.bf16.mxu1 %v17604_v24  ;;  %v17661_v24 = vld [vmem:[%s24487_s2 + $0x3e4] ss:$16 sps:$4 sm:$0xff]  }
 0x33b   :  { %4199 = vmatpush1.bf16.msra.mxu0 %v17599_v62  ;;  %v17664_v62 = vld [vmem:[%s24487_s2 + $0x3ec] ss:$16 sps:$4 sm:$0xff]  }
 0x33c   :  { %4305 = vmatpush1.bf16.msra.mxu1 %v17602_v63  ;;  %4200 = vmatprep.subr.bf16.mxu0 %v17607_v0  ;;  %v17659_v63 = vld [vmem:[%s24487_s2 + $0x3e0] ss:$16 sps:$4 sm:$0xff]   ;;  %v17662_v0 = vld [vmem:[%s24487_s2 + $0x3e8] ss:$16 sps:$4 sm:$0xff]  }
 0x33d   :  { %4306 = vmatprep.subr.bf16.mxu1 %v17610_v16  ;;  %v17667_v16 = vld [vmem:[%s24487_s2 + $0x804] ss:$16 sps:$4 sm:$0xff]  }
 0x33f   :  { %4201 = vmatpush1.bf16.msra.mxu0 %v17605_v19  ;;  %v17670_v19 = vld [vmem:[%s24487_s2 + $0x80c] ss:$16 sps:$4 sm:$0xff]  }
 0x340   :  { %4307 = vmatpush1.bf16.msra.mxu1 %v17608_v20  ;;  %4202 = vmatprep.subr.bf16.mxu0 %v17613_v43  ;;  %v20923_v20 = vld [vmem:[#allocation2] sm:$0xcc]  ;;  %v17584_v43 = vld [vmem:[#allocation2 + $0x8] ss:$16 sps:$4 sm:$0xff]  }
 0x341   :  { %4308 = vmatprep.subr.bf16.mxu1 %v17616_v2  ;;  %v17665_v2 = vld [vmem:[%s24487_s2 + $0x800] ss:$16 sps:$4 sm:$0xff]  }
 0x343   :  { %4203 = vmatpush1.bf16.msra.mxu0 %v17611_v21  ;;  %v17668_v21 = vld [vmem:[%s24487_s2 + $0x808] ss:$16 sps:$4 sm:$0xff]  }
 0x344   :  { %4309 = vmatpush1.bf16.msra.mxu1 %v17614_v22  ;;  %4204 = vmatprep.subr.bf16.mxu0 %v17619_v25  ;;  %v17671_v22 = vld [vmem:[#allocation2 + $0x2c] ss:$16 sps:$4 sm:$0xff]   ;;  %v17675_v25 = vld [vmem:[%s24487_s2 + $0x824] ss:$16 sps:$4 sm:$0xff]  }
 0x345   :  { %4310 = vmatprep.subr.bf16.mxu1 %v17622_v26  ;;  %v17678_v26 = vld [vmem:[%s24487_s2 + $0x82c] ss:$16 sps:$4 sm:$0xff]  }
 0x347   :  { %4205 = vmatpush1.bf16.msra.mxu0 %v17617_v31  ;;  %v14664_v31 = vcombine.high %v20923_v20, %v20735_v32 }
 0x348   :  { %4311 = vmatpush1.bf16.msra.mxu1 %v17620_v35  ;;  %4206 = vmatprep.subr.bf16.mxu0 %v17625_v40  ;;  %v17673_v35 = vld [vmem:[%s24487_s2 + $0x820] ss:$16 sps:$4 sm:$0xff]   ;;  %v17676_v40 = vld [vmem:[%s24487_s2 + $0x828] ss:$16 sps:$4 sm:$0xff]  }
 0x349   :  { %4312 = vmatprep.subr.bf16.mxu1 %v17628_v46  ;;  %v17682_v46 = vld [vmem:[%s24487_s2 + $0x844] ss:$16 sps:$4 sm:$0xff]  }
 0x34b   :  { %4207 = vmatpush1.bf16.msra.mxu0 %v17623_v49  ;;  %v17685_v49 = vld [vmem:[%s24487_s2 + $0x84c] ss:$16 sps:$4 sm:$0xff]  }
 0x34c   :  { %4313 = vmatpush1.bf16.msra.mxu1 %v17626_v47  ;;  %4208 = vmatprep.subr.bf16.mxu0 %v17631_v61  ;;  %v4503_v47 = vrot.slane %v14664_v31, 2  ;;  %v17679_v61 = vld [vmem:[#allocation2 + $0x28] ss:$16 sps:$4 sm:$0xff]  }
 0x34d   :  { %4314 = vmatprep.subr.bf16.mxu1 %v17634_v27  ;;  %v17680_v27 = vld [vmem:[%s24487_s2 + $0x840] ss:$16 sps:$4 sm:$0xff]   ;;  %v17725_v31 = vld [vmem:[%s24487_s2 + $0x928] ss:$16 sps:$4 sm:$0xff]  }
 0x34f   :  { %4209 = vmatpush1.bf16.msra.mxu0 %v17629_v55  ;;  %v4504_v55 = vrot.slane %v20265_v9, 2 }
 0x350   :  { %4315 = vmatpush1.bf16.msra.mxu1 %v17632_v17  ;;  %4210 = vmatprep.subr.bf16.mxu0 %v17637_v37  ;;  %v17683_v17 = vld [vmem:[%s24487_s2 + $0x848] ss:$16 sps:$4 sm:$0xff]   ;;  %v17688_v37 = vld [vmem:[%s24487_s2 + $0x864] ss:$16 sps:$4 sm:$0xff]  }
 0x351   :  { %4316 = vmatprep.subr.bf16.mxu1 %v17640_v44  ;;  %v4505_v44 = vsel %vm724_vm1, %v4503_v47, %v4504_v55  ;;  %v17736_v47 = vld [vmem:[%s24487_s2 + $0x964] ss:$16 sps:$4 sm:$0xff]  }
 0x353   :  { %4211 = vmatpush1.bf16.msra.mxu0 %v17635_v33  ;;  %v17691_v33 = vld [vmem:[%s24487_s2 + $0x86c] ss:$16 sps:$4 sm:$0xff]  }
 0x354   :  { %4317 = vmatpush1.bf16.msra.mxu1 %v17638_v59  ;;  %4212 = vmatprep.subr.bf16.mxu0 %v17643_v18  ;;  %v17686_v59 = vld [vmem:[%s24487_s2 + $0x860] ss:$16 sps:$4 sm:$0xff]   ;;  %v17689_v18 = vld [vmem:[%s24487_s2 + $0x868] ss:$16 sps:$4 sm:$0xff]  }
 0x355   :  { %4318 = vmatprep.subr.bf16.mxu1 %v17646_v56  ;;  %v17694_v56 = vld [vmem:[%s24487_s2 + $0x884] ss:$16 sps:$4 sm:$0xff]  }
 0x357   :  { %4213 = vmatpush1.bf16.msra.mxu0 %v17641_v38  ;;  %v17697_v38 = vld [vmem:[%s24487_s2 + $0x88c] ss:$16 sps:$4 sm:$0xff]  }
 0x358   :  { %4319 = vmatpush1.bf16.msra.mxu1 %v17644_v29  ;;  %4214 = vmatprep.subr.bf16.mxu0 %v17649_v30  ;;  %v17692_v29 = vld [vmem:[%s24487_s2 + $0x880] ss:$16 sps:$4 sm:$0xff]   ;;  %v17695_v30 = vld [vmem:[%s24487_s2 + $0x888] ss:$16 sps:$4 sm:$0xff]  }
 0x359   :  { %4320 = vmatprep.subr.bf16.mxu1 %v17652_v57  ;;  %v17700_v57 = vld [vmem:[%s24487_s2 + $0x8a4] ss:$16 sps:$4 sm:$0xff]  }
 0x35b   :  { %4215 = vmatpush1.bf16.msra.mxu0 %v17647_v58  ;;  %v17703_v58 = vld [vmem:[%s24487_s2 + $0x8ac] ss:$16 sps:$4 sm:$0xff]  }
 0x35c   :  { %4321 = vmatpush1.bf16.msra.mxu1 %v17650_v23  ;;  %4216 = vmatprep.subr.bf16.mxu0 %v17655_v39  ;;  %v17698_v23 = vld [vmem:[%s24487_s2 + $0x8a0] ss:$16 sps:$4 sm:$0xff]   ;;  %v17701_v39 = vld [vmem:[%s24487_s2 + $0x8a8] ss:$16 sps:$4 sm:$0xff]  }
 0x35d   :  { %4322 = vmatprep.subr.bf16.mxu1 %v17658_v28  ;;  %v17706_v28 = vld [vmem:[%s24487_s2 + $0x8c4] ss:$16 sps:$4 sm:$0xff]  }
 0x35f   :  { %4217 = vmatpush1.bf16.msra.mxu0 %v17653_v42  ;;  %v17709_v42 = vld [vmem:[%s24487_s2 + $0x8cc] ss:$16 sps:$4 sm:$0xff]  }
 0x360   :  { %4323 = vmatpush1.bf16.msra.mxu1 %v17656_v1  ;;  %4218 = vmatprep.subr.bf16.mxu0 %v17661_v24  ;;  %v17704_v1 = vld [vmem:[%s24487_s2 + $0x8c0] ss:$16 sps:$4 sm:$0xff]   ;;  %v17707_v24 = vld [vmem:[%s24487_s2 + $0x8c8] ss:$16 sps:$4 sm:$0xff]  }
 0x361   :  { %4324 = vmatprep.subr.bf16.mxu1 %v17664_v62  ;;  %v17712_v62 = vld [vmem:[%s24487_s2 + $0x8e4] ss:$16 sps:$4 sm:$0xff]  }
 0x363   :  { %4219 = vmatpush1.bf16.msra.mxu0 %v17659_v63  ;;  %v17715_v63 = vld [vmem:[%s24487_s2 + $0x8ec] ss:$16 sps:$4 sm:$0xff]  }
 0x364   :  { %4325 = vmatpush1.bf16.msra.mxu1 %v17662_v0  ;;  %5168 = vmatprep.subr.bf16.mxu0 %v17667_v16  ;;  %v17710_v0 = vld [vmem:[%s24487_s2 + $0x8e0] ss:$16 sps:$4 sm:$0xff]   ;;  %v17713_v16 = vld [vmem:[%s24487_s2 + $0x8e8] ss:$16 sps:$4 sm:$0xff]  }
 0x365   :  { %5274 = vmatprep.subr.bf16.mxu1 %v17670_v19  ;;  %v17718_v19 = vld [vmem:[%s24487_s2 + $0x904] ss:$16 sps:$4 sm:$0xff]  }
 0x366   :  { %4221 = vmatmul.mubr.bf16.vlgmr.msra.gmra.mrb[12].mxu0 %v17584_v43 }
 0x367   :  { %4327 = vmatmul.mubr.bf16.vlgmr.msra.gmra.mrb[12].mxu1 %v17584_v43  ;;  %4230 = vmatprep.mubr.bf16.mxu0 %v17671_v22  ;;  %v17721_v43 = vld [vmem:[%s24487_s2 + $0x90c] ss:$16 sps:$4 sm:$0xff]  }
 0x368   :  { %4336 = vmatprep.mubr.bf16.mxu1 %v17671_v22  ;;  %5169 = vmatpush1.bf16.msra.mxu0 %v17665_v2  ;;  %v17716_v2 = vld [vmem:[%s24487_s2 + $0x900] ss:$16 sps:$4 sm:$0xff]   ;;  %v17724_v22 = vld [vmem:[%s24487_s2 + $0x924] ss:$16 sps:$4 sm:$0xff]  }
 0x369   :  { %5275 = vmatpush1.bf16.msra.mxu1 %v17668_v21  ;;  %5170 = vmatprep.subr.bf16.mxu0 %v17675_v25  ;;  %v17719_v21 = vld [vmem:[%s24487_s2 + $0x908] ss:$16 sps:$4 sm:$0xff]   ;;  %v17727_v25 = vld [vmem:[%s24487_s2 + $0x92c] ss:$16 sps:$4 sm:$0xff]  }
 0x36a   :  { %5276 = vmatprep.subr.bf16.mxu1 %v17678_v26  ;;  %v17722_v26 = vld [vmem:[%s24487_s2 + $0x920] ss:$16 sps:$4 sm:$0xff]  }
 0x36c   :  { %5171 = vmatpush1.bf16.msra.mxu0 %v17673_v35  ;;  %v17730_v35 = vld [vmem:[%s24487_s2 + $0x944] ss:$16 sps:$4 sm:$0xff]  }
 0x36d   :  { %5277 = vmatpush1.bf16.msra.mxu1 %v17676_v40  ;;  %5172 = vmatprep.subr.bf16.mxu0 %v17682_v46  ;;  %v17733_v40 = vld [vmem:[%s24487_s2 + $0x94c] ss:$16 sps:$4 sm:$0xff]   ;;  %v17728_v46 = vld [vmem:[%s24487_s2 + $0x940] ss:$16 sps:$4 sm:$0xff]  }
 0x36e   :  { %4231 = vmatmul.mubr.bf16.gmra.mrb[16].mxu0 %v17679_v61  ;;  %5278 = vmatprep.subr.bf16.mxu1 %v17685_v49  ;;  %v17731_v49 = vld [vmem:[%s24487_s2 + $0x948] ss:$16 sps:$4 sm:$0xff]  }
 0x36f   :  { %4337 = vmatmul.mubr.bf16.gmra.mrb[16].mxu1 %v17679_v61  ;;  %5200 = vmatprep.mubr.bf16.mxu0 %v4505_v44  ;;  %v17739_v61 = vld [vmem:[%s24487_s2 + $0x96c] ss:$16 sps:$4 sm:$0xff]  }
 0x370   :  { %5173 = vmatpush1.bf16.msra.mxu0 %v17680_v27  ;;  %5306 = vmatprep.mubr.bf16.mxu1 %v4505_v44  ;;  %v17734_v27 = vld [vmem:[%s24487_s2 + $0x960] ss:$16 sps:$4 sm:$0xff]   ;;  %v17745_v44 = vld [vmem:[%s24487_s2 + $0x98c] ss:$16 sps:$4 sm:$0xff]  }
 0x371   :  { %5279 = vmatpush1.bf16.msra.mxu1 %v17683_v17  ;;  %5174 = vmatprep.subr.bf16.mxu0 %v17688_v37  ;;  %v17737_v17 = vld [vmem:[%s24487_s2 + $0x968] ss:$16 sps:$4 sm:$0xff]   ;;  %v17742_v37 = vld [vmem:[%s24487_s2 + $0x984] ss:$16 sps:$4 sm:$0xff]  }
 0x372   :  { %5280 = vmatprep.subr.bf16.mxu1 %v17691_v33  ;;  %v17740_v33 = vld [vmem:[%s24487_s2 + $0x980] ss:$16 sps:$4 sm:$0xff]  }
 0x374   :  { %5175 = vmatpush1.bf16.msra.mxu0 %v17686_v59  ;;  %v17743_v59 = vld [vmem:[%s24487_s2 + $0x988] ss:$16 sps:$4 sm:$0xff]  }
 0x375   :  { %5281 = vmatpush1.bf16.msra.mxu1 %v17689_v18  ;;  %5176 = vmatprep.subr.bf16.mxu0 %v17694_v56  ;;  %v17748_v18 = vld [vmem:[%s24487_s2 + $0x9a4] ss:$16 sps:$4 sm:$0xff]   ;;  %v17751_v56 = vld [vmem:[%s24487_s2 + $0x9ac] ss:$16 sps:$4 sm:$0xff]  }
 0x376   :  { %5282 = vmatprep.subr.bf16.mxu1 %v17697_v38  ;;  %v17746_v38 = vld [vmem:[%s24487_s2 + $0x9a0] ss:$16 sps:$4 sm:$0xff]  }
 0x378   :  { %5177 = vmatpush1.bf16.msra.mxu0 %v17692_v29  ;;  %v17749_v29 = vld [vmem:[%s24487_s2 + $0x9a8] ss:$16 sps:$4 sm:$0xff]  }
 0x379   :  { %5283 = vmatpush1.bf16.msra.mxu1 %v17695_v30  ;;  %5178 = vmatprep.subr.bf16.mxu0 %v17700_v57  ;;  %v17754_v30 = vld [vmem:[%s24487_s2 + $0x9c4] ss:$16 sps:$4 sm:$0xff]   ;;  %v17757_v57 = vld [vmem:[%s24487_s2 + $0x9cc] ss:$16 sps:$4 sm:$0xff]  }
 0x37a   :  { %5284 = vmatprep.subr.bf16.mxu1 %v17703_v58  ;;  %v17752_v58 = vld [vmem:[%s24487_s2 + $0x9c0] ss:$16 sps:$4 sm:$0xff]  }
 0x37c   :  { %5179 = vmatpush1.bf16.msra.mxu0 %v17698_v23  ;;  %v4349_v23 = vld [vmem:[#allocation2 + $0x40] sm:$0x33] }
 0x37d   :  { %5285 = vmatpush1.bf16.msra.mxu1 %v17701_v39  ;;  %5180 = vmatprep.subr.bf16.mxu0 %v17706_v28  ;;  %v17755_v39 = vld [vmem:[%s24487_s2 + $0x9c8] ss:$16 sps:$4 sm:$0xff]   ;;  %v17760_v28 = vld [vmem:[%s24487_s2 + $0x9e4] ss:$16 sps:$4 sm:$0xff]  }
 0x37e   :  { %5286 = vmatprep.subr.bf16.mxu1 %v17709_v42  ;;  %v14663_v42 = vcombine.low %v20923_v20, %v20735_v32  ;;  %v17766_v20 = vld [vmem:[%s24487_s2 + $0xa04] ss:$16 sps:$4 sm:$0xff]  }
 0x380   :  { %5181 = vmatpush1.bf16.msra.mxu0 %v17704_v1  ;;  %v17763_v1 = vld [vmem:[%s24487_s2 + $0x9ec] ss:$16 sps:$4 sm:$0xff]  }
 0x381   :  { %5287 = vmatpush1.bf16.msra.mxu1 %v17707_v24  ;;  %5182 = vmatprep.subr.bf16.mxu0 %v17712_v62  ;;  %v14668_v24 = vcombine.high %v4349_v23, %v4349_v23  ;;  %v17758_v62 = vld [vmem:[%s24487_s2 + $0x9e0] ss:$16 sps:$4 sm:$0xff]  }
 0x382   :  { %5288 = vmatprep.subr.bf16.mxu1 %v17715_v63  ;;  %v17761_v63 = vld [vmem:[%s24487_s2 + $0x9e8] ss:$16 sps:$4 sm:$0xff]  }
 0x384   :  { %5183 = vmatpush1.bf16.msra.mxu0 %v17710_v0  ;;  %v4500_v0 = vrot.slane %v14663_v42, 2  ;;  %v17805_v42 = vld [vmem:[%s24487_s2 + $0xac8] ss:$16 sps:$4 sm:$0xff]  }
 0x385   :  { %5289 = vmatpush1.bf16.msra.mxu1 %v17713_v16  ;;  %5184 = vmatprep.subr.bf16.mxu0 %v17718_v19  ;;  %v17769_v16 = vld [vmem:[%s24487_s2 + $0xa0c] ss:$16 sps:$4 sm:$0xff]   ;;  %v4514_v19 = vrot.slane %v14668_v24, 2 }
 0x386   :  { %5290 = vmatprep.subr.bf16.mxu1 %v17721_v43  ;;  %v4501_v43 = vrot.slane %v20277_v15, 2  ;;  %v17813_v24 = vld [vmem:[%s24487_s2 + $0xaec] ss:$16 sps:$4 sm:$0xff]  }
 0x388   :  { %5185 = vmatpush1.bf16.msra.mxu0 %v17716_v2  ;;  %v17764_v2 = vld [vmem:[%s24487_s2 + $0xa00] ss:$16 sps:$4 sm:$0xff]  }
 0x389   :  { %5291 = vmatpush1.bf16.msra.mxu1 %v17719_v21  ;;  %5186 = vmatprep.subr.bf16.mxu0 %v17724_v22  ;;  %v4502_v21 = vsel %vm724_vm1, %v4500_v0, %v4501_v43  ;;  %v17767_v22 = vld [vmem:[%s24487_s2 + $0xa08] ss:$16 sps:$4 sm:$0xff]   ;;  %v17819_v0 = vld [vmem:[%s24487_s2 + $0xb0c] ss:$16 sps:$4 sm:$0xff]  }
 0x38a   :  { %5292 = vmatprep.subr.bf16.mxu1 %v17727_v25  ;;  %v17773_v25 = vld [vmem:[%s24487_s2 + $0xa24] ss:$16 sps:$4 sm:$0xff]  }
 0x38c   :  { %5187 = vmatpush1.bf16.msra.mxu0 %v17722_v26  ;;  %v14667_v26 = vcombine.low %v4349_v23, %v4349_v23  ;;  %v17804_v23 = vld [vmem:[%s24487_s2 + $0xac4] ss:$16 sps:$4 sm:$0xff]  }
 0x38d   :  { %5293 = vmatpush1.bf16.msra.mxu1 %v17725_v31  ;;  %5188 = vmatprep.subr.bf16.mxu0 %v17730_v35  ;;  %v4515_v31 = vsel %vm724_vm1, %v4504_v55, %v4514_v19  ;;  %v17776_v35 = vld [vmem:[%s24487_s2 + $0xa2c] ss:$16 sps:$4 sm:$0xff]   ;;  %v17780_v55 = vld [vmem:[%s24487_s2 + $0xa44] ss:$16 sps:$4 sm:$0xff]   ;;  %v17817_v19 = vld [vmem:[%s24487_s2 + $0xb08] ss:$16 sps:$4 sm:$0xff]  }
 0x38e   :  { %5294 = vmatprep.subr.bf16.mxu1 %v17733_v40  ;;  %v17771_v40 = vld [vmem:[%s24487_s2 + $0xa20] ss:$16 sps:$4 sm:$0xff]  }
 0x390   :  { %5189 = vmatpush1.bf16.msra.mxu0 %v17728_v46  ;;  %v17774_v46 = vld [vmem:[%s24487_s2 + $0xa28] ss:$16 sps:$4 sm:$0xff]  }
 0x391   :  { %5295 = vmatpush1.bf16.msra.mxu1 %v17731_v49  ;;  %5190 = vmatprep.subr.bf16.mxu0 %v17736_v47  ;;  %v4512_v49 = vrot.slane %v14667_v26, 2  ;;  %v17783_v47 = vld [vmem:[%s24487_s2 + $0xa4c] ss:$16 sps:$4 sm:$0xff]  }
 0x392   :  { %5296 = vmatprep.subr.bf16.mxu1 %v17739_v61  ;;  %v17778_v61 = vld [vmem:[%s24487_s2 + $0xa40] ss:$16 sps:$4 sm:$0xff]   ;;  %v17831_v26 = vld [vmem:[%s24487_s2 + $0xb4c] ss:$16 sps:$4 sm:$0xff]  }
 0x394   :  { %5191 = vmatpush1.bf16.msra.mxu0 %v17734_v27  ;;  %v4513_v27 = vsel %vm724_vm1, %v4501_v43, %v4512_v49  ;;  %v17822_v43 = vld [vmem:[%s24487_s2 + $0xb24] ss:$16 sps:$4 sm:$0xff]   ;;  %v17832_v49 = vld [vmem:[%s24487_s2 + $0xb60] ss:$16 sps:$4 sm:$0xff]  }
 0x395   :  { %5297 = vmatpush1.bf16.msra.mxu1 %v17737_v17  ;;  %5192 = vmatprep.subr.bf16.mxu0 %v17742_v37  ;;  %v17781_v17 = vld [vmem:[%s24487_s2 + $0xa48] ss:$16 sps:$4 sm:$0xff]   ;;  %v17786_v37 = vld [vmem:[%s24487_s2 + $0xa64] ss:$16 sps:$4 sm:$0xff]  }
 0x396   :  { %5298 = vmatprep.subr.bf16.mxu1 %v17745_v44  ;;  %v17789_v44 = vld [vmem:[%s24487_s2 + $0xa6c] ss:$16 sps:$4 sm:$0xff]  }
 0x398   :  { %5193 = vmatpush1.bf16.msra.mxu0 %v17740_v33  ;;  %v17784_v33 = vld [vmem:[%s24487_s2 + $0xa60] ss:$16 sps:$4 sm:$0xff]  }
 0x399   :  { %5299 = vmatpush1.bf16.msra.mxu1 %v17743_v59  ;;  %5194 = vmatprep.subr.bf16.mxu0 %v17748_v18  ;;  %v17787_v59 = vld [vmem:[%s24487_s2 + $0xa68] ss:$16 sps:$4 sm:$0xff]   ;;  %v17792_v18 = vld [vmem:[%s24487_s2 + $0xa84] ss:$16 sps:$4 sm:$0xff]  }
 0x39a   :  { %5300 = vmatprep.subr.bf16.mxu1 %v17751_v56  ;;  %v17795_v56 = vld [vmem:[%s24487_s2 + $0xa8c] ss:$16 sps:$4 sm:$0xff]  }
 0x39c   :  { %5195 = vmatpush1.bf16.msra.mxu0 %v17746_v38  ;;  %v17793_v38 = vld [vmem:[%s24487_s2 + $0xa88] ss:$16 sps:$4 sm:$0xff]  }
 0x39d   :  { %5301 = vmatpush1.bf16.msra.mxu1 %v17749_v29  ;;  %5196 = vmatprep.subr.bf16.mxu0 %v17754_v30  ;;  %v17798_v29 = vld [vmem:[%s24487_s2 + $0xaa4] ss:$16 sps:$4 sm:$0xff]   ;;  %v17801_v30 = vld [vmem:[%s24487_s2 + $0xaac] ss:$16 sps:$4 sm:$0xff]  }
 0x39e   :  { %5302 = vmatprep.subr.bf16.mxu1 %v17757_v57  ;;  %v17796_v57 = vld [vmem:[%s24487_s2 + $0xaa0] ss:$16 sps:$4 sm:$0xff]  }
 0x3a0   :  { %5197 = vmatpush1.bf16.msra.mxu0 %v17752_v58  ;;  %v17799_v58 = vld [vmem:[%s24487_s2 + $0xaa8] ss:$16 sps:$4 sm:$0xff]  }
 0x3a1   :  { %5303 = vmatpush1.bf16.msra.mxu1 %v17755_v39  ;;  %5198 = vmatprep.subr.bf16.mxu0 %v17760_v28  ;;  %v17807_v39 = vld [vmem:[%s24487_s2 + $0xacc] ss:$16 sps:$4 sm:$0xff]   ;;  %v17802_v28 = vld [vmem:[%s24487_s2 + $0xac0] ss:$16 sps:$4 sm:$0xff]  }
 0x3a2   :  { %5304 = vmatprep.subr.bf16.mxu1 %v17763_v1  ;;  %v17810_v1 = vld [vmem:[%s24487_s2 + $0xae4] ss:$16 sps:$4 sm:$0xff]  }
 0x3a4   :  { %5199 = vmatpush1.bf16.msra.mxu0 %v17758_v62  ;;  %v17808_v62 = vld [vmem:[%s24487_s2 + $0xae0] ss:$16 sps:$4 sm:$0xff]  }
 0x3a5   :  { %5305 = vmatpush1.bf16.msra.mxu1 %v17761_v63  ;;  %5221 = vmatprep.subr.bf16.mxu0 %v17766_v20  ;;  %v17811_v63 = vld [vmem:[%s24487_s2 + $0xae8] ss:$16 sps:$4 sm:$0xff]   ;;  %v17816_v20 = vld [vmem:[%s24487_s2 + $0xb04] ss:$16 sps:$4 sm:$0xff]  }
 0x3a6   :  { %5327 = vmatprep.subr.bf16.mxu1 %v17769_v16  ;;  %v17814_v16 = vld [vmem:[%s24487_s2 + $0xb00] ss:$16 sps:$4 sm:$0xff]  }
 0x3a7   :  { %5201 = vmatmul.mubr.bf16.vlgmr.msra.gmra.mrb[12].mxu0 %v4502_v21 }
 0x3a8   :  { %5307 = vmatmul.mubr.bf16.vlgmr.msra.gmra.mrb[12].mxu1 %v4502_v21  ;;  %5210 = vmatprep.mubr.bf16.mxu0 %v4515_v31  ;;  %v17820_v21 = vld [vmem:[%s24487_s2 + $0xb20] ss:$16 sps:$4 sm:$0xff]  }
 0x3a9   :  { %5222 = vmatpush1.bf16.msra.mxu0 %v17764_v2  ;;  %5316 = vmatprep.mubr.bf16.mxu1 %v4515_v31  ;;  %v17825_v2 = vld [vmem:[%s24487_s2 + $0xb2c] ss:$16 sps:$4 sm:$0xff]   ;;  %v17826_v31 = vld [vmem:[%s24487_s2 + $0xb40] ss:$16 sps:$4 sm:$0xff]  }
 0x3aa   :  { %5328 = vmatpush1.bf16.msra.mxu1 %v17767_v22  ;;  %5223 = vmatprep.subr.bf16.mxu0 %v17773_v25  ;;  %v17823_v22 = vld [vmem:[%s24487_s2 + $0xb28] ss:$16 sps:$4 sm:$0xff]   ;;  %v17828_v25 = vld [vmem:[%s24487_s2 + $0xb44] ss:$16 sps:$4 sm:$0xff]  }
 0x3ab   :  { %5329 = vmatprep.subr.bf16.mxu1 %v17776_v35  ;;  %v17829_v35 = vld [vmem:[%s24487_s2 + $0xb48] ss:$16 sps:$4 sm:$0xff]  }
 0x3ad   :  { %5224 = vmatpush1.bf16.msra.mxu0 %v17771_v40  ;;  %v17834_v40 = vld [vmem:[%s24487_s2 + $0xb64] ss:$16 sps:$4 sm:$0xff]  }
 0x3ae   :  { %5330 = vmatpush1.bf16.msra.mxu1 %v17774_v46  ;;  %5225 = vmatprep.subr.bf16.mxu0 %v17780_v55  ;;  %v17837_v46 = vld [vmem:[%s24487_s2 + $0xb6c] ss:$16 sps:$4 sm:$0xff]   ;;  %v17835_v55 = vld [vmem:[%s24487_s2 + $0xb68] ss:$16 sps:$4 sm:$0xff]  }
 0x3af   :  { %5211 = vmatmul.mubr.bf16.gmra.mrb[16].mxu0 %v4513_v27  ;;  %5331 = vmatprep.subr.bf16.mxu1 %v17783_v47  ;;  %v17840_v47 = vld [vmem:[%s24487_s2 + $0xb84] ss:$16 sps:$4 sm:$0xff]  }
 0x3b0   :  { %5317 = vmatmul.mubr.bf16.gmra.mrb[16].mxu1 %v4513_v27  ;;  %5253 = vmatprep.mubr.bf16.mxu0 %v20335_v36  ;;  %v17838_v27 = vld [vmem:[%s24487_s2 + $0xb80] ss:$16 sps:$4 sm:$0xff]  }
 0x3b1   :  { %5226 = vmatpush1.bf16.msra.mxu0 %v17778_v61  ;;  %5359 = vmatprep.mubr.bf16.mxu1 %v20335_v36  ;;  %v17790_v36 = vld [vmem:[%s24487_s2 + $0xa80] ss:$16 sps:$4 sm:$0xff]   ;;  %v17843_v61 = vld [vmem:[%s24487_s2 + $0xb8c] ss:$16 sps:$4 sm:$0xff]  }
 0x3b2   :  { %5332 = vmatpush1.bf16.msra.mxu1 %v17781_v17  ;;  %5227 = vmatprep.subr.bf16.mxu0 %v17786_v37  ;;  %v17841_v17 = vld [vmem:[%s24487_s2 + $0xb88] ss:$16 sps:$4 sm:$0xff]   ;;  %v17846_v37 = vld [vmem:[%s24487_s2 + $0xba4] ss:$16 sps:$4 sm:$0xff]  }
 0x3b3   :  { %5333 = vmatprep.subr.bf16.mxu1 %v17789_v44  ;;  %v17849_v44 = vld [vmem:[%s24487_s2 + $0xbac] ss:$16 sps:$4 sm:$0xff]  }
 0x3b5   :  { %5228 = vmatpush1.bf16.msra.mxu0 %v17784_v33  ;;  %v17844_v33 = vld [vmem:[%s24487_s2 + $0xba0] ss:$16 sps:$4 sm:$0xff]  }
 0x3b6   :  { %5334 = vmatpush1.bf16.msra.mxu1 %v17787_v59  ;;  %5229 = vmatprep.subr.bf16.mxu0 %v17792_v18  ;;  %v17847_v59 = vld [vmem:[%s24487_s2 + $0xba8] ss:$16 sps:$4 sm:$0xff]   ;;  %v17852_v18 = vld [vmem:[%s24487_s2 + $0xbc4] ss:$16 sps:$4 sm:$0xff]  }
 0x3b7   :  { %5335 = vmatprep.subr.bf16.mxu1 %v17795_v56  ;;  %v17855_v56 = vld [vmem:[%s24487_s2 + $0xbcc] ss:$16 sps:$4 sm:$0xff]  }
 0x3b9   :  { %5230 = vmatpush1.bf16.msra.mxu0 %v17790_v36  ;;  %v17850_v36 = vld [vmem:[%s24487_s2 + $0xbc0] ss:$16 sps:$4 sm:$0xff]  }
 0x3ba   :  { %5336 = vmatpush1.bf16.msra.mxu1 %v17793_v38  ;;  %5231 = vmatprep.subr.bf16.mxu0 %v17798_v29  ;;  %v4350_v38 = vld [vmem:[#allocation2 + $0x48] sm:$0x33] }
 0x3bb   :  { %5337 = vmatprep.subr.bf16.mxu1 %v17801_v30  ;;  %v17853_v29 = vld [vmem:[%s24487_s2 + $0xbc8] ss:$16 sps:$4 sm:$0xff]   ;;  %v17858_v30 = vld [vmem:[%s24487_s2 + $0xbe4] ss:$16 sps:$4 sm:$0xff]  }
 0x3bd   :  { %5232 = vmatpush1.bf16.msra.mxu0 %v17796_v57  ;;  %v17861_v57 = vld [vmem:[%s24487_s2 + $0xbec] ss:$16 sps:$4 sm:$0xff]  }
 0x3be   :  { %5338 = vmatpush1.bf16.msra.mxu1 %v17799_v58  ;;  %5233 = vmatprep.subr.bf16.mxu0 %v17804_v23  ;;  %v14670_v58 = vcombine.high %v4350_v38, %v4350_v38  ;;  %v17856_v23 = vld [vmem:[%s24487_s2 + $0xbe0] ss:$16 sps:$4 sm:$0xff]  }
 0x3bf   :  { %5339 = vmatprep.subr.bf16.mxu1 %v17807_v39  ;;  %v17859_v39 = vld [vmem:[%s24487_s2 + $0xbe8] ss:$16 sps:$4 sm:$0xff]  }
 0x3c1   :  { %5234 = vmatpush1.bf16.msra.mxu0 %v17802_v28  ;;  %v17864_v28 = vld [vmem:[%s24487_s2 + $0xc04] ss:$16 sps:$4 sm:$0xff]  }
 0x3c2   :  { %5340 = vmatpush1.bf16.msra.mxu1 %v17805_v42  ;;  %5235 = vmatprep.subr.bf16.mxu0 %v17810_v1  ;;  %v17867_v42 = vld [vmem:[%s24487_s2 + $0xc0c] ss:$16 sps:$4 sm:$0xff]   ;;  %v4518_v1 = vrot.slane %v14670_v58, 2  ;;  %v17909_v58 = vld [vmem:[%s24487_s2 + $0xce8] ss:$16 sps:$4 sm:$0xff]  }
 0x3c3   :  { %5341 = vmatprep.subr.bf16.mxu1 %v17813_v24  ;;  %v21325_v24 = vld [vmem:[#allocation2] sm:$0x88] }
 0x3c5   :  { %5236 = vmatpush1.bf16.msra.mxu0 %v17808_v62  ;;  %v17862_v62 = vld [vmem:[%s24487_s2 + $0xc00] ss:$16 sps:$4 sm:$0xff]  }
 0x3c6   :  { %5342 = vmatpush1.bf16.msra.mxu1 %v17811_v63  ;;  %5237 = vmatprep.subr.bf16.mxu0 %v17816_v20  ;;  %v17865_v63 = vld [vmem:[%s24487_s2 + $0xc08] ss:$16 sps:$4 sm:$0xff]   ;;  %v17871_v20 = vld [vmem:[%s24487_s2 + $0xc24] ss:$16 sps:$4 sm:$0xff]  }
 0x3c7   :  { %5343 = vmatprep.subr.bf16.mxu1 %v17819_v0  ;;  %v14669_v0 = vcombine.low %v4350_v38, %v4350_v38  ;;  %v17903_v38 = vld [vmem:[%s24487_s2 + $0xcc8] ss:$16 sps:$4 sm:$0xff]  }
 0x3c9   :  { %5238 = vmatpush1.bf16.msra.mxu0 %v17814_v16  ;;  %v4519_v16 = vsel %vm724_vm1, %v4510_v13, %v4518_v1  ;;  %v17872_v13 = vld [vmem:[%s24487_s2 + $0xc28] ss:$16 sps:$4 sm:$0xff]   ;;  %v17920_v1 = vld [vmem:[%s24487_s2 + $0xd24] ss:$16 sps:$4 sm:$0xff]  }
 0x3ca   :  { %5344 = vmatpush1.bf16.msra.mxu1 %v17817_v19  ;;  %5239 = vmatprep.subr.bf16.mxu0 %v17822_v43  ;;  %v17874_v19 = vld [vmem:[%s24487_s2 + $0xc2c] ss:$16 sps:$4 sm:$0xff]   ;;  %v14928_v43 = vcombine.high %v21325_v24, %v20735_v32  ;;  %v17878_v32 = vld [vmem:[%s24487_s2 + $0xc44] ss:$16 sps:$4 sm:$0xff]  }
 0x3cb   :  { %5345 = vmatprep.subr.bf16.mxu1 %v17825_v2  ;;  %v17869_v2 = vld [vmem:[%s24487_s2 + $0xc20] ss:$16 sps:$4 sm:$0xff]  }
 0x3cd   :  { %5240 = vmatpush1.bf16.msra.mxu0 %v17820_v21  ;;  %v4516_v21 = vrot.slane %v14669_v0, 2  ;;  %v17926_v0 = vld [vmem:[%s24487_s2 + $0xd44] ss:$16 sps:$4 sm:$0xff]  }
 0x3ce   :  { %5346 = vmatpush1.bf16.msra.mxu1 %v17823_v22  ;;  %5241 = vmatprep.subr.bf16.mxu0 %v17828_v25  ;;  %v5552_v22 = vrot.slane %v14928_v43, 3  ;;  %v17876_v25 = vld [vmem:[%s24487_s2 + $0xc40] ss:$16 sps:$4 sm:$0xff]   ;;  %v17927_v43 = vld [vmem:[%s24487_s2 + $0xd48] ss:$16 sps:$4 sm:$0xff]  }
 0x3cf   :  { %5347 = vmatprep.subr.bf16.mxu1 %v17831_v26  ;;  %v5553_v26 = vrot.slane %v20265_v9, 3  ;;  %v17970_v9 = vld [vmem:[%s24487_s2 + $0xe28] ss:$16 sps:$4 sm:$0xff]  }
 0x3d1   :  { %5242 = vmatpush1.bf16.msra.mxu0 %v17826_v31  ;;  %v4517_v31 = vsel %vm724_vm1, %v4507_v50, %v4516_v21  ;;  %v17882_v50 = vld [vmem:[%s24487_s2 + $0xc60] ss:$16 sps:$4 sm:$0xff]  }
 0x3d2   :  { %5348 = vmatpush1.bf16.msra.mxu1 %v17829_v35  ;;  %5243 = vmatprep.subr.bf16.mxu0 %v17834_v40  ;;  %v17879_v35 = vld [vmem:[%s24487_s2 + $0xc48] ss:$16 sps:$4 sm:$0xff]   ;;  %v17884_v40 = vld [vmem:[%s24487_s2 + $0xc64] ss:$16 sps:$4 sm:$0xff]   ;;  %v17930_v21 = vld [vmem:[%s24487_s2 + $0xd60] ss:$16 sps:$4 sm:$0xff]  }
 0x3d3   :  { %5349 = vmatprep.subr.bf16.mxu1 %v17837_v46  ;;  %v5554_v46 = vsel %vm1055_vm2, %v5552_v22, %v5553_v26  ;;  %v17941_v22 = vld [vmem:[%s24487_s2 + $0xd8c] ss:$16 sps:$4 sm:$0xff]  }
 0x3d5   :  { %5244 = vmatpush1.bf16.msra.mxu0 %v17832_v49  ;;  %v17887_v49 = vld [vmem:[%s24487_s2 + $0xc6c] ss:$16 sps:$4 sm:$0xff]  }
 0x3d6   :  { %5350 = vmatpush1.bf16.msra.mxu1 %v17835_v55  ;;  %5245 = vmatprep.subr.bf16.mxu0 %v17840_v47  ;;  %v17885_v55 = vld [vmem:[%s24487_s2 + $0xc68] ss:$16 sps:$4 sm:$0xff]   ;;  %v17890_v47 = vld [vmem:[%s24487_s2 + $0xc84] ss:$16 sps:$4 sm:$0xff]  }
 0x3d7   :  { %5351 = vmatprep.subr.bf16.mxu1 %v17843_v61  ;;  %v17893_v61 = vld [vmem:[%s24487_s2 + $0xc8c] ss:$16 sps:$4 sm:$0xff]  }
 0x3d9   :  { %5246 = vmatpush1.bf16.msra.mxu0 %v17838_v27  ;;  %v17888_v27 = vld [vmem:[%s24487_s2 + $0xc80] ss:$16 sps:$4 sm:$0xff]  }
 0x3da   :  { %5352 = vmatpush1.bf16.msra.mxu1 %v17841_v17  ;;  %5247 = vmatprep.subr.bf16.mxu0 %v17846_v37  ;;  %v17891_v17 = vld [vmem:[%s24487_s2 + $0xc88] ss:$16 sps:$4 sm:$0xff]   ;;  %v17896_v37 = vld [vmem:[%s24487_s2 + $0xca4] ss:$16 sps:$4 sm:$0xff]  }
 0x3db   :  { %5353 = vmatprep.subr.bf16.mxu1 %v17849_v44  ;;  %v17899_v44 = vld [vmem:[%s24487_s2 + $0xcac] ss:$16 sps:$4 sm:$0xff]  }
 0x3dd   :  { %5248 = vmatpush1.bf16.msra.mxu0 %v17844_v33  ;;  %v17894_v33 = vld [vmem:[%s24487_s2 + $0xca0] ss:$16 sps:$4 sm:$0xff]  }
 0x3de   :  { %5354 = vmatpush1.bf16.msra.mxu1 %v17847_v59  ;;  %5249 = vmatprep.subr.bf16.mxu0 %v17852_v18  ;;  %v17897_v59 = vld [vmem:[%s24487_s2 + $0xca8] ss:$16 sps:$4 sm:$0xff]   ;;  %v17902_v18 = vld [vmem:[%s24487_s2 + $0xcc4] ss:$16 sps:$4 sm:$0xff]  }
 0x3df   :  { %5355 = vmatprep.subr.bf16.mxu1 %v17855_v56  ;;  %v17905_v56 = vld [vmem:[%s24487_s2 + $0xccc] ss:$16 sps:$4 sm:$0xff]  }
 0x3e1   :  { %5250 = vmatpush1.bf16.msra.mxu0 %v17850_v36  ;;  %v17900_v36 = vld [vmem:[%s24487_s2 + $0xcc0] ss:$16 sps:$4 sm:$0xff]  }
 0x3e2   :  { %5356 = vmatpush1.bf16.msra.mxu1 %v17853_v29  ;;  %5251 = vmatprep.subr.bf16.mxu0 %v17858_v30  ;;  %v17908_v29 = vld [vmem:[%s24487_s2 + $0xce4] ss:$16 sps:$4 sm:$0xff]   ;;  %v17911_v30 = vld [vmem:[%s24487_s2 + $0xcec] ss:$16 sps:$4 sm:$0xff]  }
 0x3e3   :  { %5357 = vmatprep.subr.bf16.mxu1 %v17861_v57  ;;  %v17906_v57 = vld [vmem:[%s24487_s2 + $0xce0] ss:$16 sps:$4 sm:$0xff]  }
 0x3e5   :  { %5252 = vmatpush1.bf16.msra.mxu0 %v17856_v23  ;;  %v17914_v23 = vld [vmem:[%s24487_s2 + $0xd04] ss:$16 sps:$4 sm:$0xff]  }
 0x3e6   :  { %5358 = vmatpush1.bf16.msra.mxu1 %v17859_v39  ;;  %6217 = vmatprep.subr.bf16.mxu0 %v17864_v28  ;;  %v17917_v39 = vld [vmem:[%s24487_s2 + $0xd0c] ss:$16 sps:$4 sm:$0xff]   ;;  %v17912_v28 = vld [vmem:[%s24487_s2 + $0xd00] ss:$16 sps:$4 sm:$0xff]  }
 0x3e7   :  { %6323 = vmatprep.subr.bf16.mxu1 %v17867_v42  ;;  %v17915_v42 = vld [vmem:[%s24487_s2 + $0xd08] ss:$16 sps:$4 sm:$0xff]  }
 0x3e8   :  { %5254 = vmatmul.mubr.bf16.vlgmr.msra.gmra.mrb[12].mxu0 %v20340_v51 }
 0x3e9   :  { %5360 = vmatmul.mubr.bf16.vlgmr.msra.gmra.mrb[12].mxu1 %v20340_v51  ;;  %5263 = vmatprep.mubr.bf16.mxu0 %v4519_v16  ;;  %v17881_v51 = vld [vmem:[%s24487_s2 + $0xc4c] ss:$16 sps:$4 sm:$0xff]  }
 0x3ea   :  { %5369 = vmatprep.mubr.bf16.mxu1 %v4519_v16  ;;  %6218 = vmatpush1.bf16.msra.mxu0 %v17862_v62  ;;  %v17923_v62 = vld [vmem:[%s24487_s2 + $0xd2c] ss:$16 sps:$4 sm:$0xff]  }
 0x3eb   :  { %6324 = vmatpush1.bf16.msra.mxu1 %v17865_v63  ;;  %6219 = vmatprep.subr.bf16.mxu0 %v17871_v20  ;;  %v17918_v63 = vld [vmem:[%s24487_s2 + $0xd20] ss:$16 sps:$4 sm:$0xff]   ;;  %v17921_v20 = vld [vmem:[%s24487_s2 + $0xd28] ss:$16 sps:$4 sm:$0xff]   ;;  %v17929_v16 = vld [vmem:[%s24487_s2 + $0xd4c] ss:$16 sps:$4 sm:$0xff]  }
 0x3ec   :  { %6325 = vmatprep.subr.bf16.mxu1 %v17874_v19  ;;  %v17924_v19 = vld [vmem:[%s24487_s2 + $0xd40] ss:$16 sps:$4 sm:$0xff]  }
 0x3ee   :  { %6220 = vmatpush1.bf16.msra.mxu0 %v17869_v2  ;;  %v17932_v2 = vld [vmem:[%s24487_s2 + $0xd64] ss:$16 sps:$4 sm:$0xff]  }
 0x3ef   :  { %6326 = vmatpush1.bf16.msra.mxu1 %v17872_v13  ;;  %6221 = vmatprep.subr.bf16.mxu0 %v17878_v32  ;;  %v17935_v13 = vld [vmem:[%s24487_s2 + $0xd6c] ss:$16 sps:$4 sm:$0xff]   ;;  %v17933_v32 = vld [vmem:[%s24487_s2 + $0xd68] ss:$16 sps:$4 sm:$0xff]  }
 0x3f0   :  { %5264 = vmatmul.mubr.bf16.gmra.mrb[16].mxu0 %v4517_v31  ;;  %6327 = vmatprep.subr.bf16.mxu1 %v17881_v51  ;;  %v17938_v51 = vld [vmem:[%s24487_s2 + $0xd84] ss:$16 sps:$4 sm:$0xff]  }
 0x3f1   :  { %5370 = vmatmul.mubr.bf16.gmra.mrb[16].mxu1 %v4517_v31  ;;  %6249 = vmatprep.mubr.bf16.mxu0 %v5554_v46  ;;  %v17939_v31 = vld [vmem:[%s24487_s2 + $0xd88] ss:$16 sps:$4 sm:$0xff]  }
 0x3f2   :  { %6222 = vmatpush1.bf16.msra.mxu0 %v17876_v25  ;;  %6355 = vmatprep.mubr.bf16.mxu1 %v5554_v46  ;;  %v17936_v25 = vld [vmem:[%s24487_s2 + $0xd80] ss:$16 sps:$4 sm:$0xff]  }
 0x3f3   :  { %6328 = vmatpush1.bf16.msra.mxu1 %v17879_v35  ;;  %6223 = vmatprep.subr.bf16.mxu0 %v17884_v40  ;;  %v17944_v35 = vld [vmem:[%s24487_s2 + $0xda4] ss:$16 sps:$4 sm:$0xff]   ;;  %v17947_v40 = vld [vmem:[%s24487_s2 + $0xdac] ss:$16 sps:$4 sm:$0xff]   ;;  %v17942_v46 = vld [vmem:[%s24487_s2 + $0xda0] ss:$16 sps:$4 sm:$0xff]  }
 0x3f4   :  { %6329 = vmatprep.subr.bf16.mxu1 %v17887_v49  ;;  %v17945_v49 = vld [vmem:[%s24487_s2 + $0xda8] ss:$16 sps:$4 sm:$0xff]  }
 0x3f6   :  { %6224 = vmatpush1.bf16.msra.mxu0 %v17882_v50  ;;  %v17950_v50 = vld [vmem:[%s24487_s2 + $0xdc4] ss:$16 sps:$4 sm:$0xff]  }
 0x3f7   :  { %6330 = vmatpush1.bf16.msra.mxu1 %v17885_v55  ;;  %6225 = vmatprep.subr.bf16.mxu0 %v17890_v47  ;;  %v17953_v55 = vld [vmem:[%s24487_s2 + $0xdcc] ss:$16 sps:$4 sm:$0xff]   ;;  %v17948_v47 = vld [vmem:[%s24487_s2 + $0xdc0] ss:$16 sps:$4 sm:$0xff]  }
 0x3f8   :  { %6331 = vmatprep.subr.bf16.mxu1 %v17893_v61  ;;  %v5398_v61 = vld [vmem:[#allocation2 + $0x40] sm:$0x77] }
 0x3fa   :  { %6226 = vmatpush1.bf16.msra.mxu0 %v17888_v27  ;;  %v17951_v27 = vld [vmem:[%s24487_s2 + $0xdc8] ss:$16 sps:$4 sm:$0xff]  }
 0x3fb   :  { %6332 = vmatpush1.bf16.msra.mxu1 %v17891_v17  ;;  %6227 = vmatprep.subr.bf16.mxu0 %v17896_v37  ;;  %v17956_v17 = vld [vmem:[%s24487_s2 + $0xde4] ss:$16 sps:$4 sm:$0xff]  }
 0x3fc   :  { %6333 = vmatprep.subr.bf16.mxu1 %v17899_v44  ;;  %v19255_v37 = vld [vmem:[#allocation2 + $0x10] sm:$0xff] }
 0x3fd   :  { %v14927_v44 = vcombine.low %v21325_v24, %v19255_v37  ;;  %v17962_v24 = vld [vmem:[%s24487_s2 + $0xe04] ss:$16 sps:$4 sm:$0xff]   ;;  %v18015_v37 = vld [vmem:[%s24487_s2 + $0xf0c] ss:$16 sps:$4 sm:$0xff]  }
 0x3fe   :  { %6228 = vmatpush1.bf16.msra.mxu0 %v17894_v33  ;;  %v17959_v33 = vld [vmem:[%s24487_s2 + $0xdec] ss:$16 sps:$4 sm:$0xff]  }
 0x3ff   :  { %6334 = vmatpush1.bf16.msra.mxu1 %v17897_v59  ;;  %6229 = vmatprep.subr.bf16.mxu0 %v17902_v18  ;;  %v14932_v59 = vcombine.high %v5398_v61, %v5398_v61  ;;  %v17954_v18 = vld [vmem:[%s24487_s2 + $0xde0] ss:$16 sps:$4 sm:$0xff]  }
 0x400   :  { %6335 = vmatprep.subr.bf16.mxu1 %v17905_v56  ;;  %v17957_v56 = vld [vmem:[%s24487_s2 + $0xde8] ss:$16 sps:$4 sm:$0xff]  }
 0x402   :  { %6230 = vmatpush1.bf16.msra.mxu0 %v17900_v36  ;;  %v5549_v36 = vrot.slane %v14927_v44, 3  ;;  %v18010_v44 = vld [vmem:[%s24487_s2 + $0xf00] ss:$16 sps:$4 sm:$0xff]  }
 0x403   :  { %6336 = vmatpush1.bf16.msra.mxu1 %v17903_v38  ;;  %6231 = vmatprep.subr.bf16.mxu0 %v17908_v29  ;;  %v17965_v38 = vld [vmem:[%s24487_s2 + $0xe0c] ss:$16 sps:$4 sm:$0xff]   ;;  %v5563_v29 = vrot.slane %v14932_v59, 3  ;;  %v18018_v59 = vld [vmem:[%s24487_s2 + $0xf24] ss:$16 sps:$4 sm:$0xff]  }
 0x404   :  { %6337 = vmatprep.subr.bf16.mxu1 %v17911_v30  ;;  %v5550_v30 = vrot.slane %v20277_v15, 3 }
 0x405   :  { %v5564_v15 = vsel %vm1055_vm2, %v5553_v26, %v5563_v29  ;;  %v17976_v26 = vld [vmem:[%s24487_s2 + $0xe44] ss:$16 sps:$4 sm:$0xff]   ;;  %v18022_v29 = vld [vmem:[%s24487_s2 + $0xf40] ss:$16 sps:$4 sm:$0xff]  }
 0x406   :  { %6232 = vmatpush1.bf16.msra.mxu0 %v17906_v57  ;;  %v17960_v57 = vld [vmem:[%s24487_s2 + $0xe00] ss:$16 sps:$4 sm:$0xff]  }
 0x407   :  { %6338 = vmatpush1.bf16.msra.mxu1 %v17909_v58  ;;  %6233 = vmatprep.subr.bf16.mxu0 %v17914_v23  ;;  %v5551_v58 = vsel %vm1055_vm2, %v5549_v36, %v5550_v30  ;;  %v17963_v23 = vld [vmem:[%s24487_s2 + $0xe08] ss:$16 sps:$4 sm:$0xff]   ;;  %v18024_v36 = vld [vmem:[%s24487_s2 + $0xf44] ss:$16 sps:$4 sm:$0xff]  }
 0x408   :  { %6339 = vmatprep.subr.bf16.mxu1 %v17917_v39  ;;  %v17969_v39 = vld [vmem:[%s24487_s2 + $0xe24] ss:$16 sps:$4 sm:$0xff]  }
 0x40a   :  { %6234 = vmatpush1.bf16.msra.mxu0 %v17912_v28  ;;  %v14931_v28 = vcombine.low %v5398_v61, %v5398_v61  ;;  %v18004_v61 = vld [vmem:[%s24487_s2 + $0xee0] ss:$16 sps:$4 sm:$0xff]  }
 0x40b   :  { %6340 = vmatpush1.bf16.msra.mxu1 %v17915_v42  ;;  %6235 = vmatprep.subr.bf16.mxu0 %v17920_v1  ;;  %v17972_v42 = vld [vmem:[%s24487_s2 + $0xe2c] ss:$16 sps:$4 sm:$0xff]   ;;  %v17967_v1 = vld [vmem:[%s24487_s2 + $0xe20] ss:$16 sps:$4 sm:$0xff]  }
 0x40c   :  { %6341 = vmatprep.subr.bf16.mxu1 %v17923_v62  ;;  %v5561_v62 = vrot.slane %v14931_v28, 3  ;;  %v18036_v28 = vld [vmem:[%s24487_s2 + $0xf84] ss:$16 sps:$4 sm:$0xff]  }
 0x40e   :  { %6236 = vmatpush1.bf16.msra.mxu0 %v17918_v63  ;;  %v17979_v63 = vld [vmem:[%s24487_s2 + $0xe4c] ss:$16 sps:$4 sm:$0xff]  }
 0x40f   :  { %6342 = vmatpush1.bf16.msra.mxu1 %v17921_v20  ;;  %6237 = vmatprep.subr.bf16.mxu0 %v17926_v0  ;;  %v17974_v20 = vld [vmem:[%s24487_s2 + $0xe40] ss:$16 sps:$4 sm:$0xff]   ;;  %v5562_v0 = vsel %vm1055_vm2, %v5550_v30, %v5561_v62  ;;  %v18025_v30 = vld [vmem:[%s24487_s2 + $0xf48] ss:$16 sps:$4 sm:$0xff]   ;;  %v18045_v62 = vld [vmem:[%s24487_s2 + $0xfac] ss:$16 sps:$4 sm:$0xff]  }
 0x410   :  { %6343 = vmatprep.subr.bf16.mxu1 %v17929_v16  ;;  %v17977_v16 = vld [vmem:[%s24487_s2 + $0xe48] ss:$16 sps:$4 sm:$0xff]  }
 0x412   :  { %6238 = vmatpush1.bf16.msra.mxu0 %v17924_v19  ;;  %v17982_v19 = vld [vmem:[%s24487_s2 + $0xe64] ss:$16 sps:$4 sm:$0xff]  }
 0x413   :  { %6344 = vmatpush1.bf16.msra.mxu1 %v17927_v43  ;;  %6239 = vmatprep.subr.bf16.mxu0 %v17932_v2  ;;  %v17985_v43 = vld [vmem:[%s24487_s2 + $0xe6c] ss:$16 sps:$4 sm:$0xff]   ;;  %v17980_v2 = vld [vmem:[%s24487_s2 + $0xe60] ss:$16 sps:$4 sm:$0xff]  }
 0x414   :  { %6345 = vmatprep.subr.bf16.mxu1 %v17935_v13  ;;  %v17983_v13 = vld [vmem:[%s24487_s2 + $0xe68] ss:$16 sps:$4 sm:$0xff]  }
 0x416   :  { %6240 = vmatpush1.bf16.msra.mxu0 %v17930_v21  ;;  %v17988_v21 = vld [vmem:[%s24487_s2 + $0xe84] ss:$16 sps:$4 sm:$0xff]  }
 0x417   :  { %6346 = vmatpush1.bf16.msra.mxu1 %v17933_v32  ;;  %6241 = vmatprep.subr.bf16.mxu0 %v17938_v51  ;;  %v17991_v32 = vld [vmem:[%s24487_s2 + $0xe8c] ss:$16 sps:$4 sm:$0xff]   ;;  %v17989_v51 = vld [vmem:[%s24487_s2 + $0xe88] ss:$16 sps:$4 sm:$0xff]  }
 0x418   :  { %6347 = vmatprep.subr.bf16.mxu1 %v17941_v22  ;;  %v17994_v22 = vld [vmem:[%s24487_s2 + $0xea4] ss:$16 sps:$4 sm:$0xff]  }
 0x41a   :  { %6242 = vmatpush1.bf16.msra.mxu0 %v17936_v25  ;;  %v17997_v25 = vld [vmem:[%s24487_s2 + $0xeac] ss:$16 sps:$4 sm:$0xff]  }
 0x41b   :  { %6348 = vmatpush1.bf16.msra.mxu1 %v17939_v31  ;;  %6243 = vmatprep.subr.bf16.mxu0 %v17944_v35  ;;  %v17992_v31 = vld [vmem:[%s24487_s2 + $0xea0] ss:$16 sps:$4 sm:$0xff]   ;;  %v17995_v35 = vld [vmem:[%s24487_s2 + $0xea8] ss:$16 sps:$4 sm:$0xff]  }
 0x41c   :  { %6349 = vmatprep.subr.bf16.mxu1 %v17947_v40  ;;  %v18000_v40 = vld [vmem:[%s24487_s2 + $0xec4] ss:$16 sps:$4 sm:$0xff]  }
 0x41e   :  { %6244 = vmatpush1.bf16.msra.mxu0 %v17942_v46  ;;  %v18003_v46 = vld [vmem:[%s24487_s2 + $0xecc] ss:$16 sps:$4 sm:$0xff]  }
 0x41f   :  { %6350 = vmatpush1.bf16.msra.mxu1 %v17945_v49  ;;  %6245 = vmatprep.subr.bf16.mxu0 %v17950_v50  ;;  %v17998_v49 = vld [vmem:[%s24487_s2 + $0xec0] ss:$16 sps:$4 sm:$0xff]   ;;  %v18001_v50 = vld [vmem:[%s24487_s2 + $0xec8] ss:$16 sps:$4 sm:$0xff]  }
 0x420   :  { %6351 = vmatprep.subr.bf16.mxu1 %v17953_v55  ;;  %v18006_v55 = vld [vmem:[%s24487_s2 + $0xee4] ss:$16 sps:$4 sm:$0xff]  }
 0x422   :  { %6246 = vmatpush1.bf16.msra.mxu0 %v17948_v47  ;;  %v18009_v47 = vld [vmem:[%s24487_s2 + $0xeec] ss:$16 sps:$4 sm:$0xff]  }
 0x423   :  { %6352 = vmatpush1.bf16.msra.mxu1 %v17951_v27  ;;  %6247 = vmatprep.subr.bf16.mxu0 %v17956_v17  ;;  %v18007_v27 = vld [vmem:[%s24487_s2 + $0xee8] ss:$16 sps:$4 sm:$0xff]   ;;  %v18012_v17 = vld [vmem:[%s24487_s2 + $0xf04] ss:$16 sps:$4 sm:$0xff]  }
 0x424   :  { %6353 = vmatprep.subr.bf16.mxu1 %v17959_v33  ;;  %v18013_v33 = vld [vmem:[%s24487_s2 + $0xf08] ss:$16 sps:$4 sm:$0xff]  }
 0x426   :  { %6248 = vmatpush1.bf16.msra.mxu0 %v17954_v18  ;;  %v18021_v18 = vld [vmem:[%s24487_s2 + $0xf2c] ss:$16 sps:$4 sm:$0xff]  }
 0x427   :  { %6354 = vmatpush1.bf16.msra.mxu1 %v17957_v56  ;;  %6270 = vmatprep.subr.bf16.mxu0 %v17962_v24  ;;  %v18016_v56 = vld [vmem:[%s24487_s2 + $0xf20] ss:$16 sps:$4 sm:$0xff]   ;;  %v18019_v24 = vld [vmem:[%s24487_s2 + $0xf28] ss:$16 sps:$4 sm:$0xff]  }
 0x428   :  { %6376 = vmatprep.subr.bf16.mxu1 %v17965_v38  ;;  %v18027_v38 = vld [vmem:[%s24487_s2 + $0xf4c] ss:$16 sps:$4 sm:$0xff]  }
 0x429   :  { %6250 = vmatmul.mubr.bf16.vlgmr.msra.gmra.mrb[12].mxu0 %v5551_v58 }
 0x42a   :  { %6356 = vmatmul.mubr.bf16.vlgmr.msra.gmra.mrb[12].mxu1 %v5551_v58  ;;  %6259 = vmatprep.mubr.bf16.mxu0 %v5564_v15  ;;  %v18033_v58 = vld [vmem:[%s24487_s2 + $0xf6c] ss:$16 sps:$4 sm:$0xff]  }
 0x42b   :  { %6271 = vmatpush1.bf16.msra.mxu0 %v17960_v57  ;;  %6365 = vmatprep.mubr.bf16.mxu1 %v5564_v15  ;;  %v18030_v57 = vld [vmem:[%s24487_s2 + $0xf64] ss:$16 sps:$4 sm:$0xff]   ;;  %v18039_v15 = vld [vmem:[%s24487_s2 + $0xf8c] ss:$16 sps:$4 sm:$0xff]  }
 0x42c   :  { %6377 = vmatpush1.bf16.msra.mxu1 %v17963_v23  ;;  %6272 = vmatprep.subr.bf16.mxu0 %v17969_v39  ;;  %v18028_v23 = vld [vmem:[%s24487_s2 + $0xf60] ss:$16 sps:$4 sm:$0xff]   ;;  %v18031_v39 = vld [vmem:[%s24487_s2 + $0xf68] ss:$16 sps:$4 sm:$0xff]  }
 0x42d   :  { %6378 = vmatprep.subr.bf16.mxu1 %v17972_v42  ;;  %v18034_v42 = vld [vmem:[%s24487_s2 + $0xf80] ss:$16 sps:$4 sm:$0xff]  }
 0x42f   :  { %6273 = vmatpush1.bf16.msra.mxu0 %v17967_v1  ;;  %v18037_v1 = vld [vmem:[%s24487_s2 + $0xf88] ss:$16 sps:$4 sm:$0xff]  }
 0x430   :  { %6379 = vmatpush1.bf16.msra.mxu1 %v17970_v9  ;;  %6274 = vmatprep.subr.bf16.mxu0 %v17976_v26  ;;  %v18042_v9 = vld [vmem:[%s24487_s2 + $0xfa4] ss:$16 sps:$4 sm:$0xff]   ;;  %v18040_v26 = vld [vmem:[%s24487_s2 + $0xfa0] ss:$16 sps:$4 sm:$0xff]  }
 0x431   :  { %6260 = vmatmul.mubr.bf16.gmra.mrb[16].mxu0 %v5562_v0  ;;  %6380 = vmatprep.subr.bf16.mxu1 %v17979_v63  ;;  %v18043_v63 = vld [vmem:[%s24487_s2 + $0xfa8] ss:$16 sps:$4 sm:$0xff]  }
 0x432   :  { %6366 = vmatmul.mubr.bf16.gmra.mrb[16].mxu1 %v5562_v0  ;;  %6302 = vmatprep.mubr.bf16.mxu0 %v20500_v48  ;;  %v18051_v0 = vld [vmem:[%s24487_s2 + $0xfcc] ss:$16 sps:$4 sm:$0xff]  }
 0x433   :  { %6275 = vmatpush1.bf16.msra.mxu0 %v17974_v20  ;;  %6408 = vmatprep.mubr.bf16.mxu1 %v20500_v48  ;;  %v17986_v48 = vld [vmem:[%s24487_s2 + $0xe80] ss:$16 sps:$4 sm:$0xff]   ;;  %v18048_v20 = vld [vmem:[%s24487_s2 + $0xfc4] ss:$16 sps:$4 sm:$0xff]  }
 0x434   :  { %6381 = vmatpush1.bf16.msra.mxu1 %v17977_v16  ;;  %6276 = vmatprep.subr.bf16.mxu0 %v17982_v19  ;;  %v18046_v16 = vld [vmem:[%s24487_s2 + $0xfc0] ss:$16 sps:$4 sm:$0xff]   ;;  %v5399_v19 = vld [vmem:[#allocation2 + $0x48] sm:$0x77] }
 0x435   :  { %6382 = vmatprep.subr.bf16.mxu1 %v17985_v43  ;;  %v18049_v43 = vld [vmem:[%s24487_s2 + $0xfc8] ss:$16 sps:$4 sm:$0xff]  }
 0x437   :  { %6277 = vmatpush1.bf16.msra.mxu0 %v17980_v2  ;;  %v18054_v2 = vld [vmem:[%s24487_s2 + $0xfe4] ss:$16 sps:$4 sm:$0xff]  }
 0x438   :  { %6383 = vmatpush1.bf16.msra.mxu1 %v17983_v13  ;;  %6278 = vmatprep.subr.bf16.mxu0 %v17988_v21  ;;  %v18057_v13 = vld [vmem:[%s24487_s2 + $0xfec] ss:$16 sps:$4 sm:$0xff]   ;;  %v14934_v21 = vcombine.high %v5399_v19, %v5399_v19 }
 0x439   :  { %6384 = vmatprep.subr.bf16.mxu1 %v17991_v32  ;;  %v18052_v32 = vld [vmem:[%s24487_s2 + $0xfe0] ss:$16 sps:$4 sm:$0xff]  }
 0x43b   :  { %6279 = vmatpush1.bf16.msra.mxu0 %v17986_v48  ;;  %v18055_v48 = vld [vmem:[%s24487_s2 + $0xfe8] ss:$16 sps:$4 sm:$0xff]  }
 0x43c   :  { %6385 = vmatpush1.bf16.msra.mxu1 %v17989_v51  ;;  %6280 = vmatprep.subr.bf16.mxu0 %v17994_v22  ;;  %v18060_v51 = vld [vmem:[%s24487_s2 + $0x1004] ss:$16 sps:$4 sm:$0xff]   ;;  %v18063_v22 = vld [vmem:[%s24487_s2 + $0x100c] ss:$16 sps:$4 sm:$0xff]  }
 0x43d   :  { %6386 = vmatprep.subr.bf16.mxu1 %v17997_v25  ;;  %v5567_v25 = vrot.slane %v14934_v21, 3  ;;  %v18131_v21 = vld [vmem:[%s24487_s2 + $0x116c] ss:$16 sps:$4 sm:$0xff]  }
 0x43f   :  { %6281 = vmatpush1.bf16.msra.mxu0 %v17992_v31  ;;  %v18058_v31 = vld [vmem:[%s24487_s2 + $0x1000] ss:$16 sps:$4 sm:$0xff]  }
 0x440   :  { %6387 = vmatpush1.bf16.msra.mxu1 %v17995_v35  ;;  %6282 = vmatprep.subr.bf16.mxu0 %v18000_v40  ;;  %v18061_v35 = vld [vmem:[%s24487_s2 + $0x1008] ss:$16 sps:$4 sm:$0xff]   ;;  %v18067_v40 = vld [vmem:[%s24487_s2 + $0x1024] ss:$16 sps:$4 sm:$0xff]  }
 0x441   :  { %6388 = vmatprep.subr.bf16.mxu1 %v18003_v46  ;;  %v14933_v46 = vcombine.low %v5399_v19, %v5399_v19  ;;  %v18125_v19 = vld [vmem:[%s24487_s2 + $0x114c] ss:$16 sps:$4 sm:$0xff]  }
 0x443   :  { %6283 = vmatpush1.bf16.msra.mxu0 %v17998_v49  ;;  %v5568_v49 = vsel %vm1055_vm2, %v5559_v52, %v5567_v25  ;;  %v5565_v52 = vrot.slane %v14933_v46, 3  ;;  %v18132_v25 = vld [vmem:[%s24487_s2 + $0x1180] ss:$16 sps:$4 sm:$0xff]  }
 0x444   :  { %6389 = vmatpush1.bf16.msra.mxu1 %v18001_v50  ;;  %6284 = vmatprep.subr.bf16.mxu0 %v18006_v55  ;;  %v18070_v50 = vld [vmem:[%s24487_s2 + $0x102c] ss:$16 sps:$4 sm:$0xff]   ;;  %v18065_v55 = vld [vmem:[%s24487_s2 + $0x1020] ss:$16 sps:$4 sm:$0xff]  }
 0x445   :  { %6390 = vmatprep.subr.bf16.mxu1 %v18009_v47  ;;  %v18074_v47 = vld [vmem:[%s24487_s2 + $0x1044] ss:$16 sps:$4 sm:$0xff]   ;;  %v18138_v46 = vld [vmem:[%s24487_s2 + $0x11a0] ss:$16 sps:$4 sm:$0xff]  }
 0x447   :  { %6285 = vmatpush1.bf16.msra.mxu0 %v18004_v61  ;;  %v18072_v61 = vld [vmem:[%s24487_s2 + $0x1040] ss:$16 sps:$4 sm:$0xff]  }
 0x448   :  { %6391 = vmatpush1.bf16.msra.mxu1 %v18007_v27  ;;  %6286 = vmatprep.subr.bf16.mxu0 %v18012_v17  ;;  %v5566_v27 = vsel %vm1055_vm2, %v5556_v53, %v5565_v52  ;;  %v18075_v17 = vld [vmem:[%s24487_s2 + $0x1048] ss:$16 sps:$4 sm:$0xff]  }
 0x449   :  { %6392 = vmatprep.subr.bf16.mxu1 %v18015_v37  ;;  %v18080_v37 = vld [vmem:[%s24487_s2 + $0x1064] ss:$16 sps:$4 sm:$0xff]   ;;  %v18081_v53 = vld [vmem:[%s24487_s2 + $0x1068] ss:$16 sps:$4 sm:$0xff]  }
 0x44a   :  { %v18147_v52 = vld [vmem:[%s24487_s2 + $0x11c8] ss:$16 sps:$4 sm:$0xff]  }
 0x44b   :  { %6287 = vmatpush1.bf16.msra.mxu0 %v18010_v44  ;;  %v18083_v44 = vld [vmem:[%s24487_s2 + $0x106c] ss:$16 sps:$4 sm:$0xff]  }
 0x44c   :  { %6393 = vmatpush1.bf16.msra.mxu1 %v18013_v33  ;;  %6288 = vmatprep.subr.bf16.mxu0 %v18018_v59  ;;  %v18086_v33 = vld [vmem:[%s24487_s2 + $0x1084] ss:$16 sps:$4 sm:$0xff]   ;;  %v18089_v59 = vld [vmem:[%s24487_s2 + $0x108c] ss:$16 sps:$4 sm:$0xff]  }
 0x44d   :  { %6394 = vmatprep.subr.bf16.mxu1 %v18021_v18  ;;  %v18087_v18 = vld [vmem:[%s24487_s2 + $0x1088] ss:$16 sps:$4 sm:$0xff]  }
 0x44f   :  { %6289 = vmatpush1.bf16.msra.mxu0 %v18016_v56  ;;  %v18092_v56 = vld [vmem:[%s24487_s2 + $0x10a4] ss:$16 sps:$4 sm:$0xff]  }
 0x450   :  { %6395 = vmatpush1.bf16.msra.mxu1 %v18019_v24  ;;  %6290 = vmatprep.subr.bf16.mxu0 %v18024_v36  ;;  %v18095_v24 = vld [vmem:[%s24487_s2 + $0x10ac] ss:$16 sps:$4 sm:$0xff]   ;;  %v18090_v36 = vld [vmem:[%s24487_s2 + $0x10a0] ss:$16 sps:$4 sm:$0xff]  }
 0x451   :  { %6396 = vmatprep.subr.bf16.mxu1 %v18027_v38  ;;  %v18093_v38 = vld [vmem:[%s24487_s2 + $0x10a8] ss:$16 sps:$4 sm:$0xff]  }
 0x453   :  { %6291 = vmatpush1.bf16.msra.mxu0 %v18022_v29  ;;  %v18098_v29 = vld [vmem:[%s24487_s2 + $0x10c4] ss:$16 sps:$4 sm:$0xff]  }
 0x454   :  { %6397 = vmatpush1.bf16.msra.mxu1 %v18025_v30  ;;  %6292 = vmatprep.subr.bf16.mxu0 %v18030_v57  ;;  %v18101_v30 = vld [vmem:[%s24487_s2 + $0x10cc] ss:$16 sps:$4 sm:$0xff]   ;;  %v18096_v57 = vld [vmem:[%s24487_s2 + $0x10c0] ss:$16 sps:$4 sm:$0xff]  }
 0x455   :  { %6398 = vmatprep.subr.bf16.mxu1 %v18033_v58  ;;  %v18099_v58 = vld [vmem:[%s24487_s2 + $0x10c8] ss:$16 sps:$4 sm:$0xff]  }
 0x457   :  { %6293 = vmatpush1.bf16.msra.mxu0 %v18028_v23  ;;  %v18104_v23 = vld [vmem:[%s24487_s2 + $0x10e4] ss:$16 sps:$4 sm:$0xff]  }
 0x458   :  { %6399 = vmatpush1.bf16.msra.mxu1 %v18031_v39  ;;  %6294 = vmatprep.subr.bf16.mxu0 %v18036_v28  ;;  %v18107_v39 = vld [vmem:[%s24487_s2 + $0x10ec] ss:$16 sps:$4 sm:$0xff]   ;;  %v18102_v28 = vld [vmem:[%s24487_s2 + $0x10e0] ss:$16 sps:$4 sm:$0xff]  }
 0x459   :  { %6400 = vmatprep.subr.bf16.mxu1 %v18039_v15  ;;  %v18105_v15 = vld [vmem:[%s24487_s2 + $0x10e8] ss:$16 sps:$4 sm:$0xff]  }
 0x45b   :  { %6295 = vmatpush1.bf16.msra.mxu0 %v18034_v42  ;;  %v18110_v42 = vld [vmem:[%s24487_s2 + $0x1104] ss:$16 sps:$4 sm:$0xff]  }
 0x45c   :  { %6401 = vmatpush1.bf16.msra.mxu1 %v18037_v1  ;;  %6296 = vmatprep.subr.bf16.mxu0 %v18042_v9  ;;  %v18113_v1 = vld [vmem:[%s24487_s2 + $0x110c] ss:$16 sps:$4 sm:$0xff]   ;;  %v18108_v9 = vld [vmem:[%s24487_s2 + $0x1100] ss:$16 sps:$4 sm:$0xff]  }
 0x45d   :  { %6402 = vmatprep.subr.bf16.mxu1 %v18045_v62  ;;  %v18111_v62 = vld [vmem:[%s24487_s2 + $0x1108] ss:$16 sps:$4 sm:$0xff]  }
 0x45f   :  { %6297 = vmatpush1.bf16.msra.mxu0 %v18040_v26  ;;  %v18116_v26 = vld [vmem:[%s24487_s2 + $0x1124] ss:$16 sps:$4 sm:$0xff]  }
 0x460   :  { %6403 = vmatpush1.bf16.msra.mxu1 %v18043_v63  ;;  %6298 = vmatprep.subr.bf16.mxu0 %v18048_v20  ;;  %v18119_v63 = vld [vmem:[%s24487_s2 + $0x112c] ss:$16 sps:$4 sm:$0xff]   ;;  %v18114_v20 = vld [vmem:[%s24487_s2 + $0x1120] ss:$16 sps:$4 sm:$0xff]  }
 0x461   :  { %6404 = vmatprep.subr.bf16.mxu1 %v18051_v0  ;;  %v18117_v0 = vld [vmem:[%s24487_s2 + $0x1128] ss:$16 sps:$4 sm:$0xff]  }
 0x463   :  { %6299 = vmatpush1.bf16.msra.mxu0 %v18046_v16  ;;  %v18122_v16 = vld [vmem:[%s24487_s2 + $0x1144] ss:$16 sps:$4 sm:$0xff]  }
 0x464   :  { %6405 = vmatpush1.bf16.msra.mxu1 %v18049_v43  ;;  %6300 = vmatprep.subr.bf16.mxu0 %v18054_v2  ;;  %v18120_v43 = vld [vmem:[%s24487_s2 + $0x1140] ss:$16 sps:$4 sm:$0xff]   ;;  %v18123_v2 = vld [vmem:[%s24487_s2 + $0x1148] ss:$16 sps:$4 sm:$0xff]  }
 0x465   :  { %6406 = vmatprep.subr.bf16.mxu1 %v18057_v13  ;;  %v18128_v13 = vld [vmem:[%s24487_s2 + $0x1164] ss:$16 sps:$4 sm:$0xff]  }
 0x467   :  { %6301 = vmatpush1.bf16.msra.mxu0 %v18052_v32  ;;  %v18126_v32 = vld [vmem:[%s24487_s2 + $0x1160] ss:$16 sps:$4 sm:$0xff]  }
 0x468   :  { %6407 = vmatpush1.bf16.msra.mxu1 %v18055_v48  ;;  %7238 = vmatprep.subr.bf16.mxu0 %v18060_v51  ;;  %v18129_v48 = vld [vmem:[%s24487_s2 + $0x1168] ss:$16 sps:$4 sm:$0xff]   ;;  %v18134_v51 = vld [vmem:[%s24487_s2 + $0x1184] ss:$16 sps:$4 sm:$0xff]  }
 0x469   :  { %7344 = vmatprep.subr.bf16.mxu1 %v18063_v22  ;;  %v18137_v22 = vld [vmem:[%s24487_s2 + $0x118c] ss:$16 sps:$4 sm:$0xff]  }
 0x46a   :  { %6303 = vmatmul.mubr.bf16.vlgmr.msra.gmra.mrb[12].mxu0 %v20505_v54 }
 0x46b   :  { %6409 = vmatmul.mubr.bf16.vlgmr.msra.gmra.mrb[12].mxu1 %v20505_v54  ;;  %6312 = vmatprep.mubr.bf16.mxu0 %v5568_v49  ;;  %v18077_v54 = vld [vmem:[%s24487_s2 + $0x104c] ss:$16 sps:$4 sm:$0xff]  }
 0x46c   :  { %6418 = vmatprep.mubr.bf16.mxu1 %v5568_v49  ;;  %7239 = vmatpush1.bf16.msra.mxu0 %v18058_v31  ;;  %v18135_v31 = vld [vmem:[%s24487_s2 + $0x1188] ss:$16 sps:$4 sm:$0xff]  }
 0x46d   :  { %7345 = vmatpush1.bf16.msra.mxu1 %v18061_v35  ;;  %7240 = vmatprep.subr.bf16.mxu0 %v18067_v40  ;;  %v18140_v35 = vld [vmem:[%s24487_s2 + $0x11a4] ss:$16 sps:$4 sm:$0xff]   ;;  %v18143_v40 = vld [vmem:[%s24487_s2 + $0x11ac] ss:$16 sps:$4 sm:$0xff]   ;;  %v18141_v49 = vld [vmem:[%s24487_s2 + $0x11a8] ss:$16 sps:$4 sm:$0xff]  }
 0x46e   :  { %7346 = vmatprep.subr.bf16.mxu1 %v18070_v50  ;;  %v18146_v50 = vld [vmem:[%s24487_s2 + $0x11c4] ss:$16 sps:$4 sm:$0xff]  }
 0x470   :  { %7241 = vmatpush1.bf16.msra.mxu0 %v18065_v55  ;;  %v18149_v55 = vld [vmem:[%s24487_s2 + $0x11cc] ss:$16 sps:$4 sm:$0xff]  }
 0x471   :  { %7347 = vmatpush1.bf16.msra.mxu1 %v18068_v14  ;;  %7242 = vmatprep.subr.bf16.mxu0 %v18074_v47  ;;  %v18144_v14 = vld [vmem:[%s24487_s2 + $0x11c0] ss:$16 sps:$4 sm:$0xff]   ;;  %v18152_v47 = vld [vmem:[%s24487_s2 + $0x11e4] ss:$16 sps:$4 sm:$0xff]  }
 0x472   :  { %6313 = vmatmul.mubr.bf16.gmra.mrb[16].mxu0 %v5566_v27  ;;  %7348 = vmatprep.subr.bf16.mxu1 %v18077_v54  ;;  %v18155_v54 = vld [vmem:[%s24487_s2 + $0x11ec] ss:$16 sps:$4 sm:$0xff]  }
 0x473   :  { %6419 = vmatmul.mubr.bf16.gmra.mrb[16].mxu1 %v5566_v27  ;;  %7270 = vmatprep.mubr.bf16.mxu0 %v20260_v6  ;;  %v18153_v27 = vld [vmem:[%s24487_s2 + $0x11e8] ss:$16 sps:$4 sm:$0xff]  }
 0x474   :  { %7243 = vmatpush1.bf16.msra.mxu0 %v18072_v61  ;;  %7376 = vmatprep.mubr.bf16.mxu1 %v20260_v6  ;;  %v18084_v6 = vld [vmem:[%s24487_s2 + $0x1080] ss:$16 sps:$4 sm:$0xff]  }
 0x475   :  { %7349 = vmatpush1.bf16.msra.mxu1 %v18075_v17  ;;  %7244 = vmatprep.subr.bf16.mxu0 %v18080_v37  ;;  %v18150_v61 = vld [vmem:[%s24487_s2 + $0x11e0] ss:$16 sps:$4 sm:$0xff]   ;;  %v18158_v17 = vld [vmem:[%s24487_s2 + $0x1204] ss:$16 sps:$4 sm:$0xff]   ;;  %v18161_v37 = vld [vmem:[%s24487_s2 + $0x120c] ss:$16 sps:$4 sm:$0xff]  }
 0x476   :  { %7350 = vmatprep.subr.bf16.mxu1 %v18083_v44  ;;  %v6445_v44 = vld [vmem:[#allocation2 + $0x40] sm:$0xff] }
 0x478   :  { %7245 = vmatpush1.bf16.msra.mxu0 %v18078_v34  ;;  %v18156_v34 = vld [vmem:[%s24487_s2 + $0x1200] ss:$16 sps:$4 sm:$0xff]  }
 0x479   :  { %7351 = vmatpush1.bf16.msra.mxu1 %v18081_v53  ;;  %7246 = vmatprep.subr.bf16.mxu0 %v18086_v33  ;;  %v18159_v53 = vld [vmem:[%s24487_s2 + $0x1208] ss:$16 sps:$4 sm:$0xff]   ;;  %v19256_v33 = vld [vmem:[#allocation2 + $0x30] sm:$0xff] }
 0x47a   :  { %7352 = vmatprep.subr.bf16.mxu1 %v18089_v59  ;;  %v15196_v59 = vcombine.high %v19256_v33, %v6445_v44 }
 0x47c   :  { %7247 = vmatpush1.bf16.msra.mxu0 %v18084_v6  ;;  %v18164_v6 = vld [vmem:[%s24487_s2 + $0x1224] ss:$16 sps:$4 sm:$0xff]  }
 0x47d   :  { %7353 = vmatpush1.bf16.msra.mxu1 %v18087_v18  ;;  %7248 = vmatprep.subr.bf16.mxu0 %v18092_v56  ;;  %v18167_v18 = vld [vmem:[%s24487_s2 + $0x122c] ss:$16 sps:$4 sm:$0xff]   ;;  %v18162_v56 = vld [vmem:[%s24487_s2 + $0x1220] ss:$16 sps:$4 sm:$0xff]  }
 0x47e   :  { %7354 = vmatprep.subr.bf16.mxu1 %v18095_v24  ;;  %v18165_v24 = vld [vmem:[%s24487_s2 + $0x1228] ss:$16 sps:$4 sm:$0xff]  }
 0x480   :  { %7249 = vmatpush1.bf16.msra.mxu0 %v18090_v36  ;;  %v18170_v36 = vld [vmem:[%s24487_s2 + $0x1244] ss:$16 sps:$4 sm:$0xff]  }
 0x481   :  { %7355 = vmatpush1.bf16.msra.mxu1 %v18093_v38  ;;  %7250 = vmatprep.subr.bf16.mxu0 %v18098_v29  ;;  %v15195_v38 = vcombine.low %v19256_v33, %v6445_v44  ;;  %v18168_v29 = vld [vmem:[%s24487_s2 + $0x1240] ss:$16 sps:$4 sm:$0xff]   ;;  %v18239_v44 = vld [vmem:[%s24487_s2 + $0x13ac] ss:$16 sps:$4 sm:$0xff]   ;;  %v18242_v33 = vld [vmem:[%s24487_s2 + $0x13c4] ss:$16 sps:$4 sm:$0xff]  }
 0x482   :  { %7356 = vmatprep.subr.bf16.mxu1 %v18101_v30  ;;  %v18171_v30 = vld [vmem:[%s24487_s2 + $0x1248] ss:$16 sps:$4 sm:$0xff]  }
 0x484   :  { %7251 = vmatpush1.bf16.msra.mxu0 %v18096_v57  ;;  %v18176_v57 = vld [vmem:[%s24487_s2 + $0x1264] ss:$16 sps:$4 sm:$0xff]  }
 0x485   :  { %7357 = vmatpush1.bf16.msra.mxu1 %v18099_v58  ;;  %7252 = vmatprep.subr.bf16.mxu0 %v18104_v23  ;;  %v18179_v58 = vld [vmem:[%s24487_s2 + $0x126c] ss:$16 sps:$4 sm:$0xff]   ;;  %v18174_v23 = vld [vmem:[%s24487_s2 + $0x1260] ss:$16 sps:$4 sm:$0xff]  }
 0x486   :  { %7358 = vmatprep.subr.bf16.mxu1 %v18107_v39  ;;  %v18177_v39 = vld [vmem:[%s24487_s2 + $0x1268] ss:$16 sps:$4 sm:$0xff]  }
 0x488   :  { %7253 = vmatpush1.bf16.msra.mxu0 %v18102_v28  ;;  %v18182_v28 = vld [vmem:[%s24487_s2 + $0x1284] ss:$16 sps:$4 sm:$0xff]  }
 0x489   :  { %7359 = vmatpush1.bf16.msra.mxu1 %v18105_v15  ;;  %7254 = vmatprep.subr.bf16.mxu0 %v18110_v42  ;;  %v18185_v15 = vld [vmem:[%s24487_s2 + $0x128c] ss:$16 sps:$4 sm:$0xff]   ;;  %v18183_v42 = vld [vmem:[%s24487_s2 + $0x1288] ss:$16 sps:$4 sm:$0xff]  }
 0x48a   :  { %7360 = vmatprep.subr.bf16.mxu1 %v18113_v1  ;;  %v18188_v1 = vld [vmem:[%s24487_s2 + $0x12a4] ss:$16 sps:$4 sm:$0xff]  }
 0x48c   :  { %7255 = vmatpush1.bf16.msra.mxu0 %v18108_v9  ;;  %v18191_v9 = vld [vmem:[%s24487_s2 + $0x12ac] ss:$16 sps:$4 sm:$0xff]  }
 0x48d   :  { %7361 = vmatpush1.bf16.msra.mxu1 %v18111_v62  ;;  %7256 = vmatprep.subr.bf16.mxu0 %v18116_v26  ;;  %v18186_v62 = vld [vmem:[%s24487_s2 + $0x12a0] ss:$16 sps:$4 sm:$0xff]   ;;  %v18189_v26 = vld [vmem:[%s24487_s2 + $0x12a8] ss:$16 sps:$4 sm:$0xff]  }
 0x48e   :  { %7362 = vmatprep.subr.bf16.mxu1 %v18119_v63  ;;  %v18194_v63 = vld [vmem:[%s24487_s2 + $0x12c4] ss:$16 sps:$4 sm:$0xff]  }
 0x490   :  { %7257 = vmatpush1.bf16.msra.mxu0 %v18114_v20  ;;  %v18197_v20 = vld [vmem:[%s24487_s2 + $0x12cc] ss:$16 sps:$4 sm:$0xff]  }
 0x491   :  { %7363 = vmatpush1.bf16.msra.mxu1 %v18117_v0  ;;  %7258 = vmatprep.subr.bf16.mxu0 %v18122_v16  ;;  %v18192_v0 = vld [vmem:[%s24487_s2 + $0x12c0] ss:$16 sps:$4 sm:$0xff]   ;;  %v18195_v16 = vld [vmem:[%s24487_s2 + $0x12c8] ss:$16 sps:$4 sm:$0xff]  }
 0x492   :  { %7364 = vmatprep.subr.bf16.mxu1 %v18125_v19  ;;  %v18200_v19 = vld [vmem:[%s24487_s2 + $0x12e4] ss:$16 sps:$4 sm:$0xff]  }
 0x494   :  { %7259 = vmatpush1.bf16.msra.mxu0 %v18120_v43  ;;  %v18203_v43 = vld [vmem:[%s24487_s2 + $0x12ec] ss:$16 sps:$4 sm:$0xff]  }
 0x495   :  { %7365 = vmatpush1.bf16.msra.mxu1 %v18123_v2  ;;  %7260 = vmatprep.subr.bf16.mxu0 %v18128_v13  ;;  %v18198_v2 = vld [vmem:[%s24487_s2 + $0x12e0] ss:$16 sps:$4 sm:$0xff]   ;;  %v18201_v13 = vld [vmem:[%s24487_s2 + $0x12e8] ss:$16 sps:$4 sm:$0xff]  }
 0x496   :  { %7366 = vmatprep.subr.bf16.mxu1 %v18131_v21  ;;  %v18206_v21 = vld [vmem:[%s24487_s2 + $0x1304] ss:$16 sps:$4 sm:$0xff]  }
 0x498   :  { %7261 = vmatpush1.bf16.msra.mxu0 %v18126_v32  ;;  %v18209_v32 = vld [vmem:[%s24487_s2 + $0x130c] ss:$16 sps:$4 sm:$0xff]  }
 0x499   :  { %7367 = vmatpush1.bf16.msra.mxu1 %v18129_v48  ;;  %7262 = vmatprep.subr.bf16.mxu0 %v18134_v51  ;;  %v18204_v48 = vld [vmem:[%s24487_s2 + $0x1300] ss:$16 sps:$4 sm:$0xff]   ;;  %v18207_v51 = vld [vmem:[%s24487_s2 + $0x1308] ss:$16 sps:$4 sm:$0xff]  }
 0x49a   :  { %7368 = vmatprep.subr.bf16.mxu1 %v18137_v22  ;;  %v18212_v22 = vld [vmem:[%s24487_s2 + $0x1324] ss:$16 sps:$4 sm:$0xff]  }
 0x49c   :  { %7263 = vmatpush1.bf16.msra.mxu0 %v18132_v25  ;;  %v18215_v25 = vld [vmem:[%s24487_s2 + $0x132c] ss:$16 sps:$4 sm:$0xff]  }
 0x49d   :  { %7369 = vmatpush1.bf16.msra.mxu1 %v18135_v31  ;;  %7264 = vmatprep.subr.bf16.mxu0 %v18140_v35  ;;  %v18210_v31 = vld [vmem:[%s24487_s2 + $0x1320] ss:$16 sps:$4 sm:$0xff]   ;;  %v18213_v35 = vld [vmem:[%s24487_s2 + $0x1328] ss:$16 sps:$4 sm:$0xff]  }
 0x49e   :  { %7370 = vmatprep.subr.bf16.mxu1 %v18143_v40  ;;  %v18218_v40 = vld [vmem:[%s24487_s2 + $0x1344] ss:$16 sps:$4 sm:$0xff]  }
 0x4a0   :  { %7265 = vmatpush1.bf16.msra.mxu0 %v18138_v46  ;;  %v18221_v46 = vld [vmem:[%s24487_s2 + $0x134c] ss:$16 sps:$4 sm:$0xff]  }
 0x4a1   :  { %7371 = vmatpush1.bf16.msra.mxu1 %v18141_v49  ;;  %7266 = vmatprep.subr.bf16.mxu0 %v18146_v50  ;;  %v18216_v49 = vld [vmem:[%s24487_s2 + $0x1340] ss:$16 sps:$4 sm:$0xff]   ;;  %v18219_v50 = vld [vmem:[%s24487_s2 + $0x1348] ss:$16 sps:$4 sm:$0xff]  }
 0x4a2   :  { %7372 = vmatprep.subr.bf16.mxu1 %v18149_v55  ;;  %v18224_v55 = vld [vmem:[%s24487_s2 + $0x1364] ss:$16 sps:$4 sm:$0xff]  }
 0x4a4   :  { %7267 = vmatpush1.bf16.msra.mxu0 %v18144_v14  ;;  %v18227_v14 = vld [vmem:[%s24487_s2 + $0x136c] ss:$16 sps:$4 sm:$0xff]  }
 0x4a5   :  { %7373 = vmatpush1.bf16.msra.mxu1 %v18147_v52  ;;  %7268 = vmatprep.subr.bf16.mxu0 %v18152_v47  ;;  %v18222_v52 = vld [vmem:[%s24487_s2 + $0x1360] ss:$16 sps:$4 sm:$0xff]   ;;  %v18225_v47 = vld [vmem:[%s24487_s2 + $0x1368] ss:$16 sps:$4 sm:$0xff]  }
 0x4a6   :  { %7374 = vmatprep.subr.bf16.mxu1 %v18155_v54  ;;  %v18230_v54 = vld [vmem:[%s24487_s2 + $0x1384] ss:$16 sps:$4 sm:$0xff]  }
 0x4a8   :  { %7269 = vmatpush1.bf16.msra.mxu0 %v18150_v61  ;;  %v18233_v61 = vld [vmem:[%s24487_s2 + $0x138c] ss:$16 sps:$4 sm:$0xff]  }
 0x4a9   :  { %7375 = vmatpush1.bf16.msra.mxu1 %v18153_v27  ;;  %7291 = vmatprep.subr.bf16.mxu0 %v18158_v17  ;;  %v18228_v27 = vld [vmem:[%s24487_s2 + $0x1380] ss:$16 sps:$4 sm:$0xff]   ;;  %v18231_v17 = vld [vmem:[%s24487_s2 + $0x1388] ss:$16 sps:$4 sm:$0xff]  }
 0x4aa   :  { %7397 = vmatprep.subr.bf16.mxu1 %v18161_v37  ;;  %v18236_v37 = vld [vmem:[%s24487_s2 + $0x13a4] ss:$16 sps:$4 sm:$0xff]  }
 0x4ab   :  { %7271 = vmatmul.mubr.bf16.vlgmr.msra.gmra.mrb[12].mxu0 %v20263_v7 }
 0x4ac   :  { %7377 = vmatmul.mubr.bf16.vlgmr.msra.gmra.mrb[12].mxu1 %v20263_v7  ;;  %7280 = vmatprep.mubr.bf16.mxu0 %v15196_v59  ;;  %v18173_v7 = vld [vmem:[%s24487_s2 + $0x124c] ss:$16 sps:$4 sm:$0xff]  }
 0x4ad   :  { %7292 = vmatpush1.bf16.msra.mxu0 %v18156_v34  ;;  %7386 = vmatprep.mubr.bf16.mxu1 %v15196_v59  ;;  %v18234_v34 = vld [vmem:[%s24487_s2 + $0x13a0] ss:$16 sps:$4 sm:$0xff]   ;;  %v18245_v59 = vld [vmem:[%s24487_s2 + $0x13cc] ss:$16 sps:$4 sm:$0xff]  }
 0x4ae   :  { %7398 = vmatpush1.bf16.msra.mxu1 %v18159_v53  ;;  %7293 = vmatprep.subr.bf16.mxu0 %v18164_v6  ;;  %v18237_v53 = vld [vmem:[%s24487_s2 + $0x13a8] ss:$16 sps:$4 sm:$0xff]   ;;  %v18240_v6 = vld [vmem:[%s24487_s2 + $0x13c0] ss:$16 sps:$4 sm:$0xff]  }
 0x4af   :  { %7399 = vmatprep.subr.bf16.mxu1 %v18167_v18  ;;  %v18243_v18 = vld [vmem:[%s24487_s2 + $0x13c8] ss:$16 sps:$4 sm:$0xff]  }
 0x4b1   :  { %7294 = vmatpush1.bf16.msra.mxu0 %v18162_v56  ;;  %v18248_v56 = vld [vmem:[%s24487_s2 + $0x13e4] ss:$16 sps:$4 sm:$0xff]  }
 0x4b2   :  { %7400 = vmatpush1.bf16.msra.mxu1 %v18165_v24  ;;  %7295 = vmatprep.subr.bf16.mxu0 %v18170_v36  ;;  %v18251_v24 = vld [vmem:[%s24487_s2 + $0x13ec] ss:$16 sps:$4 sm:$0xff]   ;;  %v18246_v36 = vld [vmem:[%s24487_s2 + $0x13e0] ss:$16 sps:$4 sm:$0xff]  }
 0x4b3   :  { %7281 = vmatmul.mubr.bf16.gmra.mrb[16].mxu0 %v15195_v38  ;;  %7401 = vmatprep.subr.bf16.mxu1 %v18173_v7  ;;  %v18249_v7 = vld [vmem:[%s24487_s2 + $0x13e8] ss:$16 sps:$4 sm:$0xff]  }
 0x4b4   :  { %7387 = vmatmul.mubr.bf16.gmra.mrb[16].mxu1 %v15195_v38  ;;  %7323 = vmatprep.mubr.bf16.mxu0 %v20268_v10  ;;  %v6446_v38 = vld [vmem:[#allocation2 + $0x48] sm:$0xff] }
 0x4b5   :  { %7296 = vmatpush1.bf16.msra.mxu0 %v18168_v29  ;;  %7429 = vmatprep.mubr.bf16.mxu1 %v20268_v10  ;;  %v18180_v10 = vld [vmem:[%s24487_s2 + $0x1280] ss:$16 sps:$4 sm:$0xff]   ;;  %v19257_v29 = vld [vmem:[#allocation2 + $0x38] sm:$0xff] }
 0x4b6   :  { %7402 = vmatpush1.bf16.msra.mxu1 %v18171_v30  ;;  %7297 = vmatprep.subr.bf16.mxu0 %v18176_v57  ;;  %v15198_v30 = vcombine.high %v19257_v29, %v6446_v38  ;;  %v15197_v57 = vcombine.low %v19257_v29, %v6446_v38  ;;  %v18258_v38 = vld [vmem:[%s24490_s3 + $0x420] ss:$16 sps:$4 sm:$0xff]   ;;  %v18260_v29 = vld [vmem:[%s24490_s3 + $0x424] ss:$16 sps:$4 sm:$0xff]  }
 0x4b7   :  { %7403 = vmatprep.subr.bf16.mxu1 %v18179_v58 }
 0x4b9   :  { %7298 = vmatpush1.bf16.msra.mxu0 %v18174_v23 }
 0x4ba   :  { %7404 = vmatpush1.bf16.msra.mxu1 %v18177_v39  ;;  %7299 = vmatprep.subr.bf16.mxu0 %v18182_v28 }
 0x4bb   :  { %7405 = vmatprep.subr.bf16.mxu1 %v18185_v15 }
 0x4bd   :  { %7300 = vmatpush1.bf16.msra.mxu0 %v18180_v10 }
 0x4be   :  { %7406 = vmatpush1.bf16.msra.mxu1 %v18183_v42  ;;  %7301 = vmatprep.subr.bf16.mxu0 %v18188_v1 }
 0x4bf   :  { %7407 = vmatprep.subr.bf16.mxu1 %v18191_v9 }
 0x4c1   :  { %7302 = vmatpush1.bf16.msra.mxu0 %v18186_v62 }
 0x4c2   :  { %7408 = vmatpush1.bf16.msra.mxu1 %v18189_v26  ;;  %7303 = vmatprep.subr.bf16.mxu0 %v18194_v63 }
 0x4c3   :  { %7409 = vmatprep.subr.bf16.mxu1 %v18197_v20 }
 0x4c5   :  { %7304 = vmatpush1.bf16.msra.mxu0 %v18192_v0 }
 0x4c6   :  { %7410 = vmatpush1.bf16.msra.mxu1 %v18195_v16  ;;  %7305 = vmatprep.subr.bf16.mxu0 %v18200_v19 }
 0x4c7   :  { %7411 = vmatprep.subr.bf16.mxu1 %v18203_v43 }
 0x4c9   :  { %7306 = vmatpush1.bf16.msra.mxu0 %v18198_v2 }
 0x4ca   :  { %7412 = vmatpush1.bf16.msra.mxu1 %v18201_v13  ;;  %7307 = vmatprep.subr.bf16.mxu0 %v18206_v21 }
 0x4cb   :  { %7413 = vmatprep.subr.bf16.mxu1 %v18209_v32 }
 0x4cd   :  { %7308 = vmatpush1.bf16.msra.mxu0 %v18204_v48 }
 0x4ce   :  { %7414 = vmatpush1.bf16.msra.mxu1 %v18207_v51  ;;  %7309 = vmatprep.subr.bf16.mxu0 %v18212_v22 }
 0x4cf   :  { %7415 = vmatprep.subr.bf16.mxu1 %v18215_v25 }
 0x4d1   :  { %7310 = vmatpush1.bf16.msra.mxu0 %v18210_v31 }
 0x4d2   :  { %7416 = vmatpush1.bf16.msra.mxu1 %v18213_v35  ;;  %7311 = vmatprep.subr.bf16.mxu0 %v18218_v40 }
 0x4d3   :  { %7417 = vmatprep.subr.bf16.mxu1 %v18221_v46 }
 0x4d5   :  { %7312 = vmatpush1.bf16.msra.mxu0 %v18216_v49 }
 0x4d6   :  { %7418 = vmatpush1.bf16.msra.mxu1 %v18219_v50  ;;  %7313 = vmatprep.subr.bf16.mxu0 %v18224_v55 }
 0x4d7   :  { %7419 = vmatprep.subr.bf16.mxu1 %v18227_v14 }
 0x4d9   :  { %7314 = vmatpush1.bf16.msra.mxu0 %v18222_v52 }
 0x4da   :  { %7420 = vmatpush1.bf16.msra.mxu1 %v18225_v47  ;;  %7315 = vmatprep.subr.bf16.mxu0 %v18230_v54 }
 0x4db   :  { %7421 = vmatprep.subr.bf16.mxu1 %v18233_v61 }
 0x4dd   :  { %7316 = vmatpush1.bf16.msra.mxu0 %v18228_v27 }
 0x4de   :  { %7422 = vmatpush1.bf16.msra.mxu1 %v18231_v17  ;;  %7317 = vmatprep.subr.bf16.mxu0 %v18236_v37 }
 0x4df   :  { %7423 = vmatprep.subr.bf16.mxu1 %v18239_v44 }
 0x4e1   :  { %7318 = vmatpush1.bf16.msra.mxu0 %v18234_v34 }
 0x4e2   :  { %7424 = vmatpush1.bf16.msra.mxu1 %v18237_v53  ;;  %7319 = vmatprep.subr.bf16.mxu0 %v18242_v33 }
 0x4e3   :  { %7425 = vmatprep.subr.bf16.mxu1 %v18245_v59 }
 0x4e5   :  { %7320 = vmatpush1.bf16.msra.mxu0 %v18240_v6 }
 0x4e6   :  { %7426 = vmatpush1.bf16.msra.mxu1 %v18243_v18  ;;  %7321 = vmatprep.subr.bf16.mxu0 %v18248_v56  ;;  %v18252_v56 = vld [vmem:[%s24490_s3 + $0x400] ss:$16 sps:$4 sm:$0xff]  }
 0x4e7   :  { %7427 = vmatprep.subr.bf16.mxu1 %v18251_v24  ;;  %v18254_v24 = vld [vmem:[%s24490_s3 + $0x404] ss:$16 sps:$4 sm:$0xff]  }
 0x4e9   :  { %7322 = vmatpush1.bf16.msra.mxu0 %v18246_v36  ;;  %v18255_v36 = vld [vmem:[%s24490_s3 + $0x408] ss:$16 sps:$4 sm:$0xff]  }
 0x4ea   :  { %7428 = vmatpush1.bf16.msra.mxu1 %v18249_v7  ;;  %v18257_v7 = vld [vmem:[%s24490_s3 + $0x40c] ss:$16 sps:$4 sm:$0xff]  }
 0x4ec   :  { %7324 = vmatmul.mubr.bf16.vlgmr.msra.gmra.mrb[12].mxu0 %v20271_v11 }
 0x4ed   :  { %7430 = vmatmul.mubr.bf16.vlgmr.msra.gmra.mrb[12].mxu1 %v20271_v11  ;;  %7333 = vmatprep.mubr.bf16.mxu0 %v15198_v30 }
 0x4ee   :  { %7439 = vmatprep.mubr.bf16.mxu1 %v15198_v30  ;;  %v18261_v30 = vld [vmem:[%s24490_s3 + $0x428] ss:$16 sps:$4 sm:$0xff]  }
 0x4f4   :  { %7334 = vmatmul.mubr.bf16.gmra.mrb[16].mxu0 %v15197_v57 }
 0x4f5   :  { %7440 = vmatmul.mubr.bf16.gmra.mrb[16].mxu1 %v15197_v57  ;;  %7562 = vmatprep.mubr.f32.mxu0 %v19266_v12  ;;  %v18263_v57 = vld [vmem:[%s24490_s3 + $0x42c] ss:$16 sps:$4 sm:$0xff]  }
 0x4f6   :  { %7633 = vmatprep.mubr.f32.mxu1 %v19266_v12 }
 0x5bf   :  { %v22130_v58 = vpop.f32.mrb[12].mxu0 }
 0x5c0   :  { %v22132_v23 = vpop.f32.mrb[12].mxu1  ;;  %v22134_v39 = vpop.f32.mrb[13].mxu0  ;;  %v7640_v28 = vmul.f32 %v22130_v58, %v22130_v58 }
 0x5c1   :  { %v22138_v15 = vpop.f32.mrb[13].mxu1  ;;  %v22140_v11 = vpop.f32.mrb[14].mxu0  ;;  %v7642_v10 = vmul.f32 %v22132_v23, %v22132_v23  ;;  %v7641_v42 = vmul.f32 %v22134_v39, %v22134_v39 }
 0x5c2   :  { %v16605_v1 = vpack.c.bf16 %v22140_v11, %v22130_v58  ;;  %v7644_v9 = vmul.f32 %v22140_v11, %v22140_v11  ;;  %v22150_v62 = vpop.f32.mrb[14].mxu1  ;;  %v22152_v26 = vpop.f32.mrb[15].mxu0  ;;  %v7643_v43 = vmul.f32 %v22138_v15, %v22138_v15 }
 0x5c3   :  { %v16613_v63 = vpack.c.bf16 %v22150_v62, %v22132_v23  ;;  %v7646_v20 = vmul.f32 %v22150_v62, %v22150_v62  ;;  %v16603_v0 = vpack.c.bf16 %v22152_v26, %v22134_v39  ;;  %v7645_v16 = vmul.f32 %v22152_v26, %v22152_v26  ;;  %v22162_v19 = vpop.f32.mrb[15].mxu1 }
 0x5c4   :  { %v16621_v2 = vpack.c.bf16 %v7644_v9, %v7640_v28  ;;  %v16611_v13 = vpack.c.bf16 %v22162_v19, %v22138_v15  ;;  %v7647_v21 = vmul.f32 %v22162_v19, %v22162_v19  ;;  %v18264_v28 = vld [vmem:[%s24490_s3 + $0x440] ss:$16 sps:$4 sm:$0xff]   ;;  %v18272_v9 = vld [vmem:[%s24490_s3 + $0x464] ss:$16 sps:$4 sm:$0xff]  }
 0x5c5   :  { %v16629_v32 = vpack.c.bf16 %v7646_v20, %v7642_v10  ;;  %16604 = vmatprep.subr.bf16.mxu0 %v16603_v0  ;;  %v16619_v48 = vpack.c.bf16 %v7645_v16, %v7641_v42  ;;  %v18266_v10 = vld [vmem:[%s24490_s3 + $0x444] ss:$16 sps:$4 sm:$0xff]   ;;  %v18267_v42 = vld [vmem:[%s24490_s3 + $0x448] ss:$16 sps:$4 sm:$0xff]   ;;  %v18270_v20 = vld [vmem:[%s24490_s3 + $0x460] ss:$16 sps:$4 sm:$0xff]  }
 0x5c6   :  { %16612 = vmatprep.subr.bf16.mxu1 %v16611_v13  ;;  %16606 = vmatpush1.bf16.msra.mxu0 %v16605_v1  ;;  %v16627_v51 = vpack.c.bf16 %v7647_v21, %v7643_v43  ;;  %v18269_v1 = vld [vmem:[%s24490_s3 + $0x44c] ss:$16 sps:$4 sm:$0xff]   ;;  %v18273_v0 = vld [vmem:[%s24490_s3 + $0x468] ss:$16 sps:$4 sm:$0xff]   ;;  %v18278_v16 = vld [vmem:[%s24490_s3 + $0x484] ss:$16 sps:$4 sm:$0xff]  }
 0x5c7   :  { %16614 = vmatpush1.bf16.msra.mxu1 %v16613_v63  ;;  %v22170_v22 = vpop.f32.mrb[16].mxu0  ;;  %v18275_v63 = vld [vmem:[%s24490_s3 + $0x46c] ss:$16 sps:$4 sm:$0xff]   ;;  %v18279_v13 = vld [vmem:[%s24490_s3 + $0x488] ss:$16 sps:$4 sm:$0xff]  }
 0x5c8   :  { %v22172_v25 = vpop.f32.mrb[16].mxu1  ;;  %v22174_v31 = vpop.f32.mrb[17].mxu0  ;;  %v7648_v35 = vmul.f32 %v22170_v22, %v22170_v22  ;;  %v18281_v43 = vld [vmem:[%s24490_s3 + $0x48c] ss:$16 sps:$4 sm:$0xff]   ;;  %v18284_v21 = vld [vmem:[%s24490_s3 + $0x4a4] ss:$16 sps:$4 sm:$0xff]  }
 0x5c9   :  { %v22178_v40 = vpop.f32.mrb[17].mxu1  ;;  %v22180_v46 = vpop.f32.mrb[18].mxu0  ;;  %v7650_v49 = vmul.f32 %v22172_v25, %v22172_v25  ;;  %v7649_v50 = vmul.f32 %v22174_v31, %v22174_v31 }
 0x5ca   :  { %v16609_v55 = vpack.c.bf16 %v22180_v46, %v22170_v22  ;;  %v7652_v14 = vmul.f32 %v22180_v46, %v22180_v46  ;;  %v22190_v52 = vpop.f32.mrb[18].mxu1  ;;  %v22192_v47 = vpop.f32.mrb[19].mxu0  ;;  %v7651_v44 = vmul.f32 %v22178_v40, %v22178_v40 }
 0x5cb   :  { %v16617_v54 = vpack.c.bf16 %v22190_v52, %v22172_v25  ;;  %v7654_v61 = vmul.f32 %v22190_v52, %v22190_v52  ;;  %v16607_v27 = vpack.c.bf16 %v22192_v47, %v22174_v31  ;;  %v7653_v17 = vmul.f32 %v22192_v47, %v22192_v47  ;;  %v22202_v37 = vpop.f32.mrb[19].mxu1 }
 0x5cc   :  { %v16625_v34 = vpack.c.bf16 %v7652_v14, %v7648_v35  ;;  %v16615_v53 = vpack.c.bf16 %v22202_v37, %v22178_v40  ;;  %v7655_v33 = vmul.f32 %v22202_v37, %v22202_v37  ;;  %v18290_v35 = vld [vmem:[%s24490_s3 + $0x4c4] ss:$16 sps:$4 sm:$0xff]  }
 0x5cd   :  { %v16633_v59 = vpack.c.bf16 %v7654_v61, %v7650_v49  ;;  %16608 = vmatprep.subr.bf16.mxu0 %v16607_v27  ;;  %v16623_v6 = vpack.c.bf16 %v7653_v17, %v7649_v50  ;;  %v18293_v49 = vld [vmem:[%s24490_s3 + $0x4cc] ss:$16 sps:$4 sm:$0xff]   ;;  %v18288_v50 = vld [vmem:[%s24490_s3 + $0x4c0] ss:$16 sps:$4 sm:$0xff]   ;;  %v18296_v14 = vld [vmem:[%s24490_s3 + $0x4e4] ss:$16 sps:$4 sm:$0xff]  }
 0x5ce   :  { %16616 = vmatprep.subr.bf16.mxu1 %v16615_v53  ;;  %16610 = vmatpush1.bf16.msra.mxu0 %v16609_v55  ;;  %v16631_v18 = vpack.c.bf16 %v7655_v33, %v7651_v44  ;;  %v18291_v55 = vld [vmem:[%s24490_s3 + $0x4c8] ss:$16 sps:$4 sm:$0xff]   ;;  %v18294_v61 = vld [vmem:[%s24490_s3 + $0x4e0] ss:$16 sps:$4 sm:$0xff]   ;;  %v18302_v17 = vld [vmem:[%s24490_s3 + $0x504] ss:$16 sps:$4 sm:$0xff]  }
 0x5cf   :  { %16618 = vmatpush1.bf16.msra.mxu1 %v16617_v54  ;;  %16620 = vmatprep.subr.bf16.mxu0 %v16619_v48  ;;  %v18282_v48 = vld [vmem:[%s24490_s3 + $0x4a0] ss:$16 sps:$4 sm:$0xff]   ;;  %v18299_v54 = vld [vmem:[%s24490_s3 + $0x4ec] ss:$16 sps:$4 sm:$0xff]   ;;  %v18297_v27 = vld [vmem:[%s24490_s3 + $0x4e8] ss:$16 sps:$4 sm:$0xff]  }
 0x5d0   :  { %16628 = vmatprep.subr.bf16.mxu1 %v16627_v51  ;;  %v18285_v51 = vld [vmem:[%s24490_s3 + $0x4a8] ss:$16 sps:$4 sm:$0xff]   ;;  %v18305_v44 = vld [vmem:[%s24490_s3 + $0x50c] ss:$16 sps:$4 sm:$0xff]   ;;  %v18308_v33 = vld [vmem:[%s24490_s3 + $0x524] ss:$16 sps:$4 sm:$0xff]  }
 0x5d1   :  { %15327 = vmatmul.mubr.msk.f32.vlgmr.msra.gmra.mrb[20].mxu0 %vm1699_vm3, %v19267_v60  ;;  %v18303_v53 = vld [vmem:[%s24490_s3 + $0x508] ss:$16 sps:$4 sm:$0xff]  }
 0x5d2   :  { %15328 = vmatmul.mubr.msk.f32.vlgmr.msra.gmra.mrb[20].mxu1 %vm1699_vm3, %v19267_v60  ;;  %16622 = vmatpush1.bf16.msra.mxu0 %v16621_v2  ;;  %v18276_v2 = vld [vmem:[%s24490_s3 + $0x480] ss:$16 sps:$4 sm:$0xff]  }
 0x5d3   :  { %16630 = vmatpush1.bf16.msra.mxu1 %v16629_v32  ;;  %16624 = vmatprep.subr.bf16.mxu0 %v16623_v6  ;;  %v18287_v32 = vld [vmem:[%s24490_s3 + $0x4ac] ss:$16 sps:$4 sm:$0xff]  }
 0x5d4   :  { %16632 = vmatprep.subr.bf16.mxu1 %v16631_v18  ;;  %7720 = vmatprep.mubr.f32.mxu0 %v19266_v12  ;;  %v18311_v6 = vld [vmem:[%s24490_s3 + $0x52c] ss:$16 sps:$4 sm:$0xff]   ;;  %v18309_v18 = vld [vmem:[%s24490_s3 + $0x528] ss:$16 sps:$4 sm:$0xff]  }
 0x5d5   :  { %7791 = vmatprep.mubr.f32.mxu1 %v19266_v12 }
 0x5d6   :  { %16626 = vmatpush1.bf16.msra.mxu0 %v16625_v34  ;;  %v18300_v34 = vld [vmem:[%s24490_s3 + $0x500] ss:$16 sps:$4 sm:$0xff]  }
 0x5d7   :  { %16634 = vmatpush1.bf16.msra.mxu1 %v16633_v59  ;;  %9035 = vmatprep.subr.bf16.mxu0 %v18254_v24  ;;  %v18306_v59 = vld [vmem:[%s24490_s3 + $0x520] ss:$16 sps:$4 sm:$0xff]  }
 0x5d8   :  { %9141 = vmatprep.subr.bf16.mxu1 %v18257_v7  ;;  %v18312_v24 = vld [vmem:[%s24490_s3 + $0x540] ss:$16 sps:$4 sm:$0xff]   ;;  %v18315_v7 = vld [vmem:[%s24490_s3 + $0x548] ss:$16 sps:$4 sm:$0xff]  }
 0x5d9   :  { %15329 = vmatmul.mubr.msk.f32.vlgmr.msra.gmra.mrb[22].mxu0 %vm1699_vm3, %v19267_v60 }
 0x5da   :  { %15330 = vmatmul.mubr.msk.f32.vlgmr.msra.gmra.mrb[22].mxu1 %vm1699_vm3, %v19267_v60  ;;  %9036 = vmatpush1.bf16.msra.mxu0 %v18252_v56  ;;  %v18314_v56 = vld [vmem:[%s24490_s3 + $0x544] ss:$16 sps:$4 sm:$0xff]  }
 0x5db   :  { %9142 = vmatpush1.bf16.msra.mxu1 %v18255_v36  ;;  %9037 = vmatprep.subr.bf16.mxu0 %v18260_v29  ;;  %v18317_v36 = vld [vmem:[%s24490_s3 + $0x54c] ss:$16 sps:$4 sm:$0xff]   ;;  %v18318_v29 = vld [vmem:[%s24490_s3 + $0x560] ss:$16 sps:$4 sm:$0xff]  }
 0x5dc   :  { %9143 = vmatprep.subr.bf16.mxu1 %v18263_v57  ;;  %v18321_v57 = vld [vmem:[%s24490_s3 + $0x568] ss:$16 sps:$4 sm:$0xff]  }
 0x5de   :  { %9038 = vmatpush1.bf16.msra.mxu0 %v18258_v38  ;;  %v18320_v38 = vld [vmem:[%s24490_s3 + $0x564] ss:$16 sps:$4 sm:$0xff]  }
 0x5df   :  { %9144 = vmatpush1.bf16.msra.mxu1 %v18261_v30  ;;  %9039 = vmatprep.subr.bf16.mxu0 %v18266_v10  ;;  %v18323_v30 = vld [vmem:[%s24490_s3 + $0x56c] ss:$16 sps:$4 sm:$0xff]   ;;  %v18324_v10 = vld [vmem:[%s24490_s3 + $0x580] ss:$16 sps:$4 sm:$0xff]  }
 0x5e0   :  { %9145 = vmatprep.subr.bf16.mxu1 %v18269_v1  ;;  %v18327_v1 = vld [vmem:[%s24490_s3 + $0x588] ss:$16 sps:$4 sm:$0xff]  }
 0x5e2   :  { %9040 = vmatpush1.bf16.msra.mxu0 %v18264_v28  ;;  %v18326_v28 = vld [vmem:[%s24490_s3 + $0x584] ss:$16 sps:$4 sm:$0xff]  }
 0x5e3   :  { %9146 = vmatpush1.bf16.msra.mxu1 %v18267_v42  ;;  %9041 = vmatprep.subr.bf16.mxu0 %v18272_v9  ;;  %v18329_v42 = vld [vmem:[%s24490_s3 + $0x58c] ss:$16 sps:$4 sm:$0xff]   ;;  %v18332_v9 = vld [vmem:[%s24490_s3 + $0x5a4] ss:$16 sps:$4 sm:$0xff]  }
 0x5e4   :  { %9147 = vmatprep.subr.bf16.mxu1 %v18275_v63  ;;  %v18330_v63 = vld [vmem:[%s24490_s3 + $0x5a0] ss:$16 sps:$4 sm:$0xff]  }
 0x5e6   :  { %9042 = vmatpush1.bf16.msra.mxu0 %v18270_v20  ;;  %v18335_v20 = vld [vmem:[%s24490_s3 + $0x5ac] ss:$16 sps:$4 sm:$0xff]  }
 0x5e7   :  { %9148 = vmatpush1.bf16.msra.mxu1 %v18273_v0  ;;  %9043 = vmatprep.subr.bf16.mxu0 %v18278_v16  ;;  %v18333_v0 = vld [vmem:[%s24490_s3 + $0x5a8] ss:$16 sps:$4 sm:$0xff]   ;;  %v18338_v16 = vld [vmem:[%s24490_s3 + $0x5c4] ss:$16 sps:$4 sm:$0xff]  }
 0x5e8   :  { %9149 = vmatprep.subr.bf16.mxu1 %v18281_v43  ;;  %v18336_v43 = vld [vmem:[%s24490_s3 + $0x5c0] ss:$16 sps:$4 sm:$0xff]  }
 0x5ea   :  { %9044 = vmatpush1.bf16.msra.mxu0 %v18276_v2  ;;  %v18341_v2 = vld [vmem:[%s24490_s3 + $0x5cc] ss:$16 sps:$4 sm:$0xff]  }
 0x5eb   :  { %9150 = vmatpush1.bf16.msra.mxu1 %v18279_v13  ;;  %9045 = vmatprep.subr.bf16.mxu0 %v18284_v21  ;;  %v18339_v13 = vld [vmem:[%s24490_s3 + $0x5c8] ss:$16 sps:$4 sm:$0xff]   ;;  %v18344_v21 = vld [vmem:[%s24490_s3 + $0x5e4] ss:$16 sps:$4 sm:$0xff]  }
 0x5ec   :  { %9151 = vmatprep.subr.bf16.mxu1 %v18287_v32  ;;  %v18342_v32 = vld [vmem:[%s24490_s3 + $0x5e0] ss:$16 sps:$4 sm:$0xff]  }
 0x5ee   :  { %9046 = vmatpush1.bf16.msra.mxu0 %v18282_v48  ;;  %v18347_v48 = vld [vmem:[%s24490_s3 + $0x5ec] ss:$16 sps:$4 sm:$0xff]  }
 0x5ef   :  { %9152 = vmatpush1.bf16.msra.mxu1 %v18285_v51  ;;  %9047 = vmatprep.subr.bf16.mxu0 %v18290_v35  ;;  %v18345_v51 = vld [vmem:[%s24490_s3 + $0x5e8] ss:$16 sps:$4 sm:$0xff]   ;;  %v18350_v35 = vld [vmem:[%s24490_s3 + $0x604] ss:$16 sps:$4 sm:$0xff]  }
 0x5f0   :  { %9153 = vmatprep.subr.bf16.mxu1 %v18293_v49  ;;  %v18353_v49 = vld [vmem:[%s24490_s3 + $0x60c] ss:$16 sps:$4 sm:$0xff]  }
 0x5f2   :  { %9048 = vmatpush1.bf16.msra.mxu0 %v18288_v50 }
 0x5f3   :  { %9154 = vmatpush1.bf16.msra.mxu1 %v18291_v55  ;;  %9049 = vmatprep.subr.bf16.mxu0 %v18296_v14 }
 0x5f4   :  { %9155 = vmatprep.subr.bf16.mxu1 %v18299_v54 }
 0x5f6   :  { %9050 = vmatpush1.bf16.msra.mxu0 %v18294_v61 }
 0x5f7   :  { %9156 = vmatpush1.bf16.msra.mxu1 %v18297_v27  ;;  %9051 = vmatprep.subr.bf16.mxu0 %v18302_v17 }
 0x5f8   :  { %9157 = vmatprep.subr.bf16.mxu1 %v18305_v44 }
 0x5fa   :  { %9052 = vmatpush1.bf16.msra.mxu0 %v18300_v34 }
 0x5fb   :  { %9158 = vmatpush1.bf16.msra.mxu1 %v18303_v53  ;;  %9053 = vmatprep.subr.bf16.mxu0 %v18308_v33 }
 0x5fc   :  { %9159 = vmatprep.subr.bf16.mxu1 %v18311_v6 }
 0x5fe   :  { %9054 = vmatpush1.bf16.msra.mxu0 %v18306_v59 }
 0x5ff   :  { %9160 = vmatpush1.bf16.msra.mxu1 %v18309_v18  ;;  %9055 = vmatprep.subr.bf16.mxu0 %v18314_v56 }
 0x600   :  { %9161 = vmatprep.subr.bf16.mxu1 %v18317_v36 }
 0x602   :  { %9056 = vmatpush1.bf16.msra.mxu0 %v18312_v24 }
 0x603   :  { %9162 = vmatpush1.bf16.msra.mxu1 %v18315_v7  ;;  %9057 = vmatprep.subr.bf16.mxu0 %v18320_v38 }
 0x604   :  { %9163 = vmatprep.subr.bf16.mxu1 %v18323_v30 }
 0x606   :  { %9058 = vmatpush1.bf16.msra.mxu0 %v18318_v29 }
 0x607   :  { %9164 = vmatpush1.bf16.msra.mxu1 %v18321_v57  ;;  %9059 = vmatprep.subr.bf16.mxu0 %v18326_v28 }
 0x608   :  { %9165 = vmatprep.subr.bf16.mxu1 %v18329_v42 }
 0x60a   :  { %9060 = vmatpush1.bf16.msra.mxu0 %v18324_v10 }
 0x60b   :  { %9166 = vmatpush1.bf16.msra.mxu1 %v18327_v1  ;;  %9061 = vmatprep.subr.bf16.mxu0 %v18332_v9 }
 0x60c   :  { %9167 = vmatprep.subr.bf16.mxu1 %v18335_v20  ;;  %v7822_v20 = vld [vmem:[%s24491_s6] sm:$0xf] }
 0x60e   :  { %9062 = vmatpush1.bf16.msra.mxu0 %v18330_v63 }
 0x60f   :  { %9168 = vmatpush1.bf16.msra.mxu1 %v18333_v0  ;;  %9063 = vmatprep.subr.bf16.mxu0 %v18338_v16  ;;  %v7827_v0 = vrot.slane %v7822_v20, %v20190_v3  ;;  %v7835_v16 = vrot.slane %v7822_v20, %v20192_v4 }
 0x610   :  { %9169 = vmatprep.subr.bf16.mxu1 %v18341_v2 }
 0x612   :  { %9064 = vmatpush1.bf16.msra.mxu0 %v18336_v43  ;;  %v7831_v43 = vrot.slane %v7822_v20, %v20194_v5 }
 0x613   :  { %9170 = vmatpush1.bf16.msra.mxu1 %v18339_v13  ;;  %9065 = vmatprep.subr.bf16.mxu0 %v18344_v21  ;;  %v7839_v13 = vrot.slane %v7822_v20, %v20196_v8 }
 0x614   :  { %9171 = vmatprep.subr.bf16.mxu1 %v18347_v48 }
 0x616   :  { %9066 = vmatpush1.bf16.msra.mxu0 %v18342_v32 }
 0x617   :  { %9172 = vmatpush1.bf16.msra.mxu1 %v18345_v51  ;;  %9088 = vmatprep.subr.bf16.mxu0 %v18350_v35 }
 0x618   :  { %9194 = vmatprep.subr.bf16.mxu1 %v18353_v49 }
 0x6a4   :  { %v7564_v50 = vpop.f32.mrb[20].mxu0 }
 0x6a5   :  { %v7635_v55 = vpop.f32.mrb[20].mxu1  ;;  %v7566_v14 = vpop.f32.mrb[21].mxu0  ;;  %v7798_v61 = vmul.f32 0.03125, %v7564_v50 }
 0x6a6   :  { %v7637_v54 = vpop.f32.mrb[21].mxu1  ;;  %v7800_v27 = vmul.f32 0.03125, %v7635_v55  ;;  %v7799_v17 = vmul.f32 0.03125, %v7566_v14 }
 0x6a7   :  { %v7801_v44 = vmul.f32 0.03125, %v7637_v54  ;;  %v7806_v53 = vmul.f32 %v7798_v61, %v7798_v61 }
 0x6a8   :  { %v7808_v18 = vmul.f32 %v7800_v27, %v7800_v27  ;;  %v7807_v56 = vmul.f32 %v7799_v17, %v7799_v17 }
 0x6a9   :  { %v7809_v38 = vmul.f32 %v7801_v44, %v7801_v44 }
 0x6ac   :  { %v7722_v34 = vpop.f32.mrb[22].mxu0 }
 0x6ad   :  { %v7802_v33 = vmul.f32 0.03125, %v7722_v34  ;;  %v7793_v59 = vpop.f32.mrb[22].mxu1  ;;  %v7724_v6 = vpop.f32.mrb[23].mxu0 }
 0x6ae   :  { %v7804_v24 = vmul.f32 0.03125, %v7793_v59  ;;  %v7803_v36 = vmul.f32 0.03125, %v7724_v6  ;;  %v7795_v7 = vpop.f32.mrb[23].mxu1 }
 0x6af   :  { %v7810_v29 = vsub.f32 %v7802_v33, %v7806_v53  ;;  %v7805_v30 = vmul.f32 0.03125, %v7795_v7 }
 0x6b0   :  { %v7812_v57 = vsub.f32 %v7804_v24, %v7808_v18  ;;  %v7811_v28 = vsub.f32 %v7803_v36, %v7807_v56 }
 0x6b1   :  { %v7814_v10 = vadd.f32 1e-05, %v7810_v29  ;;  %v7813_v42 = vsub.f32 %v7805_v30, %v7809_v38 }
 0x6b2   :  { %v7816_v1 = vadd.f32 1e-05, %v7812_v57  ;;  %v7815_v9 = vadd.f32 1e-05, %v7811_v28 }
 0x6b3   :  { %19238 = vrsqrt.f32 %v7814_v10  ;;  %v7817_v63 = vadd.f32 1e-05, %v7813_v42 }
 0x6b4   :  { %19240 = vrsqrt.f32 %v7816_v1 }
 0x6b5   :  { %19242 = vrsqrt.f32 %v7815_v9 }
 0x6b6   :  { %19244 = vrsqrt.f32 %v7817_v63 }
 0x6bd   :  { %v19239_v2 = vpop.eup %19238 }
 0x6be   :  { %v19241_v21 = vpop.eup %19240  ;;  %v7844_v32 = vmul.f32 %v19239_v2, %v7827_v0 }
 0x6bf   :  { %v19243_v48 = vpop.eup %19242  ;;  %v7846_v51 = vmul.f32 %v19241_v21, %v7835_v16 }
 0x6c0   :  { %v19245_v35 = vpop.eup %19244  ;;  %v7849_v49 = vmul.f32 %v7844_v32, %v7798_v61  ;;  %v7886_v50 = vrot.slane %v7844_v32, %v20190_v3  ;;  %v7845_v55 = vmul.f32 %v19243_v48, %v7831_v43 }
 0x6c1   :  { %v7851_v14 = vmul.f32 %v7846_v51, %v7800_v27  ;;  %v7894_v54 = vrot.slane %v7846_v51, %v20190_v3  ;;  %v7847_v34 = vmul.f32 %v19245_v35, %v7839_v13 }
 0x6c2   :  { %v7899_v53 = vmul.f32 %v7886_v50, %v22130_v58  ;;  %v7903_v33 = vmul.f32 %v7886_v50, %v22140_v11  ;;  %v7907_v59 = vmul.f32 %v7886_v50, %v22170_v22  ;;  %v7911_v6 = vmul.f32 %v7886_v50, %v22180_v46 }
 0x6c3   :  { %v7901_v18 = vmul.f32 %v7894_v54, %v22132_v23  ;;  %v7905_v56 = vmul.f32 %v7894_v54, %v22150_v62  ;;  %v7909_v61 = vmul.f32 %v7894_v54, %v22172_v25  ;;  %v7913_v24 = vmul.f32 %v7894_v54, %v22190_v52 }
 0x6c4   :  { %v7850_v27 = vmul.f32 %v7845_v55, %v7799_v17  ;;  %v7890_v36 = vrot.slane %v7845_v55, %v20190_v3  ;;  %v7852_v7 = vmul.f32 %v7847_v34, %v7801_v44  ;;  %v7898_v58 = vrot.slane %v7847_v34, %v20190_v3 }
 0x6c6   :  { %v7857_v38 = vcombine.low %v7849_v49, %v7850_v27  ;;  %v7900_v11 = vmul.f32 %v7890_v36, %v22134_v39  ;;  %v7904_v22 = vmul.f32 %v7890_v36, %v22152_v26  ;;  %v7908_v46 = vmul.f32 %v7890_v36, %v22174_v31  ;;  %v7848_v26 = vld [vmem:[%s24492_s7] sm:$0xf] }
 0x6c7   :  { %v7912_v23 = vmul.f32 %v7890_v36, %v22192_v47  ;;  %v7858_v62 = vcombine.low %v7851_v14, %v7852_v7  ;;  %v7902_v25 = vmul.f32 %v7898_v58, %v22138_v15  ;;  %v7906_v52 = vmul.f32 %v7898_v58, %v22162_v19 }
 0x6c8   :  { %v7865_v17 = vrot.slane %v7857_v38, %v20204_v41  ;;  %v7910_v44 = vmul.f32 %v7898_v58, %v22178_v40  ;;  %v7914_v29 = vmul.f32 %v7898_v58, %v22202_v37 }
 0x6c9   :  { %v7872_v30 = vrot.slane %v7858_v62, %v20204_v41 }
 0x6cb   :  { %v7873_v39 = vcombine.low %v7865_v17, %v7872_v30 }
 0x6cd   :  { %v7880_v31 = vrot.slane %v7873_v39, %v20204_v41 }
 0x6cf   :  { %v7882_v47 = vsub.f32 %v7848_v26, %v7880_v31 }
 0x6d1   :  { %v7919_v15 = vrot.slane %v7882_v47, %v20190_v3  ;;  %v7923_v19 = vrot.slane %v7882_v47, %v20194_v5  ;;  %v7927_v57 = vrot.slane %v7882_v47, %v20192_v4  ;;  %v7931_v40 = vrot.slane %v7882_v47, %v20196_v8 }
 0x6d3   :  { %v7936_v28 = vadd.f32 %v7919_v15, %v7899_v53  ;;  %v7937_v37 = vadd.f32 %v7923_v19, %v7900_v11  ;;  %v7938_v10 = vadd.f32 %v7927_v57, %v7901_v18  ;;  %v7939_v42 = vadd.f32 %v7931_v40, %v7902_v25 }
 0x6d4   :  { %v7940_v1 = vadd.f32 %v7919_v15, %v7903_v33  ;;  %v7941_v9 = vadd.f32 %v7923_v19, %v7904_v22  ;;  %v7942_v63 = vadd.f32 %v7927_v57, %v7905_v56  ;;  %v7943_v20 = vadd.f32 %v7931_v40, %v7906_v52 }
 0x6d5   :  { %v7944_v0 = vadd.f32 %v7919_v15, %v7907_v59  ;;  %v7945_v16 = vadd.f32 %v7923_v19, %v7908_v46  ;;  %v7946_v43 = vadd.f32 %v7927_v57, %v7909_v61  ;;  %v7947_v2 = vadd.f32 %v7931_v40, %v7910_v44 }
 0x6d6   :  { %v7948_v13 = vadd.f32 %v7919_v15, %v7911_v6  ;;  %v7949_v21 = vadd.f32 %v7923_v19, %v7912_v23  ;;  %v7950_v32 = vadd.f32 %v7927_v57, %v7913_v24  ;;  %v7951_v48 = vadd.f32 %v7931_v40, %v7914_v29 }
 0x6d7   :  { %v7952_v51 = vmax.f32 %v7936_v28, 0.0  ;;  %v7953_v35 = vmax.f32 %v7937_v37, 0.0  ;;  %v7954_v49 = vmax.f32 %v7938_v10, 0.0  ;;  %v7955_v50 = vmax.f32 %v7939_v42, 0.0 }
 0x6d8   :  { %v7956_v55 = vmax.f32 %v7940_v1, 0.0  ;;  %v7957_v14 = vmax.f32 %v7941_v9, 0.0  ;;  %v7958_v54 = vmax.f32 %v7942_v63, 0.0  ;;  %v7959_v34 = vmax.f32 %v7943_v20, 0.0 }
 0x6d9   :  { %v7960_v53 = vmax.f32 %v7944_v0, 0.0  ;;  %v7961_v33 = vmax.f32 %v7945_v16, 0.0  ;;  %v7962_v18 = vmax.f32 %v7946_v43, 0.0  ;;  %v7963_v56 = vmax.f32 %v7947_v2, 0.0 }
 0x6da   :  { %v7964_v59 = vmax.f32 %v7948_v13, 0.0  ;;  %v7965_v27 = vmax.f32 %v7949_v21, 0.0  ;;  %v7966_v61 = vmax.f32 %v7950_v32, 0.0  ;;  %v7967_v36 = vmax.f32 %v7951_v48, 0.0 }
 0x6db   :  { %v16556_v6 = vpack.c.bf16 %v7955_v50, %v7954_v49  ;;  %v16557_v7 = vpack.c.bf16 %v7957_v14, %v7956_v55  ;;  %v16558_v24 = vpack.c.bf16 %v7959_v34, %v7958_v54  ;;  %v16559_v58 = vpack.c.bf16 %v7961_v33, %v7960_v53  ;;  %v18348_v49 = vld [vmem:[%s24490_s3 + $0x600] ss:$16 sps:$4 sm:$0xff]   ;;  %v18351_v50 = vld [vmem:[%s24490_s3 + $0x608] ss:$16 sps:$4 sm:$0xff]   ;;  %v18357_v53 = vld [vmem:[%s24490_s3 + $0x624] ss:$16 sps:$4 sm:$0xff]  }
 0x6dc   :  { %v16560_v38 = vpack.c.bf16 %v7963_v56, %v7962_v18  ;;  %v16561_v11 = vpack.c.bf16 %v7965_v27, %v7964_v59  ;;  %v16562_v22 = vpack.c.bf16 %v7967_v36, %v7966_v61  ;;  %v16555_v46 = vpack.c.bf16 %v7953_v35, %v7952_v51  ;;  %v18360_v33 = vld [vmem:[%s24490_s3 + $0x62c] ss:$16 sps:$4 sm:$0xff]   ;;  %v18355_v59 = vld [vmem:[%s24490_s3 + $0x620] ss:$16 sps:$4 sm:$0xff]   ;;  %v18358_v27 = vld [vmem:[%s24490_s3 + $0x628] ss:$16 sps:$4 sm:$0xff]  }
 0x6dd   :  { %v8009_v23 = vrot.slane %v16556_v6, 6  ;;  %v8011_v62 = vrot.slane %v16557_v7, 6  ;;  %v8014_v25 = vrot.slane %v16558_v24, 6  ;;  %v8017_v52 = vrot.slane %v16559_v58, 6  ;;  %v18363_v61 = vld [vmem:[%s24490_s3 + $0x644] ss:$16 sps:$4 sm:$0xff]  }
 0x6de   :  { %v8020_v17 = vrot.slane %v16560_v38, 6  ;;  %v8023_v44 = vrot.slane %v16561_v11, 6  ;;  %v8026_v29 = vrot.slane %v16562_v22, 6  ;;  %v8008_v30 = vrot.slane %v16555_v46, 6  ;;  %v18366_v6 = vld [vmem:[%s24490_s3 + $0x64c] ss:$16 sps:$4 sm:$0xff]  }
 0x6df   :  { %v8013_v39 = vrot.slane %v8009_v23, 4  ;;  %v8016_v26 = vrot.slane %v8011_v62, 4  ;;  %v8019_v31 = vrot.slane %v8014_v25, 4  ;;  %v8022_v47 = vrot.slane %v8017_v52, 4  ;;  %8041 = vst [vmem:[#allocation3 + $0x8] sm:$0xcc] %v8009_v23 }
 0x6e0   :  { %v8025_v15 = vrot.slane %v8020_v17, 4  ;;  %v8029_v19 = vrot.slane %v8026_v29, 4  ;;  %v8010_v57 = vrot.slane %v8008_v30, 4  ;;  %8040 = vst [vmem:[#allocation3] sm:$0xcc] %v8008_v30  ;;  %v8028_v40 = vrot.slane %v8023_v44, 4 }
 0x6e1   :  { %v22457_v28 = vsel %vm20237_vm6, %v8013_v39, %v8014_v25  ;;  %v22461_v37 = vsel %vm20237_vm6, %v8019_v31, %v8020_v17  ;;  %v8018_v10 = vsel %vm20237_vm6, %v8016_v26, %v8017_v52  ;;  %v8024_v42 = vsel %vm20237_vm6, %v8022_v47, %v8023_v44  ;;  %v18361_v58 = vld [vmem:[%s24490_s3 + $0x640] ss:$16 sps:$4 sm:$0xff]   ;;  %v18364_v38 = vld [vmem:[%s24490_s3 + $0x648] ss:$16 sps:$4 sm:$0xff]   ;;  %v18370_v22 = vld [vmem:[%s24490_s3 + $0x664] ss:$16 sps:$4 sm:$0xff]  }
 0x6e2   :  { %v22469_v1 = vsel %vm20237_vm6, %v8025_v15, %v8026_v29  ;;  %8043 = vst [vmem:[#allocation3 + $0x18] sm:$0xff] %v22457_v28  ;;  %8045 = vst [vmem:[#allocation3 + $0x28] sm:$0xff] %v22461_v37  ;;  %v22475_v9 = vsel %vm20237_vm6, %v8010_v57, %v8011_v62  ;;  %v22485_v0 = vcombine.high %v8018_v10, %v8024_v42  ;;  %v18373_v46 = vld [vmem:[%s24490_s3 + $0x66c] ss:$16 sps:$4 sm:$0xff]   ;;  %v18368_v52 = vld [vmem:[%s24490_s3 + $0x660] ss:$16 sps:$4 sm:$0xff]  }
 0x6e3   :  { %8049 = vst [vmem:[#allocation3 + $0x48] sm:$0x33] %v8029_v19  ;;  %8046 = vst [vmem:[#allocation3 + $0x30] sm:$0xff] %v8024_v42  ;;  %v22480_v63 = vcombine.high %v22475_v9, %v8018_v10  ;;  %v22483_v20 = vcombine.low %v22475_v9, %v8018_v10  ;;  %v22487_v16 = vcombine.low %v8018_v10, %v8024_v42  ;;  %v18371_v17 = vld [vmem:[%s24490_s3 + $0x668] ss:$16 sps:$4 sm:$0xff]  }
 0x6e4   :  { %8048 = vst [vmem:[#allocation3 + $0x40] sm:$0x33] %v8028_v40  ;;  %8047 = vst [vmem:[#allocation3 + $0x38] sm:$0xff] %v22469_v1  ;;  %v8371_v13 = vrot.slane %v22485_v0, 1  ;;  %v22526_v24 = vcombine.high %v22461_v37, %v22469_v1  ;;  %v18376_v44 = vld [vmem:[%s24490_s3 + $0x684] ss:$16 sps:$4 sm:$0xff]  }
 0x6e5   :  { %8042 = vst [vmem:[#allocation3 + $0x10] sm:$0xff] %v22475_v9  ;;  %v8368_v51 = vrot.slane %v22487_v16, 1  ;;  %v18379_v29 = vld [vmem:[%s24490_s3 + $0x68c] ss:$16 sps:$4 sm:$0xff]   ;;  %v18374_v30 = vld [vmem:[%s24490_s3 + $0x680] ss:$16 sps:$4 sm:$0xff]  }
 0x6e6   :  { %v22501_v34 = vld [vmem:[#allocation3 + $0x8] sm:$0xee]  ;;  %v8377_v62 = vrot.slane %v22526_v24, 1  ;;  %v18382_v26 = vld [vmem:[%s24490_s3 + $0x6a4] ss:$16 sps:$4 sm:$0xff]  }
 0x6e7   :  { %v8186_v43 = vld [vmem:[#allocation3] sm:$0xee]  ;;  %v15470_v36 = vcombine.high %v22501_v34, %v22457_v28  ;;  %v18377_v39 = vld [vmem:[%s24490_s3 + $0x688] ss:$16 sps:$4 sm:$0xff]   ;;  %v18385_v31 = vld [vmem:[%s24490_s3 + $0x6ac] ss:$16 sps:$4 sm:$0xff]  }
 0x6e8   :  { %v15468_v45 = vcombine.high %v8186_v43, %v22475_v9  ;;  %v15467_v2 = vcombine.low %v8186_v43, %v22475_v9  ;;  %v18380_v47 = vld [vmem:[%s24490_s3 + $0x6a0] ss:$16 sps:$4 sm:$0xff]   ;;  %v18383_v15 = vld [vmem:[%s24490_s3 + $0x6a8] ss:$16 sps:$4 sm:$0xff]   ;;  %v18388_v19 = vld [vmem:[%s24490_s3 + $0x6c4] ss:$16 sps:$4 sm:$0xff]  }
 0x6e9   :  { %v8376_v11 = vrot.slane %v15470_v36, 1  ;;  %v18391_v57 = vld [vmem:[%s24490_s3 + $0x6cc] ss:$16 sps:$4 sm:$0xff]   ;;  %v18386_v40 = vld [vmem:[%s24490_s3 + $0x6c0] ss:$16 sps:$4 sm:$0xff]  }
 0x6ea   :  { %v8370_v32 = vrot.slane %v15468_v45, 1  ;;  %v8367_v48 = vrot.slane %v15467_v2, 1  ;;  %v18389_v10 = vld [vmem:[%s24490_s3 + $0x6c8] ss:$16 sps:$4 sm:$0xff]   ;;  %v18394_v42 = vld [vmem:[%s24490_s3 + $0x6e4] ss:$16 sps:$4 sm:$0xff]  }
 0x6eb   :  { %v8194_v21 = vld [vmem:[#allocation3 + $0x40] sm:$0x11]  ;;  %v8378_v25 = vsel %vm131_vm0, %v8376_v11, %v8377_v62  ;;  %v18397_v43 = vld [vmem:[%s24490_s3 + $0x6ec] ss:$16 sps:$4 sm:$0xff]   ;;  %v18395_v2 = vld [vmem:[%s24490_s3 + $0x6e8] ss:$16 sps:$4 sm:$0xff]  }
 0x6ec   :  { %v15476_v35 = vcombine.high %v8194_v21, %v8194_v21  ;;  %v8372_v55 = vsel %vm131_vm0, %v8370_v32, %v8371_v13  ;;  %v8369_v14 = vsel %vm131_vm0, %v8367_v48, %v8368_v51  ;;  %v15475_v18 = vcombine.low %v8194_v21, %v8194_v21  ;;  %v18392_v45 = vld [vmem:[%s24490_s3 + $0x6e0] ss:$16 sps:$4 sm:$0xff]   ;;  %v18403_v21 = vld [vmem:[%s24490_s3 + $0x70c] ss:$16 sps:$4 sm:$0xff]   ;;  %v18401_v48 = vld [vmem:[%s24490_s3 + $0x708] ss:$16 sps:$4 sm:$0xff]  }
 0x6ed   :  { %9067 = vmatprep.mubr.bf16.mxu0 %v8372_v55  ;;  %9173 = vmatprep.mubr.bf16.mxu1 %v8372_v55  ;;  %v18398_v32 = vld [vmem:[%s24490_s3 + $0x700] ss:$16 sps:$4 sm:$0xff]   ;;  %v18412_v55 = vld [vmem:[%s24490_s3 + $0x744] ss:$16 sps:$4 sm:$0xff]   ;;  %v18431_v11 = vld [vmem:[%s24490_s3 + $0x7a8] ss:$16 sps:$4 sm:$0xff]  }
 0x6ee   :  { %v8381_v54 = vrot.slane %v15476_v35, 1  ;;  %9068 = vmatmul.mubr.bf16.vlgmr.msra.gmra.mrb[24].mxu0 %v8369_v14  ;;  %9174 = vmatmul.mubr.bf16.vlgmr.msra.gmra.mrb[24].mxu1 %v8369_v14  ;;  %v8379_v7 = vrot.slane %v15475_v18, 1  ;;  %v18409_v35 = vld [vmem:[%s24490_s3 + $0x72c] ss:$16 sps:$4 sm:$0xff]   ;;  %v18422_v36 = vld [vmem:[%s24490_s3 + $0x780] ss:$16 sps:$4 sm:$0xff]  }
 0x6ef   :  { %9089 = vmatpush1.bf16.msra.mxu0 %v18348_v49  ;;  %9195 = vmatpush1.bf16.msra.mxu1 %v18351_v50  ;;  %v18404_v49 = vld [vmem:[%s24490_s3 + $0x720] ss:$16 sps:$4 sm:$0xff]   ;;  %v18407_v50 = vld [vmem:[%s24490_s3 + $0x728] ss:$16 sps:$4 sm:$0xff]   ;;  %v18415_v14 = vld [vmem:[%s24490_s3 + $0x74c] ss:$16 sps:$4 sm:$0xff]  }
 0x6f0   :  { %v8382_v56 = vsel %vm131_vm0, %v8371_v13, %v8381_v54  ;;  %9090 = vmatprep.subr.bf16.mxu0 %v18357_v53  ;;  %9196 = vmatprep.subr.bf16.mxu1 %v18360_v33  ;;  %v8380_v23 = vsel %vm131_vm0, %v8368_v51, %v8379_v7  ;;  %v18400_v13 = vld [vmem:[%s24490_s3 + $0x704] ss:$16 sps:$4 sm:$0xff]   ;;  %v18410_v54 = vld [vmem:[%s24490_s3 + $0x740] ss:$16 sps:$4 sm:$0xff]   ;;  %v18413_v53 = vld [vmem:[%s24490_s3 + $0x748] ss:$16 sps:$4 sm:$0xff]  }
 0x6f1   :  { %9077 = vmatprep.mubr.bf16.mxu0 %v8382_v56  ;;  %9183 = vmatprep.mubr.bf16.mxu1 %v8382_v56  ;;  %v18406_v51 = vld [vmem:[%s24490_s3 + $0x724] ss:$16 sps:$4 sm:$0xff]   ;;  %v18421_v18 = vld [vmem:[%s24490_s3 + $0x76c] ss:$16 sps:$4 sm:$0xff]   ;;  %v18416_v56 = vld [vmem:[%s24490_s3 + $0x760] ss:$16 sps:$4 sm:$0xff]  }
 0x6f2   :  { %v18418_v33 = vld [vmem:[%s24490_s3 + $0x764] ss:$16 sps:$4 sm:$0xff]  }
 0x6f3   :  { %9091 = vmatpush1.bf16.msra.mxu0 %v18355_v59  ;;  %9197 = vmatpush1.bf16.msra.mxu1 %v18358_v27  ;;  %v18419_v59 = vld [vmem:[%s24490_s3 + $0x768] ss:$16 sps:$4 sm:$0xff]   ;;  %v18424_v27 = vld [vmem:[%s24490_s3 + $0x784] ss:$16 sps:$4 sm:$0xff]  }
 0x6f4   :  { %9092 = vmatprep.subr.bf16.mxu0 %v18363_v61  ;;  %9198 = vmatprep.subr.bf16.mxu1 %v18366_v6  ;;  %v18427_v61 = vld [vmem:[%s24490_s3 + $0x78c] ss:$16 sps:$4 sm:$0xff]   ;;  %v18425_v6 = vld [vmem:[%s24490_s3 + $0x788] ss:$16 sps:$4 sm:$0xff]   ;;  %v18430_v7 = vld [vmem:[%s24490_s3 + $0x7a4] ss:$16 sps:$4 sm:$0xff]  }
 0x6f6   :  { %9078 = vmatmul.mubr.bf16.gmra.mrb[28].mxu0 %v8380_v23  ;;  %9184 = vmatmul.mubr.bf16.gmra.mrb[28].mxu1 %v8380_v23  ;;  %v18434_v23 = vld [vmem:[%s24490_s3 + $0x7c0] ss:$16 sps:$4 sm:$0xff]  }
 0x6f7   :  { %9093 = vmatpush1.bf16.msra.mxu0 %v18361_v58  ;;  %9199 = vmatpush1.bf16.msra.mxu1 %v18364_v38  ;;  %v18433_v58 = vld [vmem:[%s24490_s3 + $0x7ac] ss:$16 sps:$4 sm:$0xff]   ;;  %v18428_v38 = vld [vmem:[%s24490_s3 + $0x7a0] ss:$16 sps:$4 sm:$0xff]  }
 0x6f8   :  { %9120 = vmatprep.mubr.bf16.mxu0 %v8378_v25  ;;  %9226 = vmatprep.mubr.bf16.mxu1 %v8378_v25  ;;  %v18437_v25 = vld [vmem:[%s24490_s3 + $0x7c8] ss:$16 sps:$4 sm:$0xff]  }
 0x6f9   :  { %9094 = vmatprep.subr.bf16.mxu0 %v18370_v22  ;;  %9200 = vmatprep.subr.bf16.mxu1 %v18373_v46  ;;  %v18436_v22 = vld [vmem:[%s24490_s3 + $0x7c4] ss:$16 sps:$4 sm:$0xff]   ;;  %v18439_v46 = vld [vmem:[%s24490_s3 + $0x7cc] ss:$16 sps:$4 sm:$0xff]  }
 0x6fb   :  { %9095 = vmatpush1.bf16.msra.mxu0 %v18368_v52  ;;  %9201 = vmatpush1.bf16.msra.mxu1 %v18371_v17  ;;  %v18442_v52 = vld [vmem:[%s24490_s3 + $0x7e4] ss:$16 sps:$4 sm:$0xff]   ;;  %v18445_v17 = vld [vmem:[%s24490_s3 + $0x7ec] ss:$16 sps:$4 sm:$0xff]  }
 0x6fc   :  { %9096 = vmatprep.subr.bf16.mxu0 %v18376_v44  ;;  %9202 = vmatprep.subr.bf16.mxu1 %v18379_v29  ;;  %v8195_v44 = vld [vmem:[#allocation3 + $0x48] sm:$0x11]  ;;  %v15469_v29 = vcombine.low %v22501_v34, %v22457_v28 }
 0x6fd   :  { %v18451_v28 = vld [vmem:[%s24490_s3 + $0xc] ss:$16 sps:$4 sm:$0xff]  }
 0x6fe   :  { %v8373_v34 = vrot.slane %v15469_v29, 1  ;;  %v18507_v29 = vld [vmem:[%s24490_s3 + $0x12c] ss:$16 sps:$4 sm:$0xff]  }
 0x6ff   :  { %9097 = vmatpush1.bf16.msra.mxu0 %v18374_v30  ;;  %9203 = vmatpush1.bf16.msra.mxu1 %v18377_v39  ;;  %v18440_v30 = vld [vmem:[%s24490_s3 + $0x7e0] ss:$16 sps:$4 sm:$0xff]   ;;  %v18443_v39 = vld [vmem:[%s24490_s3 + $0x7e8] ss:$16 sps:$4 sm:$0xff]  }
 0x700   :  { %9098 = vmatprep.subr.bf16.mxu0 %v18382_v26  ;;  %9204 = vmatprep.subr.bf16.mxu1 %v18385_v31  ;;  %v18448_v26 = vld [vmem:[%s24490_s3 + $0x4] ss:$16 sps:$4 sm:$0xff]   ;;  %v15478_v31 = vcombine.high %v8195_v44, %v8195_v44 }
 0x703   :  { %9099 = vmatpush1.bf16.msra.mxu0 %v18380_v47  ;;  %9205 = vmatpush1.bf16.msra.mxu1 %v18383_v15  ;;  %v22702_v47 = vcombine.low %v22461_v37, %v22469_v1  ;;  %v18446_v15 = vld [vmem:[%s24490_s3] ss:$16 sps:$4 sm:$0xff]   ;;  %v18455_v1 = vld [vmem:[%s24490_s3 + $0x24] ss:$16 sps:$4 sm:$0xff]  }
 0x704   :  { %9100 = vmatprep.subr.bf16.mxu0 %v18388_v19  ;;  %9206 = vmatprep.subr.bf16.mxu1 %v18391_v57  ;;  %v18449_v19 = vld [vmem:[%s24490_s3 + $0x8] ss:$16 sps:$4 sm:$0xff]   ;;  %v8385_v57 = vrot.slane %v15478_v31, 1  ;;  %v18513_v31 = vld [vmem:[%s24490_s3 + $0x14c] ss:$16 sps:$4 sm:$0xff]  }
 0x705   :  { %v8374_v37 = vrot.slane %v22702_v47, 1 }
 0x707   :  { %9101 = vmatpush1.bf16.msra.mxu0 %v18386_v40  ;;  %9207 = vmatpush1.bf16.msra.mxu1 %v18389_v10  ;;  %v18458_v40 = vld [vmem:[%s24490_s3 + $0x2c] ss:$16 sps:$4 sm:$0xff]   ;;  %v8375_v10 = vsel %vm131_vm0, %v8373_v34, %v8374_v37  ;;  %v18511_v34 = vld [vmem:[%s24490_s3 + $0x148] ss:$16 sps:$4 sm:$0xff]  }
 0x708   :  { %9102 = vmatprep.subr.bf16.mxu0 %v18394_v42  ;;  %9208 = vmatprep.subr.bf16.mxu1 %v18397_v43  ;;  %v15477_v42 = vcombine.low %v8195_v44, %v8195_v44  ;;  %v8386_v43 = vsel %vm131_vm0, %v8377_v62, %v8385_v57  ;;  %v18465_v62 = vld [vmem:[%s24490_s3 + $0x4c] ss:$16 sps:$4 sm:$0xff]   ;;  %v18504_v44 = vld [vmem:[%s24490_s3 + $0x124] ss:$16 sps:$4 sm:$0xff]   ;;  %v18514_v57 = vld [vmem:[%s24490_s3 + $0x160] ss:$16 sps:$4 sm:$0xff]  }
 0x70b   :  { %9103 = vmatpush1.bf16.msra.mxu0 %v18392_v45  ;;  %9209 = vmatpush1.bf16.msra.mxu1 %v18395_v2  ;;  %v18453_v45 = vld [vmem:[%s24490_s3 + $0x20] ss:$16 sps:$4 sm:$0xff]   ;;  %v18456_v2 = vld [vmem:[%s24490_s3 + $0x28] ss:$16 sps:$4 sm:$0xff]  }
 0x70c   :  { %9104 = vmatprep.subr.bf16.mxu0 %v18400_v13  ;;  %9210 = vmatprep.subr.bf16.mxu1 %v18403_v21  ;;  %v18462_v13 = vld [vmem:[%s24490_s3 + $0x44] ss:$16 sps:$4 sm:$0xff]   ;;  %v8383_v21 = vrot.slane %v15477_v42, 1  ;;  %v18523_v42 = vld [vmem:[%s24490_s3 + $0x188] ss:$16 sps:$4 sm:$0xff]  }
 0x70f   :  { %9105 = vmatpush1.bf16.msra.mxu0 %v18398_v32  ;;  %9211 = vmatpush1.bf16.msra.mxu1 %v18401_v48  ;;  %v18460_v32 = vld [vmem:[%s24490_s3 + $0x40] ss:$16 sps:$4 sm:$0xff]   ;;  %v18463_v48 = vld [vmem:[%s24490_s3 + $0x48] ss:$16 sps:$4 sm:$0xff]  }
 0x710   :  { %9106 = vmatprep.subr.bf16.mxu0 %v18406_v51  ;;  %9212 = vmatprep.subr.bf16.mxu1 %v18409_v35  ;;  %v22742_v51 = vld [vmem:[#allocation3] sm:$0xff] }
 0x711   :  { %v18468_v35 = vld [vmem:[%s24490_s3 + $0x64] ss:$16 sps:$4 sm:$0xff]  }
 0x713   :  { %9107 = vmatpush1.bf16.msra.mxu0 %v18404_v49  ;;  %9213 = vmatpush1.bf16.msra.mxu1 %v18407_v50  ;;  %v18471_v49 = vld [vmem:[%s24490_s3 + $0x6c] ss:$16 sps:$4 sm:$0xff]   ;;  %v8384_v50 = vsel %vm131_vm0, %v8374_v37, %v8383_v21  ;;  %v18517_v37 = vld [vmem:[%s24490_s3 + $0x168] ss:$16 sps:$4 sm:$0xff]   ;;  %v18534_v21 = vld [vmem:[%s24490_s3 + $0x1c4] ss:$16 sps:$4 sm:$0xff]  }
 0x714   :  { %9108 = vmatprep.subr.bf16.mxu0 %v18412_v55  ;;  %9214 = vmatprep.subr.bf16.mxu1 %v18415_v14  ;;  %v15608_v55 = vcombine.high %v22742_v51, %v22475_v9  ;;  %v18466_v14 = vld [vmem:[%s24490_s3 + $0x60] ss:$16 sps:$4 sm:$0xff]   ;;  %v18477_v9 = vld [vmem:[%s24490_s3 + $0x8c] ss:$16 sps:$4 sm:$0xff]  }
 0x717   :  { %9109 = vmatpush1.bf16.msra.mxu0 %v18410_v54  ;;  %9215 = vmatpush1.bf16.msra.mxu1 %v18413_v53  ;;  %v18469_v54 = vld [vmem:[%s24490_s3 + $0x68] ss:$16 sps:$4 sm:$0xff]   ;;  %v18474_v53 = vld [vmem:[%s24490_s3 + $0x84] ss:$16 sps:$4 sm:$0xff]  }
 0x718   :  { %9110 = vmatprep.subr.bf16.mxu0 %v18418_v33  ;;  %9216 = vmatprep.subr.bf16.mxu1 %v18421_v18  ;;  %v18472_v33 = vld [vmem:[%s24490_s3 + $0x80] ss:$16 sps:$4 sm:$0xff]   ;;  %v18475_v18 = vld [vmem:[%s24490_s3 + $0x88] ss:$16 sps:$4 sm:$0xff]  }
 0x71b   :  { %9111 = vmatpush1.bf16.msra.mxu0 %v18416_v56  ;;  %9217 = vmatpush1.bf16.msra.mxu1 %v18419_v59  ;;  %v18480_v56 = vld [vmem:[%s24490_s3 + $0xa4] ss:$16 sps:$4 sm:$0xff]   ;;  %v18483_v59 = vld [vmem:[%s24490_s3 + $0xac] ss:$16 sps:$4 sm:$0xff]  }
 0x71c   :  { %9112 = vmatprep.subr.bf16.mxu0 %v18424_v27  ;;  %9218 = vmatprep.subr.bf16.mxu1 %v18427_v61  ;;  %v18478_v27 = vld [vmem:[%s24490_s3 + $0xa0] ss:$16 sps:$4 sm:$0xff]   ;;  %v18481_v61 = vld [vmem:[%s24490_s3 + $0xa8] ss:$16 sps:$4 sm:$0xff]  }
 0x71f   :  { %9113 = vmatpush1.bf16.msra.mxu0 %v18422_v36  ;;  %9219 = vmatpush1.bf16.msra.mxu1 %v18425_v6  ;;  %v18486_v36 = vld [vmem:[%s24490_s3 + $0xc4] ss:$16 sps:$4 sm:$0xff]   ;;  %v18489_v6 = vld [vmem:[%s24490_s3 + $0xcc] ss:$16 sps:$4 sm:$0xff]  }
 0x720   :  { %9114 = vmatprep.subr.bf16.mxu0 %v18430_v7  ;;  %9220 = vmatprep.subr.bf16.mxu1 %v18433_v58  ;;  %v18484_v7 = vld [vmem:[%s24490_s3 + $0xc0] ss:$16 sps:$4 sm:$0xff]   ;;  %v18487_v58 = vld [vmem:[%s24490_s3 + $0xc8] ss:$16 sps:$4 sm:$0xff]  }
 0x723   :  { %9115 = vmatpush1.bf16.msra.mxu0 %v18428_v38  ;;  %9221 = vmatpush1.bf16.msra.mxu1 %v18431_v11  ;;  %v18492_v38 = vld [vmem:[%s24490_s3 + $0xe4] ss:$16 sps:$4 sm:$0xff]   ;;  %v18495_v11 = vld [vmem:[%s24490_s3 + $0xec] ss:$16 sps:$4 sm:$0xff]  }
 0x724   :  { %9116 = vmatprep.subr.bf16.mxu0 %v18436_v22  ;;  %9222 = vmatprep.subr.bf16.mxu1 %v18439_v46  ;;  %v18490_v22 = vld [vmem:[%s24490_s3 + $0xe0] ss:$16 sps:$4 sm:$0xff]   ;;  %v18493_v46 = vld [vmem:[%s24490_s3 + $0xe8] ss:$16 sps:$4 sm:$0xff]  }
 0x727   :  { %9117 = vmatpush1.bf16.msra.mxu0 %v18434_v23  ;;  %9223 = vmatpush1.bf16.msra.mxu1 %v18437_v25  ;;  %v18498_v23 = vld [vmem:[%s24490_s3 + $0x104] ss:$16 sps:$4 sm:$0xff]   ;;  %v18501_v25 = vld [vmem:[%s24490_s3 + $0x10c] ss:$16 sps:$4 sm:$0xff]  }
 0x728   :  { %9118 = vmatprep.subr.bf16.mxu0 %v18442_v52  ;;  %9224 = vmatprep.subr.bf16.mxu1 %v18445_v17  ;;  %v18496_v52 = vld [vmem:[%s24490_s3 + $0x100] ss:$16 sps:$4 sm:$0xff]   ;;  %v18499_v17 = vld [vmem:[%s24490_s3 + $0x108] ss:$16 sps:$4 sm:$0xff]  }
 0x72b   :  { %9119 = vmatpush1.bf16.msra.mxu0 %v18440_v30  ;;  %9225 = vmatpush1.bf16.msra.mxu1 %v18443_v39  ;;  %v18502_v30 = vld [vmem:[%s24490_s3 + $0x120] ss:$16 sps:$4 sm:$0xff]   ;;  %v18505_v39 = vld [vmem:[%s24490_s3 + $0x128] ss:$16 sps:$4 sm:$0xff]  }
 0x72c   :  { %9927 = vmatprep.subr.bf16.mxu0 %v18448_v26  ;;  %10033 = vmatprep.subr.bf16.mxu1 %v18451_v28  ;;  %v18510_v26 = vld [vmem:[%s24490_s3 + $0x144] ss:$16 sps:$4 sm:$0xff]   ;;  %v18508_v28 = vld [vmem:[%s24490_s3 + $0x140] ss:$16 sps:$4 sm:$0xff]  }
 0x72e   :  { %9121 = vmatmul.mubr.bf16.vlgmr.msra.gmra.mrb[24].mxu0 %v8375_v10  ;;  %9227 = vmatmul.mubr.bf16.vlgmr.msra.gmra.mrb[24].mxu1 %v8375_v10  ;;  %v18520_v10 = vld [vmem:[%s24490_s3 + $0x180] ss:$16 sps:$4 sm:$0xff]  }
 0x72f   :  { %9130 = vmatprep.mubr.bf16.mxu0 %v8386_v43  ;;  %9236 = vmatprep.mubr.bf16.mxu1 %v8386_v43  ;;  %v18528_v43 = vld [vmem:[%s24490_s3 + $0x1a4] ss:$16 sps:$4 sm:$0xff]  }
 0x730   :  { %9928 = vmatpush1.bf16.msra.mxu0 %v18446_v15  ;;  %10034 = vmatpush1.bf16.msra.mxu1 %v18449_v19  ;;  %v18516_v15 = vld [vmem:[%s24490_s3 + $0x164] ss:$16 sps:$4 sm:$0xff]   ;;  %v18519_v19 = vld [vmem:[%s24490_s3 + $0x16c] ss:$16 sps:$4 sm:$0xff]  }
 0x731   :  { %9929 = vmatprep.subr.bf16.mxu0 %v18455_v1  ;;  %10035 = vmatprep.subr.bf16.mxu1 %v18458_v40  ;;  %v18522_v1 = vld [vmem:[%s24490_s3 + $0x184] ss:$16 sps:$4 sm:$0xff]   ;;  %v18525_v40 = vld [vmem:[%s24490_s3 + $0x18c] ss:$16 sps:$4 sm:$0xff]  }
 0x734   :  { %9930 = vmatpush1.bf16.msra.mxu0 %v18453_v45  ;;  %10036 = vmatpush1.bf16.msra.mxu1 %v18456_v2  ;;  %v18531_v45 = vld [vmem:[%s24490_s3 + $0x1ac] ss:$16 sps:$4 sm:$0xff]   ;;  %v18526_v2 = vld [vmem:[%s24490_s3 + $0x1a0] ss:$16 sps:$4 sm:$0xff]  }
 0x735   :  { %9931 = vmatprep.subr.bf16.mxu0 %v18462_v13  ;;  %10037 = vmatprep.subr.bf16.mxu1 %v18465_v62  ;;  %v18529_v13 = vld [vmem:[%s24490_s3 + $0x1a8] ss:$16 sps:$4 sm:$0xff]   ;;  %v18537_v62 = vld [vmem:[%s24490_s3 + $0x1cc] ss:$16 sps:$4 sm:$0xff]  }
 0x736   :  { %9131 = vmatmul.mubr.bf16.gmra.mrb[28].mxu0 %v8384_v50  ;;  %9237 = vmatmul.mubr.bf16.gmra.mrb[28].mxu1 %v8384_v50  ;;  %v18538_v50 = vld [vmem:[%s24490_s3 + $0x1e0] ss:$16 sps:$4 sm:$0xff]  }
 0x737   :  { %9959 = vmatprep.mubr.bf16.mxu0 %v15608_v55  ;;  %10065 = vmatprep.mubr.bf16.mxu1 %v15608_v55  ;;  %v18541_v55 = vld [vmem:[%s24490_s3 + $0x1e8] ss:$16 sps:$4 sm:$0xff]  }
 0x738   :  { %9932 = vmatpush1.bf16.msra.mxu0 %v18460_v32  ;;  %10038 = vmatpush1.bf16.msra.mxu1 %v18463_v48  ;;  %v18532_v32 = vld [vmem:[%s24490_s3 + $0x1c0] ss:$16 sps:$4 sm:$0xff]   ;;  %v18535_v48 = vld [vmem:[%s24490_s3 + $0x1c8] ss:$16 sps:$4 sm:$0xff]  }
 0x739   :  { %9933 = vmatprep.subr.bf16.mxu0 %v18468_v35  ;;  %10039 = vmatprep.subr.bf16.mxu1 %v18471_v49  ;;  %v18540_v35 = vld [vmem:[%s24490_s3 + $0x1e4] ss:$16 sps:$4 sm:$0xff]   ;;  %v18543_v49 = vld [vmem:[%s24490_s3 + $0x1ec] ss:$16 sps:$4 sm:$0xff]  }
 0x73c   :  { %9934 = vmatpush1.bf16.msra.mxu0 %v18466_v14  ;;  %10040 = vmatpush1.bf16.msra.mxu1 %v18469_v54  ;;  %v18546_v14 = vld [vmem:[%s24490_s3 + $0x204] ss:$16 sps:$4 sm:$0xff]   ;;  %v18549_v54 = vld [vmem:[%s24490_s3 + $0x20c] ss:$16 sps:$4 sm:$0xff]  }
 0x73d   :  { %9935 = vmatprep.subr.bf16.mxu0 %v18474_v53  ;;  %10041 = vmatprep.subr.bf16.mxu1 %v18477_v9  ;;  %v18544_v53 = vld [vmem:[%s24490_s3 + $0x200] ss:$16 sps:$4 sm:$0xff]   ;;  %v18547_v9 = vld [vmem:[%s24490_s3 + $0x208] ss:$16 sps:$4 sm:$0xff]  }
 0x740   :  { %9936 = vmatpush1.bf16.msra.mxu0 %v18472_v33  ;;  %10042 = vmatpush1.bf16.msra.mxu1 %v18475_v18  ;;  %v18552_v33 = vld [vmem:[%s24490_s3 + $0x224] ss:$16 sps:$4 sm:$0xff]   ;;  %v18555_v18 = vld [vmem:[%s24490_s3 + $0x22c] ss:$16 sps:$4 sm:$0xff]  }
 0x741   :  { %9937 = vmatprep.subr.bf16.mxu0 %v18480_v56  ;;  %10043 = vmatprep.subr.bf16.mxu1 %v18483_v59  ;;  %v22921_v56 = vld [vmem:[#allocation3 + $0x10] sm:$0xff] }
 0x742   :  { %v15607_v59 = vcombine.low %v22742_v51, %v22921_v56  ;;  %v18558_v51 = vld [vmem:[%s24490_s3 + $0x244] ss:$16 sps:$4 sm:$0xff]  }
 0x744   :  { %9938 = vmatpush1.bf16.msra.mxu0 %v18478_v27  ;;  %10044 = vmatpush1.bf16.msra.mxu1 %v18481_v61  ;;  %v18550_v27 = vld [vmem:[%s24490_s3 + $0x220] ss:$16 sps:$4 sm:$0xff]   ;;  %v18553_v61 = vld [vmem:[%s24490_s3 + $0x228] ss:$16 sps:$4 sm:$0xff]  }
 0x745   :  { %9939 = vmatprep.subr.bf16.mxu0 %v18486_v36  ;;  %10045 = vmatprep.subr.bf16.mxu1 %v18489_v6  ;;  %v18561_v36 = vld [vmem:[%s24490_s3 + $0x24c] ss:$16 sps:$4 sm:$0xff]   ;;  %v18556_v6 = vld [vmem:[%s24490_s3 + $0x240] ss:$16 sps:$4 sm:$0xff]  }
 0x748   :  { %9940 = vmatpush1.bf16.msra.mxu0 %v18484_v7  ;;  %10046 = vmatpush1.bf16.msra.mxu1 %v18487_v58  ;;  %v18559_v7 = vld [vmem:[%s24490_s3 + $0x248] ss:$16 sps:$4 sm:$0xff]   ;;  %v18564_v58 = vld [vmem:[#allocation3 + $0xc] ss:$16 sps:$4 sm:$0xff]  }
 0x749   :  { %9941 = vmatprep.subr.bf16.mxu0 %v18492_v38  ;;  %10047 = vmatprep.subr.bf16.mxu1 %v18495_v11  ;;  %v18567_v38 = vld [vmem:[%s24490_s3 + $0x264] ss:$16 sps:$4 sm:$0xff]   ;;  %v18570_v11 = vld [vmem:[%s24490_s3 + $0x26c] ss:$16 sps:$4 sm:$0xff]  }
 0x74c   :  { %9942 = vmatpush1.bf16.msra.mxu0 %v18490_v22  ;;  %10048 = vmatpush1.bf16.msra.mxu1 %v18493_v46  ;;  %v18565_v22 = vld [vmem:[%s24490_s3 + $0x260] ss:$16 sps:$4 sm:$0xff]   ;;  %v18568_v46 = vld [vmem:[%s24490_s3 + $0x268] ss:$16 sps:$4 sm:$0xff]  }
 0x74d   :  { %9943 = vmatprep.subr.bf16.mxu0 %v18498_v23  ;;  %10049 = vmatprep.subr.bf16.mxu1 %v18501_v25  ;;  %v18573_v23 = vld [vmem:[%s24490_s3 + $0x284] ss:$16 sps:$4 sm:$0xff]   ;;  %v18576_v25 = vld [vmem:[%s24490_s3 + $0x28c] ss:$16 sps:$4 sm:$0xff]  }
 0x750   :  { %9944 = vmatpush1.bf16.msra.mxu0 %v18496_v52  ;;  %10050 = vmatpush1.bf16.msra.mxu1 %v18499_v17  ;;  %v18571_v52 = vld [vmem:[%s24490_s3 + $0x280] ss:$16 sps:$4 sm:$0xff]   ;;  %v18574_v17 = vld [vmem:[%s24490_s3 + $0x288] ss:$16 sps:$4 sm:$0xff]  }
 0x751   :  { %9945 = vmatprep.subr.bf16.mxu0 %v18504_v44  ;;  %10051 = vmatprep.subr.bf16.mxu1 %v18507_v29  ;;  %v18579_v44 = vld [vmem:[%s24490_s3 + $0x2a4] ss:$16 sps:$4 sm:$0xff]   ;;  %v18582_v29 = vld [vmem:[%s24490_s3 + $0x2ac] ss:$16 sps:$4 sm:$0xff]  }
 0x754   :  { %9946 = vmatpush1.bf16.msra.mxu0 %v18502_v30  ;;  %10052 = vmatpush1.bf16.msra.mxu1 %v18505_v39  ;;  %v18577_v30 = vld [vmem:[%s24490_s3 + $0x2a0] ss:$16 sps:$4 sm:$0xff]   ;;  %v18580_v39 = vld [vmem:[%s24490_s3 + $0x2a8] ss:$16 sps:$4 sm:$0xff]  }
 0x755   :  { %9947 = vmatprep.subr.bf16.mxu0 %v18510_v26  ;;  %10053 = vmatprep.subr.bf16.mxu1 %v18513_v31  ;;  %v18585_v26 = vld [vmem:[%s24490_s3 + $0x2c4] ss:$16 sps:$4 sm:$0xff]   ;;  %v18588_v31 = vld [vmem:[%s24490_s3 + $0x2cc] ss:$16 sps:$4 sm:$0xff]  }
 0x758   :  { %9948 = vmatpush1.bf16.msra.mxu0 %v18508_v28  ;;  %10054 = vmatpush1.bf16.msra.mxu1 %v18511_v34  ;;  %v18583_v28 = vld [vmem:[%s24490_s3 + $0x2c0] ss:$16 sps:$4 sm:$0xff]   ;;  %v18586_v34 = vld [vmem:[%s24490_s3 + $0x2c8] ss:$16 sps:$4 sm:$0xff]  }
 0x759   :  { %9949 = vmatprep.subr.bf16.mxu0 %v18516_v15  ;;  %10055 = vmatprep.subr.bf16.mxu1 %v18519_v19  ;;  %v18591_v15 = vld [vmem:[%s24490_s3 + $0x2e4] ss:$16 sps:$4 sm:$0xff]   ;;  %v18594_v19 = vld [vmem:[%s24490_s3 + $0x2ec] ss:$16 sps:$4 sm:$0xff]  }
 0x75c   :  { %9950 = vmatpush1.bf16.msra.mxu0 %v18514_v57  ;;  %10056 = vmatpush1.bf16.msra.mxu1 %v18517_v37  ;;  %v18589_v57 = vld [vmem:[%s24490_s3 + $0x2e0] ss:$16 sps:$4 sm:$0xff]   ;;  %v18592_v37 = vld [vmem:[%s24490_s3 + $0x2e8] ss:$16 sps:$4 sm:$0xff]  }
 0x75d   :  { %9951 = vmatprep.subr.bf16.mxu0 %v18522_v1  ;;  %10057 = vmatprep.subr.bf16.mxu1 %v18525_v40  ;;  %v18597_v1 = vld [vmem:[%s24490_s3 + $0x304] ss:$16 sps:$4 sm:$0xff]   ;;  %v18600_v40 = vld [vmem:[%s24490_s3 + $0x30c] ss:$16 sps:$4 sm:$0xff]  }
 0x760   :  { %9952 = vmatpush1.bf16.msra.mxu0 %v18520_v10  ;;  %10058 = vmatpush1.bf16.msra.mxu1 %v18523_v42  ;;  %v18595_v10 = vld [vmem:[%s24490_s3 + $0x300] ss:$16 sps:$4 sm:$0xff]   ;;  %v18598_v42 = vld [vmem:[%s24490_s3 + $0x308] ss:$16 sps:$4 sm:$0xff]  }
 0x761   :  { %9953 = vmatprep.subr.bf16.mxu0 %v18528_v43  ;;  %10059 = vmatprep.subr.bf16.mxu1 %v18531_v45  ;;  %v18603_v43 = vld [vmem:[%s24490_s3 + $0x324] ss:$16 sps:$4 sm:$0xff]   ;;  %v18606_v45 = vld [vmem:[%s24490_s3 + $0x32c] ss:$16 sps:$4 sm:$0xff]  }
 0x764   :  { %9954 = vmatpush1.bf16.msra.mxu0 %v18526_v2  ;;  %10060 = vmatpush1.bf16.msra.mxu1 %v18529_v13  ;;  %v18601_v2 = vld [vmem:[%s24490_s3 + $0x320] ss:$16 sps:$4 sm:$0xff]   ;;  %v18604_v13 = vld [vmem:[%s24490_s3 + $0x328] ss:$16 sps:$4 sm:$0xff]  }
 0x765   :  { %9955 = vmatprep.subr.bf16.mxu0 %v18534_v21  ;;  %10061 = vmatprep.subr.bf16.mxu1 %v18537_v62  ;;  %v18609_v21 = vld [vmem:[%s24490_s3 + $0x344] ss:$16 sps:$4 sm:$0xff]   ;;  %v18612_v62 = vld [vmem:[%s24490_s3 + $0x34c] ss:$16 sps:$4 sm:$0xff]  }
 0x768   :  { %9956 = vmatpush1.bf16.msra.mxu0 %v18532_v32  ;;  %10062 = vmatpush1.bf16.msra.mxu1 %v18535_v48  ;;  %v18607_v32 = vld [vmem:[%s24490_s3 + $0x340] ss:$16 sps:$4 sm:$0xff]   ;;  %v18610_v48 = vld [vmem:[%s24490_s3 + $0x348] ss:$16 sps:$4 sm:$0xff]  }
 0x769   :  { %9957 = vmatprep.subr.bf16.mxu0 %v18540_v35  ;;  %10063 = vmatprep.subr.bf16.mxu1 %v18543_v49  ;;  %v18615_v35 = vld [vmem:[%s24490_s3 + $0x364] ss:$16 sps:$4 sm:$0xff]   ;;  %v18618_v49 = vld [vmem:[%s24490_s3 + $0x36c] ss:$16 sps:$4 sm:$0xff]  }
 0x76c   :  { %9958 = vmatpush1.bf16.msra.mxu0 %v18538_v50  ;;  %10064 = vmatpush1.bf16.msra.mxu1 %v18541_v55  ;;  %v18613_v50 = vld [vmem:[%s24490_s3 + $0x360] ss:$16 sps:$4 sm:$0xff]   ;;  %v18616_v55 = vld [vmem:[%s24490_s3 + $0x368] ss:$16 sps:$4 sm:$0xff]  }
 0x76d   :  { %9980 = vmatprep.subr.bf16.mxu0 %v18546_v14  ;;  %10086 = vmatprep.subr.bf16.mxu1 %v18549_v54  ;;  %v18621_v14 = vld [vmem:[%s24490_s3 + $0x384] ss:$16 sps:$4 sm:$0xff]   ;;  %v18624_v54 = vld [vmem:[%s24490_s3 + $0x38c] ss:$16 sps:$4 sm:$0xff]  }
 0x76f   :  { %9960 = vmatmul.mubr.bf16.vlgmr.msra.gmra.mrb[24].mxu0 %v15607_v59  ;;  %10066 = vmatmul.mubr.bf16.vlgmr.msra.gmra.mrb[24].mxu1 %v15607_v59  ;;  %v18625_v59 = vld [vmem:[%s24490_s3 + $0x3a0] ss:$16 sps:$4 sm:$0xff]  }
 0x770   :  { %9969 = vmatprep.mubr.bf16.mxu0 %v22485_v0  ;;  %9981 = vmatpush1.bf16.msra.mxu0 %v18544_v53  ;;  %v18619_v53 = vld [vmem:[%s24490_s3 + $0x380] ss:$16 sps:$4 sm:$0xff]  }
 0x771   :  { %10075 = vmatprep.mubr.bf16.mxu1 %v22485_v0  ;;  %10087 = vmatpush1.bf16.msra.mxu1 %v18547_v9  ;;  %v18622_v9 = vld [vmem:[%s24490_s3 + $0x388] ss:$16 sps:$4 sm:$0xff]  }
 0x772   :  { %9982 = vmatprep.subr.bf16.mxu0 %v18552_v33  ;;  %10088 = vmatprep.subr.bf16.mxu1 %v18555_v18  ;;  %v18627_v33 = vld [vmem:[%s24490_s3 + $0x3a4] ss:$16 sps:$4 sm:$0xff]   ;;  %v18630_v18 = vld [vmem:[%s24490_s3 + $0x3ac] ss:$16 sps:$4 sm:$0xff]  }
 0x774   :  { %9983 = vmatpush1.bf16.msra.mxu0 %v18550_v27  ;;  %v18628_v27 = vld [vmem:[%s24490_s3 + $0x3a8] ss:$16 sps:$4 sm:$0xff]  }
 0x775   :  { %10089 = vmatpush1.bf16.msra.mxu1 %v18553_v61  ;;  %9984 = vmatprep.subr.bf16.mxu0 %v18558_v51  ;;  %v18633_v61 = vld [vmem:[%s24490_s3 + $0x3c4] ss:$16 sps:$4 sm:$0xff]   ;;  %v18636_v51 = vld [vmem:[%s24490_s3 + $0x3cc] ss:$16 sps:$4 sm:$0xff]  }
 0x776   :  { %10090 = vmatprep.subr.bf16.mxu1 %v18561_v36  ;;  %v18631_v36 = vld [vmem:[%s24490_s3 + $0x3c0] ss:$16 sps:$4 sm:$0xff]  }
 0x777   :  { %9970 = vmatmul.mubr.bf16.gmra.mrb[28].mxu0 %v22487_v16  ;;  %10076 = vmatmul.mubr.bf16.gmra.mrb[28].mxu1 %v22487_v16 }
 0x778   :  { %9985 = vmatpush1.bf16.msra.mxu0 %v18556_v6  ;;  %10012 = vmatprep.mubr.bf16.mxu0 %v18564_v58  ;;  %v18634_v6 = vld [vmem:[%s24490_s3 + $0x3c8] ss:$16 sps:$4 sm:$0xff]  }
 0x779   :  { %10091 = vmatpush1.bf16.msra.mxu1 %v18559_v7  ;;  %10118 = vmatprep.mubr.bf16.mxu1 %v18564_v58  ;;  %v18639_v7 = vld [vmem:[%s24490_s3 + $0x3e4] ss:$16 sps:$4 sm:$0xff]   ;;  %v18642_v58 = vld [vmem:[%s24490_s3 + $0x3ec] ss:$16 sps:$4 sm:$0xff]  }
 0x77a   :  { %9986 = vmatprep.subr.bf16.mxu0 %v18567_v38  ;;  %10092 = vmatprep.subr.bf16.mxu1 %v18570_v11  ;;  %v18637_v38 = vld [vmem:[%s24490_s3 + $0x3e0] ss:$16 sps:$4 sm:$0xff]   ;;  %v18640_v11 = vld [vmem:[%s24490_s3 + $0x3e8] ss:$16 sps:$4 sm:$0xff]  }
 0x77c   :  { %9987 = vmatpush1.bf16.msra.mxu0 %v18565_v22  ;;  %v18645_v22 = vld [vmem:[%s24490_s3 + $0x804] ss:$16 sps:$4 sm:$0xff]  }
 0x77d   :  { %10093 = vmatpush1.bf16.msra.mxu1 %v18568_v46  ;;  %9988 = vmatprep.subr.bf16.mxu0 %v18573_v23  ;;  %v18648_v46 = vld [vmem:[%s24490_s3 + $0x80c] ss:$16 sps:$4 sm:$0xff]   ;;  %v23109_v23 = vld [vmem:[#allocation3] sm:$0xcc] }
 0x77e   :  { %10094 = vmatprep.subr.bf16.mxu1 %v18576_v25  ;;  %v18562_v25 = vld [vmem:[#allocation3 + $0x8] ss:$16 sps:$4 sm:$0xff]  }
 0x780   :  { %9989 = vmatpush1.bf16.msra.mxu0 %v18571_v52  ;;  %v18643_v52 = vld [vmem:[%s24490_s3 + $0x800] ss:$16 sps:$4 sm:$0xff]  }
 0x781   :  { %10095 = vmatpush1.bf16.msra.mxu1 %v18574_v17  ;;  %9990 = vmatprep.subr.bf16.mxu0 %v18579_v44  ;;  %v18646_v17 = vld [vmem:[%s24490_s3 + $0x808] ss:$16 sps:$4 sm:$0xff]   ;;  %v18649_v44 = vld [vmem:[#allocation3 + $0x2c] ss:$16 sps:$4 sm:$0xff]  }
 0x782   :  { %10096 = vmatprep.subr.bf16.mxu1 %v18582_v29  ;;  %v18653_v29 = vld [vmem:[%s24490_s3 + $0x824] ss:$16 sps:$4 sm:$0xff]  }
 0x784   :  { %9991 = vmatpush1.bf16.msra.mxu0 %v18577_v30  ;;  %v18656_v30 = vld [vmem:[%s24490_s3 + $0x82c] ss:$16 sps:$4 sm:$0xff]  }
 0x785   :  { %10097 = vmatpush1.bf16.msra.mxu1 %v18580_v39  ;;  %9992 = vmatprep.subr.bf16.mxu0 %v18585_v26  ;;  %v15872_v39 = vcombine.high %v23109_v23, %v22921_v56  ;;  %v18651_v26 = vld [vmem:[%s24490_s3 + $0x820] ss:$16 sps:$4 sm:$0xff]  }
 0x786   :  { %10098 = vmatprep.subr.bf16.mxu1 %v18588_v31  ;;  %v18654_v31 = vld [vmem:[%s24490_s3 + $0x828] ss:$16 sps:$4 sm:$0xff]  }
 0x788   :  { %9993 = vmatpush1.bf16.msra.mxu0 %v18583_v28  ;;  %v18660_v28 = vld [vmem:[%s24490_s3 + $0x844] ss:$16 sps:$4 sm:$0xff]  }
 0x789   :  { %10099 = vmatpush1.bf16.msra.mxu1 %v18586_v34  ;;  %9994 = vmatprep.subr.bf16.mxu0 %v18591_v15  ;;  %v18663_v34 = vld [vmem:[%s24490_s3 + $0x84c] ss:$16 sps:$4 sm:$0xff]   ;;  %v10295_v15 = vrot.slane %v15872_v39, 2  ;;  %v18718_v39 = vld [vmem:[%s24490_s3 + $0x980] ss:$16 sps:$4 sm:$0xff]  }
 0x78a   :  { %10100 = vmatprep.subr.bf16.mxu1 %v18594_v19  ;;  %v18657_v19 = vld [vmem:[#allocation3 + $0x28] ss:$16 sps:$4 sm:$0xff]  }
 0x78c   :  { %9995 = vmatpush1.bf16.msra.mxu0 %v18589_v57  ;;  %v18658_v57 = vld [vmem:[%s24490_s3 + $0x840] ss:$16 sps:$4 sm:$0xff]  }
 0x78d   :  { %10101 = vmatpush1.bf16.msra.mxu1 %v18592_v37  ;;  %9996 = vmatprep.subr.bf16.mxu0 %v18597_v1  ;;  %v10296_v37 = vrot.slane %v22485_v0, 2  ;;  %v18661_v1 = vld [vmem:[%s24490_s3 + $0x848] ss:$16 sps:$4 sm:$0xff]  }
 0x78e   :  { %10102 = vmatprep.subr.bf16.mxu1 %v18600_v40  ;;  %v18666_v40 = vld [vmem:[%s24490_s3 + $0x864] ss:$16 sps:$4 sm:$0xff]  }
 0x790   :  { %9997 = vmatpush1.bf16.msra.mxu0 %v18595_v10  ;;  %v10297_v10 = vsel %vm724_vm1, %v10295_v15, %v10296_v37  ;;  %v18727_v15 = vld [vmem:[%s24490_s3 + $0x9a8] ss:$16 sps:$4 sm:$0xff]  }
 0x791   :  { %10103 = vmatpush1.bf16.msra.mxu1 %v18598_v42  ;;  %9998 = vmatprep.subr.bf16.mxu0 %v18603_v43  ;;  %v18669_v42 = vld [vmem:[%s24490_s3 + $0x86c] ss:$16 sps:$4 sm:$0xff]   ;;  %v18664_v43 = vld [vmem:[%s24490_s3 + $0x860] ss:$16 sps:$4 sm:$0xff]  }
 0x792   :  { %10104 = vmatprep.subr.bf16.mxu1 %v18606_v45  ;;  %v18667_v45 = vld [vmem:[%s24490_s3 + $0x868] ss:$16 sps:$4 sm:$0xff]  }
 0x794   :  { %9999 = vmatpush1.bf16.msra.mxu0 %v18601_v2  ;;  %v18672_v2 = vld [vmem:[%s24490_s3 + $0x884] ss:$16 sps:$4 sm:$0xff]  }
 0x795   :  { %10105 = vmatpush1.bf16.msra.mxu1 %v18604_v13  ;;  %10000 = vmatprep.subr.bf16.mxu0 %v18609_v21  ;;  %v18675_v13 = vld [vmem:[%s24490_s3 + $0x88c] ss:$16 sps:$4 sm:$0xff]   ;;  %v18670_v21 = vld [vmem:[%s24490_s3 + $0x880] ss:$16 sps:$4 sm:$0xff]  }
 0x796   :  { %10106 = vmatprep.subr.bf16.mxu1 %v18612_v62  ;;  %v18673_v62 = vld [vmem:[%s24490_s3 + $0x888] ss:$16 sps:$4 sm:$0xff]  }
 0x798   :  { %10001 = vmatpush1.bf16.msra.mxu0 %v18607_v32  ;;  %v18678_v32 = vld [vmem:[%s24490_s3 + $0x8a4] ss:$16 sps:$4 sm:$0xff]  }
 0x799   :  { %10107 = vmatpush1.bf16.msra.mxu1 %v18610_v48  ;;  %10002 = vmatprep.subr.bf16.mxu0 %v18615_v35  ;;  %v18681_v48 = vld [vmem:[%s24490_s3 + $0x8ac] ss:$16 sps:$4 sm:$0xff]   ;;  %v18676_v35 = vld [vmem:[%s24490_s3 + $0x8a0] ss:$16 sps:$4 sm:$0xff]  }
 0x79a   :  { %10108 = vmatprep.subr.bf16.mxu1 %v18618_v49  ;;  %v18679_v49 = vld [vmem:[%s24490_s3 + $0x8a8] ss:$16 sps:$4 sm:$0xff]  }
 0x79c   :  { %10003 = vmatpush1.bf16.msra.mxu0 %v18613_v50  ;;  %v18684_v50 = vld [vmem:[%s24490_s3 + $0x8c4] ss:$16 sps:$4 sm:$0xff]  }
 0x79d   :  { %10109 = vmatpush1.bf16.msra.mxu1 %v18616_v55  ;;  %10004 = vmatprep.subr.bf16.mxu0 %v18621_v14  ;;  %v18687_v55 = vld [vmem:[%s24490_s3 + $0x8cc] ss:$16 sps:$4 sm:$0xff]   ;;  %v18682_v14 = vld [vmem:[%s24490_s3 + $0x8c0] ss:$16 sps:$4 sm:$0xff]  }
 0x79e   :  { %10110 = vmatprep.subr.bf16.mxu1 %v18624_v54  ;;  %v18685_v54 = vld [vmem:[%s24490_s3 + $0x8c8] ss:$16 sps:$4 sm:$0xff]  }
 0x7a0   :  { %10005 = vmatpush1.bf16.msra.mxu0 %v18619_v53  ;;  %v18690_v53 = vld [vmem:[%s24490_s3 + $0x8e4] ss:$16 sps:$4 sm:$0xff]  }
 0x7a1   :  { %10111 = vmatpush1.bf16.msra.mxu1 %v18622_v9  ;;  %10006 = vmatprep.subr.bf16.mxu0 %v18627_v33  ;;  %v18693_v9 = vld [vmem:[%s24490_s3 + $0x8ec] ss:$16 sps:$4 sm:$0xff]   ;;  %v18688_v33 = vld [vmem:[%s24490_s3 + $0x8e0] ss:$16 sps:$4 sm:$0xff]  }
 0x7a2   :  { %10112 = vmatprep.subr.bf16.mxu1 %v18630_v18  ;;  %v18691_v18 = vld [vmem:[%s24490_s3 + $0x8e8] ss:$16 sps:$4 sm:$0xff]  }
 0x7a4   :  { %10007 = vmatpush1.bf16.msra.mxu0 %v18625_v59  ;;  %v18696_v59 = vld [vmem:[%s24490_s3 + $0x904] ss:$16 sps:$4 sm:$0xff]  }
 0x7a5   :  { %10113 = vmatpush1.bf16.msra.mxu1 %v18628_v27  ;;  %10008 = vmatprep.subr.bf16.mxu0 %v18633_v61  ;;  %v18699_v27 = vld [vmem:[%s24490_s3 + $0x90c] ss:$16 sps:$4 sm:$0xff]   ;;  %v18694_v61 = vld [vmem:[%s24490_s3 + $0x900] ss:$16 sps:$4 sm:$0xff]  }
 0x7a6   :  { %10114 = vmatprep.subr.bf16.mxu1 %v18636_v51  ;;  %v18697_v51 = vld [vmem:[%s24490_s3 + $0x908] ss:$16 sps:$4 sm:$0xff]  }
 0x7a8   :  { %10009 = vmatpush1.bf16.msra.mxu0 %v18631_v36  ;;  %v18702_v36 = vld [vmem:[%s24490_s3 + $0x924] ss:$16 sps:$4 sm:$0xff]  }
 0x7a9   :  { %10115 = vmatpush1.bf16.msra.mxu1 %v18634_v6  ;;  %10010 = vmatprep.subr.bf16.mxu0 %v18639_v7  ;;  %v18705_v6 = vld [vmem:[%s24490_s3 + $0x92c] ss:$16 sps:$4 sm:$0xff]   ;;  %v18700_v7 = vld [vmem:[%s24490_s3 + $0x920] ss:$16 sps:$4 sm:$0xff]  }
 0x7aa   :  { %10116 = vmatprep.subr.bf16.mxu1 %v18642_v58  ;;  %v18703_v58 = vld [vmem:[%s24490_s3 + $0x928] ss:$16 sps:$4 sm:$0xff]  }
 0x7ac   :  { %10011 = vmatpush1.bf16.msra.mxu0 %v18637_v38  ;;  %v18708_v38 = vld [vmem:[%s24490_s3 + $0x944] ss:$16 sps:$4 sm:$0xff]  }
 0x7ad   :  { %10117 = vmatpush1.bf16.msra.mxu1 %v18640_v11  ;;  %10960 = vmatprep.subr.bf16.mxu0 %v18645_v22  ;;  %v18711_v11 = vld [vmem:[%s24490_s3 + $0x94c] ss:$16 sps:$4 sm:$0xff]   ;;  %v18706_v22 = vld [vmem:[%s24490_s3 + $0x940] ss:$16 sps:$4 sm:$0xff]  }
 0x7ae   :  { %11066 = vmatprep.subr.bf16.mxu1 %v18648_v46  ;;  %v18709_v46 = vld [vmem:[%s24490_s3 + $0x948] ss:$16 sps:$4 sm:$0xff]  }
 0x7af   :  { %10013 = vmatmul.mubr.bf16.vlgmr.msra.gmra.mrb[24].mxu0 %v18562_v25 }
 0x7b0   :  { %10119 = vmatmul.mubr.bf16.vlgmr.msra.gmra.mrb[24].mxu1 %v18562_v25  ;;  %10022 = vmatprep.mubr.bf16.mxu0 %v18649_v44  ;;  %v18714_v25 = vld [vmem:[%s24490_s3 + $0x964] ss:$16 sps:$4 sm:$0xff]  }
 0x7b1   :  { %10128 = vmatprep.mubr.bf16.mxu1 %v18649_v44  ;;  %10961 = vmatpush1.bf16.msra.mxu0 %v18643_v52  ;;  %v18717_v52 = vld [vmem:[%s24490_s3 + $0x96c] ss:$16 sps:$4 sm:$0xff]   ;;  %v18715_v44 = vld [vmem:[%s24490_s3 + $0x968] ss:$16 sps:$4 sm:$0xff]  }
 0x7b2   :  { %11067 = vmatpush1.bf16.msra.mxu1 %v18646_v17  ;;  %10962 = vmatprep.subr.bf16.mxu0 %v18653_v29  ;;  %v18712_v17 = vld [vmem:[%s24490_s3 + $0x960] ss:$16 sps:$4 sm:$0xff]   ;;  %v18720_v29 = vld [vmem:[%s24490_s3 + $0x984] ss:$16 sps:$4 sm:$0xff]  }
 0x7b3   :  { %11068 = vmatprep.subr.bf16.mxu1 %v18656_v30  ;;  %v18723_v30 = vld [vmem:[%s24490_s3 + $0x98c] ss:$16 sps:$4 sm:$0xff]  }
 0x7b5   :  { %10963 = vmatpush1.bf16.msra.mxu0 %v18651_v26  ;;  %v18721_v26 = vld [vmem:[%s24490_s3 + $0x988] ss:$16 sps:$4 sm:$0xff]  }
 0x7b6   :  { %11069 = vmatpush1.bf16.msra.mxu1 %v18654_v31  ;;  %10964 = vmatprep.subr.bf16.mxu0 %v18660_v28  ;;  %v18726_v31 = vld [vmem:[%s24490_s3 + $0x9a4] ss:$16 sps:$4 sm:$0xff]   ;;  %v18729_v28 = vld [vmem:[%s24490_s3 + $0x9ac] ss:$16 sps:$4 sm:$0xff]  }
 0x7b7   :  { %10023 = vmatmul.mubr.bf16.gmra.mrb[28].mxu0 %v18657_v19  ;;  %11070 = vmatprep.subr.bf16.mxu1 %v18663_v34  ;;  %v18724_v34 = vld [vmem:[%s24490_s3 + $0x9a0] ss:$16 sps:$4 sm:$0xff]  }
 0x7b8   :  { %10129 = vmatmul.mubr.bf16.gmra.mrb[28].mxu1 %v18657_v19  ;;  %10992 = vmatprep.mubr.bf16.mxu0 %v10297_v10  ;;  %v18732_v19 = vld [vmem:[%s24490_s3 + $0x9c4] ss:$16 sps:$4 sm:$0xff]  }
 0x7b9   :  { %10965 = vmatpush1.bf16.msra.mxu0 %v18658_v57  ;;  %11098 = vmatprep.mubr.bf16.mxu1 %v10297_v10  ;;  %v18735_v57 = vld [vmem:[%s24490_s3 + $0x9cc] ss:$16 sps:$4 sm:$0xff]   ;;  %v18733_v10 = vld [vmem:[%s24490_s3 + $0x9c8] ss:$16 sps:$4 sm:$0xff]  }
 0x7ba   :  { %11071 = vmatpush1.bf16.msra.mxu1 %v18661_v1  ;;  %10966 = vmatprep.subr.bf16.mxu0 %v18666_v40  ;;  %v18730_v1 = vld [vmem:[%s24490_s3 + $0x9c0] ss:$16 sps:$4 sm:$0xff]  }
 0x7bb   :  { %11072 = vmatprep.subr.bf16.mxu1 %v18669_v42  ;;  %v10141_v40 = vld [vmem:[#allocation3 + $0x40] sm:$0x33] }
 0x7bc   :  { %v18738_v42 = vld [vmem:[%s24490_s3 + $0x9e4] ss:$16 sps:$4 sm:$0xff]  }
 0x7bd   :  { %10967 = vmatpush1.bf16.msra.mxu0 %v18664_v43  ;;  %v15871_v43 = vcombine.low %v23109_v23, %v22921_v56  ;;  %v18744_v23 = vld [vmem:[%s24490_s3 + $0xa04] ss:$16 sps:$4 sm:$0xff]  }
 0x7be   :  { %11073 = vmatpush1.bf16.msra.mxu1 %v18667_v45  ;;  %10968 = vmatprep.subr.bf16.mxu0 %v18672_v2  ;;  %v18741_v45 = vld [vmem:[%s24490_s3 + $0x9ec] ss:$16 sps:$4 sm:$0xff]   ;;  %v15876_v2 = vcombine.high %v10141_v40, %v10141_v40 }
 0x7bf   :  { %11074 = vmatprep.subr.bf16.mxu1 %v18675_v13  ;;  %v18736_v13 = vld [vmem:[%s24490_s3 + $0x9e0] ss:$16 sps:$4 sm:$0xff]  }
 0x7c1   :  { %10969 = vmatpush1.bf16.msra.mxu0 %v18670_v21  ;;  %v18739_v21 = vld [vmem:[%s24490_s3 + $0x9e8] ss:$16 sps:$4 sm:$0xff]  }
 0x7c2   :  { %11075 = vmatpush1.bf16.msra.mxu1 %v18673_v62  ;;  %10970 = vmatprep.subr.bf16.mxu0 %v18678_v32  ;;  %v10292_v62 = vrot.slane %v15871_v43, 2  ;;  %v18747_v32 = vld [vmem:[%s24490_s3 + $0xa0c] ss:$16 sps:$4 sm:$0xff]   ;;  %v18789_v43 = vld [vmem:[%s24490_s3 + $0xae8] ss:$16 sps:$4 sm:$0xff]  }
 0x7c3   :  { %11076 = vmatprep.subr.bf16.mxu1 %v18681_v48  ;;  %v10306_v48 = vrot.slane %v15876_v2, 2  ;;  %v18797_v2 = vld [vmem:[%s24490_s3 + $0xb0c] ss:$16 sps:$4 sm:$0xff]  }
 0x7c5   :  { %10971 = vmatpush1.bf16.msra.mxu0 %v18676_v35  ;;  %v10293_v35 = vrot.slane %v22487_v16, 2 }
 0x7c6   :  { %11077 = vmatpush1.bf16.msra.mxu1 %v18679_v49  ;;  %10972 = vmatprep.subr.bf16.mxu0 %v18684_v50  ;;  %v23312_v49 = vld [vmem:[#allocation3 + $0x8] sm:$0xcc]  ;;  %v18742_v50 = vld [vmem:[%s24490_s3 + $0xa00] ss:$16 sps:$4 sm:$0xff]  }
 0x7c7   :  { %11078 = vmatprep.subr.bf16.mxu1 %v18687_v55  ;;  %v10294_v55 = vsel %vm724_vm1, %v10292_v62, %v10293_v35  ;;  %v18803_v62 = vld [vmem:[%s24490_s3 + $0xb2c] ss:$16 sps:$4 sm:$0xff]  }
 0x7c9   :  { %10973 = vmatpush1.bf16.msra.mxu0 %v18682_v14  ;;  %v18745_v14 = vld [vmem:[%s24490_s3 + $0xa08] ss:$16 sps:$4 sm:$0xff]  }
 0x7ca   :  { %11079 = vmatpush1.bf16.msra.mxu1 %v18685_v54  ;;  %10974 = vmatprep.subr.bf16.mxu0 %v18690_v53  ;;  %v18751_v54 = vld [vmem:[%s24490_s3 + $0xa24] ss:$16 sps:$4 sm:$0xff]   ;;  %v15875_v53 = vcombine.low %v10141_v40, %v10141_v40 }
 0x7cb   :  { %11080 = vmatprep.subr.bf16.mxu1 %v18693_v9  ;;  %v10307_v9 = vsel %vm724_vm1, %v10296_v37, %v10306_v48  ;;  %v18752_v37 = vld [vmem:[%s24490_s3 + $0xa28] ss:$16 sps:$4 sm:$0xff]   ;;  %v18788_v40 = vld [vmem:[%s24490_s3 + $0xae4] ss:$16 sps:$4 sm:$0xff]  }
 0x7cc   :  { %v18801_v48 = vld [vmem:[%s24490_s3 + $0xb28] ss:$16 sps:$4 sm:$0xff]  }
 0x7cd   :  { %10975 = vmatpush1.bf16.msra.mxu0 %v18688_v33  ;;  %v18754_v33 = vld [vmem:[%s24490_s3 + $0xa2c] ss:$16 sps:$4 sm:$0xff]  }
 0x7ce   :  { %11081 = vmatpush1.bf16.msra.mxu1 %v18691_v18  ;;  %10976 = vmatprep.subr.bf16.mxu0 %v18696_v59  ;;  %v23330_v18 = vld [vmem:[#allocation3 + $0x18] sm:$0xff] }
 0x7cf   :  { %11082 = vmatprep.subr.bf16.mxu1 %v18699_v27  ;;  %v15874_v59 = vcombine.high %v23312_v49, %v23330_v18  ;;  %v18749_v27 = vld [vmem:[%s24490_s3 + $0xa20] ss:$16 sps:$4 sm:$0xff]  }
 0x7d1   :  { %10977 = vmatpush1.bf16.msra.mxu0 %v18694_v61  ;;  %v10304_v61 = vrot.slane %v15875_v53, 2  ;;  %v18815_v53 = vld [vmem:[%s24490_s3 + $0xb6c] ss:$16 sps:$4 sm:$0xff]  }
 0x7d2   :  { %11083 = vmatpush1.bf16.msra.mxu1 %v18697_v51  ;;  %10978 = vmatprep.subr.bf16.mxu0 %v18702_v36  ;;  %v18758_v51 = vld [vmem:[%s24490_s3 + $0xa44] ss:$16 sps:$4 sm:$0xff]   ;;  %v18761_v36 = vld [vmem:[%s24490_s3 + $0xa4c] ss:$16 sps:$4 sm:$0xff]  }
 0x7d3   :  { %11084 = vmatprep.subr.bf16.mxu1 %v18705_v6  ;;  %v10301_v6 = vrot.slane %v15874_v59, 2  ;;  %v18818_v59 = vld [vmem:[%s24490_s3 + $0xb84] ss:$16 sps:$4 sm:$0xff]  }
 0x7d5   :  { %10979 = vmatpush1.bf16.msra.mxu0 %v18700_v7  ;;  %v18756_v7 = vld [vmem:[%s24490_s3 + $0xa40] ss:$16 sps:$4 sm:$0xff]  }
 0x7d6   :  { %11085 = vmatpush1.bf16.msra.mxu1 %v18703_v58  ;;  %10980 = vmatprep.subr.bf16.mxu0 %v18708_v38  ;;  %v10302_v58 = vrot.slane %v22526_v24, 2  ;;  %v10305_v38 = vsel %vm724_vm1, %v10293_v35, %v10304_v61  ;;  %v18806_v35 = vld [vmem:[%s24490_s3 + $0xb44] ss:$16 sps:$4 sm:$0xff]   ;;  %v18819_v61 = vld [vmem:[%s24490_s3 + $0xb88] ss:$16 sps:$4 sm:$0xff]  }
 0x7d7   :  { %11086 = vmatprep.subr.bf16.mxu1 %v18711_v11  ;;  %v18759_v11 = vld [vmem:[%s24490_s3 + $0xa48] ss:$16 sps:$4 sm:$0xff]  }
 0x7d9   :  { %10981 = vmatpush1.bf16.msra.mxu0 %v18706_v22  ;;  %v18764_v22 = vld [vmem:[%s24490_s3 + $0xa64] ss:$16 sps:$4 sm:$0xff]  }
 0x7da   :  { %11087 = vmatpush1.bf16.msra.mxu1 %v18709_v46  ;;  %10982 = vmatprep.subr.bf16.mxu0 %v18714_v25  ;;  %v10303_v46 = vsel %vm724_vm1, %v10301_v6, %v10302_v58  ;;  %v18767_v25 = vld [vmem:[%s24490_s3 + $0xa6c] ss:$16 sps:$4 sm:$0xff]   ;;  %v18822_v6 = vld [vmem:[%s24490_s3 + $0xba0] ss:$16 sps:$4 sm:$0xff]  }
 0x7db   :  { %11088 = vmatprep.subr.bf16.mxu1 %v18717_v52  ;;  %v18762_v52 = vld [vmem:[%s24490_s3 + $0xa60] ss:$16 sps:$4 sm:$0xff]  }
 0x7dd   :  { %10983 = vmatpush1.bf16.msra.mxu0 %v18712_v17  ;;  %v18765_v17 = vld [vmem:[%s24490_s3 + $0xa68] ss:$16 sps:$4 sm:$0xff]  }
 0x7de   :  { %11089 = vmatpush1.bf16.msra.mxu1 %v18715_v44  ;;  %10984 = vmatprep.subr.bf16.mxu0 %v18720_v29  ;;  %v18770_v44 = vld [vmem:[%s24490_s3 + $0xa84] ss:$16 sps:$4 sm:$0xff]   ;;  %v18773_v29 = vld [vmem:[%s24490_s3 + $0xa8c] ss:$16 sps:$4 sm:$0xff]  }
 0x7df   :  { %11090 = vmatprep.subr.bf16.mxu1 %v18723_v30  ;;  %v18768_v30 = vld [vmem:[%s24490_s3 + $0xa80] ss:$16 sps:$4 sm:$0xff]  }
 0x7e1   :  { %10985 = vmatpush1.bf16.msra.mxu0 %v18718_v39  ;;  %v18771_v39 = vld [vmem:[%s24490_s3 + $0xa88] ss:$16 sps:$4 sm:$0xff]  }
 0x7e2   :  { %11091 = vmatpush1.bf16.msra.mxu1 %v18721_v26  ;;  %10986 = vmatprep.subr.bf16.mxu0 %v18726_v31  ;;  %v18776_v26 = vld [vmem:[%s24490_s3 + $0xaa4] ss:$16 sps:$4 sm:$0xff]   ;;  %v18779_v31 = vld [vmem:[%s24490_s3 + $0xaac] ss:$16 sps:$4 sm:$0xff]  }
 0x7e3   :  { %11092 = vmatprep.subr.bf16.mxu1 %v18729_v28  ;;  %v18774_v28 = vld [vmem:[%s24490_s3 + $0xaa0] ss:$16 sps:$4 sm:$0xff]  }
 0x7e5   :  { %10987 = vmatpush1.bf16.msra.mxu0 %v18724_v34  ;;  %v18777_v34 = vld [vmem:[%s24490_s3 + $0xaa8] ss:$16 sps:$4 sm:$0xff]  }
 0x7e6   :  { %11093 = vmatpush1.bf16.msra.mxu1 %v18727_v15  ;;  %10988 = vmatprep.subr.bf16.mxu0 %v18732_v19  ;;  %v18782_v15 = vld [vmem:[%s24490_s3 + $0xac4] ss:$16 sps:$4 sm:$0xff]   ;;  %v18785_v19 = vld [vmem:[%s24490_s3 + $0xacc] ss:$16 sps:$4 sm:$0xff]  }
 0x7e7   :  { %11094 = vmatprep.subr.bf16.mxu1 %v18735_v57  ;;  %v18780_v57 = vld [vmem:[%s24490_s3 + $0xac0] ss:$16 sps:$4 sm:$0xff]  }
 0x7e9   :  { %10989 = vmatpush1.bf16.msra.mxu0 %v18730_v1  ;;  %v18783_v1 = vld [vmem:[%s24490_s3 + $0xac8] ss:$16 sps:$4 sm:$0xff]  }
 0x7ea   :  { %11095 = vmatpush1.bf16.msra.mxu1 %v18733_v10  ;;  %10990 = vmatprep.subr.bf16.mxu0 %v18738_v42  ;;  %v18791_v10 = vld [vmem:[%s24490_s3 + $0xaec] ss:$16 sps:$4 sm:$0xff]   ;;  %v18786_v42 = vld [vmem:[%s24490_s3 + $0xae0] ss:$16 sps:$4 sm:$0xff]  }
 0x7eb   :  { %11096 = vmatprep.subr.bf16.mxu1 %v18741_v45  ;;  %v18794_v45 = vld [vmem:[%s24490_s3 + $0xb04] ss:$16 sps:$4 sm:$0xff]  }
 0x7ed   :  { %10991 = vmatpush1.bf16.msra.mxu0 %v18736_v13  ;;  %v18792_v13 = vld [vmem:[%s24490_s3 + $0xb00] ss:$16 sps:$4 sm:$0xff]  }
 0x7ee   :  { %11097 = vmatpush1.bf16.msra.mxu1 %v18739_v21  ;;  %11013 = vmatprep.subr.bf16.mxu0 %v18744_v23  ;;  %v18795_v21 = vld [vmem:[%s24490_s3 + $0xb08] ss:$16 sps:$4 sm:$0xff]   ;;  %v18800_v23 = vld [vmem:[%s24490_s3 + $0xb24] ss:$16 sps:$4 sm:$0xff]  }
 0x7ef   :  { %11119 = vmatprep.subr.bf16.mxu1 %v18747_v32  ;;  %v18798_v32 = vld [vmem:[%s24490_s3 + $0xb20] ss:$16 sps:$4 sm:$0xff]  }
 0x7f0   :  { %10993 = vmatmul.mubr.bf16.vlgmr.msra.gmra.mrb[24].mxu0 %v10294_v55 }
 0x7f1   :  { %11099 = vmatmul.mubr.bf16.vlgmr.msra.gmra.mrb[24].mxu1 %v10294_v55  ;;  %11002 = vmatprep.mubr.bf16.mxu0 %v10307_v9  ;;  %v18804_v55 = vld [vmem:[%s24490_s3 + $0xb40] ss:$16 sps:$4 sm:$0xff]  }
 0x7f2   :  { %11014 = vmatpush1.bf16.msra.mxu0 %v18742_v50  ;;  %11108 = vmatprep.mubr.bf16.mxu1 %v10307_v9  ;;  %v18809_v50 = vld [vmem:[%s24490_s3 + $0xb4c] ss:$16 sps:$4 sm:$0xff]   ;;  %v18810_v9 = vld [vmem:[%s24490_s3 + $0xb60] ss:$16 sps:$4 sm:$0xff]  }
 0x7f3   :  { %11120 = vmatpush1.bf16.msra.mxu1 %v18745_v14  ;;  %11015 = vmatprep.subr.bf16.mxu0 %v18751_v54  ;;  %v18807_v14 = vld [vmem:[%s24490_s3 + $0xb48] ss:$16 sps:$4 sm:$0xff]   ;;  %v18812_v54 = vld [vmem:[%s24490_s3 + $0xb64] ss:$16 sps:$4 sm:$0xff]  }
 0x7f4   :  { %11121 = vmatprep.subr.bf16.mxu1 %v18754_v33  ;;  %v18813_v33 = vld [vmem:[%s24490_s3 + $0xb68] ss:$16 sps:$4 sm:$0xff]  }
 0x7f6   :  { %11016 = vmatpush1.bf16.msra.mxu0 %v18749_v27  ;;  %v18821_v27 = vld [vmem:[%s24490_s3 + $0xb8c] ss:$16 sps:$4 sm:$0xff]  }
 0x7f7   :  { %11122 = vmatpush1.bf16.msra.mxu1 %v18752_v37  ;;  %11017 = vmatprep.subr.bf16.mxu0 %v18758_v51  ;;  %v18816_v37 = vld [vmem:[%s24490_s3 + $0xb80] ss:$16 sps:$4 sm:$0xff]   ;;  %v18824_v51 = vld [vmem:[%s24490_s3 + $0xba4] ss:$16 sps:$4 sm:$0xff]  }
 0x7f8   :  { %11003 = vmatmul.mubr.bf16.gmra.mrb[28].mxu0 %v10305_v38  ;;  %11123 = vmatprep.subr.bf16.mxu1 %v18761_v36  ;;  %v18827_v36 = vld [vmem:[%s24490_s3 + $0xbac] ss:$16 sps:$4 sm:$0xff]  }
 0x7f9   :  { %11109 = vmatmul.mubr.bf16.gmra.mrb[28].mxu1 %v10305_v38  ;;  %11045 = vmatprep.mubr.bf16.mxu0 %v10303_v46  ;;  %v18830_v38 = vld [vmem:[%s24490_s3 + $0xbc4] ss:$16 sps:$4 sm:$0xff]  }
 0x7fa   :  { %11018 = vmatpush1.bf16.msra.mxu0 %v18756_v7  ;;  %11151 = vmatprep.mubr.bf16.mxu1 %v10303_v46  ;;  %v18825_v7 = vld [vmem:[%s24490_s3 + $0xba8] ss:$16 sps:$4 sm:$0xff]  }
 0x7fb   :  { %11124 = vmatpush1.bf16.msra.mxu1 %v18759_v11  ;;  %11019 = vmatprep.subr.bf16.mxu0 %v18764_v22  ;;  %v18833_v11 = vld [vmem:[%s24490_s3 + $0xbcc] ss:$16 sps:$4 sm:$0xff]   ;;  %v18828_v22 = vld [vmem:[%s24490_s3 + $0xbc0] ss:$16 sps:$4 sm:$0xff]  }
 0x7fc   :  { %11125 = vmatprep.subr.bf16.mxu1 %v18767_v25  ;;  %v10142_v46 = vld [vmem:[#allocation3 + $0x48] sm:$0x33] }
 0x7fd   :  { %v18831_v25 = vld [vmem:[%s24490_s3 + $0xbc8] ss:$16 sps:$4 sm:$0xff]  }
 0x7fe   :  { %11020 = vmatpush1.bf16.msra.mxu0 %v18762_v52  ;;  %v18836_v52 = vld [vmem:[%s24490_s3 + $0xbe4] ss:$16 sps:$4 sm:$0xff]  }
 0x7ff   :  { %11126 = vmatpush1.bf16.msra.mxu1 %v18765_v17  ;;  %11021 = vmatprep.subr.bf16.mxu0 %v18770_v44  ;;  %v15873_v17 = vcombine.low %v23312_v49, %v23330_v18  ;;  %v18839_v44 = vld [vmem:[%s24490_s3 + $0xbec] ss:$16 sps:$4 sm:$0xff]   ;;  %v18842_v49 = vld [vmem:[%s24490_s3 + $0xc04] ss:$16 sps:$4 sm:$0xff]  }
 0x800   :  { %11127 = vmatprep.subr.bf16.mxu1 %v18773_v29  ;;  %v15878_v29 = vcombine.high %v10142_v46, %v10142_v46 }
 0x802   :  { %11022 = vmatpush1.bf16.msra.mxu0 %v18768_v30  ;;  %v18834_v30 = vld [vmem:[%s24490_s3 + $0xbe0] ss:$16 sps:$4 sm:$0xff]  }
 0x803   :  { %11128 = vmatpush1.bf16.msra.mxu1 %v18771_v39  ;;  %11023 = vmatprep.subr.bf16.mxu0 %v18776_v26  ;;  %v18837_v39 = vld [vmem:[%s24490_s3 + $0xbe8] ss:$16 sps:$4 sm:$0xff]   ;;  %v10298_v26 = vrot.slane %v15873_v17, 2  ;;  %v18892_v17 = vld [vmem:[%s24490_s3 + $0xd04] ss:$16 sps:$4 sm:$0xff]  }
 0x804   :  { %11129 = vmatprep.subr.bf16.mxu1 %v18779_v31  ;;  %v18845_v31 = vld [vmem:[%s24490_s3 + $0xc0c] ss:$16 sps:$4 sm:$0xff]  }
 0x806   :  { %11024 = vmatpush1.bf16.msra.mxu0 %v18774_v28  ;;  %v10310_v28 = vrot.slane %v15878_v29, 2  ;;  %v18890_v29 = vld [vmem:[%s24490_s3 + $0xd00] ss:$16 sps:$4 sm:$0xff]  }
 0x807   :  { %11130 = vmatpush1.bf16.msra.mxu1 %v18777_v34  ;;  %11025 = vmatprep.subr.bf16.mxu0 %v18782_v15  ;;  %v10299_v34 = vrot.slane %v22702_v47, 2  ;;  %v23522_v15 = vld [vmem:[#allocation3] sm:$0x88] }
 0x808   :  { %11131 = vmatprep.subr.bf16.mxu1 %v18785_v19  ;;  %v18840_v19 = vld [vmem:[%s24490_s3 + $0xc00] ss:$16 sps:$4 sm:$0xff]  }
 0x80a   :  { %11026 = vmatpush1.bf16.msra.mxu0 %v18780_v57  ;;  %v10300_v57 = vsel %vm724_vm1, %v10298_v26, %v10299_v34  ;;  %v18896_v26 = vld [vmem:[%s24490_s3 + $0xd20] ss:$16 sps:$4 sm:$0xff]  }
 0x80b   :  { %11132 = vmatpush1.bf16.msra.mxu1 %v18783_v1  ;;  %11027 = vmatprep.subr.bf16.mxu0 %v18788_v40  ;;  %v18843_v1 = vld [vmem:[%s24490_s3 + $0xc08] ss:$16 sps:$4 sm:$0xff]   ;;  %v18849_v40 = vld [vmem:[%s24490_s3 + $0xc24] ss:$16 sps:$4 sm:$0xff]  }
 0x80c   :  { %11133 = vmatprep.subr.bf16.mxu1 %v18791_v10  ;;  %v15877_v10 = vcombine.low %v10142_v46, %v10142_v46  ;;  %v18889_v46 = vld [vmem:[%s24490_s3 + $0xcec] ss:$16 sps:$4 sm:$0xff]  }
 0x80e   :  { %11028 = vmatpush1.bf16.msra.mxu0 %v18786_v42  ;;  %v10311_v42 = vsel %vm724_vm1, %v10302_v58, %v10310_v28  ;;  %v18850_v58 = vld [vmem:[%s24490_s3 + $0xc28] ss:$16 sps:$4 sm:$0xff]   ;;  %v18904_v28 = vld [vmem:[%s24490_s3 + $0xd44] ss:$16 sps:$4 sm:$0xff]  }
 0x80f   :  { %11134 = vmatpush1.bf16.msra.mxu1 %v18789_v43  ;;  %11029 = vmatprep.subr.bf16.mxu0 %v18794_v45  ;;  %v18852_v43 = vld [vmem:[%s24490_s3 + $0xc2c] ss:$16 sps:$4 sm:$0xff]   ;;  %v16136_v45 = vcombine.high %v23522_v15, %v22921_v56 }
 0x810   :  { %11135 = vmatprep.subr.bf16.mxu1 %v18797_v2  ;;  %v18847_v2 = vld [vmem:[%s24490_s3 + $0xc20] ss:$16 sps:$4 sm:$0xff]   ;;  %v18859_v56 = vld [vmem:[%s24490_s3 + $0xc4c] ss:$16 sps:$4 sm:$0xff]  }
 0x812   :  { %11030 = vmatpush1.bf16.msra.mxu0 %v18792_v13  ;;  %v10308_v13 = vrot.slane %v15877_v10, 2  ;;  %v18908_v10 = vld [vmem:[%s24490_s3 + $0xd60] ss:$16 sps:$4 sm:$0xff]  }
 0x813   :  { %11136 = vmatpush1.bf16.msra.mxu1 %v18795_v21  ;;  %11031 = vmatprep.subr.bf16.mxu0 %v18800_v23  ;;  %v18856_v21 = vld [vmem:[%s24490_s3 + $0xc44] ss:$16 sps:$4 sm:$0xff]   ;;  %v11344_v23 = vrot.slane %v16136_v45, 3  ;;  %v18919_v45 = vld [vmem:[%s24490_s3 + $0xd8c] ss:$16 sps:$4 sm:$0xff]  }
 0x814   :  { %11137 = vmatprep.subr.bf16.mxu1 %v18803_v62  ;;  %v18854_v62 = vld [vmem:[%s24490_s3 + $0xc40] ss:$16 sps:$4 sm:$0xff]  }
 0x816   :  { %11032 = vmatpush1.bf16.msra.mxu0 %v18798_v32  ;;  %v11345_v32 = vrot.slane %v22485_v0, 3  ;;  %v18948_v0 = vld [vmem:[%s24490_s3 + $0xe28] ss:$16 sps:$4 sm:$0xff]  }
 0x817   :  { %11138 = vmatpush1.bf16.msra.mxu1 %v18801_v48  ;;  %11033 = vmatprep.subr.bf16.mxu0 %v18806_v35  ;;  %v10309_v48 = vsel %vm724_vm1, %v10299_v34, %v10308_v13  ;;  %v18857_v35 = vld [vmem:[%s24490_s3 + $0xc48] ss:$16 sps:$4 sm:$0xff]   ;;  %v18907_v34 = vld [vmem:[%s24490_s3 + $0xd4c] ss:$16 sps:$4 sm:$0xff]   ;;  %v18922_v13 = vld [vmem:[%s24490_s3 + $0xda4] ss:$16 sps:$4 sm:$0xff]  }
 0x818   :  { %11139 = vmatprep.subr.bf16.mxu1 %v18809_v50  ;;  %v18862_v50 = vld [vmem:[%s24490_s3 + $0xc64] ss:$16 sps:$4 sm:$0xff]  }
 0x81a   :  { %11034 = vmatpush1.bf16.msra.mxu0 %v18804_v55  ;;  %v11346_v55 = vsel %vm1055_vm2, %v11344_v23, %v11345_v32  ;;  %v18923_v23 = vld [vmem:[%s24490_s3 + $0xda8] ss:$16 sps:$4 sm:$0xff]  }
 0x81b   :  { %11140 = vmatpush1.bf16.msra.mxu1 %v18807_v14  ;;  %11035 = vmatprep.subr.bf16.mxu0 %v18812_v54  ;;  %v18865_v14 = vld [vmem:[%s24490_s3 + $0xc6c] ss:$16 sps:$4 sm:$0xff]   ;;  %v18860_v54 = vld [vmem:[%s24490_s3 + $0xc60] ss:$16 sps:$4 sm:$0xff]  }
 0x81c   :  { %11141 = vmatprep.subr.bf16.mxu1 %v18815_v53  ;;  %v18863_v53 = vld [vmem:[%s24490_s3 + $0xc68] ss:$16 sps:$4 sm:$0xff]  }
 0x81e   :  { %11036 = vmatpush1.bf16.msra.mxu0 %v18810_v9  ;;  %v18868_v9 = vld [vmem:[%s24490_s3 + $0xc84] ss:$16 sps:$4 sm:$0xff]  }
 0x81f   :  { %11142 = vmatpush1.bf16.msra.mxu1 %v18813_v33  ;;  %11037 = vmatprep.subr.bf16.mxu0 %v18818_v59  ;;  %v18871_v33 = vld [vmem:[%s24490_s3 + $0xc8c] ss:$16 sps:$4 sm:$0xff]   ;;  %v18866_v59 = vld [vmem:[%s24490_s3 + $0xc80] ss:$16 sps:$4 sm:$0xff]  }
 0x820   :  { %11143 = vmatprep.subr.bf16.mxu1 %v18821_v27  ;;  %v18869_v27 = vld [vmem:[%s24490_s3 + $0xc88] ss:$16 sps:$4 sm:$0xff]  }
 0x822   :  { %11038 = vmatpush1.bf16.msra.mxu0 %v18816_v37  ;;  %v18874_v37 = vld [vmem:[%s24490_s3 + $0xca4] ss:$16 sps:$4 sm:$0xff]  }
 0x823   :  { %11144 = vmatpush1.bf16.msra.mxu1 %v18819_v61  ;;  %11039 = vmatprep.subr.bf16.mxu0 %v18824_v51  ;;  %v18877_v61 = vld [vmem:[%s24490_s3 + $0xcac] ss:$16 sps:$4 sm:$0xff]   ;;  %v18872_v51 = vld [vmem:[%s24490_s3 + $0xca0] ss:$16 sps:$4 sm:$0xff]  }
 0x824   :  { %11145 = vmatprep.subr.bf16.mxu1 %v18827_v36  ;;  %v18875_v36 = vld [vmem:[%s24490_s3 + $0xca8] ss:$16 sps:$4 sm:$0xff]  }
 0x826   :  { %11040 = vmatpush1.bf16.msra.mxu0 %v18822_v6  ;;  %v18880_v6 = vld [vmem:[%s24490_s3 + $0xcc4] ss:$16 sps:$4 sm:$0xff]  }
 0x827   :  { %11146 = vmatpush1.bf16.msra.mxu1 %v18825_v7  ;;  %11041 = vmatprep.subr.bf16.mxu0 %v18830_v38  ;;  %v18883_v7 = vld [vmem:[%s24490_s3 + $0xccc] ss:$16 sps:$4 sm:$0xff]   ;;  %v18878_v38 = vld [vmem:[%s24490_s3 + $0xcc0] ss:$16 sps:$4 sm:$0xff]  }
 0x828   :  { %11147 = vmatprep.subr.bf16.mxu1 %v18833_v11  ;;  %v18881_v11 = vld [vmem:[%s24490_s3 + $0xcc8] ss:$16 sps:$4 sm:$0xff]  }
 0x82a   :  { %11042 = vmatpush1.bf16.msra.mxu0 %v18828_v22  ;;  %v18886_v22 = vld [vmem:[%s24490_s3 + $0xce4] ss:$16 sps:$4 sm:$0xff]  }
 0x82b   :  { %11148 = vmatpush1.bf16.msra.mxu1 %v18831_v25  ;;  %11043 = vmatprep.subr.bf16.mxu0 %v18836_v52  ;;  %v18884_v25 = vld [vmem:[%s24490_s3 + $0xce0] ss:$16 sps:$4 sm:$0xff]   ;;  %v18887_v52 = vld [vmem:[%s24490_s3 + $0xce8] ss:$16 sps:$4 sm:$0xff]  }
 0x82c   :  { %11149 = vmatprep.subr.bf16.mxu1 %v18839_v44  ;;  %v18895_v44 = vld [vmem:[%s24490_s3 + $0xd0c] ss:$16 sps:$4 sm:$0xff]  }
 0x82e   :  { %11044 = vmatpush1.bf16.msra.mxu0 %v18834_v30  ;;  %v18893_v30 = vld [vmem:[%s24490_s3 + $0xd08] ss:$16 sps:$4 sm:$0xff]  }
 0x82f   :  { %11150 = vmatpush1.bf16.msra.mxu1 %v18837_v39  ;;  %12009 = vmatprep.subr.bf16.mxu0 %v18842_v49  ;;  %v18898_v39 = vld [vmem:[%s24490_s3 + $0xd24] ss:$16 sps:$4 sm:$0xff]   ;;  %v18901_v49 = vld [vmem:[%s24490_s3 + $0xd2c] ss:$16 sps:$4 sm:$0xff]  }
 0x830   :  { %12115 = vmatprep.subr.bf16.mxu1 %v18845_v31  ;;  %v18899_v31 = vld [vmem:[%s24490_s3 + $0xd28] ss:$16 sps:$4 sm:$0xff]  }
 0x831   :  { %11046 = vmatmul.mubr.bf16.vlgmr.msra.gmra.mrb[24].mxu0 %v10300_v57 }
 0x832   :  { %11152 = vmatmul.mubr.bf16.vlgmr.msra.gmra.mrb[24].mxu1 %v10300_v57  ;;  %11055 = vmatprep.mubr.bf16.mxu0 %v10311_v42  ;;  %v18905_v57 = vld [vmem:[%s24490_s3 + $0xd48] ss:$16 sps:$4 sm:$0xff]  }
 0x833   :  { %11161 = vmatprep.mubr.bf16.mxu1 %v10311_v42  ;;  %12010 = vmatpush1.bf16.msra.mxu0 %v18840_v19  ;;  %v18902_v19 = vld [vmem:[%s24490_s3 + $0xd40] ss:$16 sps:$4 sm:$0xff]   ;;  %v18911_v42 = vld [vmem:[%s24490_s3 + $0xd68] ss:$16 sps:$4 sm:$0xff]  }
 0x834   :  { %12116 = vmatpush1.bf16.msra.mxu1 %v18843_v1  ;;  %12011 = vmatprep.subr.bf16.mxu0 %v18849_v40  ;;  %v18910_v1 = vld [vmem:[%s24490_s3 + $0xd64] ss:$16 sps:$4 sm:$0xff]   ;;  %v18913_v40 = vld [vmem:[%s24490_s3 + $0xd6c] ss:$16 sps:$4 sm:$0xff]  }
 0x835   :  { %12117 = vmatprep.subr.bf16.mxu1 %v18852_v43  ;;  %v18916_v43 = vld [vmem:[%s24490_s3 + $0xd84] ss:$16 sps:$4 sm:$0xff]  }
 0x837   :  { %12012 = vmatpush1.bf16.msra.mxu0 %v18847_v2  ;;  %v18914_v2 = vld [vmem:[%s24490_s3 + $0xd80] ss:$16 sps:$4 sm:$0xff]  }
 0x838   :  { %12118 = vmatpush1.bf16.msra.mxu1 %v18850_v58  ;;  %12013 = vmatprep.subr.bf16.mxu0 %v18856_v21  ;;  %v18917_v58 = vld [vmem:[%s24490_s3 + $0xd88] ss:$16 sps:$4 sm:$0xff]   ;;  %v18925_v21 = vld [vmem:[%s24490_s3 + $0xdac] ss:$16 sps:$4 sm:$0xff]  }
 0x839   :  { %11056 = vmatmul.mubr.bf16.gmra.mrb[28].mxu0 %v10309_v48  ;;  %12119 = vmatprep.subr.bf16.mxu1 %v18859_v56  ;;  %v18920_v56 = vld [vmem:[%s24490_s3 + $0xda0] ss:$16 sps:$4 sm:$0xff]  }
 0x83a   :  { %11162 = vmatmul.mubr.bf16.gmra.mrb[28].mxu1 %v10309_v48  ;;  %12041 = vmatprep.mubr.bf16.mxu0 %v11346_v55  ;;  %v18931_v48 = vld [vmem:[%s24490_s3 + $0xdcc] ss:$16 sps:$4 sm:$0xff]  }
 0x83b   :  { %12014 = vmatpush1.bf16.msra.mxu0 %v18854_v62  ;;  %12147 = vmatprep.mubr.bf16.mxu1 %v11346_v55  ;;  %v18928_v62 = vld [vmem:[%s24490_s3 + $0xdc4] ss:$16 sps:$4 sm:$0xff]   ;;  %v18929_v55 = vld [vmem:[%s24490_s3 + $0xdc8] ss:$16 sps:$4 sm:$0xff]  }
 0x83c   :  { %12120 = vmatpush1.bf16.msra.mxu1 %v18857_v35  ;;  %12015 = vmatprep.subr.bf16.mxu0 %v18862_v50  ;;  %v18926_v35 = vld [vmem:[%s24490_s3 + $0xdc0] ss:$16 sps:$4 sm:$0xff]  }
 0x83d   :  { %12121 = vmatprep.subr.bf16.mxu1 %v18865_v14  ;;  %v11190_v50 = vld [vmem:[#allocation3 + $0x40] sm:$0x77] }
 0x83e   :  { %v18934_v14 = vld [vmem:[%s24490_s3 + $0xde4] ss:$16 sps:$4 sm:$0xff]  }
 0x83f   :  { %12016 = vmatpush1.bf16.msra.mxu0 %v18860_v54  ;;  %v19260_v54 = vld [vmem:[#allocation3 + $0x10] sm:$0xff] }
 0x840   :  { %12122 = vmatpush1.bf16.msra.mxu1 %v18863_v53  ;;  %12017 = vmatprep.subr.bf16.mxu0 %v18868_v9  ;;  %v16135_v53 = vcombine.low %v23522_v15, %v19260_v54  ;;  %v18937_v9 = vld [vmem:[%s24490_s3 + $0xdec] ss:$16 sps:$4 sm:$0xff]   ;;  %v18940_v15 = vld [vmem:[%s24490_s3 + $0xe04] ss:$16 sps:$4 sm:$0xff]  }
 0x841   :  { %12123 = vmatprep.subr.bf16.mxu1 %v18871_v33  ;;  %v16140_v33 = vcombine.high %v11190_v50, %v11190_v50  ;;  %v18993_v54 = vld [vmem:[%s24490_s3 + $0xf0c] ss:$16 sps:$4 sm:$0xff]  }
 0x843   :  { %12018 = vmatpush1.bf16.msra.mxu0 %v18866_v59  ;;  %v18932_v59 = vld [vmem:[%s24490_s3 + $0xde0] ss:$16 sps:$4 sm:$0xff]  }
 0x844   :  { %12124 = vmatpush1.bf16.msra.mxu1 %v18869_v27  ;;  %12019 = vmatprep.subr.bf16.mxu0 %v18874_v37  ;;  %v18935_v27 = vld [vmem:[%s24490_s3 + $0xde8] ss:$16 sps:$4 sm:$0xff]   ;;  %v11341_v37 = vrot.slane %v16135_v53, 3  ;;  %v18988_v53 = vld [vmem:[%s24490_s3 + $0xf00] ss:$16 sps:$4 sm:$0xff]  }
 0x845   :  { %12125 = vmatprep.subr.bf16.mxu1 %v18877_v61  ;;  %v18943_v61 = vld [vmem:[%s24490_s3 + $0xe0c] ss:$16 sps:$4 sm:$0xff]  }
 0x847   :  { %12020 = vmatpush1.bf16.msra.mxu0 %v18872_v51  ;;  %v11355_v51 = vrot.slane %v16140_v33, 3  ;;  %v18996_v33 = vld [vmem:[%s24490_s3 + $0xf24] ss:$16 sps:$4 sm:$0xff]  }
 0x848   :  { %12126 = vmatpush1.bf16.msra.mxu1 %v18875_v36  ;;  %12021 = vmatprep.subr.bf16.mxu0 %v18880_v6  ;;  %v11342_v36 = vrot.slane %v22487_v16, 3  ;;  %v23729_v6 = vld [vmem:[#allocation3 + $0x8] sm:$0x88]  ;;  %v16139_v16 = vcombine.low %v11190_v50, %v11190_v50  ;;  %v18982_v50 = vld [vmem:[%s24490_s3 + $0xee0] ss:$16 sps:$4 sm:$0xff]  }
 0x849   :  { %12127 = vmatprep.subr.bf16.mxu1 %v18883_v7  ;;  %v18938_v7 = vld [vmem:[%s24490_s3 + $0xe00] ss:$16 sps:$4 sm:$0xff]  }
 0x84b   :  { %12022 = vmatpush1.bf16.msra.mxu0 %v18878_v38  ;;  %v11343_v38 = vsel %vm1055_vm2, %v11341_v37, %v11342_v36  ;;  %v19002_v37 = vld [vmem:[%s24490_s3 + $0xf44] ss:$16 sps:$4 sm:$0xff]  }
 0x84c   :  { %12128 = vmatpush1.bf16.msra.mxu1 %v18881_v11  ;;  %12023 = vmatprep.subr.bf16.mxu0 %v18886_v22  ;;  %v18941_v11 = vld [vmem:[%s24490_s3 + $0xe08] ss:$16 sps:$4 sm:$0xff]   ;;  %v18947_v22 = vld [vmem:[%s24490_s3 + $0xe24] ss:$16 sps:$4 sm:$0xff]  }
 0x84d   :  { %12129 = vmatprep.subr.bf16.mxu1 %v18889_v46  ;;  %v11356_v46 = vsel %vm1055_vm2, %v11345_v32, %v11355_v51  ;;  %v11353_v32 = vrot.slane %v16139_v16, 3  ;;  %v19000_v51 = vld [vmem:[%s24490_s3 + $0xf40] ss:$16 sps:$4 sm:$0xff]   ;;  %v19014_v16 = vld [vmem:[%s24490_s3 + $0xf84] ss:$16 sps:$4 sm:$0xff]  }
 0x84f   :  { %12024 = vmatpush1.bf16.msra.mxu0 %v18884_v25  ;;  %v18950_v25 = vld [vmem:[%s24490_s3 + $0xe2c] ss:$16 sps:$4 sm:$0xff]  }
 0x850   :  { %12130 = vmatpush1.bf16.msra.mxu1 %v18887_v52  ;;  %12025 = vmatprep.subr.bf16.mxu0 %v18892_v17  ;;  %v16138_v52 = vcombine.high %v23729_v6, %v23330_v18  ;;  %v18945_v17 = vld [vmem:[%s24490_s3 + $0xe20] ss:$16 sps:$4 sm:$0xff]  }
 0x851   :  { %12131 = vmatprep.subr.bf16.mxu1 %v18895_v44  ;;  %v18954_v44 = vld [vmem:[%s24490_s3 + $0xe44] ss:$16 sps:$4 sm:$0xff]  }
 0x853   :  { %12026 = vmatpush1.bf16.msra.mxu0 %v18890_v29  ;;  %v18957_v29 = vld [vmem:[%s24490_s3 + $0xe4c] ss:$16 sps:$4 sm:$0xff]  }
 0x854   :  { %12132 = vmatpush1.bf16.msra.mxu1 %v18893_v30  ;;  %12027 = vmatprep.subr.bf16.mxu0 %v18898_v39  ;;  %v11350_v30 = vrot.slane %v16138_v52, 3  ;;  %v18952_v39 = vld [vmem:[%s24490_s3 + $0xe40] ss:$16 sps:$4 sm:$0xff]   ;;  %v19015_v52 = vld [vmem:[%s24490_s3 + $0xf88] ss:$16 sps:$4 sm:$0xff]  }
 0x855   :  { %12133 = vmatprep.subr.bf16.mxu1 %v18901_v49  ;;  %v11351_v49 = vrot.slane %v22526_v24, 3  ;;  %v19046_v24 = vld [vmem:[%s24490_s3 + $0x1028] ss:$16 sps:$4 sm:$0xff]  }
 0x857   :  { %12028 = vmatpush1.bf16.msra.mxu0 %v18896_v26  ;;  %v11354_v26 = vsel %vm1055_vm2, %v11342_v36, %v11353_v32  ;;  %v19003_v36 = vld [vmem:[%s24490_s3 + $0xf48] ss:$16 sps:$4 sm:$0xff]   ;;  %v19018_v32 = vld [vmem:[%s24490_s3 + $0xfa0] ss:$16 sps:$4 sm:$0xff]  }
 0x858   :  { %12134 = vmatpush1.bf16.msra.mxu1 %v18899_v31  ;;  %12029 = vmatprep.subr.bf16.mxu0 %v18904_v28  ;;  %v18955_v31 = vld [vmem:[%s24490_s3 + $0xe48] ss:$16 sps:$4 sm:$0xff]   ;;  %v18960_v28 = vld [vmem:[%s24490_s3 + $0xe64] ss:$16 sps:$4 sm:$0xff]  }
 0x859   :  { %12135 = vmatprep.subr.bf16.mxu1 %v18907_v34  ;;  %v11352_v34 = vsel %vm1055_vm2, %v11350_v30, %v11351_v49  ;;  %v19029_v30 = vld [vmem:[%s24490_s3 + $0xfcc] ss:$16 sps:$4 sm:$0xff]  }
 0x85b   :  { %12030 = vmatpush1.bf16.msra.mxu0 %v18902_v19  ;;  %v18963_v19 = vld [vmem:[%s24490_s3 + $0xe6c] ss:$16 sps:$4 sm:$0xff]  }
 0x85c   :  { %12136 = vmatpush1.bf16.msra.mxu1 %v18905_v57  ;;  %12031 = vmatprep.subr.bf16.mxu0 %v18910_v1  ;;  %v18958_v57 = vld [vmem:[%s24490_s3 + $0xe60] ss:$16 sps:$4 sm:$0xff]   ;;  %v18961_v1 = vld [vmem:[%s24490_s3 + $0xe68] ss:$16 sps:$4 sm:$0xff]  }
 0x85d   :  { %12137 = vmatprep.subr.bf16.mxu1 %v18913_v40  ;;  %v18966_v40 = vld [vmem:[%s24490_s3 + $0xe84] ss:$16 sps:$4 sm:$0xff]  }
 0x85f   :  { %12032 = vmatpush1.bf16.msra.mxu0 %v18908_v10  ;;  %v18969_v10 = vld [vmem:[%s24490_s3 + $0xe8c] ss:$16 sps:$4 sm:$0xff]  }
 0x860   :  { %12138 = vmatpush1.bf16.msra.mxu1 %v18911_v42  ;;  %12033 = vmatprep.subr.bf16.mxu0 %v18916_v43  ;;  %v18964_v42 = vld [vmem:[%s24490_s3 + $0xe80] ss:$16 sps:$4 sm:$0xff]   ;;  %v18967_v43 = vld [vmem:[%s24490_s3 + $0xe88] ss:$16 sps:$4 sm:$0xff]  }
 0x861   :  { %12139 = vmatprep.subr.bf16.mxu1 %v18919_v45  ;;  %v18972_v45 = vld [vmem:[%s24490_s3 + $0xea4] ss:$16 sps:$4 sm:$0xff]  }
 0x863   :  { %12034 = vmatpush1.bf16.msra.mxu0 %v18914_v2  ;;  %v18975_v2 = vld [vmem:[%s24490_s3 + $0xeac] ss:$16 sps:$4 sm:$0xff]  }
 0x864   :  { %12140 = vmatpush1.bf16.msra.mxu1 %v18917_v58  ;;  %12035 = vmatprep.subr.bf16.mxu0 %v18922_v13  ;;  %v18970_v58 = vld [vmem:[%s24490_s3 + $0xea0] ss:$16 sps:$4 sm:$0xff]   ;;  %v18973_v13 = vld [vmem:[%s24490_s3 + $0xea8] ss:$16 sps:$4 sm:$0xff]  }
 0x865   :  { %12141 = vmatprep.subr.bf16.mxu1 %v18925_v21  ;;  %v18978_v21 = vld [vmem:[%s24490_s3 + $0xec4] ss:$16 sps:$4 sm:$0xff]  }
 0x867   :  { %12036 = vmatpush1.bf16.msra.mxu0 %v18920_v56  ;;  %v18981_v56 = vld [vmem:[%s24490_s3 + $0xecc] ss:$16 sps:$4 sm:$0xff]  }
 0x868   :  { %12142 = vmatpush1.bf16.msra.mxu1 %v18923_v23  ;;  %12037 = vmatprep.subr.bf16.mxu0 %v18928_v62  ;;  %v18976_v23 = vld [vmem:[%s24490_s3 + $0xec0] ss:$16 sps:$4 sm:$0xff]   ;;  %v18979_v62 = vld [vmem:[%s24490_s3 + $0xec8] ss:$16 sps:$4 sm:$0xff]  }
 0x869   :  { %12143 = vmatprep.subr.bf16.mxu1 %v18931_v48  ;;  %v18984_v48 = vld [vmem:[%s24490_s3 + $0xee4] ss:$16 sps:$4 sm:$0xff]  }
 0x86b   :  { %12038 = vmatpush1.bf16.msra.mxu0 %v18926_v35  ;;  %v18987_v35 = vld [vmem:[%s24490_s3 + $0xeec] ss:$16 sps:$4 sm:$0xff]  }
 0x86c   :  { %12144 = vmatpush1.bf16.msra.mxu1 %v18929_v55  ;;  %12039 = vmatprep.subr.bf16.mxu0 %v18934_v14  ;;  %v18985_v55 = vld [vmem:[%s24490_s3 + $0xee8] ss:$16 sps:$4 sm:$0xff]   ;;  %v18990_v14 = vld [vmem:[%s24490_s3 + $0xf04] ss:$16 sps:$4 sm:$0xff]  }
 0x86d   :  { %12145 = vmatprep.subr.bf16.mxu1 %v18937_v9  ;;  %v18991_v9 = vld [vmem:[%s24490_s3 + $0xf08] ss:$16 sps:$4 sm:$0xff]  }
 0x86f   :  { %12040 = vmatpush1.bf16.msra.mxu0 %v18932_v59  ;;  %v18999_v59 = vld [vmem:[%s24490_s3 + $0xf2c] ss:$16 sps:$4 sm:$0xff]  }
 0x870   :  { %12146 = vmatpush1.bf16.msra.mxu1 %v18935_v27  ;;  %12062 = vmatprep.subr.bf16.mxu0 %v18940_v15  ;;  %v18994_v27 = vld [vmem:[%s24490_s3 + $0xf20] ss:$16 sps:$4 sm:$0xff]   ;;  %v18997_v15 = vld [vmem:[%s24490_s3 + $0xf28] ss:$16 sps:$4 sm:$0xff]  }
 0x871   :  { %12168 = vmatprep.subr.bf16.mxu1 %v18943_v61  ;;  %v19005_v61 = vld [vmem:[%s24490_s3 + $0xf4c] ss:$16 sps:$4 sm:$0xff]  }
 0x872   :  { %12042 = vmatmul.mubr.bf16.vlgmr.msra.gmra.mrb[24].mxu0 %v11343_v38 }
 0x873   :  { %12148 = vmatmul.mubr.bf16.vlgmr.msra.gmra.mrb[24].mxu1 %v11343_v38  ;;  %12051 = vmatprep.mubr.bf16.mxu0 %v11356_v46  ;;  %v19011_v38 = vld [vmem:[%s24490_s3 + $0xf6c] ss:$16 sps:$4 sm:$0xff]  }
 0x874   :  { %12063 = vmatpush1.bf16.msra.mxu0 %v18938_v7  ;;  %12157 = vmatprep.mubr.bf16.mxu1 %v11356_v46  ;;  %v19008_v7 = vld [vmem:[%s24490_s3 + $0xf64] ss:$16 sps:$4 sm:$0xff]   ;;  %v19017_v46 = vld [vmem:[%s24490_s3 + $0xf8c] ss:$16 sps:$4 sm:$0xff]  }
 0x875   :  { %12169 = vmatpush1.bf16.msra.mxu1 %v18941_v11  ;;  %12064 = vmatprep.subr.bf16.mxu0 %v18947_v22  ;;  %v19006_v11 = vld [vmem:[%s24490_s3 + $0xf60] ss:$16 sps:$4 sm:$0xff]   ;;  %v19009_v22 = vld [vmem:[%s24490_s3 + $0xf68] ss:$16 sps:$4 sm:$0xff]  }
 0x876   :  { %12170 = vmatprep.subr.bf16.mxu1 %v18950_v25  ;;  %v19012_v25 = vld [vmem:[%s24490_s3 + $0xf80] ss:$16 sps:$4 sm:$0xff]  }
 0x878   :  { %12065 = vmatpush1.bf16.msra.mxu0 %v18945_v17  ;;  %v19020_v17 = vld [vmem:[%s24490_s3 + $0xfa4] ss:$16 sps:$4 sm:$0xff]  }
 0x879   :  { %12171 = vmatpush1.bf16.msra.mxu1 %v18948_v0  ;;  %12066 = vmatprep.subr.bf16.mxu0 %v18954_v44  ;;  %v19023_v0 = vld [vmem:[%s24490_s3 + $0xfac] ss:$16 sps:$4 sm:$0xff]   ;;  %v19021_v44 = vld [vmem:[%s24490_s3 + $0xfa8] ss:$16 sps:$4 sm:$0xff]  }
 0x87a   :  { %12052 = vmatmul.mubr.bf16.gmra.mrb[28].mxu0 %v11354_v26  ;;  %12172 = vmatprep.subr.bf16.mxu1 %v18957_v29  ;;  %v19026_v29 = vld [vmem:[%s24490_s3 + $0xfc4] ss:$16 sps:$4 sm:$0xff]  }
 0x87b   :  { %12158 = vmatmul.mubr.bf16.gmra.mrb[28].mxu1 %v11354_v26  ;;  %12094 = vmatprep.mubr.bf16.mxu0 %v11352_v34  ;;  %v11191_v26 = vld [vmem:[#allocation3 + $0x48] sm:$0x77] }
 0x87c   :  { %12067 = vmatpush1.bf16.msra.mxu0 %v18952_v39  ;;  %12200 = vmatprep.mubr.bf16.mxu1 %v11352_v34  ;;  %v19024_v39 = vld [vmem:[%s24490_s3 + $0xfc0] ss:$16 sps:$4 sm:$0xff]   ;;  %v16137_v34 = vcombine.low %v23729_v6, %v23330_v18  ;;  %v19038_v18 = vld [vmem:[%s24490_s3 + $0x1004] ss:$16 sps:$4 sm:$0xff]  }
 0x87d   :  { %12173 = vmatpush1.bf16.msra.mxu1 %v18955_v31  ;;  %12068 = vmatprep.subr.bf16.mxu0 %v18960_v28  ;;  %v19027_v31 = vld [vmem:[%s24490_s3 + $0xfc8] ss:$16 sps:$4 sm:$0xff]   ;;  %v19032_v28 = vld [vmem:[%s24490_s3 + $0xfe4] ss:$16 sps:$4 sm:$0xff]  }
 0x87e   :  { %12174 = vmatprep.subr.bf16.mxu1 %v18963_v19  ;;  %v19035_v19 = vld [vmem:[%s24490_s3 + $0xfec] ss:$16 sps:$4 sm:$0xff]   ;;  %v11347_v6 = vrot.slane %v16137_v34, 3  ;;  %v19101_v34 = vld [vmem:[%s24490_s3 + $0x1148] ss:$16 sps:$4 sm:$0xff]  }
 0x880   :  { %12069 = vmatpush1.bf16.msra.mxu0 %v18958_v57  ;;  %v16142_v57 = vcombine.high %v11191_v26, %v11191_v26 }
 0x881   :  { %12175 = vmatpush1.bf16.msra.mxu1 %v18961_v1  ;;  %12070 = vmatprep.subr.bf16.mxu0 %v18966_v40  ;;  %v19030_v1 = vld [vmem:[%s24490_s3 + $0xfe0] ss:$16 sps:$4 sm:$0xff]   ;;  %v19033_v40 = vld [vmem:[%s24490_s3 + $0xfe8] ss:$16 sps:$4 sm:$0xff]  }
 0x882   :  { %12176 = vmatprep.subr.bf16.mxu1 %v18969_v10  ;;  %v19041_v10 = vld [vmem:[%s24490_s3 + $0x100c] ss:$16 sps:$4 sm:$0xff]  }
 0x884   :  { %12071 = vmatpush1.bf16.msra.mxu0 %v18964_v42  ;;  %v11359_v42 = vrot.slane %v16142_v57, 3  ;;  %v19109_v57 = vld [vmem:[%s24490_s3 + $0x116c] ss:$16 sps:$4 sm:$0xff]  }
 0x885   :  { %12177 = vmatpush1.bf16.msra.mxu1 %v18967_v43  ;;  %12072 = vmatprep.subr.bf16.mxu0 %v18972_v45  ;;  %v11348_v43 = vrot.slane %v22702_v47, 3  ;;  %v19036_v45 = vld [vmem:[%s24490_s3 + $0x1000] ss:$16 sps:$4 sm:$0xff]  }
 0x886   :  { %12178 = vmatprep.subr.bf16.mxu1 %v18975_v2  ;;  %v11360_v47 = vsel %vm1055_vm2, %v11351_v49, %v11359_v42  ;;  %v19052_v49 = vld [vmem:[%s24490_s3 + $0x1044] ss:$16 sps:$4 sm:$0xff]   ;;  %v19113_v42 = vld [vmem:[%s24490_s3 + $0x1188] ss:$16 sps:$4 sm:$0xff]  }
 0x887   :  { %v11349_v2 = vsel %vm1055_vm2, %v11347_v6, %v11348_v43  ;;  %v19115_v6 = vld [vmem:[%s24490_s3 + $0x118c] ss:$16 sps:$4 sm:$0xff]  }
 0x888   :  { %12073 = vmatpush1.bf16.msra.mxu0 %v18970_v58  ;;  %v19039_v58 = vld [vmem:[%s24490_s3 + $0x1008] ss:$16 sps:$4 sm:$0xff]  }
 0x889   :  { %12179 = vmatpush1.bf16.msra.mxu1 %v18973_v13  ;;  %12074 = vmatprep.subr.bf16.mxu0 %v18978_v21  ;;  %v19045_v13 = vld [vmem:[%s24490_s3 + $0x1024] ss:$16 sps:$4 sm:$0xff]   ;;  %v16141_v21 = vcombine.low %v11191_v26, %v11191_v26 }
 0x88a   :  { %12180 = vmatprep.subr.bf16.mxu1 %v18981_v56  ;;  %v19048_v56 = vld [vmem:[%s24490_s3 + $0x102c] ss:$16 sps:$4 sm:$0xff]   ;;  %v19100_v26 = vld [vmem:[%s24490_s3 + $0x1144] ss:$16 sps:$4 sm:$0xff]  }
 0x88c   :  { %12075 = vmatpush1.bf16.msra.mxu0 %v18976_v23  ;;  %v19043_v23 = vld [vmem:[%s24490_s3 + $0x1020] ss:$16 sps:$4 sm:$0xff]  }
 0x88d   :  { %12181 = vmatpush1.bf16.msra.mxu1 %v18979_v62  ;;  %12076 = vmatprep.subr.bf16.mxu0 %v18984_v48  ;;  %v11357_v62 = vrot.slane %v16141_v21, 3  ;;  %v19055_v48 = vld [vmem:[%s24490_s3 + $0x104c] ss:$16 sps:$4 sm:$0xff]  }
 0x88e   :  { %12182 = vmatprep.subr.bf16.mxu1 %v18987_v35  ;;  %v19050_v35 = vld [vmem:[%s24490_s3 + $0x1040] ss:$16 sps:$4 sm:$0xff]   ;;  %v19127_v21 = vld [vmem:[%s24490_s3 + $0x11cc] ss:$16 sps:$4 sm:$0xff]  }
 0x890   :  { %12077 = vmatpush1.bf16.msra.mxu0 %v18982_v50  ;;  %v11358_v50 = vsel %vm1055_vm2, %v11348_v43, %v11357_v62  ;;  %v19118_v43 = vld [vmem:[%s24490_s3 + $0x11a4] ss:$16 sps:$4 sm:$0xff]   ;;  %v19128_v62 = vld [vmem:[%s24490_s3 + $0x11e0] ss:$16 sps:$4 sm:$0xff]  }
 0x891   :  { %12183 = vmatpush1.bf16.msra.mxu1 %v18985_v55  ;;  %12078 = vmatprep.subr.bf16.mxu0 %v18990_v14  ;;  %v19053_v55 = vld [vmem:[%s24490_s3 + $0x1048] ss:$16 sps:$4 sm:$0xff]   ;;  %v19058_v14 = vld [vmem:[%s24490_s3 + $0x1064] ss:$16 sps:$4 sm:$0xff]  }
 0x892   :  { %12184 = vmatprep.subr.bf16.mxu1 %v18993_v54  ;;  %v19061_v54 = vld [vmem:[%s24490_s3 + $0x106c] ss:$16 sps:$4 sm:$0xff]  }
 0x894   :  { %12079 = vmatpush1.bf16.msra.mxu0 %v18988_v53  ;;  %v19056_v53 = vld [vmem:[%s24490_s3 + $0x1060] ss:$16 sps:$4 sm:$0xff]  }
 0x895   :  { %12185 = vmatpush1.bf16.msra.mxu1 %v18991_v9  ;;  %12080 = vmatprep.subr.bf16.mxu0 %v18996_v33  ;;  %v19059_v9 = vld [vmem:[%s24490_s3 + $0x1068] ss:$16 sps:$4 sm:$0xff]   ;;  %v19064_v33 = vld [vmem:[%s24490_s3 + $0x1084] ss:$16 sps:$4 sm:$0xff]  }
 0x896   :  { %12186 = vmatprep.subr.bf16.mxu1 %v18999_v59  ;;  %v19067_v59 = vld [vmem:[%s24490_s3 + $0x108c] ss:$16 sps:$4 sm:$0xff]  }
 0x898   :  { %12081 = vmatpush1.bf16.msra.mxu0 %v18994_v27  ;;  %v19065_v27 = vld [vmem:[%s24490_s3 + $0x1088] ss:$16 sps:$4 sm:$0xff]  }
 0x899   :  { %12187 = vmatpush1.bf16.msra.mxu1 %v18997_v15  ;;  %12082 = vmatprep.subr.bf16.mxu0 %v19002_v37  ;;  %v19070_v15 = vld [vmem:[%s24490_s3 + $0x10a4] ss:$16 sps:$4 sm:$0xff]   ;;  %v19073_v37 = vld [vmem:[%s24490_s3 + $0x10ac] ss:$16 sps:$4 sm:$0xff]  }
 0x89a   :  { %12188 = vmatprep.subr.bf16.mxu1 %v19005_v61  ;;  %v19068_v61 = vld [vmem:[%s24490_s3 + $0x10a0] ss:$16 sps:$4 sm:$0xff]  }
 0x89c   :  { %12083 = vmatpush1.bf16.msra.mxu0 %v19000_v51  ;;  %v19071_v51 = vld [vmem:[%s24490_s3 + $0x10a8] ss:$16 sps:$4 sm:$0xff]  }
 0x89d   :  { %12189 = vmatpush1.bf16.msra.mxu1 %v19003_v36  ;;  %12084 = vmatprep.subr.bf16.mxu0 %v19008_v7  ;;  %v19076_v36 = vld [vmem:[%s24490_s3 + $0x10c4] ss:$16 sps:$4 sm:$0xff]   ;;  %v19079_v7 = vld [vmem:[%s24490_s3 + $0x10cc] ss:$16 sps:$4 sm:$0xff]  }
 0x89e   :  { %12190 = vmatprep.subr.bf16.mxu1 %v19011_v38  ;;  %v19074_v38 = vld [vmem:[%s24490_s3 + $0x10c0] ss:$16 sps:$4 sm:$0xff]  }
 0x8a0   :  { %12085 = vmatpush1.bf16.msra.mxu0 %v19006_v11  ;;  %v19077_v11 = vld [vmem:[%s24490_s3 + $0x10c8] ss:$16 sps:$4 sm:$0xff]  }
 0x8a1   :  { %12191 = vmatpush1.bf16.msra.mxu1 %v19009_v22  ;;  %12086 = vmatprep.subr.bf16.mxu0 %v19014_v16  ;;  %v19082_v22 = vld [vmem:[%s24490_s3 + $0x10e4] ss:$16 sps:$4 sm:$0xff]   ;;  %v19085_v16 = vld [vmem:[%s24490_s3 + $0x10ec] ss:$16 sps:$4 sm:$0xff]  }
 0x8a2   :  { %12192 = vmatprep.subr.bf16.mxu1 %v19017_v46  ;;  %v19080_v46 = vld [vmem:[%s24490_s3 + $0x10e0] ss:$16 sps:$4 sm:$0xff]  }
 0x8a4   :  { %12087 = vmatpush1.bf16.msra.mxu0 %v19012_v25  ;;  %v19083_v25 = vld [vmem:[%s24490_s3 + $0x10e8] ss:$16 sps:$4 sm:$0xff]  }
 0x8a5   :  { %12193 = vmatpush1.bf16.msra.mxu1 %v19015_v52  ;;  %12088 = vmatprep.subr.bf16.mxu0 %v19020_v17  ;;  %v19088_v52 = vld [vmem:[%s24490_s3 + $0x1104] ss:$16 sps:$4 sm:$0xff]   ;;  %v19091_v17 = vld [vmem:[%s24490_s3 + $0x110c] ss:$16 sps:$4 sm:$0xff]  }
 0x8a6   :  { %12194 = vmatprep.subr.bf16.mxu1 %v19023_v0  ;;  %v19086_v0 = vld [vmem:[%s24490_s3 + $0x1100] ss:$16 sps:$4 sm:$0xff]  }
 0x8a8   :  { %12089 = vmatpush1.bf16.msra.mxu0 %v19018_v32  ;;  %v19089_v32 = vld [vmem:[%s24490_s3 + $0x1108] ss:$16 sps:$4 sm:$0xff]  }
 0x8a9   :  { %12195 = vmatpush1.bf16.msra.mxu1 %v19021_v44  ;;  %12090 = vmatprep.subr.bf16.mxu0 %v19026_v29  ;;  %v19094_v44 = vld [vmem:[%s24490_s3 + $0x1124] ss:$16 sps:$4 sm:$0xff]   ;;  %v19097_v29 = vld [vmem:[%s24490_s3 + $0x112c] ss:$16 sps:$4 sm:$0xff]  }
 0x8aa   :  { %12196 = vmatprep.subr.bf16.mxu1 %v19029_v30  ;;  %v19092_v30 = vld [vmem:[%s24490_s3 + $0x1120] ss:$16 sps:$4 sm:$0xff]  }
 0x8ac   :  { %12091 = vmatpush1.bf16.msra.mxu0 %v19024_v39  ;;  %v19095_v39 = vld [vmem:[%s24490_s3 + $0x1128] ss:$16 sps:$4 sm:$0xff]  }
 0x8ad   :  { %12197 = vmatpush1.bf16.msra.mxu1 %v19027_v31  ;;  %12092 = vmatprep.subr.bf16.mxu0 %v19032_v28  ;;  %v19103_v31 = vld [vmem:[%s24490_s3 + $0x114c] ss:$16 sps:$4 sm:$0xff]   ;;  %v19098_v28 = vld [vmem:[%s24490_s3 + $0x1140] ss:$16 sps:$4 sm:$0xff]  }
 0x8ae   :  { %12198 = vmatprep.subr.bf16.mxu1 %v19035_v19  ;;  %v19106_v19 = vld [vmem:[%s24490_s3 + $0x1164] ss:$16 sps:$4 sm:$0xff]  }
 0x8b0   :  { %12093 = vmatpush1.bf16.msra.mxu0 %v19030_v1  ;;  %v19104_v1 = vld [vmem:[%s24490_s3 + $0x1160] ss:$16 sps:$4 sm:$0xff]  }
 0x8b1   :  { %12199 = vmatpush1.bf16.msra.mxu1 %v19033_v40  ;;  %13030 = vmatprep.subr.bf16.mxu0 %v19038_v18  ;;  %v19107_v40 = vld [vmem:[%s24490_s3 + $0x1168] ss:$16 sps:$4 sm:$0xff]   ;;  %v19112_v18 = vld [vmem:[%s24490_s3 + $0x1184] ss:$16 sps:$4 sm:$0xff]  }
 0x8b2   :  { %13136 = vmatprep.subr.bf16.mxu1 %v19041_v10  ;;  %v19110_v10 = vld [vmem:[%s24490_s3 + $0x1180] ss:$16 sps:$4 sm:$0xff]  }
 0x8b3   :  { %12095 = vmatmul.mubr.bf16.vlgmr.msra.gmra.mrb[24].mxu0 %v11349_v2 }
 0x8b4   :  { %12201 = vmatmul.mubr.bf16.vlgmr.msra.gmra.mrb[24].mxu1 %v11349_v2  ;;  %12104 = vmatprep.mubr.bf16.mxu0 %v11360_v47  ;;  %v19116_v2 = vld [vmem:[%s24490_s3 + $0x11a0] ss:$16 sps:$4 sm:$0xff]  }
 0x8b5   :  { %12210 = vmatprep.mubr.bf16.mxu1 %v11360_v47  ;;  %13031 = vmatpush1.bf16.msra.mxu0 %v19036_v45  ;;  %v19121_v45 = vld [vmem:[%s24490_s3 + $0x11ac] ss:$16 sps:$4 sm:$0xff]   ;;  %v19122_v47 = vld [vmem:[%s24490_s3 + $0x11c0] ss:$16 sps:$4 sm:$0xff]  }
 0x8b6   :  { %13137 = vmatpush1.bf16.msra.mxu1 %v19039_v58  ;;  %13032 = vmatprep.subr.bf16.mxu0 %v19045_v13  ;;  %v19119_v58 = vld [vmem:[%s24490_s3 + $0x11a8] ss:$16 sps:$4 sm:$0xff]   ;;  %v19124_v13 = vld [vmem:[%s24490_s3 + $0x11c4] ss:$16 sps:$4 sm:$0xff]  }
 0x8b7   :  { %13138 = vmatprep.subr.bf16.mxu1 %v19048_v56  ;;  %v19125_v56 = vld [vmem:[%s24490_s3 + $0x11c8] ss:$16 sps:$4 sm:$0xff]  }
 0x8b9   :  { %13033 = vmatpush1.bf16.msra.mxu0 %v19043_v23  ;;  %v19130_v23 = vld [vmem:[%s24490_s3 + $0x11e4] ss:$16 sps:$4 sm:$0xff]  }
 0x8ba   :  { %13139 = vmatpush1.bf16.msra.mxu1 %v19046_v24  ;;  %13034 = vmatprep.subr.bf16.mxu0 %v19052_v49  ;;  %v19133_v24 = vld [vmem:[%s24490_s3 + $0x11ec] ss:$16 sps:$4 sm:$0xff]   ;;  %v19131_v49 = vld [vmem:[%s24490_s3 + $0x11e8] ss:$16 sps:$4 sm:$0xff]  }
 0x8bb   :  { %12105 = vmatmul.mubr.bf16.gmra.mrb[28].mxu0 %v11358_v50  ;;  %13140 = vmatprep.subr.bf16.mxu1 %v19055_v48  ;;  %v19136_v48 = vld [vmem:[%s24490_s3 + $0x1204] ss:$16 sps:$4 sm:$0xff]  }
 0x8bc   :  { %12211 = vmatmul.mubr.bf16.gmra.mrb[28].mxu1 %v11358_v50  ;;  %13062 = vmatprep.mubr.bf16.mxu0 %v22480_v63  ;;  %v12237_v50 = vld [vmem:[#allocation3 + $0x40] sm:$0xff] }
 0x8bd   :  { %13035 = vmatpush1.bf16.msra.mxu0 %v19050_v35  ;;  %13168 = vmatprep.mubr.bf16.mxu1 %v22480_v63  ;;  %v19062_v63 = vld [vmem:[%s24490_s3 + $0x1080] ss:$16 sps:$4 sm:$0xff]   ;;  %v19139_v35 = vld [vmem:[%s24490_s3 + $0x120c] ss:$16 sps:$4 sm:$0xff]  }
 0x8be   :  { %13141 = vmatpush1.bf16.msra.mxu1 %v19053_v55  ;;  %13036 = vmatprep.subr.bf16.mxu0 %v19058_v14  ;;  %v19134_v55 = vld [vmem:[%s24490_s3 + $0x1200] ss:$16 sps:$4 sm:$0xff]   ;;  %v19137_v14 = vld [vmem:[%s24490_s3 + $0x1208] ss:$16 sps:$4 sm:$0xff]  }
 0x8bf   :  { %13142 = vmatprep.subr.bf16.mxu1 %v19061_v54  ;;  %v19261_v54 = vld [vmem:[#allocation3 + $0x30] sm:$0xff] }
 0x8c1   :  { %13037 = vmatpush1.bf16.msra.mxu0 %v19056_v53  ;;  %v16404_v53 = vcombine.high %v19261_v54, %v12237_v50 }
 0x8c2   :  { %13143 = vmatpush1.bf16.msra.mxu1 %v19059_v9  ;;  %13038 = vmatprep.subr.bf16.mxu0 %v19064_v33  ;;  %v19142_v9 = vld [vmem:[%s24490_s3 + $0x1224] ss:$16 sps:$4 sm:$0xff]   ;;  %v19145_v33 = vld [vmem:[%s24490_s3 + $0x122c] ss:$16 sps:$4 sm:$0xff]  }
 0x8c3   :  { %13144 = vmatprep.subr.bf16.mxu1 %v19067_v59  ;;  %v19140_v59 = vld [vmem:[%s24490_s3 + $0x1220] ss:$16 sps:$4 sm:$0xff]  }
 0x8c5   :  { %13039 = vmatpush1.bf16.msra.mxu0 %v19062_v63  ;;  %v19143_v63 = vld [vmem:[%s24490_s3 + $0x1228] ss:$16 sps:$4 sm:$0xff]  }
 0x8c6   :  { %13145 = vmatpush1.bf16.msra.mxu1 %v19065_v27  ;;  %13040 = vmatprep.subr.bf16.mxu0 %v19070_v15  ;;  %v19148_v27 = vld [vmem:[%s24490_s3 + $0x1244] ss:$16 sps:$4 sm:$0xff]   ;;  %v16403_v15 = vcombine.low %v19261_v54, %v12237_v50  ;;  %v19215_v54 = vld [vmem:[%s24490_s3 + $0x13a8] ss:$16 sps:$4 sm:$0xff]  }
 0x8c7   :  { %13146 = vmatprep.subr.bf16.mxu1 %v19073_v37  ;;  %v19146_v37 = vld [vmem:[%s24490_s3 + $0x1240] ss:$16 sps:$4 sm:$0xff]   ;;  %v19214_v50 = vld [vmem:[%s24490_s3 + $0x13a4] ss:$16 sps:$4 sm:$0xff]  }
 0x8c9   :  { %13041 = vmatpush1.bf16.msra.mxu0 %v19068_v61  ;;  %v19149_v61 = vld [vmem:[%s24490_s3 + $0x1248] ss:$16 sps:$4 sm:$0xff]  }
 0x8ca   :  { %13147 = vmatpush1.bf16.msra.mxu1 %v19071_v51  ;;  %13042 = vmatprep.subr.bf16.mxu0 %v19076_v36  ;;  %v24168_v51 = vld [vmem:[#allocation3 + $0x18] sm:$0xff]  ;;  %v24170_v36 = vld [vmem:[#allocation3 + $0x28] sm:$0xff] }
 0x8cb   :  { %13148 = vmatprep.subr.bf16.mxu1 %v19079_v7  ;;  %v16402_v7 = vcombine.high %v24168_v51, %v24170_v36 }
 0x8cd   :  { %13043 = vmatpush1.bf16.msra.mxu0 %v19074_v38  ;;  %v19154_v38 = vld [vmem:[%s24490_s3 + $0x1264] ss:$16 sps:$4 sm:$0xff]  }
 0x8ce   :  { %13149 = vmatpush1.bf16.msra.mxu1 %v19077_v11  ;;  %13044 = vmatprep.subr.bf16.mxu0 %v19082_v22  ;;  %v19157_v11 = vld [vmem:[%s24490_s3 + $0x126c] ss:$16 sps:$4 sm:$0xff]   ;;  %v19152_v22 = vld [vmem:[%s24490_s3 + $0x1260] ss:$16 sps:$4 sm:$0xff]  }
 0x8cf   :  { %13150 = vmatprep.subr.bf16.mxu1 %v19085_v16  ;;  %v19155_v16 = vld [vmem:[%s24490_s3 + $0x1268] ss:$16 sps:$4 sm:$0xff]  }
 0x8d1   :  { %13045 = vmatpush1.bf16.msra.mxu0 %v19080_v46  ;;  %v19160_v46 = vld [vmem:[%s24490_s3 + $0x1284] ss:$16 sps:$4 sm:$0xff]  }
 0x8d2   :  { %13151 = vmatpush1.bf16.msra.mxu1 %v19083_v25  ;;  %13046 = vmatprep.subr.bf16.mxu0 %v19088_v52  ;;  %v19163_v25 = vld [vmem:[%s24490_s3 + $0x128c] ss:$16 sps:$4 sm:$0xff]   ;;  %v19158_v52 = vld [vmem:[%s24490_s3 + $0x1280] ss:$16 sps:$4 sm:$0xff]  }
 0x8d3   :  { %13152 = vmatprep.subr.bf16.mxu1 %v19091_v17  ;;  %v19161_v17 = vld [vmem:[%s24490_s3 + $0x1288] ss:$16 sps:$4 sm:$0xff]  }
 0x8d5   :  { %13047 = vmatpush1.bf16.msra.mxu0 %v19086_v0  ;;  %v19166_v0 = vld [vmem:[%s24490_s3 + $0x12a4] ss:$16 sps:$4 sm:$0xff]  }
 0x8d6   :  { %13153 = vmatpush1.bf16.msra.mxu1 %v19089_v32  ;;  %13048 = vmatprep.subr.bf16.mxu0 %v19094_v44  ;;  %v19169_v32 = vld [vmem:[%s24490_s3 + $0x12ac] ss:$16 sps:$4 sm:$0xff]   ;;  %v19164_v44 = vld [vmem:[%s24490_s3 + $0x12a0] ss:$16 sps:$4 sm:$0xff]  }
 0x8d7   :  { %13154 = vmatprep.subr.bf16.mxu1 %v19097_v29  ;;  %v19167_v29 = vld [vmem:[%s24490_s3 + $0x12a8] ss:$16 sps:$4 sm:$0xff]  }
 0x8d9   :  { %13049 = vmatpush1.bf16.msra.mxu0 %v19092_v30  ;;  %v19172_v30 = vld [vmem:[%s24490_s3 + $0x12c4] ss:$16 sps:$4 sm:$0xff]  }
 0x8da   :  { %13155 = vmatpush1.bf16.msra.mxu1 %v19095_v39  ;;  %13050 = vmatprep.subr.bf16.mxu0 %v19100_v26  ;;  %v19175_v39 = vld [vmem:[%s24490_s3 + $0x12cc] ss:$16 sps:$4 sm:$0xff]   ;;  %v19170_v26 = vld [vmem:[%s24490_s3 + $0x12c0] ss:$16 sps:$4 sm:$0xff]  }
 0x8db   :  { %13156 = vmatprep.subr.bf16.mxu1 %v19103_v31  ;;  %v19173_v31 = vld [vmem:[%s24490_s3 + $0x12c8] ss:$16 sps:$4 sm:$0xff]  }
 0x8dd   :  { %13051 = vmatpush1.bf16.msra.mxu0 %v19098_v28  ;;  %v19178_v28 = vld [vmem:[%s24490_s3 + $0x12e4] ss:$16 sps:$4 sm:$0xff]  }
 0x8de   :  { %13157 = vmatpush1.bf16.msra.mxu1 %v19101_v34  ;;  %13052 = vmatprep.subr.bf16.mxu0 %v19106_v19  ;;  %v19181_v34 = vld [vmem:[%s24490_s3 + $0x12ec] ss:$16 sps:$4 sm:$0xff]   ;;  %v19176_v19 = vld [vmem:[%s24490_s3 + $0x12e0] ss:$16 sps:$4 sm:$0xff]  }
 0x8df   :  { %13158 = vmatprep.subr.bf16.mxu1 %v19109_v57  ;;  %v19179_v57 = vld [vmem:[%s24490_s3 + $0x12e8] ss:$16 sps:$4 sm:$0xff]  }
 0x8e1   :  { %13053 = vmatpush1.bf16.msra.mxu0 %v19104_v1  ;;  %v19184_v1 = vld [vmem:[%s24490_s3 + $0x1304] ss:$16 sps:$4 sm:$0xff]  }
 0x8e2   :  { %13159 = vmatpush1.bf16.msra.mxu1 %v19107_v40  ;;  %13054 = vmatprep.subr.bf16.mxu0 %v19112_v18  ;;  %v19187_v40 = vld [vmem:[%s24490_s3 + $0x130c] ss:$16 sps:$4 sm:$0xff]   ;;  %v19182_v18 = vld [vmem:[%s24490_s3 + $0x1300] ss:$16 sps:$4 sm:$0xff]  }
 0x8e3   :  { %13160 = vmatprep.subr.bf16.mxu1 %v19115_v6  ;;  %v19185_v6 = vld [vmem:[%s24490_s3 + $0x1308] ss:$16 sps:$4 sm:$0xff]  }
 0x8e5   :  { %13055 = vmatpush1.bf16.msra.mxu0 %v19110_v10  ;;  %v19190_v10 = vld [vmem:[%s24490_s3 + $0x1324] ss:$16 sps:$4 sm:$0xff]  }
 0x8e6   :  { %13161 = vmatpush1.bf16.msra.mxu1 %v19113_v42  ;;  %13056 = vmatprep.subr.bf16.mxu0 %v19118_v43  ;;  %v19193_v42 = vld [vmem:[%s24490_s3 + $0x132c] ss:$16 sps:$4 sm:$0xff]   ;;  %v19188_v43 = vld [vmem:[%s24490_s3 + $0x1320] ss:$16 sps:$4 sm:$0xff]  }
 0x8e7   :  { %13162 = vmatprep.subr.bf16.mxu1 %v19121_v45  ;;  %v19191_v45 = vld [vmem:[%s24490_s3 + $0x1328] ss:$16 sps:$4 sm:$0xff]  }
 0x8e9   :  { %13057 = vmatpush1.bf16.msra.mxu0 %v19116_v2  ;;  %v19196_v2 = vld [vmem:[%s24490_s3 + $0x1344] ss:$16 sps:$4 sm:$0xff]  }
 0x8ea   :  { %13163 = vmatpush1.bf16.msra.mxu1 %v19119_v58  ;;  %13058 = vmatprep.subr.bf16.mxu0 %v19124_v13  ;;  %v19199_v58 = vld [vmem:[%s24490_s3 + $0x134c] ss:$16 sps:$4 sm:$0xff]   ;;  %v19194_v13 = vld [vmem:[%s24490_s3 + $0x1340] ss:$16 sps:$4 sm:$0xff]  }
 0x8eb   :  { %13164 = vmatprep.subr.bf16.mxu1 %v19127_v21  ;;  %v19197_v21 = vld [vmem:[%s24490_s3 + $0x1348] ss:$16 sps:$4 sm:$0xff]  }
 0x8ed   :  { %13059 = vmatpush1.bf16.msra.mxu0 %v19122_v47  ;;  %v19202_v47 = vld [vmem:[%s24490_s3 + $0x1364] ss:$16 sps:$4 sm:$0xff]  }
 0x8ee   :  { %13165 = vmatpush1.bf16.msra.mxu1 %v19125_v56  ;;  %13060 = vmatprep.subr.bf16.mxu0 %v19130_v23  ;;  %v19205_v56 = vld [vmem:[%s24490_s3 + $0x136c] ss:$16 sps:$4 sm:$0xff]   ;;  %v19200_v23 = vld [vmem:[%s24490_s3 + $0x1360] ss:$16 sps:$4 sm:$0xff]  }
 0x8ef   :  { %13166 = vmatprep.subr.bf16.mxu1 %v19133_v24  ;;  %v19203_v24 = vld [vmem:[%s24490_s3 + $0x1368] ss:$16 sps:$4 sm:$0xff]  }
 0x8f1   :  { %13061 = vmatpush1.bf16.msra.mxu0 %v19128_v62  ;;  %v19208_v62 = vld [vmem:[%s24490_s3 + $0x1384] ss:$16 sps:$4 sm:$0xff]  }
 0x8f2   :  { %13167 = vmatpush1.bf16.msra.mxu1 %v19131_v49  ;;  %13083 = vmatprep.subr.bf16.mxu0 %v19136_v48  ;;  %v19211_v49 = vld [vmem:[%s24490_s3 + $0x138c] ss:$16 sps:$4 sm:$0xff]   ;;  %v19206_v48 = vld [vmem:[%s24490_s3 + $0x1380] ss:$16 sps:$4 sm:$0xff]  }
 0x8f3   :  { %13189 = vmatprep.subr.bf16.mxu1 %v19139_v35  ;;  %v19209_v35 = vld [vmem:[%s24490_s3 + $0x1388] ss:$16 sps:$4 sm:$0xff]  }
 0x8f4   :  { %13063 = vmatmul.mubr.bf16.vlgmr.msra.gmra.mrb[24].mxu0 %v22483_v20 }
 0x8f5   :  { %13169 = vmatmul.mubr.bf16.vlgmr.msra.gmra.mrb[24].mxu1 %v22483_v20  ;;  %13072 = vmatprep.mubr.bf16.mxu0 %v16404_v53  ;;  %v19151_v20 = vld [vmem:[%s24490_s3 + $0x124c] ss:$16 sps:$4 sm:$0xff]  }
 0x8f6   :  { %13084 = vmatpush1.bf16.msra.mxu0 %v19134_v55  ;;  %13178 = vmatprep.mubr.bf16.mxu1 %v16404_v53  ;;  %v19217_v55 = vld [vmem:[%s24490_s3 + $0x13ac] ss:$16 sps:$4 sm:$0xff]   ;;  %v19220_v53 = vld [vmem:[%s24490_s3 + $0x13c4] ss:$16 sps:$4 sm:$0xff]  }
 0x8f7   :  { %13190 = vmatpush1.bf16.msra.mxu1 %v19137_v14  ;;  %13085 = vmatprep.subr.bf16.mxu0 %v19142_v9  ;;  %v19212_v14 = vld [vmem:[%s24490_s3 + $0x13a0] ss:$16 sps:$4 sm:$0xff]   ;;  %v19223_v9 = vld [vmem:[%s24490_s3 + $0x13cc] ss:$16 sps:$4 sm:$0xff]  }
 0x8f8   :  { %13191 = vmatprep.subr.bf16.mxu1 %v19145_v33  ;;  %v19218_v33 = vld [vmem:[%s24490_s3 + $0x13c0] ss:$16 sps:$4 sm:$0xff]  }
 0x8fa   :  { %13086 = vmatpush1.bf16.msra.mxu0 %v19140_v59  ;;  %v19221_v59 = vld [vmem:[%s24490_s3 + $0x13c8] ss:$16 sps:$4 sm:$0xff]  }
 0x8fb   :  { %13192 = vmatpush1.bf16.msra.mxu1 %v19143_v63  ;;  %13087 = vmatprep.subr.bf16.mxu0 %v19148_v27  ;;  %v19226_v63 = vld [vmem:[%s24490_s3 + $0x13e4] ss:$16 sps:$4 sm:$0xff]   ;;  %v19229_v27 = vld [vmem:[%s24490_s3 + $0x13ec] ss:$16 sps:$4 sm:$0xff]  }
 0x8fc   :  { %13073 = vmatmul.mubr.bf16.gmra.mrb[28].mxu0 %v16403_v15  ;;  %13193 = vmatprep.subr.bf16.mxu1 %v19151_v20  ;;  %v19224_v20 = vld [vmem:[%s24490_s3 + $0x13e0] ss:$16 sps:$4 sm:$0xff]  }
 0x8fd   :  { %13179 = vmatmul.mubr.bf16.gmra.mrb[28].mxu1 %v16403_v15  ;;  %13115 = vmatprep.mubr.bf16.mxu0 %v16402_v7  ;;  %v19227_v15 = vld [vmem:[%s24490_s3 + $0x13e8] ss:$16 sps:$4 sm:$0xff]  }
 0x8fe   :  { %13088 = vmatpush1.bf16.msra.mxu0 %v19146_v37  ;;  %13221 = vmatprep.mubr.bf16.mxu1 %v16402_v7  ;;  %v12238_v37 = vld [vmem:[#allocation3 + $0x48] sm:$0xff]  ;;  %v19264_v7 = vld [vmem:[#allocation3 + $0x38] sm:$0xff] }
 0x8ff   :  { %13194 = vmatpush1.bf16.msra.mxu1 %v19149_v61  ;;  %13089 = vmatprep.subr.bf16.mxu0 %v19154_v38  ;;  %v16401_v61 = vcombine.low %v24168_v51, %v24170_v36  ;;  %v16406_v38 = vcombine.high %v19264_v7, %v12238_v37 }
 0x900   :  { %13195 = vmatprep.subr.bf16.mxu1 %v19157_v11  ;;  %v16405_v11 = vcombine.low %v19264_v7, %v12238_v37 }
 0x902   :  { %13090 = vmatpush1.bf16.msra.mxu0 %v19152_v22 }
 0x903   :  { %13196 = vmatpush1.bf16.msra.mxu1 %v19155_v16  ;;  %13091 = vmatprep.subr.bf16.mxu0 %v19160_v46 }
 0x904   :  { %13197 = vmatprep.subr.bf16.mxu1 %v19163_v25 }
 0x906   :  { %13092 = vmatpush1.bf16.msra.mxu0 %v19158_v52 }
 0x907   :  { %13198 = vmatpush1.bf16.msra.mxu1 %v19161_v17  ;;  %13093 = vmatprep.subr.bf16.mxu0 %v19166_v0 }
 0x908   :  { %13199 = vmatprep.subr.bf16.mxu1 %v19169_v32 }
 0x90a   :  { %13094 = vmatpush1.bf16.msra.mxu0 %v19164_v44 }
 0x90b   :  { %13200 = vmatpush1.bf16.msra.mxu1 %v19167_v29  ;;  %13095 = vmatprep.subr.bf16.mxu0 %v19172_v30 }
 0x90c   :  { %13201 = vmatprep.subr.bf16.mxu1 %v19175_v39 }
 0x90e   :  { %13096 = vmatpush1.bf16.msra.mxu0 %v19170_v26 }
 0x90f   :  { %13202 = vmatpush1.bf16.msra.mxu1 %v19173_v31  ;;  %13097 = vmatprep.subr.bf16.mxu0 %v19178_v28 }
 0x910   :  { %13203 = vmatprep.subr.bf16.mxu1 %v19181_v34 }
 0x912   :  { %13098 = vmatpush1.bf16.msra.mxu0 %v19176_v19 }
 0x913   :  { %13204 = vmatpush1.bf16.msra.mxu1 %v19179_v57  ;;  %13099 = vmatprep.subr.bf16.mxu0 %v19184_v1 }
 0x914   :  { %13205 = vmatprep.subr.bf16.mxu1 %v19187_v40 }
 0x916   :  { %13100 = vmatpush1.bf16.msra.mxu0 %v19182_v18 }
 0x917   :  { %13206 = vmatpush1.bf16.msra.mxu1 %v19185_v6  ;;  %13101 = vmatprep.subr.bf16.mxu0 %v19190_v10 }
 0x918   :  { %13207 = vmatprep.subr.bf16.mxu1 %v19193_v42 }
 0x91a   :  { %13102 = vmatpush1.bf16.msra.mxu0 %v19188_v43 }
 0x91b   :  { %13208 = vmatpush1.bf16.msra.mxu1 %v19191_v45  ;;  %13103 = vmatprep.subr.bf16.mxu0 %v19196_v2 }
 0x91c   :  { %13209 = vmatprep.subr.bf16.mxu1 %v19199_v58 }
 0x91e   :  { %13104 = vmatpush1.bf16.msra.mxu0 %v19194_v13 }
 0x91f   :  { %13210 = vmatpush1.bf16.msra.mxu1 %v19197_v21  ;;  %13105 = vmatprep.subr.bf16.mxu0 %v19202_v47 }
 0x920   :  { %13211 = vmatprep.subr.bf16.mxu1 %v19205_v56 }
 0x922   :  { %13106 = vmatpush1.bf16.msra.mxu0 %v19200_v23 }
 0x923   :  { %13212 = vmatpush1.bf16.msra.mxu1 %v19203_v24  ;;  %13107 = vmatprep.subr.bf16.mxu0 %v19208_v62 }
 0x924   :  { %13213 = vmatprep.subr.bf16.mxu1 %v19211_v49 }
 0x926   :  { %13108 = vmatpush1.bf16.msra.mxu0 %v19206_v48 }
 0x927   :  { %13214 = vmatpush1.bf16.msra.mxu1 %v19209_v35  ;;  %13109 = vmatprep.subr.bf16.mxu0 %v19214_v50 }
 0x928   :  { %13215 = vmatprep.subr.bf16.mxu1 %v19217_v55 }
 0x92a   :  { %13110 = vmatpush1.bf16.msra.mxu0 %v19212_v14 }
 0x92b   :  { %13216 = vmatpush1.bf16.msra.mxu1 %v19215_v54  ;;  %13111 = vmatprep.subr.bf16.mxu0 %v19220_v53 }
 0x92c   :  { %13217 = vmatprep.subr.bf16.mxu1 %v19223_v9 }
 0x92e   :  { %13112 = vmatpush1.bf16.msra.mxu0 %v19218_v33 }
 0x92f   :  { %13218 = vmatpush1.bf16.msra.mxu1 %v19221_v59  ;;  %13113 = vmatprep.subr.bf16.mxu0 %v19226_v63 }
 0x930   :  { %13219 = vmatprep.subr.bf16.mxu1 %v19229_v27 }
 0x932   :  { %13114 = vmatpush1.bf16.msra.mxu0 %v19224_v20 }
 0x933   :  { %13220 = vmatpush1.bf16.msra.mxu1 %v19227_v15 }
 0x935   :  { %13116 = vmatmul.mubr.bf16.vlgmr.msra.gmra.mrb[24].mxu0 %v16401_v61 }
 0x936   :  { %13222 = vmatmul.mubr.bf16.vlgmr.msra.gmra.mrb[24].mxu1 %v16401_v61  ;;  %13125 = vmatprep.mubr.bf16.mxu0 %v16406_v38 }
 0x937   :  { %13231 = vmatprep.mubr.bf16.mxu1 %v16406_v38 }
 0x93d   :  { %13126 = vmatmul.mubr.bf16.gmra.mrb[28].mxu0 %v16405_v11 }
 0x93e   :  { %13232 = vmatmul.mubr.bf16.gmra.mrb[28].mxu1 %v16405_v11  ;;  %13354 = vmatprep.mubr.f32.mxu0 %v19266_v12 }
 0x93f   :  { %13425 = vmatprep.mubr.f32.mxu1 %v19266_v12 }
 0xa08   :  { %v24334_v22 = vpop.f32.mrb[24].mxu0 }
 0xa09   :  { %v24336_v16 = vpop.f32.mrb[24].mxu1  ;;  %v24338_v46 = vpop.f32.mrb[25].mxu0  ;;  %v13432_v51 = vmul.f32 %v24334_v22, %v24334_v22 }
 0xa0a   :  { %v24342_v36 = vpop.f32.mrb[25].mxu1  ;;  %v24344_v25 = vpop.f32.mrb[26].mxu0  ;;  %v13434_v52 = vmul.f32 %v24336_v16, %v24336_v16  ;;  %v13433_v17 = vmul.f32 %v24338_v46, %v24338_v46 }
 0xa0b   :  { %v16637_v0 = vpack.c.bf16 %v24344_v25, %v24334_v22  ;;  %v13436_v32 = vmul.f32 %v24344_v25, %v24344_v25  ;;  %v24354_v44 = vpop.f32.mrb[26].mxu1  ;;  %v24356_v29 = vpop.f32.mrb[27].mxu0  ;;  %v13435_v34 = vmul.f32 %v24342_v36, %v24342_v36 }
 0xa0c   :  { %v16645_v30 = vpack.c.bf16 %v24354_v44, %v24336_v16  ;;  %v13438_v39 = vmul.f32 %v24354_v44, %v24354_v44  ;;  %v16635_v26 = vpack.c.bf16 %v24356_v29, %v24338_v46  ;;  %v13437_v31 = vmul.f32 %v24356_v29, %v24356_v29  ;;  %v24366_v28 = vpop.f32.mrb[27].mxu1 }
 0xa0d   :  { %v16653_v19 = vpack.c.bf16 %v13436_v32, %v13432_v51  ;;  %v16643_v57 = vpack.c.bf16 %v24366_v28, %v24342_v36  ;;  %v13439_v1 = vmul.f32 %v24366_v28, %v24366_v28 }
 0xa0e   :  { %v16661_v40 = vpack.c.bf16 %v13438_v39, %v13434_v52  ;;  %16636 = vmatprep.subr.bf16.mxu0 %v16635_v26  ;;  %v16651_v18 = vpack.c.bf16 %v13437_v31, %v13433_v17 }
 0xa0f   :  { %16644 = vmatprep.subr.bf16.mxu1 %v16643_v57  ;;  %16638 = vmatpush1.bf16.msra.mxu0 %v16637_v0  ;;  %v16659_v6 = vpack.c.bf16 %v13439_v1, %v13435_v34 }
 0xa10   :  { %16646 = vmatpush1.bf16.msra.mxu1 %v16645_v30  ;;  %v24374_v10 = vpop.f32.mrb[28].mxu0 }
 0xa11   :  { %v24376_v42 = vpop.f32.mrb[28].mxu1  ;;  %v24378_v43 = vpop.f32.mrb[29].mxu0  ;;  %v13440_v45 = vmul.f32 %v24374_v10, %v24374_v10 }
 0xa12   :  { %v24382_v2 = vpop.f32.mrb[29].mxu1  ;;  %v24384_v58 = vpop.f32.mrb[30].mxu0  ;;  %v13442_v13 = vmul.f32 %v24376_v42, %v24376_v42  ;;  %v13441_v21 = vmul.f32 %v24378_v43, %v24378_v43 }
 0xa13   :  { %v16641_v47 = vpack.c.bf16 %v24384_v58, %v24374_v10  ;;  %v13444_v56 = vmul.f32 %v24384_v58, %v24384_v58  ;;  %v24394_v23 = vpop.f32.mrb[30].mxu1  ;;  %v24396_v24 = vpop.f32.mrb[31].mxu0  ;;  %v13443_v55 = vmul.f32 %v24382_v2, %v24382_v2 }
 0xa14   :  { %v16649_v62 = vpack.c.bf16 %v24394_v23, %v24376_v42  ;;  %v13446_v49 = vmul.f32 %v24394_v23, %v24394_v23  ;;  %v16639_v48 = vpack.c.bf16 %v24396_v24, %v24378_v43  ;;  %v13445_v35 = vmul.f32 %v24396_v24, %v24396_v24  ;;  %v24406_v50 = vpop.f32.mrb[31].mxu1 }
 0xa15   :  { %v16657_v14 = vpack.c.bf16 %v13444_v56, %v13440_v45  ;;  %v16647_v54 = vpack.c.bf16 %v24406_v50, %v24382_v2  ;;  %v13447_v53 = vmul.f32 %v24406_v50, %v24406_v50 }
 0xa16   :  { %v16665_v9 = vpack.c.bf16 %v13446_v49, %v13442_v13  ;;  %16640 = vmatprep.subr.bf16.mxu0 %v16639_v48  ;;  %v16655_v33 = vpack.c.bf16 %v13445_v35, %v13441_v21  ;;  %v13614_v13 = vld [vmem:[%s24493_s8] sm:$0xf] }
 0xa17   :  { %16648 = vmatprep.subr.bf16.mxu1 %v16647_v54  ;;  %16642 = vmatpush1.bf16.msra.mxu0 %v16641_v47  ;;  %v16663_v59 = vpack.c.bf16 %v13447_v53, %v13443_v55  ;;  %v13619_v21 = vrot.slane %v13614_v13, %v20190_v3  ;;  %v13627_v47 = vrot.slane %v13614_v13, %v20192_v4 }
 0xa18   :  { %16650 = vmatpush1.bf16.msra.mxu1 %v16649_v62  ;;  %16652 = vmatprep.subr.bf16.mxu0 %v16651_v18  ;;  %v13623_v56 = vrot.slane %v13614_v13, %v20194_v5  ;;  %v13631_v49 = vrot.slane %v13614_v13, %v20196_v8 }
 0xa19   :  { %16660 = vmatprep.subr.bf16.mxu1 %v16659_v6 }
 0xa1a   :  { %16535 = vmatmul.mubr.msk.f32.vlgmr.msra.gmra.mrb[32].mxu0 %vm1699_vm3, %v19267_v60 }
 0xa1b   :  { %16536 = vmatmul.mubr.msk.f32.vlgmr.msra.gmra.mrb[32].mxu1 %vm1699_vm3, %v19267_v60  ;;  %16654 = vmatpush1.bf16.msra.mxu0 %v16653_v19 }
 0xa1c   :  { %16662 = vmatpush1.bf16.msra.mxu1 %v16661_v40  ;;  %16656 = vmatprep.subr.bf16.mxu0 %v16655_v33 }
 0xa1d   :  { %16664 = vmatprep.subr.bf16.mxu1 %v16663_v59  ;;  %13512 = vmatprep.mubr.f32.mxu0 %v19266_v12 }
 0xa1e   :  { %13583 = vmatprep.mubr.f32.mxu1 %v19266_v12 }
 0xa1f   :  { %16658 = vmatpush1.bf16.msra.mxu0 %v16657_v14 }
 0xa20   :  { %16666 = vmatpush1.bf16.msra.mxu1 %v16665_v9 }
 0xa22   :  { %16537 = vmatmul.mubr.msk.f32.vlgmr.msra.gmra.mrb[34].mxu0 %vm1699_vm3, %v19267_v60 }
 0xa23   :  { %16538 = vmatmul.mubr.msk.f32.vlgmr.msra.gmra.mrb[34].mxu1 %vm1699_vm3, %v19267_v60 }
 0xaed   :  { %v13356_v63 = vpop.f32.mrb[32].mxu0 }
 0xaee   :  { %v13427_v27 = vpop.f32.mrb[32].mxu1  ;;  %v13358_v20 = vpop.f32.mrb[33].mxu0  ;;  %v13590_v37 = vmul.f32 0.03125, %v13356_v63 }
 0xaef   :  { %v13429_v15 = vpop.f32.mrb[33].mxu1  ;;  %v13592_v61 = vmul.f32 0.03125, %v13427_v27  ;;  %v13591_v7 = vmul.f32 0.03125, %v13358_v20 }
 0xaf0   :  { %v13593_v38 = vmul.f32 0.03125, %v13429_v15  ;;  %v13598_v51 = vmul.f32 %v13590_v37, %v13590_v37 }
 0xaf1   :  { %v13600_v0 = vmul.f32 %v13592_v61, %v13592_v61  ;;  %v13599_v32 = vmul.f32 %v13591_v7, %v13591_v7 }
 0xaf2   :  { %v13601_v31 = vmul.f32 %v13593_v38, %v13593_v38 }
 0xaf5   :  { %v13514_v11 = vpop.f32.mrb[34].mxu0 }
 0xaf6   :  { %v13594_v52 = vmul.f32 0.03125, %v13514_v11  ;;  %v13585_v12 = vpop.f32.mrb[34].mxu1  ;;  %v13516_v17 = vpop.f32.mrb[35].mxu0 }
 0xaf7   :  { %v13596_v30 = vmul.f32 0.03125, %v13585_v12  ;;  %v13595_v39 = vmul.f32 0.03125, %v13516_v17  ;;  %v13587_v26 = vpop.f32.mrb[35].mxu1 }
 0xaf8   :  { %v13602_v60 = vsub.f32 %v13594_v52, %v13598_v51  ;;  %v13597_v34 = vmul.f32 0.03125, %v13587_v26 }
 0xaf9   :  { %v13604_v19 = vsub.f32 %v13596_v30, %v13600_v0  ;;  %v13603_v57 = vsub.f32 %v13595_v39, %v13599_v32 }
 0xafa   :  { %v13606_v1 = vadd.f32 1e-05, %v13602_v60  ;;  %v13605_v40 = vsub.f32 %v13597_v34, %v13601_v31 }
 0xafb   :  { %v13608_v18 = vadd.f32 1e-05, %v13604_v19  ;;  %v13607_v6 = vadd.f32 1e-05, %v13603_v57 }
 0xafc   :  { %19246 = vrsqrt.f32 %v13606_v1  ;;  %v13609_v45 = vadd.f32 1e-05, %v13605_v40 }
 0xafd   :  { %19248 = vrsqrt.f32 %v13608_v18 }
 0xafe   :  { %19250 = vrsqrt.f32 %v13607_v6 }
 0xaff   :  { %19252 = vrsqrt.f32 %v13609_v45 }
 0xb06   :  { %v19247_v62 = vpop.eup %19246 }
 0xb07   :  { %v19249_v48 = vpop.eup %19248  ;;  %v13636_v35 = vmul.f32 %v19247_v62, %v13619_v21 }
 0xb08   :  { %v19251_v55 = vpop.eup %19250  ;;  %v13638_v14 = vmul.f32 %v19249_v48, %v13627_v47 }
 0xb09   :  { %v19253_v54 = vpop.eup %19252  ;;  %v13641_v53 = vmul.f32 %v13636_v35, %v13590_v37  ;;  %v13678_v9 = vrot.slane %v13636_v35, %v20190_v3  ;;  %v13637_v33 = vmul.f32 %v19251_v55, %v13623_v56 }
 0xb0a   :  { %v13643_v59 = vmul.f32 %v13638_v14, %v13592_v61  ;;  %v13686_v63 = vrot.slane %v13638_v14, %v20190_v3  ;;  %v13639_v27 = vmul.f32 %v19253_v54, %v13631_v49 }
 0xb0b   :  { %v13691_v20 = vmul.f32 %v13678_v9, %v24334_v22  ;;  %v13695_v15 = vmul.f32 %v13678_v9, %v24344_v25  ;;  %v13699_v11 = vmul.f32 %v13678_v9, %v24374_v10  ;;  %v13703_v51 = vmul.f32 %v13678_v9, %v24384_v58 }
 0xb0c   :  { %v13693_v52 = vmul.f32 %v13686_v63, %v24336_v16  ;;  %v13697_v12 = vmul.f32 %v13686_v63, %v24354_v44  ;;  %v13701_v37 = vmul.f32 %v13686_v63, %v24376_v42  ;;  %v13705_v17 = vmul.f32 %v13686_v63, %v24394_v23 }
 0xb0d   :  { %v13642_v61 = vmul.f32 %v13637_v33, %v13591_v7  ;;  %v13682_v0 = vrot.slane %v13637_v33, %v20190_v3  ;;  %v13644_v32 = vmul.f32 %v13639_v27, %v13593_v38  ;;  %v13690_v22 = vrot.slane %v13639_v27, %v20190_v3 }
 0xb0f   :  { %v13649_v30 = vcombine.low %v13641_v53, %v13642_v61  ;;  %v13692_v25 = vmul.f32 %v13682_v0, %v24338_v46  ;;  %v13696_v10 = vmul.f32 %v13682_v0, %v24356_v29  ;;  %v13700_v58 = vmul.f32 %v13682_v0, %v24378_v43  ;;  %v13640_v29 = vld [vmem:[%s24494_s9] sm:$0xf] }
 0xb10   :  { %v13704_v16 = vmul.f32 %v13682_v0, %v24396_v24  ;;  %v13650_v44 = vcombine.low %v13643_v59, %v13644_v32  ;;  %v13694_v42 = vmul.f32 %v13690_v22, %v24342_v36  ;;  %v13698_v23 = vmul.f32 %v13690_v22, %v24366_v28 }
 0xb11   :  { %v13657_v7 = vrot.slane %v13649_v30, %v20204_v41  ;;  %v13702_v38 = vmul.f32 %v13690_v22, %v24382_v2  ;;  %v13706_v39 = vmul.f32 %v13690_v22, %v24406_v50 }
 0xb12   :  { %v13664_v26 = vrot.slane %v13650_v44, %v20204_v41 }
 0xb14   :  { %v13665_v46 = vcombine.low %v13657_v7, %v13664_v26 }
 0xb16   :  { %v13672_v43 = vrot.slane %v13665_v46, %v20204_v41 }
 0xb18   :  { %v13674_v24 = vsub.f32 %v13640_v29, %v13672_v43 }
 0xb1a   :  { %v13711_v36 = vrot.slane %v13674_v24, %v20190_v3  ;;  %v13715_v28 = vrot.slane %v13674_v24, %v20194_v5  ;;  %v13719_v31 = vrot.slane %v13674_v24, %v20192_v4  ;;  %v13723_v2 = vrot.slane %v13674_v24, %v20196_v8 }
 0xb1c   :  { %v13728_v60 = vadd.f32 %v13711_v36, %v13691_v20  ;;  %v13729_v50 = vadd.f32 %v13715_v28, %v13692_v25  ;;  %v13730_v34 = vadd.f32 %v13719_v31, %v13693_v52  ;;  %v13731_v19 = vadd.f32 %v13723_v2, %v13694_v42 }
 0xb1d   :  { %v13732_v57 = vadd.f32 %v13711_v36, %v13695_v15  ;;  %v13733_v1 = vadd.f32 %v13715_v28, %v13696_v10  ;;  %v13734_v40 = vadd.f32 %v13719_v31, %v13697_v12  ;;  %v13735_v18 = vadd.f32 %v13723_v2, %v13698_v23 }
 0xb1e   :  { %v13736_v6 = vadd.f32 %v13711_v36, %v13699_v11  ;;  %v13737_v45 = vadd.f32 %v13715_v28, %v13700_v58  ;;  %v13738_v41 = vadd.f32 %v13719_v31, %v13701_v37  ;;  %v13739_v13 = vadd.f32 %v13723_v2, %v13702_v38 }
 0xb1f   :  { %v13740_v21 = vadd.f32 %v13711_v36, %v13703_v51  ;;  %v13741_v3 = vadd.f32 %v13715_v28, %v13704_v16  ;;  %v13742_v47 = vadd.f32 %v13719_v31, %v13705_v17  ;;  %v13743_v5 = vadd.f32 %v13723_v2, %v13706_v39 }
 0xb20   :  { %v13744_v56 = vmax.f32 %v13728_v60, 0.0  ;;  %v13745_v4 = vmax.f32 %v13729_v50, 0.0  ;;  %v13746_v62 = vmax.f32 %v13730_v34, 0.0  ;;  %v13747_v8 = vmax.f32 %v13731_v19, 0.0 }
 0xb21   :  { %v13748_v49 = vmax.f32 %v13732_v57, 0.0  ;;  %v13749_v48 = vmax.f32 %v13733_v1, 0.0  ;;  %v13750_v35 = vmax.f32 %v13734_v40, 0.0  ;;  %v13751_v55 = vmax.f32 %v13735_v18, 0.0 }
 0xb22   :  { %v13752_v14 = vmax.f32 %v13736_v6, 0.0  ;;  %v13753_v54 = vmax.f32 %v13737_v45, 0.0  ;;  %v13754_v53 = vmax.f32 %v13738_v41, 0.0  ;;  %v13755_v9 = vmax.f32 %v13739_v13, 0.0 }
 0xb23   :  { %v13756_v33 = vmax.f32 %v13740_v21, 0.0  ;;  %v13757_v59 = vmax.f32 %v13741_v3, 0.0  ;;  %v13758_v63 = vmax.f32 %v13742_v47, 0.0  ;;  %v13759_v27 = vmax.f32 %v13743_v5, 0.0 }
 0xb24   :  { %v16563_v20 = vpack.c.bf16 %v13745_v4, %v13744_v56  ;;  %v16564_v15 = vpack.c.bf16 %v13747_v8, %v13746_v62  ;;  %v16565_v11 = vpack.c.bf16 %v13749_v48, %v13748_v49  ;;  %v16566_v51 = vpack.c.bf16 %v13751_v55, %v13750_v35 }
 0xb25   :  { %v16567_v52 = vpack.c.bf16 %v13753_v54, %v13752_v14  ;;  %v16568_v12 = vpack.c.bf16 %v13755_v9, %v13754_v53  ;;  %v16569_v37 = vpack.c.bf16 %v13757_v59, %v13756_v33  ;;  %v16570_v17 = vpack.c.bf16 %v13759_v27, %v13758_v63 }
 0xb26   :  { %13808 = vst [vmem:[%s24495_s10] sm:$0xff] %v16563_v20  ;;  %13809 = vst [vmem:[%s24495_s10 + $0x8] sm:$0xff] %v16564_v15 }
 0xb27   :  { %13810 = vst [vmem:[%s24495_s10 + $0x10] sm:$0xff] %v16565_v11  ;;  %13811 = vst [vmem:[%s24495_s10 + $0x18] sm:$0xff] %v16566_v51 }
 0xb28   :  { %13812 = vst [vmem:[%s24495_s10 + $0x20] sm:$0xff] %v16567_v52  ;;  %13813 = vst [vmem:[%s24495_s10 + $0x28] sm:$0xff] %v16568_v12 }
 0xb29   :  { %13814 = vst [vmem:[%s24495_s10 + $0x30] sm:$0xff] %v16569_v37  ;;  %13815 = vst [vmem:[%s24495_s10 + $0x38] sm:$0xff] %v16570_v17 }

</bundles_post_ra>
